<compile_context>
chip_gen: v5e
topology: v5e:2x2
jax: 0.10.0
libtpu: 0.0.40
codegen_flags: <defaults>
</compile_context>

<pallas_src>
import functools

import numpy as np

import jax
import jax.numpy as jnp
from jax.experimental import pallas as pl
from jax.experimental.pallas import tpu as pltpu


# ----------------------------------------------------------------------------
# Fused ASPP kernel: pool branch + dilated/1x1 branches + 3x3 bottleneck.
# ----------------------------------------------------------------------------
def _aspp_fused_kernel(*refs, branch_defs, H, W, Cin, C, pmax):
    """One batch element per grid step.

    refs (in order):
      x_ref                      (1, H, W, Cin)   compute dtype (bf16)
      w_ip, s_ip, b_ip           (Cin, C) bf16, (1, C) f32, (1, C) f32
      per dilated branch:        (k*k, Cin, C) bf16, (1, C) f32, (1, C) f32
      w_bn, s_bn, b_bn           (9, nb*C, C) bf16, (1, C) f32, (1, C) f32
      o_ref                      (1, H, W, C)   output dtype (f32)
      pad_ref  scratch           (H+2p, W+2p, Cin) bf16  zero-padded input
      cat_ref  scratch           (H+2, W+2, nb*C)  bf16  zero-bordered concat
    """
    nb = len(branch_defs) + 1           # +1 for the image-pool branch
    nbC = nb * C
    it = iter(refs)
    x_ref = next(it)
    w_ip_ref, s_ip_ref, b_ip_ref = next(it), next(it), next(it)
    br_refs = [(next(it), next(it), next(it)) for _ in branch_defs]
    w_bn_ref, s_bn_ref, b_bn_ref = next(it), next(it), next(it)
    o_ref = next(it)
    pad_ref = next(it)
    cat_ref = next(it)

    cdtype = cat_ref.dtype
    Wp = W + 2 * pmax
    M = H * W

    x = x_ref[0]                                           # (H, W, Cin) bf16
    x2d = x.reshape(M, Cin)

    # --- zero ONLY the borders (interiors are fully rewritten every step).
    # Done every step (not under pl.when(pid==0)) so correctness holds even if
    # the parallel batch axis is sharded across TensorCores (per-core scratch).
    if pmax > 0:
        pad_ref[pl.ds(0, pmax), :, :] = jnp.zeros((pmax, Wp, Cin), cdtype)
        pad_ref[pl.ds(pmax + H, pmax), :, :] = jnp.zeros((pmax, Wp, Cin), cdtype)
        pad_ref[pl.ds(pmax, H), pl.ds(0, pmax), :] = jnp.zeros((H, pmax, Cin), cdtype)
        pad_ref[pl.ds(pmax, H), pl.ds(pmax + W, pmax), :] = jnp.zeros((H, pmax, Cin), cdtype)
        # Stage the zero-padded input in VMEM (replaces host-side jnp.pad).
        pad_ref[pl.ds(pmax, H), pl.ds(pmax, W), :] = x
    cat_ref[pl.ds(0, 1), :, :] = jnp.zeros((1, W + 2, nbC), cdtype)
    cat_ref[pl.ds(H + 1, 1), :, :] = jnp.zeros((1, W + 2, nbC), cdtype)
    cat_ref[pl.ds(1, H), pl.ds(0, 1), :] = jnp.zeros((H, 1, nbC), cdtype)
    cat_ref[pl.ds(1, H), pl.ds(W + 1, 1), :] = jnp.zeros((H, 1, nbC), cdtype)

    outs = []

    # ---- branch 0: global avg pool -> 1x1 conv -> BN -> ReLU -> broadcast.
    # (bilinear resize of a 1x1 map is exactly a broadcast.)
    mean = jnp.sum(x2d.astype(jnp.float32), axis=0, keepdims=True) * (1.0 / M)
    yp = jnp.dot(mean.astype(cdtype), w_ip_ref[...],
                 preferred_element_type=jnp.float32)                 # (1, C)
    yp = jnp.maximum(yp * s_ip_ref[...] + b_ip_ref[...], 0.0)        # f32
    outs.append(jnp.broadcast_to(yp.astype(cdtype).reshape(1, 1, C), (H, W, C)))

    # ---- dilated / 1x1 branches.
    for b, (k, d) in enumerate(branch_defs):
        w_ref, s_ref, bias_ref = br_refs[b]
        w = w_ref[...]                                               # (k*k, Cin, C) bf16
        if k == 1:
            acc = jnp.dot(x2d, w[0], preferred_element_type=jnp.float32)
        else:
            base = pmax - d                 # conv padding is d for k=3
            acc = None
            for kj in range(k):
                # One (sublane-misaligned) W slice per kj, reused for all ki;
                # only the H + 2*d rows actually used are read.
                x_kj = pad_ref[pl.ds(base, H + 2 * d),
                               pl.ds(base + kj * d, W), :]           # (H+2d, W, Cin)
                for ki in range(k):
                    xs = x_kj[ki * d: ki * d + H]                    # (H, W, Cin)
                    part = jnp.dot(xs.reshape(M, Cin), w[ki * k + kj],
                                   preferred_element_type=jnp.float32)
                    acc = part if acc is None else acc + part
        yb = jnp.maximum(acc * s_ref[...] + bias_ref[...], 0.0)      # (M, C) f32
        outs.append(yb.astype(cdtype).reshape(H, W, C))

    # Single lane-dense store of the concatenated features into the interior.
    cat_ref[pl.ds(1, H), pl.ds(1, W), :] = jnp.concatenate(outs, axis=-1)

    # ---- bottleneck: 3x3, padding=1, contraction K = nb*C.
    w_bn = w_bn_ref[...]                                             # (9, nb*C, C) bf16
    acc = None
    for kj in range(3):
        c_kj = cat_ref[pl.ds(0, H + 2), pl.ds(kj, W), :]             # (H+2, W, nb*C)
        for ki in range(3):
            cs = c_kj[ki:ki + H].reshape(M, nbC)                     # (M, nb*C)
            part = jnp.dot(cs, w_bn[ki * 3 + kj],
                           preferred_element_type=jnp.float32)
            acc = part if acc is None else acc + part
    y = jnp.maximum(acc * s_bn_ref[...] + b_bn_ref[...], 0.0)        # f32
    o_ref[0] = y.reshape(H, W, C).astype(o_ref.dtype)


# ----------------------------------------------------------------------------
# Wrapper: one fused pallas_call over the batch.
# ----------------------------------------------------------------------------
def aspp_forward(x_nchw, params, dilations, *, compute_dtype=jnp.bfloat16):
    out_dtype = x_nchw.dtype
    x = jnp.transpose(x_nchw, (0, 2, 3, 1)).astype(compute_dtype)    # NCHW -> NHWC
    N, H, W, Cin = x.shape
    w_ip, s_ip, b_ip = params["image_pool"]
    C = w_ip.shape[-1]
    branch_defs = tuple((1 if d == 1 else 3, d) for d in dilations)
    nb = len(branch_defs) + 1
    pmax = max([0] + [d * (k // 2) for (k, d) in branch_defs])
    Hp, Wp = H + 2 * pmax, W + 2 * pmax
    w_bn, s_bn, b_bn = params["bottleneck"]               # (9, nb*C, C), (1,C), (1,C)

    args = [x, w_ip.astype(compute_dtype), s_ip, b_ip]
    in_specs = [
        pl.BlockSpec((1, H, W, Cin), lambda n: (n, 0, 0, 0)),
        pl.BlockSpec(w_ip.shape, lambda n: (0, 0)),
        pl.BlockSpec((1, C), lambda n: (0, 0)),
        pl.BlockSpec((1, C), lambda n: (0, 0)),
    ]
    for (w, s, b) in params["aspp"]:
        args += [w.astype(compute_dtype), s, b]
        in_specs += [
            pl.BlockSpec(w.shape, lambda n: (0, 0, 0)),
            pl.BlockSpec((1, C), lambda n: (0, 0)),
            pl.BlockSpec((1, C), lambda n: (0, 0)),
        ]
    args += [w_bn.astype(compute_dtype), s_bn, b_bn]
    in_specs += [
        pl.BlockSpec(w_bn.shape, lambda n: (0, 0, 0)),
        pl.BlockSpec((1, C), lambda n: (0, 0)),
        pl.BlockSpec((1, C), lambda n: (0, 0)),
    ]

    cbytes = np.dtype(compute_dtype).itemsize
    obytes = np.dtype(out_dtype).itemsize

    # Advisory cost estimate for XLA scheduling around the custom call.
    flops = 2 * N * H * W * Cin * C * sum(k * k for (k, _) in branch_defs)
    flops += 2 * N * Cin * C                                 # pooled 1x1 conv
    flops += 2 * N * H * W * (nb * C) * C * 9                # fused bottleneck
    weight_bytes = sum(int(a.size) * a.dtype.itemsize for a in args[1:])
    bytes_accessed = int(N * H * W * Cin * cbytes + N * H * W * C * obytes
                         + weight_bytes)

    # Explicit VMEM budget: 2x double-buffered blocks + weights + scratches,
    # with 2x headroom (capped well below any generation's physical VMEM).
    block_bytes = H * W * Cin * cbytes + H * W * C * obytes
    scratch_bytes = (Hp * Wp * Cin + (H + 2) * (W + 2) * nb * C) * cbytes
    vmem_limit = int(min(100 << 20,
                         max(32 << 20,
                             2 * (2 * block_bytes + 2 * weight_bytes + scratch_bytes))))

    kernel = functools.partial(
        _aspp_fused_kernel, branch_defs=branch_defs,
        H=H, W=W, Cin=Cin, C=C, pmax=pmax)

    grid_spec = pltpu.PrefetchScalarGridSpec(
        num_scalar_prefetch=0,
        grid=(N,),
        in_specs=in_specs,
        out_specs=pl.BlockSpec((1, H, W, C), lambda n: (n, 0, 0, 0)),
        scratch_shapes=[
            pltpu.VMEM((Hp, Wp, Cin), compute_dtype),          # padded input
            pltpu.VMEM((H + 2, W + 2, nb * C), compute_dtype), # padded concat
        ],
    )
    out = pl.pallas_call(
        kernel,
        out_shape=jax.ShapeDtypeStruct((N, H, W, C), out_dtype),
        grid_spec=grid_spec,
        compiler_params=pltpu.CompilerParams(
            dimension_semantics=("parallel",),
            vmem_limit_bytes=vmem_limit),
        cost_estimate=pl.CostEstimate(
            flops=flops, transcendentals=0, bytes_accessed=bytes_accessed),
    )(*args)
    return jnp.transpose(out, (0, 3, 1, 2))                  # NHWC -> NCHW


# ----------------------------------------------------------------------------
# Parameter construction (deterministic, synthetic) with folded BatchNorm.
# ----------------------------------------------------------------------------
def _fold_bn(gamma, beta, rmean, rvar, eps=1e-5):
    scale = gamma / jnp.sqrt(rvar + eps)
    bias = beta - rmean * scale
    return scale.reshape(1, -1), bias.reshape(1, -1)


def _make_conv_params(key, cin, cout, k):
    kw, kg, kb, km, kv = jax.random.split(key, 5)
    # PyTorch conv weight (Cout, Cin, k, k) -> tap-major (k*k, Cin, Cout).
    w_pt = 0.1 * jax.random.normal(kw, (cout, cin, k, k), jnp.float32)
    w = jnp.transpose(w_pt, (2, 3, 1, 0)).reshape(k * k, cin, cout)
    gamma = 1.0 + 0.1 * jax.random.normal(kg, (cout,), jnp.float32)
    beta = 0.1 * jax.random.normal(kb, (cout,), jnp.float32)
    rmean = 0.05 * jax.random.normal(km, (cout,), jnp.float32)
    rvar = 1.0 + 0.1 * jnp.abs(jax.random.normal(kv, (cout,), jnp.float32))
    scale, bias = _fold_bn(gamma, beta, rmean, rvar)
    return w, scale, bias


def make_aspp_params(key, dilations, in_channels, channels):
    nb = len(dilations) + 1
    keys = jax.random.split(key, len(dilations) + 2)
    params = {}
    # image_pool 1x1 conv, stored as (Cin, Cout)
    w, s, b = _make_conv_params(keys[0], in_channels, channels, 1)
    params["image_pool"] = (w.reshape(in_channels, channels), s, b)
    # dilated / 1x1 branches
    params["aspp"] = []
    for i, d in enumerate(dilations):
        k = 1 if d == 1 else 3
        params["aspp"].append(_make_conv_params(keys[1 + i], in_channels, channels, k))
    # bottleneck 3x3 over nb*channels inputs, stored tap-major (9, nb*C, C)
    w, s, b = _make_conv_params(keys[-1], nb * channels, channels, 3)
    params["bottleneck"] = (w, s, b)
    return params


# ----------------------------------------------------------------------------
# Pure-JAX reference (lax conv) with matching bf16-operand / f32-accumulate
# quantization, for a tight correctness check.
# ----------------------------------------------------------------------------
def aspp_reference(x_nchw, params, dilations, compute_dtype=jnp.bfloat16):
    x = jnp.transpose(x_nchw, (0, 2, 3, 1)).astype(compute_dtype)
    N, H, W, _ = x.shape

    def conv_bn_relu(inp, w_flat, s, b, k, d):
        cin = inp.shape[-1]
        cout = w_flat.shape[-1]
        wk = w_flat.reshape(k, k, cin, cout).astype(compute_dtype)
        p = 0 if k == 1 else d
        y = jax.lax.conv_general_dilated(
            inp, wk, window_strides=(1, 1), padding=[(p, p), (p, p)],
            rhs_dilation=(d, d), dimension_numbers=("NHWC", "HWIO", "NHWC"),
            preferred_element_type=jnp.float32)
        return jnp.maximum(y * s.reshape(1, 1, 1, -1) + b.reshape(1, 1, 1, -1), 0.0)

    w_ip, s_ip, b_ip = params["image_pool"]
    mean = jnp.mean(x.astype(jnp.float32), axis=(1, 2))               # (N, Cin) f32
    yp = jnp.dot(mean.astype(compute_dtype), w_ip.astype(compute_dtype),
                 preferred_element_type=jnp.float32)
    yp = jnp.maximum(yp * s_ip + b_ip, 0.0)                           # (N, C) f32
    C = yp.shape[-1]
    outs = [jnp.broadcast_to(yp.astype(compute_dtype)[:, None, None, :], (N, H, W, C))]
    for d, (w, s, b) in zip(dilations, params["aspp"]):
        k = 1 if d == 1 else 3
        outs.append(conv_bn_relu(x, w, s, b, k, d).astype(compute_dtype))
    cat = jnp.concatenate(outs, axis=-1)
    w_bn, s_bn, b_bn = params["bottleneck"]                           # (9, nb*C, C)
    y = conv_bn_relu(cat, w_bn, s_bn, b_bn, 3, 1)
    return jnp.transpose(y, (0, 3, 1, 2)).astype(x_nchw.dtype)


# ----------------------------------------------------------------------------
if __name__ == "__main__":
    dilations = (1, 2, 3)
    in_channels = 4
    channels = 8
    N, H, W = 2, 16, 16

    key = jax.random.PRNGKey(0)
    kx, kp = jax.random.split(key)
    x = jax.random.normal(kx, (N, in_channels, H, W), jnp.float32)   # NCHW input
    params = make_aspp_params(kp, dilations, in_channels, channels)

    out = aspp_forward(x, params, dilations)
    out = jax.block_until_ready(out)

    assert out.shape == (N, channels, H, W), out.shape
    assert bool(jnp.all(jnp.isfinite(out)))

    ref = aspp_reference(x, params, dilations)
    max_err = float(jnp.max(jnp.abs(out - ref)))
    assert max_err < 2e-2, f"max abs err vs reference: {max_err}"

    print("KERNEL_OK")
</pallas_src>

<mosaic_0001>
module attributes {stable_mosaic.version = 11 : i64} {
  func.func @_aspp_fused_kernel(%arg0: i32, %arg1: memref<1x16x16x4xbf16, #tpu.memory_space<vmem>>, %arg2: memref<4x8xbf16, #tpu.memory_space<vmem>>, %arg3: memref<1x8xf32, #tpu.memory_space<vmem>>, %arg4: memref<1x8xf32, #tpu.memory_space<vmem>>, %arg5: memref<1x4x8xbf16, #tpu.memory_space<vmem>>, %arg6: memref<1x8xf32, #tpu.memory_space<vmem>>, %arg7: memref<1x8xf32, #tpu.memory_space<vmem>>, %arg8: memref<9x4x8xbf16, #tpu.memory_space<vmem>>, %arg9: memref<1x8xf32, #tpu.memory_space<vmem>>, %arg10: memref<1x8xf32, #tpu.memory_space<vmem>>, %arg11: memref<9x4x8xbf16, #tpu.memory_space<vmem>>, %arg12: memref<1x8xf32, #tpu.memory_space<vmem>>, %arg13: memref<1x8xf32, #tpu.memory_space<vmem>>, %arg14: memref<9x32x8xbf16, #tpu.memory_space<vmem>>, %arg15: memref<1x8xf32, #tpu.memory_space<vmem>>, %arg16: memref<1x8xf32, #tpu.memory_space<vmem>>, %arg17: memref<1x16x16x8xf32, #tpu.memory_space<vmem>>, %arg18: memref<22x22x4xbf16, #tpu.memory_space<vmem>>, %arg19: memref<18x18x32xbf16, #tpu.memory_space<vmem>>) attributes {dimension_semantics = [#tpu.dimension_semantics<parallel>], iteration_bounds = array<i64: 2>, scalar_prefetch = 0 : i64, scratch_operands = 2 : i64, tpu.core_type = #tpu.core_type<tc>, window_params = [{transform_indices = @transform_0, window_bounds = array<i64: 1, 16, 16, 4>}, {pipeline_mode = #tpu.pipeline_mode<synchronous>, transform_indices = @transform_1, window_bounds = array<i64: 4, 8>}, {pipeline_mode = #tpu.pipeline_mode<synchronous>, transform_indices = @transform_2, window_bounds = array<i64: 1, 8>}, {pipeline_mode = #tpu.pipeline_mode<synchronous>, transform_indices = @transform_3, window_bounds = array<i64: 1, 8>}, {pipeline_mode = #tpu.pipeline_mode<synchronous>, transform_indices = @transform_4, window_bounds = array<i64: 1, 4, 8>}, {pipeline_mode = #tpu.pipeline_mode<synchronous>, transform_indices = @transform_5, window_bounds = array<i64: 1, 8>}, {pipeline_mode = #tpu.pipeline_mode<synchronous>, transform_indices = @transform_6, window_bounds = array<i64: 1, 8>}, {pipeline_mode = #tpu.pipeline_mode<synchronous>, transform_indices = @transform_7, window_bounds = array<i64: 9, 4, 8>}, {pipeline_mode = #tpu.pipeline_mode<synchronous>, transform_indices = @transform_8, window_bounds = array<i64: 1, 8>}, {pipeline_mode = #tpu.pipeline_mode<synchronous>, transform_indices = @transform_9, window_bounds = array<i64: 1, 8>}, {pipeline_mode = #tpu.pipeline_mode<synchronous>, transform_indices = @transform_10, window_bounds = array<i64: 9, 4, 8>}, {pipeline_mode = #tpu.pipeline_mode<synchronous>, transform_indices = @transform_11, window_bounds = array<i64: 1, 8>}, {pipeline_mode = #tpu.pipeline_mode<synchronous>, transform_indices = @transform_12, window_bounds = array<i64: 1, 8>}, {pipeline_mode = #tpu.pipeline_mode<synchronous>, transform_indices = @transform_13, window_bounds = array<i64: 9, 32, 8>}, {pipeline_mode = #tpu.pipeline_mode<synchronous>, transform_indices = @transform_14, window_bounds = array<i64: 1, 8>}, {pipeline_mode = #tpu.pipeline_mode<synchronous>, transform_indices = @transform_15, window_bounds = array<i64: 1, 8>}, {transform_indices = @transform_16, window_bounds = array<i64: 1, 16, 16, 8>}]} {
    %c0 = arith.constant 0 : index
    %c0_0 = arith.constant 0 : index
    %c0_1 = arith.constant 0 : index
    %c0_2 = arith.constant 0 : index
    %0 = vector.load %arg1[%c0, %c0_0, %c0_1, %c0_2] : memref<1x16x16x4xbf16, #tpu.memory_space<vmem>>, vector<1x16x16x4xbf16>
    %1 = vector.shape_cast %0 : vector<1x16x16x4xbf16> to vector<16x16x4xbf16>
    %2 = vector.shape_cast %1 : vector<16x16x4xbf16> to vector<256x4xbf16>
    %cst = arith.constant 0.000000e+00 : bf16
    %3 = vector.broadcast %cst : bf16 to vector<3x22x4xbf16>
    %c0_3 = arith.constant 0 : index
    %c0_4 = arith.constant 0 : index
    %c0_5 = arith.constant 0 : index
    %4 = vector.load %arg18[%c0_3, %c0_4, %c0_5] : memref<22x22x4xbf16, #tpu.memory_space<vmem>>, vector<3x22x4xbf16>
    tpu.vector_store %arg18[%c0_3, %c0_4, %c0_5], %3 {strides = array<i32>} : memref<22x22x4xbf16, #tpu.memory_space<vmem>>, vector<3x22x4xbf16>,
    %cst_6 = arith.constant 0.000000e+00 : bf16
    %5 = vector.broadcast %cst_6 : bf16 to vector<3x22x4xbf16>
    %c19 = arith.constant 19 : index
    %c0_7 = arith.constant 0 : index
    %c0_8 = arith.constant 0 : index
    %6 = vector.load %arg18[%c19, %c0_7, %c0_8] : memref<22x22x4xbf16, #tpu.memory_space<vmem>>, vector<3x22x4xbf16>
    tpu.vector_store %arg18[%c19, %c0_7, %c0_8], %5 {strides = array<i32>} : memref<22x22x4xbf16, #tpu.memory_space<vmem>>, vector<3x22x4xbf16>,
    %cst_9 = arith.constant 0.000000e+00 : bf16
    %7 = vector.broadcast %cst_9 : bf16 to vector<16x3x4xbf16>
    %c3 = arith.constant 3 : index
    %c0_10 = arith.constant 0 : index
    %c0_11 = arith.constant 0 : index
    %8 = vector.load %arg18[%c3, %c0_10, %c0_11] : memref<22x22x4xbf16, #tpu.memory_space<vmem>>, vector<16x3x4xbf16>
    tpu.vector_store %arg18[%c3, %c0_10, %c0_11], %7 {strides = array<i32>} : memref<22x22x4xbf16, #tpu.memory_space<vmem>>, vector<16x3x4xbf16>,
    %cst_12 = arith.constant 0.000000e+00 : bf16
    %9 = vector.broadcast %cst_12 : bf16 to vector<16x3x4xbf16>
    %c3_13 = arith.constant 3 : index
    %c19_14 = arith.constant 19 : index
    %c0_15 = arith.constant 0 : index
    %10 = vector.load %arg18[%c3_13, %c19_14, %c0_15] : memref<22x22x4xbf16, #tpu.memory_space<vmem>>, vector<16x3x4xbf16>
    tpu.vector_store %arg18[%c3_13, %c19_14, %c0_15], %9 {strides = array<i32>} : memref<22x22x4xbf16, #tpu.memory_space<vmem>>, vector<16x3x4xbf16>,
    %c3_16 = arith.constant 3 : index
    %c3_17 = arith.constant 3 : index
    %c0_18 = arith.constant 0 : index
    %11 = vector.load %arg18[%c3_16, %c3_17, %c0_18] : memref<22x22x4xbf16, #tpu.memory_space<vmem>>, vector<16x16x4xbf16>
    tpu.vector_store %arg18[%c3_16, %c3_17, %c0_18], %1 {strides = array<i32>} : memref<22x22x4xbf16, #tpu.memory_space<vmem>>, vector<16x16x4xbf16>,
    %cst_19 = arith.constant 0.000000e+00 : bf16
    %12 = vector.broadcast %cst_19 : bf16 to vector<1x18x32xbf16>
    %c0_20 = arith.constant 0 : index
    %c0_21 = arith.constant 0 : index
    %c0_22 = arith.constant 0 : index
    %13 = vector.load %arg19[%c0_20, %c0_21, %c0_22] : memref<18x18x32xbf16, #tpu.memory_space<vmem>>, vector<1x18x32xbf16>
    tpu.vector_store %arg19[%c0_20, %c0_21, %c0_22], %12 {strides = array<i32>} : memref<18x18x32xbf16, #tpu.memory_space<vmem>>, vector<1x18x32xbf16>,
    %cst_23 = arith.constant 0.000000e+00 : bf16
    %14 = vector.broadcast %cst_23 : bf16 to vector<1x18x32xbf16>
    %c17 = arith.constant 17 : index
    %c0_24 = arith.constant 0 : index
    %c0_25 = arith.constant 0 : index
    %15 = vector.load %arg19[%c17, %c0_24, %c0_25] : memref<18x18x32xbf16, #tpu.memory_space<vmem>>, vector<1x18x32xbf16>
    tpu.vector_store %arg19[%c17, %c0_24, %c0_25], %14 {strides = array<i32>} : memref<18x18x32xbf16, #tpu.memory_space<vmem>>, vector<1x18x32xbf16>,
    %cst_26 = arith.constant 0.000000e+00 : bf16
    %16 = vector.broadcast %cst_26 : bf16 to vector<16x1x32xbf16>
    %c1 = arith.constant 1 : index
    %c0_27 = arith.constant 0 : index
    %c0_28 = arith.constant 0 : index
    %17 = vector.load %arg19[%c1, %c0_27, %c0_28] : memref<18x18x32xbf16, #tpu.memory_space<vmem>>, vector<16x1x32xbf16>
    tpu.vector_store %arg19[%c1, %c0_27, %c0_28], %16 {strides = array<i32>} : memref<18x18x32xbf16, #tpu.memory_space<vmem>>, vector<16x1x32xbf16>,
    %cst_29 = arith.constant 0.000000e+00 : bf16
    %18 = vector.broadcast %cst_29 : bf16 to vector<16x1x32xbf16>
    %c1_30 = arith.constant 1 : index
    %c17_31 = arith.constant 17 : index
    %c0_32 = arith.constant 0 : index
    %19 = vector.load %arg19[%c1_30, %c17_31, %c0_32] : memref<18x18x32xbf16, #tpu.memory_space<vmem>>, vector<16x1x32xbf16>
    tpu.vector_store %arg19[%c1_30, %c17_31, %c0_32], %18 {strides = array<i32>} : memref<18x18x32xbf16, #tpu.memory_space<vmem>>, vector<16x1x32xbf16>,
    %20 = arith.extf %2 : vector<256x4xbf16> to vector<256x4xf32>
    %cst_33 = arith.constant dense<0.000000e+00> : vector<4xf32>
    %21 = vector.multi_reduction <add>, %20, %cst_33 [0] : vector<256x4xf32> to vector<4xf32>
    %22 = vector.shape_cast %21 : vector<4xf32> to vector<1x4xf32>
    %cst_34 = arith.constant 3.906250e-03 : f32
    %23 = vector.broadcast %cst_34 : f32 to vector<1x4xf32>
    %24 = arith.mulf %22, %23 : vector<1x4xf32>
    %25 = arith.truncf %24 : vector<1x4xf32> to vector<1x4xbf16>
    %c0_35 = arith.constant 0 : index
    %c0_36 = arith.constant 0 : index
    %26 = vector.load %arg2[%c0_35, %c0_36] : memref<4x8xbf16, #tpu.memory_space<vmem>>, vector<4x8xbf16>
    %cst_37 = arith.constant dense<0.000000e+00> : vector<1x8xf32>
    %27 = tpu.matmul %25, %26, %cst_37 {dimension_numbers = #tpu.dot_dimension_numbers<[1], [0], [0], [1], [0, 0, 1, 1], [], []>} : vector<1x4xbf16>, vector<4x8xbf16>, vector<1x8xf32> -> vector<1x8xf32>
    %c0_38 = arith.constant 0 : index
    %c0_39 = arith.constant 0 : index
    %28 = vector.load %arg3[%c0_38, %c0_39] : memref<1x8xf32, #tpu.memory_space<vmem>>, vector<1x8xf32>
    %29 = arith.mulf %27, %28 : vector<1x8xf32>
    %c0_40 = arith.constant 0 : index
    %c0_41 = arith.constant 0 : index
    %30 = vector.load %arg4[%c0_40, %c0_41] : memref<1x8xf32, #tpu.memory_space<vmem>>, vector<1x8xf32>
    %31 = arith.addf %29, %30 : vector<1x8xf32>
    %cst_42 = arith.constant 0.000000e+00 : f32
    %32 = vector.broadcast %cst_42 : f32 to vector<1x8xf32>
    %33 = arith.maximumf %31, %32 : vector<1x8xf32>
    %34 = arith.truncf %33 : vector<1x8xf32> to vector<1x8xbf16>
    %35 = vector.shape_cast %34 : vector<1x8xbf16> to vector<1x1x8xbf16>
    %36 = vector.shape_cast %35 : vector<1x1x8xbf16> to vector<1x1x8xbf16>
    %37 = vector.broadcast %36 : vector<1x1x8xbf16> to vector<16x16x8xbf16>
    %c0_43 = arith.constant 0 : index
    %c0_44 = arith.constant 0 : index
    %c0_45 = arith.constant 0 : index
    %38 = vector.load %arg5[%c0_43, %c0_44, %c0_45] : memref<1x4x8xbf16, #tpu.memory_space<vmem>>, vector<1x4x8xbf16>
    %39 = vector.shape_cast %38 : vector<1x4x8xbf16> to vector<4x8xbf16>
    %cst_46 = arith.constant dense<0.000000e+00> : vector<256x8xf32>
    %40 = tpu.matmul %2, %39, %cst_46 {dimension_numbers = #tpu.dot_dimension_numbers<[1], [0], [0], [1], [0, 0, 1, 1], [], []>} : vector<256x4xbf16>, vector<4x8xbf16>, vector<256x8xf32> -> vector<256x8xf32>
    %c0_47 = arith.constant 0 : index
    %c0_48 = arith.constant 0 : index
    %41 = vector.load %arg6[%c0_47, %c0_48] : memref<1x8xf32, #tpu.memory_space<vmem>>, vector<1x8xf32>
    %42 = vector.broadcast %41 : vector<1x8xf32> to vector<256x8xf32>
    %43 = arith.mulf %40, %42 : vector<256x8xf32>
    %c0_49 = arith.constant 0 : index
    %c0_50 = arith.constant 0 : index
    %44 = vector.load %arg7[%c0_49, %c0_50] : memref<1x8xf32, #tpu.memory_space<vmem>>, vector<1x8xf32>
    %45 = vector.broadcast %44 : vector<1x8xf32> to vector<256x8xf32>
    %46 = arith.addf %43, %45 : vector<256x8xf32>
    %cst_51 = arith.constant 0.000000e+00 : f32
    %47 = vector.broadcast %cst_51 : f32 to vector<256x8xf32>
    %48 = arith.maximumf %46, %47 : vector<256x8xf32>
    %49 = arith.truncf %48 : vector<256x8xf32> to vector<256x8xbf16>
    %50 = vector.shape_cast %49 : vector<256x8xbf16> to vector<16x16x8xbf16>
    %c0_52 = arith.constant 0 : index
    %c0_53 = arith.constant 0 : index
    %c0_54 = arith.constant 0 : index
    %51 = vector.load %arg8[%c0_52, %c0_53, %c0_54] : memref<9x4x8xbf16, #tpu.memory_space<vmem>>, vector<9x4x8xbf16>
    %c1_55 = arith.constant 1 : index
    %c1_56 = arith.constant 1 : index
    %c0_57 = arith.constant 0 : index
    %52 = vector.load %arg18[%c1_55, %c1_56, %c0_57] : memref<22x22x4xbf16, #tpu.memory_space<vmem>>, vector<20x16x4xbf16>
    %53 = vector.extract_strided_slice %52 {offsets = [0, 0, 0], sizes = [16, 16, 4], strides = [1, 1, 1]} : vector<20x16x4xbf16> to vector<16x16x4xbf16>
    %54 = vector.shape_cast %53 : vector<16x16x4xbf16> to vector<256x4xbf16>
    %55 = vector.extract_strided_slice %51 {offsets = [0, 0, 0], sizes = [1, 4, 8], strides = [1, 1, 1]} : vector<9x4x8xbf16> to vector<1x4x8xbf16>
    %56 = vector.shape_cast %55 : vector<1x4x8xbf16> to vector<4x8xbf16>
    %cst_58 = arith.constant dense<0.000000e+00> : vector<256x8xf32>
    %57 = tpu.matmul %54, %56, %cst_58 {dimension_numbers = #tpu.dot_dimension_numbers<[1], [0], [0], [1], [0, 0, 1, 1], [], []>} : vector<256x4xbf16>, vector<4x8xbf16>, vector<256x8xf32> -> vector<256x8xf32>
    %58 = vector.extract_strided_slice %52 {offsets = [2, 0, 0], sizes = [16, 16, 4], strides = [1, 1, 1]} : vector<20x16x4xbf16> to vector<16x16x4xbf16>
    %59 = vector.shape_cast %58 : vector<16x16x4xbf16> to vector<256x4xbf16>
    %60 = vector.extract_strided_slice %51 {offsets = [3, 0, 0], sizes = [1, 4, 8], strides = [1, 1, 1]} : vector<9x4x8xbf16> to vector<1x4x8xbf16>
    %61 = vector.shape_cast %60 : vector<1x4x8xbf16> to vector<4x8xbf16>
    %cst_59 = arith.constant dense<0.000000e+00> : vector<256x8xf32>
    %62 = tpu.matmul %59, %61, %cst_59 {dimension_numbers = #tpu.dot_dimension_numbers<[1], [0], [0], [1], [0, 0, 1, 1], [], []>} : vector<256x4xbf16>, vector<4x8xbf16>, vector<256x8xf32> -> vector<256x8xf32>
    %63 = arith.addf %57, %62 : vector<256x8xf32>
    %64 = vector.extract_strided_slice %52 {offsets = [4, 0, 0], sizes = [16, 16, 4], strides = [1, 1, 1]} : vector<20x16x4xbf16> to vector<16x16x4xbf16>
    %65 = vector.shape_cast %64 : vector<16x16x4xbf16> to vector<256x4xbf16>
    %66 = vector.extract_strided_slice %51 {offsets = [6, 0, 0], sizes = [1, 4, 8], strides = [1, 1, 1]} : vector<9x4x8xbf16> to vector<1x4x8xbf16>
    %67 = vector.shape_cast %66 : vector<1x4x8xbf16> to vector<4x8xbf16>
    %cst_60 = arith.constant dense<0.000000e+00> : vector<256x8xf32>
    %68 = tpu.matmul %65, %67, %cst_60 {dimension_numbers = #tpu.dot_dimension_numbers<[1], [0], [0], [1], [0, 0, 1, 1], [], []>} : vector<256x4xbf16>, vector<4x8xbf16>, vector<256x8xf32> -> vector<256x8xf32>
    %69 = arith.addf %63, %68 : vector<256x8xf32>
    %c1_61 = arith.constant 1 : index
    %c3_62 = arith.constant 3 : index
    %c0_63 = arith.constant 0 : index
    %70 = vector.load %arg18[%c1_61, %c3_62, %c0_63] : memref<22x22x4xbf16, #tpu.memory_space<vmem>>, vector<20x16x4xbf16>
    %71 = vector.extract_strided_slice %70 {offsets = [0, 0, 0], sizes = [16, 16, 4], strides = [1, 1, 1]} : vector<20x16x4xbf16> to vector<16x16x4xbf16>
    %72 = vector.shape_cast %71 : vector<16x16x4xbf16> to vector<256x4xbf16>
    %73 = vector.extract_strided_slice %51 {offsets = [1, 0, 0], sizes = [1, 4, 8], strides = [1, 1, 1]} : vector<9x4x8xbf16> to vector<1x4x8xbf16>
    %74 = vector.shape_cast %73 : vector<1x4x8xbf16> to vector<4x8xbf16>
    %cst_64 = arith.constant dense<0.000000e+00> : vector<256x8xf32>
    %75 = tpu.matmul %72, %74, %cst_64 {dimension_numbers = #tpu.dot_dimension_numbers<[1], [0], [0], [1], [0, 0, 1, 1], [], []>} : vector<256x4xbf16>, vector<4x8xbf16>, vector<256x8xf32> -> vector<256x8xf32>
    %76 = arith.addf %69, %75 : vector<256x8xf32>
    %77 = vector.extract_strided_slice %70 {offsets = [2, 0, 0], sizes = [16, 16, 4], strides = [1, 1, 1]} : vector<20x16x4xbf16> to vector<16x16x4xbf16>
    %78 = vector.shape_cast %77 : vector<16x16x4xbf16> to vector<256x4xbf16>
    %79 = vector.extract_strided_slice %51 {offsets = [4, 0, 0], sizes = [1, 4, 8], strides = [1, 1, 1]} : vector<9x4x8xbf16> to vector<1x4x8xbf16>
    %80 = vector.shape_cast %79 : vector<1x4x8xbf16> to vector<4x8xbf16>
    %cst_65 = arith.constant dense<0.000000e+00> : vector<256x8xf32>
    %81 = tpu.matmul %78, %80, %cst_65 {dimension_numbers = #tpu.dot_dimension_numbers<[1], [0], [0], [1], [0, 0, 1, 1], [], []>} : vector<256x4xbf16>, vector<4x8xbf16>, vector<256x8xf32> -> vector<256x8xf32>
    %82 = arith.addf %76, %81 : vector<256x8xf32>
    %83 = vector.extract_strided_slice %70 {offsets = [4, 0, 0], sizes = [16, 16, 4], strides = [1, 1, 1]} : vector<20x16x4xbf16> to vector<16x16x4xbf16>
    %84 = vector.shape_cast %83 : vector<16x16x4xbf16> to vector<256x4xbf16>
    %85 = vector.extract_strided_slice %51 {offsets = [7, 0, 0], sizes = [1, 4, 8], strides = [1, 1, 1]} : vector<9x4x8xbf16> to vector<1x4x8xbf16>
    %86 = vector.shape_cast %85 : vector<1x4x8xbf16> to vector<4x8xbf16>
    %cst_66 = arith.constant dense<0.000000e+00> : vector<256x8xf32>
    %87 = tpu.matmul %84, %86, %cst_66 {dimension_numbers = #tpu.dot_dimension_numbers<[1], [0], [0], [1], [0, 0, 1, 1], [], []>} : vector<256x4xbf16>, vector<4x8xbf16>, vector<256x8xf32> -> vector<256x8xf32>
    %88 = arith.addf %82, %87 : vector<256x8xf32>
    %c1_67 = arith.constant 1 : index
    %c5 = arith.constant 5 : index
    %c0_68 = arith.constant 0 : index
    %89 = vector.load %arg18[%c1_67, %c5, %c0_68] : memref<22x22x4xbf16, #tpu.memory_space<vmem>>, vector<20x16x4xbf16>
    %90 = vector.extract_strided_slice %89 {offsets = [0, 0, 0], sizes = [16, 16, 4], strides = [1, 1, 1]} : vector<20x16x4xbf16> to vector<16x16x4xbf16>
    %91 = vector.shape_cast %90 : vector<16x16x4xbf16> to vector<256x4xbf16>
    %92 = vector.extract_strided_slice %51 {offsets = [2, 0, 0], sizes = [1, 4, 8], strides = [1, 1, 1]} : vector<9x4x8xbf16> to vector<1x4x8xbf16>
    %93 = vector.shape_cast %92 : vector<1x4x8xbf16> to vector<4x8xbf16>
    %cst_69 = arith.constant dense<0.000000e+00> : vector<256x8xf32>
    %94 = tpu.matmul %91, %93, %cst_69 {dimension_numbers = #tpu.dot_dimension_numbers<[1], [0], [0], [1], [0, 0, 1, 1], [], []>} : vector<256x4xbf16>, vector<4x8xbf16>, vector<256x8xf32> -> vector<256x8xf32>
    %95 = arith.addf %88, %94 : vector<256x8xf32>
    %96 = vector.extract_strided_slice %89 {offsets = [2, 0, 0], sizes = [16, 16, 4], strides = [1, 1, 1]} : vector<20x16x4xbf16> to vector<16x16x4xbf16>
    %97 = vector.shape_cast %96 : vector<16x16x4xbf16> to vector<256x4xbf16>
    %98 = vector.extract_strided_slice %51 {offsets = [5, 0, 0], sizes = [1, 4, 8], strides = [1, 1, 1]} : vector<9x4x8xbf16> to vector<1x4x8xbf16>
    %99 = vector.shape_cast %98 : vector<1x4x8xbf16> to vector<4x8xbf16>
    %cst_70 = arith.constant dense<0.000000e+00> : vector<256x8xf32>
    %100 = tpu.matmul %97, %99, %cst_70 {dimension_numbers = #tpu.dot_dimension_numbers<[1], [0], [0], [1], [0, 0, 1, 1], [], []>} : vector<256x4xbf16>, vector<4x8xbf16>, vector<256x8xf32> -> vector<256x8xf32>
    %101 = arith.addf %95, %100 : vector<256x8xf32>
    %102 = vector.extract_strided_slice %89 {offsets = [4, 0, 0], sizes = [16, 16, 4], strides = [1, 1, 1]} : vector<20x16x4xbf16> to vector<16x16x4xbf16>
    %103 = vector.shape_cast %102 : vector<16x16x4xbf16> to vector<256x4xbf16>
    %104 = vector.extract_strided_slice %51 {offsets = [8, 0, 0], sizes = [1, 4, 8], strides = [1, 1, 1]} : vector<9x4x8xbf16> to vector<1x4x8xbf16>
    %105 = vector.shape_cast %104 : vector<1x4x8xbf16> to vector<4x8xbf16>
    %cst_71 = arith.constant dense<0.000000e+00> : vector<256x8xf32>
    %106 = tpu.matmul %103, %105, %cst_71 {dimension_numbers = #tpu.dot_dimension_numbers<[1], [0], [0], [1], [0, 0, 1, 1], [], []>} : vector<256x4xbf16>, vector<4x8xbf16>, vector<256x8xf32> -> vector<256x8xf32>
    %107 = arith.addf %101, %106 : vector<256x8xf32>
    %c0_72 = arith.constant 0 : index
    %c0_73 = arith.constant 0 : index
    %108 = vector.load %arg9[%c0_72, %c0_73] : memref<1x8xf32, #tpu.memory_space<vmem>>, vector<1x8xf32>
    %109 = vector.broadcast %108 : vector<1x8xf32> to vector<256x8xf32>
    %110 = arith.mulf %107, %109 : vector<256x8xf32>
    %c0_74 = arith.constant 0 : index
    %c0_75 = arith.constant 0 : index
    %111 = vector.load %arg10[%c0_74, %c0_75] : memref<1x8xf32, #tpu.memory_space<vmem>>, vector<1x8xf32>
    %112 = vector.broadcast %111 : vector<1x8xf32> to vector<256x8xf32>
    %113 = arith.addf %110, %112 : vector<256x8xf32>
    %cst_76 = arith.constant 0.000000e+00 : f32
    %114 = vector.broadcast %cst_76 : f32 to vector<256x8xf32>
    %115 = arith.maximumf %113, %114 : vector<256x8xf32>
    %116 = arith.truncf %115 : vector<256x8xf32> to vector<256x8xbf16>
    %117 = vector.shape_cast %116 : vector<256x8xbf16> to vector<16x16x8xbf16>
    %c0_77 = arith.constant 0 : index
    %c0_78 = arith.constant 0 : index
    %c0_79 = arith.constant 0 : index
    %118 = vector.load %arg11[%c0_77, %c0_78, %c0_79] : memref<9x4x8xbf16, #tpu.memory_space<vmem>>, vector<9x4x8xbf16>
    %c0_80 = arith.constant 0 : index
    %c0_81 = arith.constant 0 : index
    %c0_82 = arith.constant 0 : index
    %119 = vector.load %arg18[%c0_80, %c0_81, %c0_82] : memref<22x22x4xbf16, #tpu.memory_space<vmem>>, vector<22x16x4xbf16>
    %120 = vector.extract_strided_slice %119 {offsets = [0, 0, 0], sizes = [16, 16, 4], strides = [1, 1, 1]} : vector<22x16x4xbf16> to vector<16x16x4xbf16>
    %121 = vector.shape_cast %120 : vector<16x16x4xbf16> to vector<256x4xbf16>
    %122 = vector.extract_strided_slice %118 {offsets = [0, 0, 0], sizes = [1, 4, 8], strides = [1, 1, 1]} : vector<9x4x8xbf16> to vector<1x4x8xbf16>
    %123 = vector.shape_cast %122 : vector<1x4x8xbf16> to vector<4x8xbf16>
    %cst_83 = arith.constant dense<0.000000e+00> : vector<256x8xf32>
    %124 = tpu.matmul %121, %123, %cst_83 {dimension_numbers = #tpu.dot_dimension_numbers<[1], [0], [0], [1], [0, 0, 1, 1], [], []>} : vector<256x4xbf16>, vector<4x8xbf16>, vector<256x8xf32> -> vector<256x8xf32>
    %125 = vector.extract_strided_slice %119 {offsets = [3, 0, 0], sizes = [16, 16, 4], strides = [1, 1, 1]} : vector<22x16x4xbf16> to vector<16x16x4xbf16>
    %126 = vector.shape_cast %125 : vector<16x16x4xbf16> to vector<256x4xbf16>
    %127 = vector.extract_strided_slice %118 {offsets = [3, 0, 0], sizes = [1, 4, 8], strides = [1, 1, 1]} : vector<9x4x8xbf16> to vector<1x4x8xbf16>
    %128 = vector.shape_cast %127 : vector<1x4x8xbf16> to vector<4x8xbf16>
    %cst_84 = arith.constant dense<0.000000e+00> : vector<256x8xf32>
    %129 = tpu.matmul %126, %128, %cst_84 {dimension_numbers = #tpu.dot_dimension_numbers<[1], [0], [0], [1], [0, 0, 1, 1], [], []>} : vector<256x4xbf16>, vector<4x8xbf16>, vector<256x8xf32> -> vector<256x8xf32>
    %130 = arith.addf %124, %129 : vector<256x8xf32>
    %131 = vector.extract_strided_slice %119 {offsets = [6, 0, 0], sizes = [16, 16, 4], strides = [1, 1, 1]} : vector<22x16x4xbf16> to vector<16x16x4xbf16>
    %132 = vector.shape_cast %131 : vector<16x16x4xbf16> to vector<256x4xbf16>
    %133 = vector.extract_strided_slice %118 {offsets = [6, 0, 0], sizes = [1, 4, 8], strides = [1, 1, 1]} : vector<9x4x8xbf16> to vector<1x4x8xbf16>
    %134 = vector.shape_cast %133 : vector<1x4x8xbf16> to vector<4x8xbf16>
    %cst_85 = arith.constant dense<0.000000e+00> : vector<256x8xf32>
    %135 = tpu.matmul %132, %134, %cst_85 {dimension_numbers = #tpu.dot_dimension_numbers<[1], [0], [0], [1], [0, 0, 1, 1], [], []>} : vector<256x4xbf16>, vector<4x8xbf16>, vector<256x8xf32> -> vector<256x8xf32>
    %136 = arith.addf %130, %135 : vector<256x8xf32>
    %c0_86 = arith.constant 0 : index
    %c3_87 = arith.constant 3 : index
    %c0_88 = arith.constant 0 : index
    %137 = vector.load %arg18[%c0_86, %c3_87, %c0_88] : memref<22x22x4xbf16, #tpu.memory_space<vmem>>, vector<22x16x4xbf16>
    %138 = vector.extract_strided_slice %137 {offsets = [0, 0, 0], sizes = [16, 16, 4], strides = [1, 1, 1]} : vector<22x16x4xbf16> to vector<16x16x4xbf16>
    %139 = vector.shape_cast %138 : vector<16x16x4xbf16> to vector<256x4xbf16>
    %140 = vector.extract_strided_slice %118 {offsets = [1, 0, 0], sizes = [1, 4, 8], strides = [1, 1, 1]} : vector<9x4x8xbf16> to vector<1x4x8xbf16>
    %141 = vector.shape_cast %140 : vector<1x4x8xbf16> to vector<4x8xbf16>
    %cst_89 = arith.constant dense<0.000000e+00> : vector<256x8xf32>
    %142 = tpu.matmul %139, %141, %cst_89 {dimension_numbers = #tpu.dot_dimension_numbers<[1], [0], [0], [1], [0, 0, 1, 1], [], []>} : vector<256x4xbf16>, vector<4x8xbf16>, vector<256x8xf32> -> vector<256x8xf32>
    %143 = arith.addf %136, %142 : vector<256x8xf32>
    %144 = vector.extract_strided_slice %137 {offsets = [3, 0, 0], sizes = [16, 16, 4], strides = [1, 1, 1]} : vector<22x16x4xbf16> to vector<16x16x4xbf16>
    %145 = vector.shape_cast %144 : vector<16x16x4xbf16> to vector<256x4xbf16>
    %146 = vector.extract_strided_slice %118 {offsets = [4, 0, 0], sizes = [1, 4, 8], strides = [1, 1, 1]} : vector<9x4x8xbf16> to vector<1x4x8xbf16>
    %147 = vector.shape_cast %146 : vector<1x4x8xbf16> to vector<4x8xbf16>
    %cst_90 = arith.constant dense<0.000000e+00> : vector<256x8xf32>
    %148 = tpu.matmul %145, %147, %cst_90 {dimension_numbers = #tpu.dot_dimension_numbers<[1], [0], [0], [1], [0, 0, 1, 1], [], []>} : vector<256x4xbf16>, vector<4x8xbf16>, vector<256x8xf32> -> vector<256x8xf32>
    %149 = arith.addf %143, %148 : vector<256x8xf32>
    %150 = vector.extract_strided_slice %137 {offsets = [6, 0, 0], sizes = [16, 16, 4], strides = [1, 1, 1]} : vector<22x16x4xbf16> to vector<16x16x4xbf16>
    %151 = vector.shape_cast %150 : vector<16x16x4xbf16> to vector<256x4xbf16>
    %152 = vector.extract_strided_slice %118 {offsets = [7, 0, 0], sizes = [1, 4, 8], strides = [1, 1, 1]} : vector<9x4x8xbf16> to vector<1x4x8xbf16>
    %153 = vector.shape_cast %152 : vector<1x4x8xbf16> to vector<4x8xbf16>
    %cst_91 = arith.constant dense<0.000000e+00> : vector<256x8xf32>
    %154 = tpu.matmul %151, %153, %cst_91 {dimension_numbers = #tpu.dot_dimension_numbers<[1], [0], [0], [1], [0, 0, 1, 1], [], []>} : vector<256x4xbf16>, vector<4x8xbf16>, vector<256x8xf32> -> vector<256x8xf32>
    %155 = arith.addf %149, %154 : vector<256x8xf32>
    %c0_92 = arith.constant 0 : index
    %c6 = arith.constant 6 : index
    %c0_93 = arith.constant 0 : index
    %156 = vector.load %arg18[%c0_92, %c6, %c0_93] : memref<22x22x4xbf16, #tpu.memory_space<vmem>>, vector<22x16x4xbf16>
    %157 = vector.extract_strided_slice %156 {offsets = [0, 0, 0], sizes = [16, 16, 4], strides = [1, 1, 1]} : vector<22x16x4xbf16> to vector<16x16x4xbf16>
    %158 = vector.shape_cast %157 : vector<16x16x4xbf16> to vector<256x4xbf16>
    %159 = vector.extract_strided_slice %118 {offsets = [2, 0, 0], sizes = [1, 4, 8], strides = [1, 1, 1]} : vector<9x4x8xbf16> to vector<1x4x8xbf16>
    %160 = vector.shape_cast %159 : vector<1x4x8xbf16> to vector<4x8xbf16>
    %cst_94 = arith.constant dense<0.000000e+00> : vector<256x8xf32>
    %161 = tpu.matmul %158, %160, %cst_94 {dimension_numbers = #tpu.dot_dimension_numbers<[1], [0], [0], [1], [0, 0, 1, 1], [], []>} : vector<256x4xbf16>, vector<4x8xbf16>, vector<256x8xf32> -> vector<256x8xf32>
    %162 = arith.addf %155, %161 : vector<256x8xf32>
    %163 = vector.extract_strided_slice %156 {offsets = [3, 0, 0], sizes = [16, 16, 4], strides = [1, 1, 1]} : vector<22x16x4xbf16> to vector<16x16x4xbf16>
    %164 = vector.shape_cast %163 : vector<16x16x4xbf16> to vector<256x4xbf16>
    %165 = vector.extract_strided_slice %118 {offsets = [5, 0, 0], sizes = [1, 4, 8], strides = [1, 1, 1]} : vector<9x4x8xbf16> to vector<1x4x8xbf16>
    %166 = vector.shape_cast %165 : vector<1x4x8xbf16> to vector<4x8xbf16>
    %cst_95 = arith.constant dense<0.000000e+00> : vector<256x8xf32>
    %167 = tpu.matmul %164, %166, %cst_95 {dimension_numbers = #tpu.dot_dimension_numbers<[1], [0], [0], [1], [0, 0, 1, 1], [], []>} : vector<256x4xbf16>, vector<4x8xbf16>, vector<256x8xf32> -> vector<256x8xf32>
    %168 = arith.addf %162, %167 : vector<256x8xf32>
    %169 = vector.extract_strided_slice %156 {offsets = [6, 0, 0], sizes = [16, 16, 4], strides = [1, 1, 1]} : vector<22x16x4xbf16> to vector<16x16x4xbf16>
    %170 = vector.shape_cast %169 : vector<16x16x4xbf16> to vector<256x4xbf16>
    %171 = vector.extract_strided_slice %118 {offsets = [8, 0, 0], sizes = [1, 4, 8], strides = [1, 1, 1]} : vector<9x4x8xbf16> to vector<1x4x8xbf16>
    %172 = vector.shape_cast %171 : vector<1x4x8xbf16> to vector<4x8xbf16>
    %cst_96 = arith.constant dense<0.000000e+00> : vector<256x8xf32>
    %173 = tpu.matmul %170, %172, %cst_96 {dimension_numbers = #tpu.dot_dimension_numbers<[1], [0], [0], [1], [0, 0, 1, 1], [], []>} : vector<256x4xbf16>, vector<4x8xbf16>, vector<256x8xf32> -> vector<256x8xf32>
    %174 = arith.addf %168, %173 : vector<256x8xf32>
    %c0_97 = arith.constant 0 : index
    %c0_98 = arith.constant 0 : index
    %175 = vector.load %arg12[%c0_97, %c0_98] : memref<1x8xf32, #tpu.memory_space<vmem>>, vector<1x8xf32>
    %176 = vector.broadcast %175 : vector<1x8xf32> to vector<256x8xf32>
    %177 = arith.mulf %174, %176 : vector<256x8xf32>
    %c0_99 = arith.constant 0 : index
    %c0_100 = arith.constant 0 : index
    %178 = vector.load %arg13[%c0_99, %c0_100] : memref<1x8xf32, #tpu.memory_space<vmem>>, vector<1x8xf32>
    %179 = vector.broadcast %178 : vector<1x8xf32> to vector<256x8xf32>
    %180 = arith.addf %177, %179 : vector<256x8xf32>
    %cst_101 = arith.constant 0.000000e+00 : f32
    %181 = vector.broadcast %cst_101 : f32 to vector<256x8xf32>
    %182 = arith.maximumf %180, %181 : vector<256x8xf32>
    %183 = arith.truncf %182 : vector<256x8xf32> to vector<256x8xbf16>
    %184 = vector.shape_cast %183 : vector<256x8xbf16> to vector<16x16x8xbf16>
    %185 = tpu.concatenate %37, %50, %117, %184 in 2 : vector<16x16x8xbf16>, vector<16x16x8xbf16>, vector<16x16x8xbf16>, vector<16x16x8xbf16> -> vector<16x16x32xbf16>
    %c1_102 = arith.constant 1 : index
    %c1_103 = arith.constant 1 : index
    %c0_104 = arith.constant 0 : index
    %186 = vector.load %arg19[%c1_102, %c1_103, %c0_104] : memref<18x18x32xbf16, #tpu.memory_space<vmem>>, vector<16x16x32xbf16>
    tpu.vector_store %arg19[%c1_102, %c1_103, %c0_104], %185 {strides = array<i32>} : memref<18x18x32xbf16, #tpu.memory_space<vmem>>, vector<16x16x32xbf16>,
    %c0_105 = arith.constant 0 : index
    %c0_106 = arith.constant 0 : index
    %c0_107 = arith.constant 0 : index
    %187 = vector.load %arg14[%c0_105, %c0_106, %c0_107] : memref<9x32x8xbf16, #tpu.memory_space<vmem>>, vector<9x32x8xbf16>
    %c0_108 = arith.constant 0 : index
    %c0_109 = arith.constant 0 : index
    %c0_110 = arith.constant 0 : index
    %188 = vector.load %arg19[%c0_108, %c0_109, %c0_110] : memref<18x18x32xbf16, #tpu.memory_space<vmem>>, vector<18x16x32xbf16>
    %189 = vector.extract_strided_slice %188 {offsets = [0, 0, 0], sizes = [16, 16, 32], strides = [1, 1, 1]} : vector<18x16x32xbf16> to vector<16x16x32xbf16>
    %190 = vector.shape_cast %189 : vector<16x16x32xbf16> to vector<256x32xbf16>
    %191 = vector.extract_strided_slice %187 {offsets = [0, 0, 0], sizes = [1, 32, 8], strides = [1, 1, 1]} : vector<9x32x8xbf16> to vector<1x32x8xbf16>
    %192 = vector.shape_cast %191 : vector<1x32x8xbf16> to vector<32x8xbf16>
    %cst_111 = arith.constant dense<0.000000e+00> : vector<256x8xf32>
    %193 = tpu.matmul %190, %192, %cst_111 {dimension_numbers = #tpu.dot_dimension_numbers<[1], [0], [0], [1], [0, 0, 1, 1], [], []>} : vector<256x32xbf16>, vector<32x8xbf16>, vector<256x8xf32> -> vector<256x8xf32>
    %194 = vector.extract_strided_slice %188 {offsets = [1, 0, 0], sizes = [16, 16, 32], strides = [1, 1, 1]} : vector<18x16x32xbf16> to vector<16x16x32xbf16>
    %195 = vector.shape_cast %194 : vector<16x16x32xbf16> to vector<256x32xbf16>
    %196 = vector.extract_strided_slice %187 {offsets = [3, 0, 0], sizes = [1, 32, 8], strides = [1, 1, 1]} : vector<9x32x8xbf16> to vector<1x32x8xbf16>
    %197 = vector.shape_cast %196 : vector<1x32x8xbf16> to vector<32x8xbf16>
    %cst_112 = arith.constant dense<0.000000e+00> : vector<256x8xf32>
    %198 = tpu.matmul %195, %197, %cst_112 {dimension_numbers = #tpu.dot_dimension_numbers<[1], [0], [0], [1], [0, 0, 1, 1], [], []>} : vector<256x32xbf16>, vector<32x8xbf16>, vector<256x8xf32> -> vector<256x8xf32>
    %199 = arith.addf %193, %198 : vector<256x8xf32>
    %200 = vector.extract_strided_slice %188 {offsets = [2, 0, 0], sizes = [16, 16, 32], strides = [1, 1, 1]} : vector<18x16x32xbf16> to vector<16x16x32xbf16>
    %201 = vector.shape_cast %200 : vector<16x16x32xbf16> to vector<256x32xbf16>
    %202 = vector.extract_strided_slice %187 {offsets = [6, 0, 0], sizes = [1, 32, 8], strides = [1, 1, 1]} : vector<9x32x8xbf16> to vector<1x32x8xbf16>
    %203 = vector.shape_cast %202 : vector<1x32x8xbf16> to vector<32x8xbf16>
    %cst_113 = arith.constant dense<0.000000e+00> : vector<256x8xf32>
    %204 = tpu.matmul %201, %203, %cst_113 {dimension_numbers = #tpu.dot_dimension_numbers<[1], [0], [0], [1], [0, 0, 1, 1], [], []>} : vector<256x32xbf16>, vector<32x8xbf16>, vector<256x8xf32> -> vector<256x8xf32>
    %205 = arith.addf %199, %204 : vector<256x8xf32>
    %c0_114 = arith.constant 0 : index
    %c1_115 = arith.constant 1 : index
    %c0_116 = arith.constant 0 : index
    %206 = vector.load %arg19[%c0_114, %c1_115, %c0_116] : memref<18x18x32xbf16, #tpu.memory_space<vmem>>, vector<18x16x32xbf16>
    %207 = vector.extract_strided_slice %206 {offsets = [0, 0, 0], sizes = [16, 16, 32], strides = [1, 1, 1]} : vector<18x16x32xbf16> to vector<16x16x32xbf16>
    %208 = vector.shape_cast %207 : vector<16x16x32xbf16> to vector<256x32xbf16>
    %209 = vector.extract_strided_slice %187 {offsets = [1, 0, 0], sizes = [1, 32, 8], strides = [1, 1, 1]} : vector<9x32x8xbf16> to vector<1x32x8xbf16>
    %210 = vector.shape_cast %209 : vector<1x32x8xbf16> to vector<32x8xbf16>
    %cst_117 = arith.constant dense<0.000000e+00> : vector<256x8xf32>
    %211 = tpu.matmul %208, %210, %cst_117 {dimension_numbers = #tpu.dot_dimension_numbers<[1], [0], [0], [1], [0, 0, 1, 1], [], []>} : vector<256x32xbf16>, vector<32x8xbf16>, vector<256x8xf32> -> vector<256x8xf32>
    %212 = arith.addf %205, %211 : vector<256x8xf32>
    %213 = vector.extract_strided_slice %206 {offsets = [1, 0, 0], sizes = [16, 16, 32], strides = [1, 1, 1]} : vector<18x16x32xbf16> to vector<16x16x32xbf16>
    %214 = vector.shape_cast %213 : vector<16x16x32xbf16> to vector<256x32xbf16>
    %215 = vector.extract_strided_slice %187 {offsets = [4, 0, 0], sizes = [1, 32, 8], strides = [1, 1, 1]} : vector<9x32x8xbf16> to vector<1x32x8xbf16>
    %216 = vector.shape_cast %215 : vector<1x32x8xbf16> to vector<32x8xbf16>
    %cst_118 = arith.constant dense<0.000000e+00> : vector<256x8xf32>
    %217 = tpu.matmul %214, %216, %cst_118 {dimension_numbers = #tpu.dot_dimension_numbers<[1], [0], [0], [1], [0, 0, 1, 1], [], []>} : vector<256x32xbf16>, vector<32x8xbf16>, vector<256x8xf32> -> vector<256x8xf32>
    %218 = arith.addf %212, %217 : vector<256x8xf32>
    %219 = vector.extract_strided_slice %206 {offsets = [2, 0, 0], sizes = [16, 16, 32], strides = [1, 1, 1]} : vector<18x16x32xbf16> to vector<16x16x32xbf16>
    %220 = vector.shape_cast %219 : vector<16x16x32xbf16> to vector<256x32xbf16>
    %221 = vector.extract_strided_slice %187 {offsets = [7, 0, 0], sizes = [1, 32, 8], strides = [1, 1, 1]} : vector<9x32x8xbf16> to vector<1x32x8xbf16>
    %222 = vector.shape_cast %221 : vector<1x32x8xbf16> to vector<32x8xbf16>
    %cst_119 = arith.constant dense<0.000000e+00> : vector<256x8xf32>
    %223 = tpu.matmul %220, %222, %cst_119 {dimension_numbers = #tpu.dot_dimension_numbers<[1], [0], [0], [1], [0, 0, 1, 1], [], []>} : vector<256x32xbf16>, vector<32x8xbf16>, vector<256x8xf32> -> vector<256x8xf32>
    %224 = arith.addf %218, %223 : vector<256x8xf32>
    %c0_120 = arith.constant 0 : index
    %c2 = arith.constant 2 : index
    %c0_121 = arith.constant 0 : index
    %225 = vector.load %arg19[%c0_120, %c2, %c0_121] : memref<18x18x32xbf16, #tpu.memory_space<vmem>>, vector<18x16x32xbf16>
    %226 = vector.extract_strided_slice %225 {offsets = [0, 0, 0], sizes = [16, 16, 32], strides = [1, 1, 1]} : vector<18x16x32xbf16> to vector<16x16x32xbf16>
    %227 = vector.shape_cast %226 : vector<16x16x32xbf16> to vector<256x32xbf16>
    %228 = vector.extract_strided_slice %187 {offsets = [2, 0, 0], sizes = [1, 32, 8], strides = [1, 1, 1]} : vector<9x32x8xbf16> to vector<1x32x8xbf16>
    %229 = vector.shape_cast %228 : vector<1x32x8xbf16> to vector<32x8xbf16>
    %cst_122 = arith.constant dense<0.000000e+00> : vector<256x8xf32>
    %230 = tpu.matmul %227, %229, %cst_122 {dimension_numbers = #tpu.dot_dimension_numbers<[1], [0], [0], [1], [0, 0, 1, 1], [], []>} : vector<256x32xbf16>, vector<32x8xbf16>, vector<256x8xf32> -> vector<256x8xf32>
    %231 = arith.addf %224, %230 : vector<256x8xf32>
    %232 = vector.extract_strided_slice %225 {offsets = [1, 0, 0], sizes = [16, 16, 32], strides = [1, 1, 1]} : vector<18x16x32xbf16> to vector<16x16x32xbf16>
    %233 = vector.shape_cast %232 : vector<16x16x32xbf16> to vector<256x32xbf16>
    %234 = vector.extract_strided_slice %187 {offsets = [5, 0, 0], sizes = [1, 32, 8], strides = [1, 1, 1]} : vector<9x32x8xbf16> to vector<1x32x8xbf16>
    %235 = vector.shape_cast %234 : vector<1x32x8xbf16> to vector<32x8xbf16>
    %cst_123 = arith.constant dense<0.000000e+00> : vector<256x8xf32>
    %236 = tpu.matmul %233, %235, %cst_123 {dimension_numbers = #tpu.dot_dimension_numbers<[1], [0], [0], [1], [0, 0, 1, 1], [], []>} : vector<256x32xbf16>, vector<32x8xbf16>, vector<256x8xf32> -> vector<256x8xf32>
    %237 = arith.addf %231, %236 : vector<256x8xf32>
    %238 = vector.extract_strided_slice %225 {offsets = [2, 0, 0], sizes = [16, 16, 32], strides = [1, 1, 1]} : vector<18x16x32xbf16> to vector<16x16x32xbf16>
    %239 = vector.shape_cast %238 : vector<16x16x32xbf16> to vector<256x32xbf16>
    %240 = vector.extract_strided_slice %187 {offsets = [8, 0, 0], sizes = [1, 32, 8], strides = [1, 1, 1]} : vector<9x32x8xbf16> to vector<1x32x8xbf16>
    %241 = vector.shape_cast %240 : vector<1x32x8xbf16> to vector<32x8xbf16>
    %cst_124 = arith.constant dense<0.000000e+00> : vector<256x8xf32>
    %242 = tpu.matmul %239, %241, %cst_124 {dimension_numbers = #tpu.dot_dimension_numbers<[1], [0], [0], [1], [0, 0, 1, 1], [], []>} : vector<256x32xbf16>, vector<32x8xbf16>, vector<256x8xf32> -> vector<256x8xf32>
    %243 = arith.addf %237, %242 : vector<256x8xf32>
    %c0_125 = arith.constant 0 : index
    %c0_126 = arith.constant 0 : index
    %244 = vector.load %arg15[%c0_125, %c0_126] : memref<1x8xf32, #tpu.memory_space<vmem>>, vector<1x8xf32>
    %245 = vector.broadcast %244 : vector<1x8xf32> to vector<256x8xf32>
    %246 = arith.mulf %243, %245 : vector<256x8xf32>
    %c0_127 = arith.constant 0 : index
    %c0_128 = arith.constant 0 : index
    %247 = vector.load %arg16[%c0_127, %c0_128] : memref<1x8xf32, #tpu.memory_space<vmem>>, vector<1x8xf32>
    %248 = vector.broadcast %247 : vector<1x8xf32> to vector<256x8xf32>
    %249 = arith.addf %246, %248 : vector<256x8xf32>
    %cst_129 = arith.constant 0.000000e+00 : f32
    %250 = vector.broadcast %cst_129 : f32 to vector<256x8xf32>
    %251 = arith.maximumf %249, %250 : vector<256x8xf32>
    %252 = vector.shape_cast %251 : vector<256x8xf32> to vector<16x16x8xf32>
    %c0_130 = arith.constant 0 : index
    %c0_131 = arith.constant 0 : index
    %c0_132 = arith.constant 0 : index
    %c0_133 = arith.constant 0 : index
    %253 = vector.load %arg17[%c0_130, %c0_131, %c0_132, %c0_133] : memref<1x16x16x8xf32, #tpu.memory_space<vmem>>, vector<1x16x16x8xf32>
    %254 = vector.shape_cast %253 : vector<1x16x16x8xf32> to vector<16x16x8xf32>
    %255 = vector.shape_cast %252 : vector<16x16x8xf32> to vector<1x16x16x8xf32>
    tpu.vector_store %arg17[%c0_130, %c0_131, %c0_132, %c0_133], %255 {strides = array<i32>} : memref<1x16x16x8xf32, #tpu.memory_space<vmem>>, vector<1x16x16x8xf32>,
    return
  }
  func.func @transform_0(%arg0: i32) -> (i32, i32, i32, i32) {
    %c0_i32 = arith.constant 0 : i32
    %c0_i32_0 = arith.constant 0 : i32
    %c0_i32_1 = arith.constant 0 : i32
    %c0_i32_2 = arith.constant 0 : i32
    return %arg0, %c0_i32, %c0_i32_0, %c0_i32_1 : i32, i32, i32, i32
  }
  func.func @transform_1(%arg0: i32) -> (i32, i32) {
    %c0_i32 = arith.constant 0 : i32
    %c0_i32_0 = arith.constant 0 : i32
    %c0_i32_1 = arith.constant 0 : i32
    return %c0_i32, %c0_i32_0 : i32, i32
  }
  func.func @transform_2(%arg0: i32) -> (i32, i32) {
    %c0_i32 = arith.constant 0 : i32
    %c0_i32_0 = arith.constant 0 : i32
    %c0_i32_1 = arith.constant 0 : i32
    return %c0_i32, %c0_i32_0 : i32, i32
  }
  func.func @transform_3(%arg0: i32) -> (i32, i32) {
    %c0_i32 = arith.constant 0 : i32
    %c0_i32_0 = arith.constant 0 : i32
    %c0_i32_1 = arith.constant 0 : i32
    return %c0_i32, %c0_i32_0 : i32, i32
  }
  func.func @transform_4(%arg0: i32) -> (i32, i32, i32) {
    %c0_i32 = arith.constant 0 : i32
    %c0_i32_0 = arith.constant 0 : i32
    %c0_i32_1 = arith.constant 0 : i32
    %c0_i32_2 = arith.constant 0 : i32
    return %c0_i32, %c0_i32_0, %c0_i32_1 : i32, i32, i32
  }
  func.func @transform_5(%arg0: i32) -> (i32, i32) {
    %c0_i32 = arith.constant 0 : i32
    %c0_i32_0 = arith.constant 0 : i32
    %c0_i32_1 = arith.constant 0 : i32
    return %c0_i32, %c0_i32_0 : i32, i32
  }
  func.func @transform_6(%arg0: i32) -> (i32, i32) {
    %c0_i32 = arith.constant 0 : i32
    %c0_i32_0 = arith.constant 0 : i32
    %c0_i32_1 = arith.constant 0 : i32
    return %c0_i32, %c0_i32_0 : i32, i32
  }
  func.func @transform_7(%arg0: i32) -> (i32, i32, i32) {
    %c0_i32 = arith.constant 0 : i32
    %c0_i32_0 = arith.constant 0 : i32
    %c0_i32_1 = arith.constant 0 : i32
    %c0_i32_2 = arith.constant 0 : i32
    return %c0_i32, %c0_i32_0, %c0_i32_1 : i32, i32, i32
  }
  func.func @transform_8(%arg0: i32) -> (i32, i32) {
    %c0_i32 = arith.constant 0 : i32
    %c0_i32_0 = arith.constant 0 : i32
    %c0_i32_1 = arith.constant 0 : i32
    return %c0_i32, %c0_i32_0 : i32, i32
  }
  func.func @transform_9(%arg0: i32) -> (i32, i32) {
    %c0_i32 = arith.constant 0 : i32
    %c0_i32_0 = arith.constant 0 : i32
    %c0_i32_1 = arith.constant 0 : i32
    return %c0_i32, %c0_i32_0 : i32, i32
  }
  func.func @transform_10(%arg0: i32) -> (i32, i32, i32) {
    %c0_i32 = arith.constant 0 : i32
    %c0_i32_0 = arith.constant 0 : i32
    %c0_i32_1 = arith.constant 0 : i32
    %c0_i32_2 = arith.constant 0 : i32
    return %c0_i32, %c0_i32_0, %c0_i32_1 : i32, i32, i32
  }
  func.func @transform_11(%arg0: i32) -> (i32, i32) {
    %c0_i32 = arith.constant 0 : i32
    %c0_i32_0 = arith.constant 0 : i32
    %c0_i32_1 = arith.constant 0 : i32
    return %c0_i32, %c0_i32_0 : i32, i32
  }
  func.func @transform_12(%arg0: i32) -> (i32, i32) {
    %c0_i32 = arith.constant 0 : i32
    %c0_i32_0 = arith.constant 0 : i32
    %c0_i32_1 = arith.constant 0 : i32
    return %c0_i32, %c0_i32_0 : i32, i32
  }
  func.func @transform_13(%arg0: i32) -> (i32, i32, i32) {
    %c0_i32 = arith.constant 0 : i32
    %c0_i32_0 = arith.constant 0 : i32
    %c0_i32_1 = arith.constant 0 : i32
    %c0_i32_2 = arith.constant 0 : i32
    return %c0_i32, %c0_i32_0, %c0_i32_1 : i32, i32, i32
  }
  func.func @transform_14(%arg0: i32) -> (i32, i32) {
    %c0_i32 = arith.constant 0 : i32
    %c0_i32_0 = arith.constant 0 : i32
    %c0_i32_1 = arith.constant 0 : i32
    return %c0_i32, %c0_i32_0 : i32, i32
  }
  func.func @transform_15(%arg0: i32) -> (i32, i32) {
    %c0_i32 = arith.constant 0 : i32
    %c0_i32_0 = arith.constant 0 : i32
    %c0_i32_1 = arith.constant 0 : i32
    return %c0_i32, %c0_i32_0 : i32, i32
  }
  func.func @transform_16(%arg0: i32) -> (i32, i32, i32, i32) {
    %c0_i32 = arith.constant 0 : i32
    %c0_i32_0 = arith.constant 0 : i32
    %c0_i32_1 = arith.constant 0 : i32
    %c0_i32_2 = arith.constant 0 : i32
    return %arg0, %c0_i32, %c0_i32_0, %c0_i32_1 : i32, i32, i32, i32
  }
}

</mosaic_0001>

<bundles_post_ra>
// kernel: tpu_custom_call.1
= control target key start
LH: loop header
LB: loop body
LE: loop exit
PB: predicated region body
PF: predicated region fallthrough
CT: control target
= control target key end

     0   :  { %s11927_s21 = smov 0   ;;  %s17004_s0 = inlined_call_operand.vmem [shape: bf16[2,16,16,4], index: 0, kind: input, shape index: {}]   ;;  %s17005_s1 = inlined_call_operand.vmem [shape: bf16[4,8], index: 1, kind: input, shape index: {}]   ;;  %s17006_s2 = inlined_call_operand.vmem [shape: f32[1,8], index: 2, kind: input, shape index: {}]   ;;  %s17007_s3 = inlined_call_operand.vmem [shape: f32[1,8], index: 3, kind: input, shape index: {}]   ;;  %s17008_s4 = inlined_call_operand.vmem [shape: bf16[1,4,8], index: 4, kind: input, shape index: {}]   ;;  %s17009_s5 = inlined_call_operand.vmem [shape: f32[1,8], index: 5, kind: input, shape index: {}]   ;;  %s17010_s6 = inlined_call_operand.vmem [shape: f32[1,8], index: 6, kind: input, shape index: {}]   ;;  %s17011_s7 = inlined_call_operand.vmem [shape: bf16[9,4,8], index: 7, kind: input, shape index: {}]   ;;  %s17012_s8 = inlined_call_operand.vmem [shape: f32[1,8], index: 8, kind: input, shape index: {}]   ;;  %s17013_s9 = inlined_call_operand.vmem [shape: f32[1,8], index: 9, kind: input, shape index: {}]   ;;  %s17014_s10 = inlined_call_operand.vmem [shape: bf16[9,4,8], index: 10, kind: input, shape index: {}]   ;;  %s17015_s11 = inlined_call_operand.vmem [shape: f32[1,8], index: 11, kind: input, shape index: {}]   ;;  %s17016_s12 = inlined_call_operand.vmem [shape: f32[1,8], index: 12, kind: input, shape index: {}]   ;;  %s17017_s13 = inlined_call_operand.vmem [shape: bf16[9,32,8], index: 13, kind: input, shape index: {}]   ;;  %s17018_s14 = inlined_call_operand.vmem [shape: f32[1,8], index: 14, kind: input, shape index: {}]   ;;  %s17019_s15 = inlined_call_operand.vmem [shape: f32[1,8], index: 15, kind: input, shape index: {}]   ;;  %s17020_s16 = inlined_call_operand.vmem [shape: f32[2,16,16,8], index: 16, kind: output, shape index: {}]  }
   0x1   :  { %17107 = sst [smem:[#allocation61_spill]] %s17004_s0 }
   0x2 LB: > { %s10880_s22 = sadd.s32 4294967295, %s11836_s21   ;;  %p10884_p0 = scmp.ge.s32.totalorder %s11836_s21, 1  ;;  %s11836_s21 = sphi %s11927_s21, %s26_s21  }
   0x3   : > { %p462_p1 = scmp.lt.s32.totalorder %s11836_s21, 3 }
   0x5   : > { %p463_p2 = pnand %p10884_p0, %p462_p1 }
   0x7   : > { %466 = sbr.rel (%p463_p2) target bundleno = 2302 (0x8fe), region = 84 }
   0xc   : > { %vm1366_vm0 = vcmask 1041408   ;;  %v1393_v0 = vld [vmem:[%s17008_s4] sm:$0x3]  ;;  %p512_p3 = scmp.lt.s32.totalorder %s10880_s22, 1  ;;  %vm555_vm1 = vcmask 27648   ;;  %vm558_vm2 = vcmask 26624  }
   0xd   : > { %v1523_v1 = vsel %vm1366_vm0, %v1393_v0, 0  ;;  %v1750_v2 = vld [vmem:[%s17011_s7] sm:$0x3]  ;;  %v17021_v4 = vmov 0   ;;  %v1753_v5 = vld [vmem:[%s17011_s7 + $0x6] sm:$0x3] }
   0xe   : > { %1532 = vmatpush.bf16.msra.mxu1 %v1523_v1  ;;  %s17427_s22 = smov (!%p512_p3, %s10880_s22), 1  ;;  %v2456_v3 = vsel %vm1366_vm0, %v1750_v2, 0  ;;  %560 = vst.msk [vmem:[#allocation2 + $0xc] sm:$0xf] %vm555_vm1, %v17021_v4  ;;  %v2352_v6 = vsel %vm1366_vm0, %v1753_v5, 0  ;;  %s17108_s17 = sld [smem:[#allocation61_spill]] }
   0xf   : > { %2465 = vmatpush.bf16.msra.mxu3 %v2456_v3  ;;  %561 = vst.msk [vmem:[#allocation2 + $0x10] sm:$0xf] %vm555_vm1, %v17021_v4  ;;  %s11676_s29 = sshll.u32 %s17427_s22, 7  ;;  %vm1290_vm3 = vcmask 31744   ;;  %vm1820_vm4 = vsmask.f32 3328  ;;  %2361 = vmatpush.bf16.msra.mxu2 %v2352_v6 }
  0x10   : > { %562 = vst.msk [vmem:[#allocation2 + $0x14] sm:$0x7] %vm558_vm2, %v17021_v4  ;;  %vm577_vm5 = vcmask 25600   ;;  %vm1821_vm6 = vsmask.f32 7440  ;;  %vm628_vm8 = vcmask 26625  }
  0x11   : > { %556 = vst.msk [vmem:[#allocation2] sm:$0xf] %vm555_vm1, %v17021_v4  ;;  %vm578_vm7 = vsmask.f32 1280  ;;  %vm629_vm9 = vsmask.f32 7942  ;;  %vm11997_vm11 = vmor %vm1820_vm4, %vm1821_vm6 }
  0x12   : > { %557 = vst.msk [vmem:[#allocation2 + $0x4] sm:$0xf] %vm555_vm1, %v17021_v4  ;;  %v580_v18 = vld [vmem:[#allocation2 + $0x24] sm:$0x3]  ;;  %vm11991_vm10 = vmand %vm577_vm5, %vm578_vm7  ;;  %v631_v27 = vld [vmem:[#allocation2 + $0x2c] sm:$0x6] }
  0x13   : > { %559 = vst.msk [vmem:[#allocation2 + $0x8] sm:$0x7] %vm558_vm2, %v17021_v4  ;;  %v17112_v28 = vmov 0  ;;  %vm679_vm12 = vsmask.f32 5392  ;;  %vm12007_vm13 = vmand %vm628_vm8, %vm629_vm9  ;;  %v581_v38 = vsel %vm11991_vm10, 0, %v580_v18 }
  0x14   : > { %s11959_s18 = scalar_lea.vmem %s17108_s17, %s11676_s29  ;;  %563 = vst.msk [vmem:[#allocation2 + $0x18] sm:$0xf] %vm555_vm1, %v17021_v4  ;;  %v17113_v28 = vsel %vm11997_vm11, 4294967295, %v17112_v28  ;;  %v632_v46 = vsel %vm12007_vm13, 0, %v631_v27  ;;  %vm1033_vm14 = vcmask 27649   ;;  %vm12043_vm15 = vmor %vm578_vm7, %vm679_vm12  ;;  %v17117_v57 = vmov 0 }
  0x15   : > { %v11678_v7 = vld [vmem:[%s11959_s18] sm:$0xff]  ;;  %v1760_v11 = vld [vmem:[#allocation2 + $0xc] sm:$0xf]  ;;  %564 = vst.msk [vmem:[#allocation2 + $0x1c] sm:$0xf] %vm555_vm1, %v17021_v4  ;;  %v17118_v57 = vsel %vm12043_vm15, 4294967295, %v17117_v57 }
  0x16   : > { %v523_v8 = vld [vmem:[%s11959_s18] sm:$0xf]  ;;  %10954 = vmatmul.msk.bf16.vlgmr.msra.gmra.mxu1 %vm1290_vm3, %v11678_v7  ;;  %v524_v9 = vld [vmem:[%s11959_s18 + $0x4] sm:$0xf]  ;;  %v1761_v12 = vld [vmem:[#allocation2 + $0x10] sm:$0xf] }
  0x17   : > { %v682_v10 = vshrl.u32 %v523_v8, 16  ;;  %v1824_v13 = vshrl.u32 %v1760_v11, 16  ;;  %v1827_v14 = vshll.u32 %v1760_v11, 16  ;;  %565 = vst.msk [vmem:[#allocation2 + $0x20] sm:$0x7] %vm558_vm2, %v17021_v4  ;;  %v11977_v16 = vshll.u32 %v1761_v12, 16 }
  0x18   : > { %v1762_v15 = vld [vmem:[#allocation2 + $0x14] sm:$0x1]  ;;  %v11979_v17 = vshrl.u32 %v1761_v12, 16  ;;  %567 = vst.msk [vmem:[#allocation2 + $0xe4] sm:$0xf] %vm555_vm1, %v17021_v4  ;;  %v1258_v19 = vunpack.c.l.bf16 %v523_v8  ;;  %v1259_v23 = vunpack.c.l.bf16 %v524_v9  ;;  %v685_v34 = vshll.u32 %v523_v8, 16 }
  0x19   : > { %17109 = vst [vmem:[#allocation4_spill] sm:$0xff] %v11977_v16  ;;  %v1826_v20 = vrot.slane %v1824_v13, 4  ;;  %v1829_v21 = vrot.slane %v1827_v14, 5  ;;  %v1843_v22 = vshll.u32 %v1762_v15, 16  ;;  %v1835_v24 = vrot.slane %v11977_v16, 5  ;;  %v11679_v55 = vld [vmem:[%s11959_s18 + $0x8] sm:$0xff] }
  0x1a   : > { %568 = vst.msk [vmem:[#allocation2 + $0xe8] sm:$0xf] %vm555_vm1, %v17021_v4  ;;  %v1839_v25 = vrot.slane %v11979_v17, 4  ;;  %v684_v31 = vrot.slane %v682_v10, 6  ;;  %v691_v35 = vshrl.u32 %v524_v9, 16  ;;  %v694_v36 = vshll.u32 %v524_v9, 16 }
  0x1b   : > { %569 = vst.msk [vmem:[#allocation2 + $0xec] sm:$0x7] %vm558_vm2, %v17021_v4  ;;  %v1830_v29 = vor.u32 %v1829_v21, %v1826_v20  ;;  %v1845_v30 = vrot.slane %v1843_v22, 5  ;;  %v1291_v39 = vsel %vm1290_vm3, %v1258_v19, 0.0  ;;  %v1292_v40 = vsel %vm1290_vm3, %v1259_v23, 0.0  ;;  %s11839_s23 = smov 8  }
  0x1c   : > { %17114 = vst [vmem:[#allocation5_spill] sm:$0xff] %v17113_v28  ;;  %v1840_v32 = vor.u32 %v1839_v25, %v1835_v24  ;;  %v687_v42 = vrot.slane %v685_v34, 7  ;;  %v693_v43 = vrot.slane %v691_v35, 6  ;;  %v696_v44 = vrot.slane %v694_v36, 7  ;;  %v1754_v48 = vld [vmem:[%s17011_s7 + $0x8] sm:$0x3] }
  0x1d   : > { %570 = vst.msk [vmem:[#allocation2 + $0xf0] sm:$0xf] %vm555_vm1, %v17021_v4  ;;  %v1831_v37 = vrot.slane %v1830_v29, 4  ;;  %v12025_v47 = vadd.f32 %v1292_v40, %v1291_v39  ;;  %v1757_v53 = vld [vmem:[%s17011_s7 + $0xe] sm:$0x3]  ;;  %v3421_v58 = vsel %vm1366_vm0, %v1754_v48, 0 }
  0x1e   : > { %571 = vst.msk [vmem:[#allocation2 + $0xf4] sm:$0xf] %vm555_vm1, %v17021_v4  ;;  %v1841_v41 = vrot.slane %v1840_v32, 4  ;;  %v688_v51 = vor.u32 %v687_v42, %v684_v31  ;;  %v697_v52 = vor.u32 %v696_v44, %v693_v43  ;;  %v1751_v54 = vld [vmem:[%s17011_s7 + $0x2] sm:$0x3]  ;;  %v3603_v59 = vsel %vm1366_vm0, %v1757_v53, 0  ;;  %3430 = vmatpush.bf16.msrb.mxu2 %v3421_v58 }
  0x1f   : > { %572 = vst.msk [vmem:[#allocation2 + $0xf8] sm:$0x7] %vm558_vm2, %v17021_v4  ;;  %v1836_v45 = vsel %vm11997_vm11, %v1831_v37, %v1835_v24  ;;  %v3239_v60 = vsel %vm1366_vm0, %v1751_v54, 0  ;;  %3612 = vmatpush.bf16.msrb.mxu3 %v3603_v59  ;;  %v1763_v63 = vld [vmem:[#allocation2 + $0x18] sm:$0xf]  ;;  %vm6670_vm6 = vcmask 1044484  }
  0x20   : > { %573 = vst.msk [vmem:[#allocation2 + $0xfc] sm:$0xf] %vm555_vm1, %v17021_v4  ;;  %v1846_v49 = vsel %vm11997_vm11, %v1841_v41, %v1845_v30  ;;  %v2443_v50 = vunpack.c.l.b16 %v1836_v45  ;;  %v689_v61 = vrot.slane %v688_v51, 4  ;;  %v699_v62 = vrot.slane %v697_v52, 4  ;;  %3248 = vmatpush.bf16.msrb.mxu1 %v3239_v60  ;;  %v1764_v1 = vld [vmem:[#allocation2 + $0x1c] sm:$0xf] }
  0x21   : > { %574 = vst.msk [vmem:[#allocation2 + $0x100] sm:$0xf] %vm555_vm1, %v17021_v4  ;;  %v2444_v56 = vunpack.c.l.b16 %v1846_v49  ;;  %v1765_v2 = vld [vmem:[#allocation2 + $0x20] sm:$0x1]  ;;  %v1848_v3 = vshrl.u32 %v1763_v63, 16  ;;  %v1851_v5 = vshll.u32 %v1763_v63, 16 }
  0x22   : > { %575 = vst.msk [vmem:[#allocation2 + $0x104] sm:$0x7] %vm558_vm2, %v17021_v4  ;;  %v698_v6 = vsel %vm12043_vm15, %v689_v61, %v697_v52  ;;  %v12052_v7 = vshll.u32 %v1764_v1, 16  ;;  %v12054_v8 = vshrl.u32 %v1764_v1, 16  ;;  %v1867_v9 = vshll.u32 %v1765_v2, 16  ;;  %vm12063_vm2 = vmand %vm1033_vm14, %vm629_vm9  ;;  %s11841_s24 = smov 24  }
  0x23   : > { %582 = vst [vmem:[#allocation2 + $0x24] sm:$0x3] %v581_v38  ;;  %v2447_v0 = vpack.c.b16 %v2444_v56, %v2443_v50  ;;  %v525_v10 = vld [vmem:[%s11959_s18 + $0x8] sm:$0xf]  ;;  %v1850_v11 = vrot.slane %v1848_v3, 4  ;;  %v1853_v12 = vrot.slane %v1851_v5, 5 }
  0x24   : > { %17119 = vst [vmem:[#allocation6_spill] sm:$0xff] %v17118_v57  ;;  %v526_v13 = vld [vmem:[%s11959_s18 + $0xc] sm:$0xf]  ;;  %v1260_v14 = vunpack.c.l.bf16 %v525_v10  ;;  %v1859_v18 = vrot.slane %v12052_v7, 5  ;;  %v1863_v19 = vrot.slane %v12054_v8, 4  ;;  %v1869_v20 = vrot.slane %v1867_v9, 5 }
  0x25   : > { %633 = vst [vmem:[#allocation2 + $0x2c] sm:$0x6] %v632_v46  ;;  %10986 = vmatmul.msk.bf16.vlgmr.msra.gmra.mxu3 %vm1290_vm3, %v2447_v0  ;;  %v583_v21 = vld [vmem:[#allocation2 + $0x30] sm:$0x3]  ;;  %v701_v22 = vshrl.u32 %v525_v10, 16  ;;  %v1854_v23 = vor.u32 %v1853_v12, %v1850_v11  ;;  %v704_v27 = vshll.u32 %v525_v10, 16  ;;  %v1261_v35 = vunpack.c.l.bf16 %v526_v13 }
  0x26   : > { %10955 = vmatmul.msk.bf16.gmra.mxu1 %vm1290_vm3, %v11679_v55  ;;  %1038 = vst.msk [vmem:[#allocation2 + $0x28] sm:$0xf] %vm555_vm1, %v698_v6  ;;  %v584_v24 = vsel %vm11991_vm10, 0, %v583_v21  ;;  %v634_v25 = vld [vmem:[#allocation2 + $0x38] sm:$0x6]  ;;  %v710_v29 = vshrl.u32 %v526_v13, 16  ;;  %v1864_v31 = vor.u32 %v1863_v19, %v1859_v18 }
  0x27   : > { %585 = vst [vmem:[#allocation2 + $0x30] sm:$0x3] %v584_v24  ;;  %v635_v32 = vsel %vm12007_vm13, 0, %v634_v25  ;;  %v703_v34 = vrot.slane %v701_v22, 6  ;;  %v1855_v38 = vrot.slane %v1854_v23, 4  ;;  %v706_v39 = vrot.slane %v704_v27, 7 }
  0x28   : > { %636 = vst [vmem:[#allocation2 + $0x38] sm:$0x6] %v635_v32  ;;  %v1865_v41 = vrot.slane %v1864_v31, 4  ;;  %v712_v42 = vrot.slane %v710_v29, 6  ;;  %v713_v43 = vshll.u32 %v526_v13, 16  ;;  %v1294_v46 = vsel %vm1290_vm3, %v1260_v14, 0.0 }
  0x29   : > { %v1860_v44 = vsel %vm11997_vm11, %v1855_v38, %v1859_v18  ;;  %v707_v45 = vor.u32 %v706_v39, %v703_v34  ;;  %v1296_v48 = vsel %vm1290_vm3, %v1261_v35, 0.0  ;;  %v1295_v53 = vadd.f32 %v1294_v46, %v12025_v47  ;;  %v12085_v54 = vld [vmem:[%s11959_s18 + $0x10] sm:$0xf]  ;;  %v586_v60 = vld [vmem:[#allocation2 + $0x3c] sm:$0x3]  ;;  %s11677_s26 = sshll.u32 %s17427_s22, 8 }
  0x2a   : > { %v1035_v30 = vld [vmem:[#allocation2 + $0x24] sm:$0xe]  ;;  %v1870_v50 = vsel %vm11997_vm11, %v1865_v41, %v1869_v20  ;;  %v715_v52 = vrot.slane %v713_v43, 7  ;;  %v587_v63 = vsel %vm11991_vm10, 0, %v586_v60  ;;  %v720_v1 = vshrl.u32 %v12085_v54, 16  ;;  %v11680_v3 = vld [vmem:[%s11959_s18 + $0x10] sm:$0xff]  ;;  %s16823_s28 = scalar_lea.vmem %s17020_s16, %s11677_s26 }
  0x2b   : > { %v1036_v36 = vsel %vm12063_vm2, %v688_v51, %v1035_v30  ;;  %v2445_v51 = vunpack.c.l.b16 %v1860_v44  ;;  %v2446_v58 = vunpack.c.l.b16 %v1870_v50  ;;  %v708_v59 = vrot.slane %v707_v45, 4  ;;  %v637_v0 = vld [vmem:[#allocation2 + $0x44] sm:$0x6]  ;;  %v12104_v12 = vld [vmem:[%s11959_s18 + $0x14] sm:$0xf] }
  0x2c   : > { %v1039_v37 = vld [vmem:[#allocation2 + $0x2c] sm:$0x3]  ;;  %1037 = vst [vmem:[#allocation2 + $0x24] sm:$0xe] %v1036_v36  ;;  %v716_v61 = vor.u32 %v715_v52, %v712_v42  ;;  %v638_v13 = vsel %vm12007_vm13, 0, %v637_v0  ;;  %v722_v20 = vrot.slane %v720_v1, 6 }
  0x2d   : > { %v1040_v40 = vsel %vm11991_vm10, %v699_v62, %v1039_v37  ;;  %v1767_v49 = vld [vmem:[#allocation2 + $0x28] sm:$0xf]  ;;  %v12091_v62 = vadd.f32 %v1296_v48, %v1295_v53  ;;  %588 = vst [vmem:[#allocation2 + $0x3c] sm:$0x3] %v587_v63  ;;  %v2448_v19 = vpack.c.b16 %v2446_v58, %v2445_v51  ;;  %v723_v21 = vshll.u32 %v12085_v54, 16 }
  0x2e   : > { %1041 = vst [vmem:[#allocation2 + $0x2c] sm:$0x3] %v1040_v40  ;;  %v12087_v55 = vshll.u32 %v1767_v49, 16  ;;  %v12089_v56 = vshrl.u32 %v1767_v49, 16  ;;  %v1042_v5 = vld [vmem:[#allocation2 + $0x30] sm:$0xe]  ;;  %v717_v6 = vsel %vm12043_vm15, %v708_v59, %v716_v61 }
  0x2f   : > { %v718_v9 = vrot.slane %v716_v61, 4  ;;  %v1043_v10 = vsel %vm12063_vm2, %v707_v45, %v1042_v5  ;;  %v1046_v11 = vld [vmem:[#allocation2 + $0x38] sm:$0x3]  ;;  %1045 = vst.msk [vmem:[#allocation2 + $0x34] sm:$0xf] %vm555_vm1, %v717_v6  ;;  %v725_v30 = vrot.slane %v723_v21, 7 }
  0x30   : > { %17122 = vst [vmem:[#allocation7_spill] sm:$0xff] %v12089_v56  ;;  %v1883_v47 = vrot.slane %v12087_v55, 5  ;;  %v1887_v2 = vrot.slane %v12089_v56, 4  ;;  %v729_v31 = vshrl.u32 %v12104_v12, 16  ;;  %v732_v35 = vshll.u32 %v12104_v12, 16 }
  0x31   : > { %1044 = vst [vmem:[#allocation2 + $0x30] sm:$0xe] %v1043_v10  ;;  %v1047_v25 = vsel %vm11991_vm10, %v718_v9, %v1046_v11  ;;  %v726_v37 = vor.u32 %v725_v30, %v722_v20  ;;  %v12129_v63 = vld [vmem:[%s11959_s18 + $0x18] sm:$0xf]  ;;  %v589_v0 = vld [vmem:[#allocation2 + $0x48] sm:$0x3] }
  0x32   : > { %v1888_v18 = vor.u32 %v1887_v2, %v1883_v47  ;;  %1048 = vst [vmem:[#allocation2 + $0x38] sm:$0x3] %v1047_v25  ;;  %v731_v38 = vrot.slane %v729_v31, 6  ;;  %v734_v40 = vrot.slane %v732_v35, 7  ;;  %v590_v11 = vsel %vm11991_vm10, 0, %v589_v0 }
  0x33   : > { %v1766_v14 = vld [vmem:[#allocation2 + $0x24] sm:$0xf]  ;;  %639 = vst [vmem:[#allocation2 + $0x44] sm:$0x6] %v638_v13  ;;  %v727_v42 = vrot.slane %v726_v37, 4  ;;  %vm1150_vm8 = vcmask 253952  }
  0x34   : > { %v1872_v23 = vshrl.u32 %v1766_v14, 16  ;;  %v1875_v24 = vshll.u32 %v1766_v14, 16  ;;  %v1889_v27 = vrot.slane %v1888_v18, 4  ;;  %v1049_v43 = vld [vmem:[#allocation2 + $0x3c] sm:$0xe]  ;;  %v735_v46 = vor.u32 %v734_v40, %v731_v38 }
  0x35   : > { %v1768_v22 = vld [vmem:[#allocation2 + $0x2c] sm:$0x1]  ;;  %10987 = vmatmul.msk.bf16.gmra.mxu3 %vm1290_vm3, %v2448_v19  ;;  %v1050_v48 = vsel %vm12063_vm2, %v726_v37, %v1049_v43  ;;  %v12137_v18 = vld [vmem:[%s11959_s18 + $0x1c] sm:$0xf]  ;;  %591 = vst [vmem:[#allocation2 + $0x48] sm:$0x3] %v590_v11 }
  0x36   : > { %v1891_v29 = vshll.u32 %v1768_v22, 16  ;;  %v1874_v32 = vrot.slane %v1872_v23, 4  ;;  %v1877_v34 = vrot.slane %v1875_v24, 5  ;;  %10956 = vmatmul.msk.bf16.gmra.mxu1 %vm1290_vm3, %v11680_v3  ;;  %v1770_v50 = vld [vmem:[#allocation2 + $0x34] sm:$0xf]  ;;  %v736_v61 = vsel %vm12043_vm15, %v727_v42, %v735_v46 }
  0x37   : > { %1051 = vst [vmem:[#allocation2 + $0x3c] sm:$0xe] %v1050_v48  ;;  %v12122_v59 = vshll.u32 %v1770_v50, 16  ;;  %v12124_v60 = vshrl.u32 %v1770_v50, 16  ;;  %v737_v9 = vrot.slane %v735_v46, 4  ;;  %v739_v19 = vshrl.u32 %v12129_v63, 16 }
  0x38   : > { %v1893_v36 = vrot.slane %v1891_v29, 5  ;;  %v1878_v39 = vor.u32 %v1877_v34, %v1874_v32  ;;  %v1769_v45 = vld [vmem:[#allocation2 + $0x30] sm:$0xf]  ;;  %1052 = vst.msk [vmem:[#allocation2 + $0x40] sm:$0xf] %vm555_vm1, %v736_v61  ;;  %v742_v23 = vshll.u32 %v12129_v63, 16 }
  0x39   : > { %v1896_v51 = vshrl.u32 %v1769_v45, 16  ;;  %v1899_v52 = vshll.u32 %v1769_v45, 16  ;;  %v1771_v58 = vld [vmem:[#allocation2 + $0x38] sm:$0x1]  ;;  %17123 = vst [vmem:[#allocation8_spill] sm:$0xff] %v12122_v59  ;;  %v1911_v6 = vrot.slane %v12124_v60, 4 }
  0x3a   : > { %v1894_v41 = vsel %vm11997_vm11, %v1889_v27, %v1893_v36  ;;  %v1879_v44 = vrot.slane %v1878_v39, 4  ;;  %17124 = vst [vmem:[#allocation9_spill] sm:$0xff] %v12124_v60  ;;  %v1915_v5 = vshll.u32 %v1771_v58, 16  ;;  %v1053_v10 = vld [vmem:[#allocation2 + $0x44] sm:$0x3]  ;;  %v748_v24 = vshrl.u32 %v12137_v18, 16 }
  0x3b   : > { %v2256_v49 = vunpack.c.l.b16 %v1894_v41  ;;  %v1898_v2 = vrot.slane %v1896_v51, 4  ;;  %v1901_v3 = vrot.slane %v1899_v52, 5  ;;  %v1054_v21 = vsel %vm11991_vm10, %v737_v9, %v1053_v10  ;;  %v640_v22 = vld [vmem:[#allocation2 + $0x50] sm:$0x6]  ;;  %v1362_v29 = vld [vmem:[%s17005_s1] sm:$0x3] }
  0x3c   : > { %v1884_v53 = vsel %vm11997_vm11, %v1879_v44, %v1883_v47  ;;  %v1907_v47 = vrot.slane %v12122_v59, 5  ;;  %v1917_v27 = vrot.slane %v1915_v5, 5  ;;  %1055 = vst [vmem:[#allocation2 + $0x44] sm:$0x3] %v1054_v21  ;;  %v1368_v32 = vsel %vm1366_vm0, %v1362_v29, 0  ;;  %v11681_v36 = vld [vmem:[%s11959_s18 + $0x18] sm:$0xff] }
  0x3d   : > { %v2255_v1 = vunpack.c.l.b16 %v1884_v53  ;;  %v1902_v14 = vor.u32 %v1901_v3, %v1898_v2  ;;  %v641_v34 = vsel %vm12007_vm13, 0, %v640_v22  ;;  %v741_v35 = vrot.slane %v739_v19, 6  ;;  %1377 = vmatpush.bf16.msra.mxu0 %v1368_v32  ;;  %v1056_v50 = vld [vmem:[#allocation2 + $0x48] sm:$0xe]  ;;  %v11682_v32 = vld [vmem:[%s11959_s18 + $0x20] sm:$0xff] }
  0x3e   : > { %v1912_v20 = vor.u32 %v1911_v6, %v1907_v47  ;;  %v1772_v31 = vld [vmem:[#allocation2 + $0x3c] sm:$0xf]  ;;  %642 = vst [vmem:[#allocation2 + $0x50] sm:$0x6] %v641_v34  ;;  %v744_v38 = vrot.slane %v742_v23, 7  ;;  %v750_v41 = vrot.slane %v748_v24, 6 }
  0x3f   : > { %v2287_v13 = vpack.c.b16 %v2256_v49, %v2255_v1  ;;  %v1903_v25 = vrot.slane %v1902_v14, 4  ;;  %v1920_v37 = vshrl.u32 %v1772_v31, 16  ;;  %v1773_v39 = vld [vmem:[#allocation2 + $0x40] sm:$0xf]  ;;  %v1923_v40 = vshll.u32 %v1772_v31, 16 }
  0x40   : > { %v1913_v30 = vrot.slane %v1912_v20, 4  ;;  %v751_v42 = vshll.u32 %v12137_v18, 16  ;;  %v12155_v44 = vshll.u32 %v1773_v39, 16  ;;  %v12159_v46 = vshrl.u32 %v1773_v39, 16  ;;  %v613_v24 = vld [vmem:[#allocation2 + $0xa8] sm:$0x3] }
  0x41   : > { %10970 = vmatmul.msk.bf16.vlgmr.msra.gmra.mxu2 %vm1290_vm3, %v2287_v13  ;;  %v1908_v43 = vsel %vm11997_vm11, %v1903_v25, %v1907_v47  ;;  %v745_v48 = vor.u32 %v744_v38, %v741_v35  ;;  %v1922_v51 = vrot.slane %v1920_v37, 4  ;;  %v1925_v52 = vrot.slane %v1923_v40, 5  ;;  %v616_v25 = vld [vmem:[#allocation2 + $0xb4] sm:$0x3]  ;;  %v619_v31 = vld [vmem:[#allocation2 + $0xc0] sm:$0x3] }
  0x42   : > { %17125 = vst [vmem:[#allocation10_spill] sm:$0xff] %v12155_v44  ;;  %v1918_v45 = vsel %vm11997_vm11, %v1913_v30, %v1917_v27  ;;  %v753_v49 = vrot.slane %v751_v42, 7  ;;  %v2257_v0 = vunpack.c.l.b16 %v1908_v43  ;;  %v1931_v2 = vrot.slane %v12155_v44, 5  ;;  %v625_v42 = vld [vmem:[#allocation2 + $0xd8] sm:$0x3] }
  0x43   : > { %17126 = vst [vmem:[#allocation11_spill] sm:$0xff] %v12159_v46  ;;  %v746_v53 = vrot.slane %v745_v48, 4  ;;  %v1057_v61 = vsel %vm12063_vm2, %v745_v48, %v1056_v50  ;;  %v2258_v1 = vunpack.c.l.b16 %v1918_v45  ;;  %v1935_v3 = vrot.slane %v12159_v46, 4  ;;  %v1774_v5 = vld [vmem:[#allocation2 + $0x44] sm:$0x1] }
  0x44   : > { %v754_v58 = vor.u32 %v753_v49, %v750_v41  ;;  %1058 = vst [vmem:[#allocation2 + $0x48] sm:$0xe] %v1057_v61  ;;  %v1926_v10 = vor.u32 %v1925_v52, %v1922_v51  ;;  %v1939_v19 = vshll.u32 %v1774_v5, 16  ;;  %v614_v29 = vsel %vm11991_vm10, 0, %v613_v24  ;;  %v622_v41 = vld [vmem:[#allocation2 + $0xcc] sm:$0x3] }
  0x45   : > { %10988 = vmatmul.msk.bf16.gmra.mxu3 %vm1290_vm3, %v2287_v13  ;;  %v1060_v9 = vld [vmem:[#allocation2 + $0x50] sm:$0x3]  ;;  %v2288_v13 = vpack.c.b16 %v2258_v1, %v2257_v0  ;;  %v1936_v14 = vor.u32 %v1935_v3, %v1931_v2  ;;  %v617_v30 = vsel %vm11991_vm10, 0, %v616_v25  ;;  %615 = vst [vmem:[#allocation2 + $0xa8] sm:$0x3] %v614_v29  ;;  %v620_v38 = vsel %vm11991_vm10, 0, %v619_v31 }
  0x46   : > { %10957 = vmatmul.msk.bf16.gmra.mxu1 %vm1290_vm3, %v11681_v36  ;;  %v755_v47 = vsel %vm12043_vm15, %v746_v53, %v754_v58  ;;  %v756_v6 = vrot.slane %v754_v58, 4  ;;  %v1927_v20 = vrot.slane %v1926_v10, 4  ;;  %v1941_v23 = vrot.slane %v1939_v19, 5  ;;  %618 = vst [vmem:[#allocation2 + $0xb4] sm:$0x3] %v617_v30 }
  0x47   : > { %1059 = vst.msk [vmem:[#allocation2 + $0x4c] sm:$0xf] %vm555_vm1, %v755_v47  ;;  %v1937_v22 = vrot.slane %v1936_v14, 4  ;;  %v664_v43 = vld [vmem:[#allocation2 + $0xb0] sm:$0x6]  ;;  %v623_v50 = vsel %vm11991_vm10, 0, %v622_v41  ;;  %v1262_v5 = vunpack.c.l.bf16 %v12085_v54  ;;  %v1264_v30 = vunpack.c.l.bf16 %v12129_v63 }
  0x48   : > { %v1061_v11 = vsel %vm11991_vm10, %v756_v6, %v1060_v9  ;;  %621 = vst [vmem:[#allocation2 + $0xc0] sm:$0x3] %v620_v38  ;;  %v1932_v39 = vsel %vm11997_vm11, %v1927_v20, %v1931_v2  ;;  %v667_v51 = vld [vmem:[#allocation2 + $0xbc] sm:$0x6]  ;;  %v626_v53 = vsel %vm11991_vm10, 0, %v625_v42  ;;  %v665_v58 = vsel %vm12007_vm13, 0, %v664_v43 }
  0x49   : > { %1062 = vst [vmem:[#allocation2 + $0x50] sm:$0x3] %v1061_v11  ;;  %v1942_v40 = vsel %vm11997_vm11, %v1937_v22, %v1941_v23  ;;  %v668_v61 = vsel %vm12007_vm13, 0, %v667_v51  ;;  %v2259_v0 = vunpack.c.l.b16 %v1932_v39  ;;  %v670_v3 = vld [vmem:[#allocation2 + $0xc8] sm:$0x6]  ;;  %v1263_v20 = vunpack.c.l.bf16 %v12104_v12 }
  0x4a   : > { %624 = vst [vmem:[#allocation2 + $0xcc] sm:$0x3] %v623_v50  ;;  %v2260_v1 = vunpack.c.l.b16 %v1942_v40  ;;  %v671_v47 = vsel %vm12007_vm13, 0, %v670_v3  ;;  %v673_v6 = vld [vmem:[#allocation2 + $0xd4] sm:$0x6]  ;;  %v1302_v50 = vsel %vm1290_vm3, %v1264_v30, 0.0 }
  0x4b   : > { %v1775_v21 = vld [vmem:[#allocation2 + $0x48] sm:$0xf]  ;;  %627 = vst [vmem:[#allocation2 + $0xd8] sm:$0x3] %v626_v53  ;;  %v674_v9 = vsel %vm12007_vm13, 0, %v673_v6  ;;  %v1300_v29 = vsel %vm1290_vm3, %v1263_v20, 0.0 }
  0x4c   : > { %v1944_v34 = vshrl.u32 %v1775_v21, 16  ;;  %v1947_v35 = vshll.u32 %v1775_v21, 16  ;;  %666 = vst [vmem:[#allocation2 + $0xb0] sm:$0x6] %v665_v58  ;;  %v676_v10 = vld [vmem:[#allocation2 + $0xe0] sm:$0x6]  ;;  %v12207_v19 = vpack.c.b16 %v2260_v1, %v2259_v0 }
  0x4d   : > { %669 = vst [vmem:[#allocation2 + $0xbc] sm:$0x6] %v668_v61  ;;  %v677_v54 = vsel %vm12007_vm13, 0, %v676_v10  ;;  %v1298_v21 = vsel %vm1290_vm3, %v1262_v5, 0.0  ;;  %v12214_v25 = vld [vmem:[%s11959_s18 + $0x20] sm:$0xf] }
  0x4e   : > { %v1776_v27 = vld [vmem:[#allocation2 + $0x4c] sm:$0xf]  ;;  %v1946_v45 = vrot.slane %v1944_v34, 4  ;;  %v1949_v48 = vrot.slane %v1947_v35, 5  ;;  %672 = vst [vmem:[#allocation2 + $0xc8] sm:$0x6] %v671_v47 }
  0x4f   : > { %v12178_v36 = vshll.u32 %v1776_v27, 16  ;;  %v12180_v37 = vshrl.u32 %v1776_v27, 16  ;;  %675 = vst [vmem:[#allocation2 + $0xd4] sm:$0x6] %v674_v9  ;;  %v1299_v27 = vadd.f32 %v1298_v21, %v12091_v62  ;;  %v12220_v12 = vld [vmem:[%s11959_s18 + $0x24] sm:$0xf] }
  0x50   : > { %v1777_v2 = vld [vmem:[#allocation2 + $0x50] sm:$0x1]  ;;  %v1950_v11 = vor.u32 %v1949_v48, %v1946_v45  ;;  %678 = vst [vmem:[#allocation2 + $0xe0] sm:$0x6] %v677_v54  ;;  %v12232_v62 = vld [vmem:[%s11959_s18 + $0x54] sm:$0xf] }
  0x51   : > { %10971 = vmatmul.msk.bf16.gmra.mxu2 %vm1290_vm3, %v2288_v13  ;;  %17127 = vst [vmem:[#allocation12_spill] sm:$0xff] %v12178_v36  ;;  %v1955_v49 = vrot.slane %v12178_v36, 5  ;;  %v1959_v52 = vrot.slane %v12180_v37, 4  ;;  %v1963_v14 = vshll.u32 %v1777_v2, 16  ;;  %v12223_v31 = vld [vmem:[%s11959_s18 + $0x50] sm:$0xf]  ;;  %v1301_v43 = vadd.f32 %v1300_v29, %v1299_v27 }
  0x52   : > { %17128 = vst [vmem:[#allocation13_spill] sm:$0xff] %v12180_v37  ;;  %v1951_v22 = vrot.slane %v1950_v11, 4  ;;  %v872_v34 = vshrl.u32 %v12223_v31, 16  ;;  %v875_v63 = vshll.u32 %v12223_v31, 16  ;;  %v12237_v40 = vld [vmem:[%s11959_s18 + $0x58] sm:$0xf] }
  0x53   : > { %v1965_v24 = vrot.slane %v1963_v14, 5  ;;  %v881_v41 = vshrl.u32 %v12232_v62, 16  ;;  %v884_v48 = vshll.u32 %v12232_v62, 16  ;;  %v12245_v53 = vld [vmem:[%s11959_s18 + $0x5c] sm:$0xf]  ;;  %v894_v0 = vshll.u32 %v12237_v40, 16 }
  0x54   : > { %v1956_v35 = vsel %vm11997_vm11, %v1951_v22, %v1955_v49  ;;  %v877_v45 = vrot.slane %v875_v63, 7  ;;  %v12248_v58 = vld [vmem:[%s11959_s18 + $0x60] sm:$0xf]  ;;  %v12254_v1 = vld [vmem:[%s11959_s18 + $0x64] sm:$0xf]  ;;  %v900_v47 = vshrl.u32 %v12245_v53, 16 }
  0x55   : > { %10989 = vmatmul.msk.bf16.gmra.mxu3 %vm1290_vm3, %v2288_v13  ;;  %v1960_v13 = vor.u32 %v1959_v52, %v1955_v49  ;;  %v891_v49 = vshrl.u32 %v12237_v40, 16  ;;  %v2261_v51 = vunpack.c.l.b16 %v1956_v35  ;;  %v883_v61 = vrot.slane %v881_v41, 6  ;;  %v12277_v30 = vld [vmem:[%s11959_s18 + $0x6c] sm:$0xf]  ;;  %v1130_v59 = vld [vmem:[#allocation2 + $0xc8] sm:$0x3] }
  0x56   : > { %10958 = vmatmul.msk.bf16.gmra.mxu1 %vm1290_vm3, %v11682_v32  ;;  %v1265_v32 = vunpack.c.l.bf16 %v12137_v18  ;;  %v874_v18 = vrot.slane %v872_v34, 6  ;;  %v886_v3 = vrot.slane %v884_v48, 7  ;;  %v896_v6 = vrot.slane %v894_v0, 7  ;;  %v1133_v60 = vld [vmem:[#allocation2 + $0xcc] sm:$0xe] }
  0x57   : > { %v1961_v23 = vrot.slane %v1960_v13, 4  ;;  %v893_v5 = vrot.slane %v891_v49, 6  ;;  %v903_v9 = vshll.u32 %v12245_v53, 16  ;;  %v910_v10 = vshrl.u32 %v12248_v58, 16  ;;  %v12265_v13 = vld [vmem:[%s11959_s18 + $0x68] sm:$0xf] }
  0x58   : > { %v12256_v2 = vor.u32 %v877_v45, %v874_v18  ;;  %v12262_v11 = vsel %vm1290_vm3, %v1265_v32, 0.0  ;;  %v12268_v54 = vor.u32 %v886_v3, %v883_v61  ;;  %v902_v20 = vrot.slane %v900_v47, 6  ;;  %v12296_v61 = vld [vmem:[%s11959_s18 + $0x74] sm:$0xf] }
  0x59   : > { %v1966_v38 = vsel %vm11997_vm11, %v1961_v23, %v1965_v24  ;;  %v913_v21 = vshll.u32 %v12248_v58, 16  ;;  %v12271_v22 = vor.u32 %v896_v6, %v893_v5  ;;  %v905_v23 = vrot.slane %v903_v9, 7 }
  0x5a   : > { %v2262_v52 = vunpack.c.l.b16 %v1966_v38  ;;  %v879_v14 = vrot.slane %v12256_v2, 4  ;;  %v912_v24 = vrot.slane %v910_v10, 6  ;;  %v919_v27 = vshrl.u32 %v12254_v1, 16 }
  0x5b   : > { %v915_v34 = vrot.slane %v913_v21, 7  ;;  %v922_v35 = vshll.u32 %v12254_v1, 16  ;;  %v898_v38 = vrot.slane %v12271_v22, 4  ;;  %v12284_v63 = vor.u32 %v905_v23, %v902_v20  ;;  %v12307_v20 = vld [vmem:[%s11959_s18 + $0x78] sm:$0xf] }
  0x5c   : > { %v12274_v29 = vpack.c.b16 %v2262_v52, %v2261_v51  ;;  %v888_v32 = vsel %vm12043_vm15, %v879_v14, %v12268_v54  ;;  %v921_v18 = vrot.slane %v919_v27, 6  ;;  %v929_v41 = vshrl.u32 %v12265_v13, 16  ;;  %v12293_v52 = vld [vmem:[%s11959_s18 + $0x70] sm:$0xf] }
  0x5d   : > { %1108 = vst.msk [vmem:[#allocation2 + $0xa0] sm:$0xf] %vm555_vm1, %v888_v32  ;;  %v12288_v45 = vor.u32 %v915_v34, %v912_v24  ;;  %v924_v48 = vrot.slane %v922_v35, 7  ;;  %v932_v49 = vshll.u32 %v12265_v13, 16  ;;  %v938_v51 = vshrl.u32 %v12277_v30, 16 }
  0x5e   : > { %v907_v0 = vsel %vm12043_vm15, %v898_v38, %v12284_v63  ;;  %v931_v3 = vrot.slane %v929_v41, 6  ;;  %v941_v5 = vshll.u32 %v12277_v30, 16  ;;  %v1303_v47 = vadd.f32 %v1302_v50, %v1301_v43  ;;  %v12313_v50 = vld [vmem:[%s11959_s18 + $0x7c] sm:$0xf]  ;;  %v1112_v38 = vld [vmem:[#allocation2 + $0xa8] sm:$0xe] }
  0x5f   : > { %v917_v6 = vrot.slane %v12288_v45, 4  ;;  %v925_v9 = vor.u32 %v924_v48, %v921_v18  ;;  %v934_v10 = vrot.slane %v932_v49, 7  ;;  %v940_v14 = vrot.slane %v938_v51, 6  ;;  %1115 = vst.msk [vmem:[#allocation2 + $0xac] sm:$0xf] %vm555_vm1, %v907_v0 }
  0x60   : > { %v943_v21 = vrot.slane %v941_v5, 7  ;;  %v948_v23 = vshrl.u32 %v12293_v52, 16  ;;  %v951_v24 = vshll.u32 %v12293_v52, 16  ;;  %v957_v43 = vshrl.u32 %v12296_v61, 16  ;;  %v1119_v51 = vld [vmem:[#allocation2 + $0xb4] sm:$0xe] }
  0x61   : > { %10972 = vmatmul.msk.bf16.gmra.mxu2 %vm1290_vm3, %v12207_v19  ;;  %v926_v27 = vsel %vm12043_vm15, %v917_v6, %v925_v9  ;;  %v927_v32 = vrot.slane %v925_v9, 4  ;;  %v935_v34 = vor.u32 %v934_v10, %v931_v3  ;;  %v960_v35 = vshll.u32 %v12296_v61, 16  ;;  %v12320_v0 = vld [vmem:[%s11959_s18 + $0x28] sm:$0xf]  ;;  %v1126_v9 = vld [vmem:[#allocation2 + $0xc0] sm:$0xe] }
  0x62   : > { %v944_v18 = vor.u32 %v943_v21, %v940_v14  ;;  %v950_v41 = vrot.slane %v948_v23, 6  ;;  %v953_v48 = vrot.slane %v951_v24, 7  ;;  %v959_v49 = vrot.slane %v957_v43, 6  ;;  %1122 = vst.msk [vmem:[#allocation2 + $0xb8] sm:$0xf] %vm555_vm1, %v926_v27 }
  0x63   : > { %v936_v5 = vrot.slane %v935_v34, 4  ;;  %v962_v4 = vrot.slane %v960_v35, 7  ;;  %v967_v42 = vshrl.u32 %v12307_v20, 16  ;;  %v970_v6 = vshll.u32 %v12307_v20, 16  ;;  %v12325_v3 = vld [vmem:[%s11959_s18 + $0x2c] sm:$0xf] }
  0x64   : > { %v946_v10 = vrot.slane %v944_v18, 4  ;;  %v954_v39 = vor.u32 %v953_v48, %v950_v41  ;;  %v976_v14 = vshrl.u32 %v12313_v50, 16  ;;  %v979_v21 = vshll.u32 %v12313_v50, 16  ;;  %v1123_v23 = vld [vmem:[#allocation2 + $0xbc] sm:$0x3] }
  0x65   : > { %10990 = vmatmul.msk.bf16.gmra.mxu3 %vm1290_vm3, %v12207_v19  ;;  %v945_v24 = vsel %vm12043_vm15, %v936_v5, %v944_v18  ;;  %v963_v43 = vor.u32 %v962_v4, %v959_v49  ;;  %v969_v27 = vrot.slane %v967_v42, 6  ;;  %v972_v35 = vrot.slane %v970_v6, 7  ;;  %v12342_v49 = vld [vmem:[%s11959_s18 + $0x30] sm:$0xf]  ;;  %v1137_v6 = vld [vmem:[#allocation2 + $0xd4] sm:$0x3] }
  0x66   : > { %v955_v36 = vrot.slane %v954_v39, 4  ;;  %v978_v37 = vrot.slane %v976_v14, 6  ;;  %v981_v56 = vrot.slane %v979_v21, 7  ;;  %v1113_v41 = vsel %vm12063_vm2, %v12271_v22, %v1112_v38  ;;  %1129 = vst.msk [vmem:[#allocation2 + $0xc4] sm:$0xf] %vm555_vm1, %v945_v24 }
  0x67   : > { %v965_v18 = vrot.slane %v963_v43, 4  ;;  %v973_v4 = vor.u32 %v972_v35, %v969_v27  ;;  %v1120_v42 = vsel %vm12063_vm2, %v12288_v45, %v1119_v51  ;;  %v1305_v48 = vadd.f32 %v12262_v11, %v1303_v47  ;;  %1114 = vst [vmem:[#allocation2 + $0xa8] sm:$0xe] %v1113_v41  ;;  %v12350_v21 = vld [vmem:[%s11959_s18 + $0x34] sm:$0xf] }
  0x68   : > { %v982_v5 = vor.u32 %v981_v56, %v978_v37  ;;  %1121 = vst [vmem:[#allocation2 + $0xb4] sm:$0xe] %v1120_v42  ;;  %v1124_v22 = vsel %vm11991_vm10, %v927_v32, %v1123_v23  ;;  %v1127_v38 = vsel %vm12063_vm2, %v935_v34, %v1126_v9  ;;  %v1268_v14 = vunpack.c.l.bf16 %v12320_v0  ;;  %v1140_v37 = vld [vmem:[#allocation2 + $0xd8] sm:$0xe] }
  0x69   : > { %v974_v24 = vrot.slane %v973_v4, 4  ;;  %1125 = vst [vmem:[#allocation2 + $0xbc] sm:$0x3] %v1124_v22  ;;  %v1131_v11 = vsel %vm11991_vm10, %v946_v10, %v1130_v59  ;;  %v1134_v56 = vsel %vm12063_vm2, %v954_v39, %v1133_v60  ;;  %v1269_v45 = vunpack.c.l.bf16 %v12325_v3  ;;  %v1144_v39 = vld [vmem:[#allocation2 + $0xe0] sm:$0x3] }
  0x6a   : > { %v964_v47 = vsel %vm12043_vm15, %v955_v36, %v963_v43  ;;  %v984_v32 = vrot.slane %v982_v5, 4  ;;  %1128 = vst [vmem:[#allocation2 + $0xc0] sm:$0xe] %v1127_v38  ;;  %v17129_v34 = vunpack.c.l.bf16 %v12214_v25  ;;  %v17130_v9 = vunpack.c.l.bf16 %v12220_v12  ;;  %v1116_v36 = vld [vmem:[#allocation2 + $0xb0] sm:$0x3] }
  0x6b   : > { %v908_v10 = vrot.slane %v12284_v63, 4  ;;  %1132 = vst [vmem:[#allocation2 + $0xc8] sm:$0x3] %v1131_v11  ;;  %v1138_v60 = vsel %vm11991_vm10, %v965_v18, %v1137_v6  ;;  %v1141_v43 = vsel %vm12063_vm2, %v973_v4, %v1140_v37  ;;  %v1270_v27 = vunpack.c.l.bf16 %v12342_v49  ;;  %v12373_v41 = vld [vmem:[%s11959_s18 + $0x38] sm:$0xf] }
  0x6c   : > { %v1306_v51 = vsel %vm1290_vm3, %v17129_v34, 0.0  ;;  %v1308_v59 = vsel %vm1290_vm3, %v17130_v9, 0.0  ;;  %1135 = vst [vmem:[#allocation2 + $0xcc] sm:$0xe] %v1134_v56  ;;  %v1310_v35 = vsel %vm1290_vm3, %v1268_v14, 0.0  ;;  %v983_v63 = vsel %vm12043_vm15, %v974_v24, %v982_v5 }
  0x6d   : > { %v1307_v23 = vadd.f32 %v1306_v51, %v1305_v48  ;;  %1136 = vst.msk [vmem:[#allocation2 + $0xd0] sm:$0xf] %vm555_vm1, %v964_v47  ;;  %v1145_v42 = vsel %vm11991_vm10, %v984_v32, %v1144_v39  ;;  %v1271_v4 = vunpack.c.l.bf16 %v12350_v21  ;;  %v1312_v48 = vsel %vm1290_vm3, %v1269_v45, 0.0  ;;  %v12383_v22 = vld [vmem:[%s11959_s18 + $0x3c] sm:$0xf] }
  0x6e   : > { %1139 = vst [vmem:[#allocation2 + $0xd4] sm:$0x3] %v1138_v60  ;;  %v1117_v38 = vsel %vm11991_vm10, %v908_v10, %v1116_v36  ;;  %v1272_v6 = vunpack.c.l.bf16 %v12373_v41  ;;  %v1314_v14 = vsel %vm1290_vm3, %v1270_v27, 0.0  ;;  %v12391_v24 = vld [vmem:[%s11959_s18 + $0x40] sm:$0xf]  ;;  %v1273_v56 = vunpack.c.l.bf16 %v12383_v22 }
  0x6f   : > { %v1309_v18 = vadd.f32 %v1308_v59, %v1307_v23  ;;  %1142 = vst [vmem:[#allocation2 + $0xd8] sm:$0xe] %v1141_v43  ;;  %v1316_v37 = vsel %vm1290_vm3, %v1271_v4, 0.0  ;;  %v12396_v45 = vld [vmem:[%s11959_s18 + $0x44] sm:$0xf]  ;;  %v1274_v34 = vunpack.c.l.bf16 %v12391_v24  ;;  %v761_v4 = vshll.u32 %v12214_v25, 16 }
  0x70   : > { %1143 = vst.msk [vmem:[#allocation2 + $0xdc] sm:$0xf] %vm555_vm1, %v983_v63  ;;  %v12399_v32 = vld [vmem:[%s11959_s18 + $0x48] sm:$0xf]  ;;  %v1318_v51 = vsel %vm1290_vm3, %v1272_v6, 0.0  ;;  %v1275_v59 = vunpack.c.l.bf16 %v12396_v45  ;;  %v1320_v10 = vsel %vm1290_vm3, %v1273_v56, 0.0 }
  0x71   : > { %10973 = vmatmul.msk.bf16.gmra.mxu2 %vm1290_vm3, %v12274_v29  ;;  %v1311_v5 = vadd.f32 %v1310_v35, %v1309_v18  ;;  %1146 = vst [vmem:[#allocation2 + $0xe0] sm:$0x3] %v1145_v42  ;;  %v12406_v60 = vld [vmem:[%s11959_s18 + $0x4c] sm:$0xf]  ;;  %v1276_v39 = vunpack.c.l.bf16 %v12399_v32  ;;  %v1322_v36 = vsel %vm1290_vm3, %v1274_v34, 0.0  ;;  %v758_v42 = vshrl.u32 %v12214_v25, 16 }
  0x72   : > { %1118 = vst [vmem:[#allocation2 + $0xb0] sm:$0x3] %v1117_v38  ;;  %v592_v43 = vld [vmem:[#allocation2 + $0x54] sm:$0x3]  ;;  %v1277_v63 = vunpack.c.l.bf16 %v12406_v60  ;;  %v1324_v18 = vsel %vm1290_vm3, %v1275_v59, 0.0  ;;  %v767_v56 = vshrl.u32 %v12220_v12, 16 }
  0x73   : > { %v1313_v11 = vadd.f32 %v1312_v48, %v1311_v5  ;;  %v593_v35 = vsel %vm11991_vm10, 0, %v592_v43  ;;  %v1278_v48 = vunpack.c.l.bf16 %v12223_v31  ;;  %v1326_v5 = vsel %vm1290_vm3, %v1276_v39, 0.0  ;;  %v643_v6 = vld [vmem:[#allocation2 + $0x5c] sm:$0x6] }
  0x74   : > { %594 = vst [vmem:[#allocation2 + $0x54] sm:$0x3] %v593_v35  ;;  %v1328_v25 = vsel %vm1290_vm3, %v1277_v63, 0.0  ;;  %v1280_v39 = vunpack.c.l.bf16 %v12237_v40  ;;  %v1282_v40 = vunpack.c.l.bf16 %v12248_v58  ;;  %vm2772_vm4 = vsmask.f32 6416 }
  0x75   : > { %10991 = vmatmul.msk.bf16.gmra.mxu3 %vm1290_vm3, %v12274_v29  ;;  %v1315_v47 = vadd.f32 %v1314_v14, %v1313_v11  ;;  %v760_v14 = vrot.slane %v758_v42, 6  ;;  %v763_v11 = vrot.slane %v761_v4, 7  ;;  %v1283_v4 = vunpack.c.l.bf16 %v12254_v1 }
  0x76   : > { %v1338_v1 = vsel %vm1290_vm3, %v1282_v40, 0.0  ;;  %vm1158_vm9 = vsmask.f32 256  ;;  %vm8600_vm14 = vcmask 261120  }
  0x77   : > { %v1317_v9 = vadd.f32 %v1316_v37, %v1315_v47  ;;  %v770_v37 = vshll.u32 %v12220_v12, 16  ;;  %v1279_v47 = vunpack.c.l.bf16 %v12232_v62  ;;  %v764_v31 = vor.u32 %v763_v11, %v760_v14  ;;  %vm15303_vm12 = vmand %vm1150_vm8, %vm1158_vm9 }
  0x78   : > { %v1281_v62 = vunpack.c.l.bf16 %v12245_v53  ;;  %v1284_v53 = vunpack.c.l.bf16 %v12265_v13 }
  0x79   : > { %v1319_v23 = vadd.f32 %v1318_v51, %v1317_v9  ;;  %v644_v51 = vsel %vm12007_vm13, 0, %v643_v6  ;;  %v769_v9 = vrot.slane %v767_v56, 6  ;;  %v772_v59 = vrot.slane %v770_v37, 7 }
  0x7a   : > { %645 = vst [vmem:[#allocation2 + $0x5c] sm:$0x6] %v644_v51  ;;  %v1332_v35 = vsel %vm1290_vm3, %v1279_v47, 0.0  ;;  %v1336_v11 = vsel %vm1290_vm3, %v1281_v62, 0.0  ;;  %v1340_v37 = vsel %vm1290_vm3, %v1283_v4, 0.0  ;;  %v1342_v51 = vsel %vm1290_vm3, %v1284_v53, 0.0 }
  0x7b   : > { %v1321_v27 = vadd.f32 %v1320_v10, %v1319_v23  ;;  %v1330_v23 = vsel %vm1290_vm3, %v1278_v48, 0.0  ;;  %v773_v43 = vor.u32 %v772_v59, %v769_v9  ;;  %v1334_v48 = vsel %vm1290_vm3, %v1280_v39, 0.0  ;;  %v595_v47 = vld [vmem:[#allocation2 + $0x60] sm:$0x3] }
  0x7c   : > { %v777_v59 = vshrl.u32 %v12320_v0, 16  ;;  %v1287_v39 = vunpack.c.l.bf16 %v12296_v61  ;;  %v1288_v4 = vunpack.c.l.bf16 %v12307_v20 }
  0x7d   : > { %v1323_v38 = vadd.f32 %v1322_v36, %v1321_v27  ;;  %v765_v36 = vrot.slane %v764_v31, 4  ;;  %v1063_v27 = vld [vmem:[#allocation2 + $0x54] sm:$0xe] }
  0x7f   : > { %v1325_v34 = vadd.f32 %v1324_v18, %v1323_v38  ;;  %v774_v63 = vsel %vm12043_vm15, %v765_v36, %v773_v43  ;;  %v1064_v18 = vsel %vm12063_vm2, %v764_v31, %v1063_v27  ;;  %v775_v38 = vrot.slane %v773_v43, 4  ;;  %v1756_v27 = vld [vmem:[%s17011_s7 + $0xc] sm:$0x3] }
  0x80   : > { %1065 = vst [vmem:[#allocation2 + $0x54] sm:$0xe] %v1064_v18  ;;  %v1286_v31 = vunpack.c.l.bf16 %v12293_v52 }
  0x81   : > { %v1327_v10 = vadd.f32 %v1326_v5, %v1325_v34  ;;  %1066 = vst.msk [vmem:[#allocation2 + $0x58] sm:$0xf] %vm555_vm1, %v774_v63  ;;  %v1285_v5 = vunpack.c.l.bf16 %v12277_v30  ;;  %v1067_v14 = vld [vmem:[#allocation2 + $0x5c] sm:$0x3]  ;;  %v11683_v30 = vld [vmem:[%s11959_s18 + $0x28] sm:$0xff] }
  0x82   : > { %v1068_v56 = vsel %vm11991_vm10, %v775_v38, %v1067_v14  ;;  %10959 = vmatmul.msk.bf16.gmra.mxu1 %vm1290_vm3, %v11683_v30  ;;  %v646_v63 = vld [vmem:[#allocation2 + $0x68] sm:$0x6] }
  0x83   : > { %v1329_v12 = vadd.f32 %v1328_v25, %v1327_v10  ;;  %1069 = vst [vmem:[#allocation2 + $0x5c] sm:$0x3] %v1068_v56  ;;  %v1344_v13 = vsel %vm1290_vm3, %v1285_v5, 0.0  ;;  %v596_v25 = vsel %vm11991_vm10, 0, %v595_v47  ;;  %v780_v10 = vshll.u32 %v12320_v0, 16 }
  0x84   : > { %597 = vst [vmem:[#allocation2 + $0x60] sm:$0x3] %v596_v25  ;;  %v779_v0 = vrot.slane %v777_v59, 6  ;;  %v647_v40 = vsel %vm12007_vm13, 0, %v646_v63  ;;  %v789_v47 = vshll.u32 %v12325_v3, 16 }
  0x85   : > { %v1331_v42 = vadd.f32 %v1330_v23, %v1329_v12  ;;  %648 = vst [vmem:[#allocation2 + $0x68] sm:$0x6] %v647_v40  ;;  %v782_v56 = vrot.slane %v780_v10, 7 }
  0x87   : > { %v1333_v6 = vadd.f32 %v1332_v35, %v1331_v42  ;;  %v1778_v9 = vld [vmem:[#allocation2 + $0x54] sm:$0xf]  ;;  %v2608_v35 = vsel %vm1366_vm0, %v1756_v27, 0  ;;  %v783_v30 = vor.u32 %v782_v56, %v779_v0 }
  0x88   : > { %v1779_v36 = vld [vmem:[#allocation2 + $0x58] sm:$0xf]  ;;  %v1968_v43 = vshrl.u32 %v1778_v9, 16  ;;  %v1971_v12 = vshll.u32 %v1778_v9, 16  ;;  %2617 = vmatpush.bf16.msrb.mxu0 %v2608_v35  ;;  %v1348_v9 = vsel %vm1290_vm3, %v1287_v39, 0.0  ;;  %v796_v39 = vshrl.u32 %v12342_v49, 16 }
  0x89   : > { %v1335_v58 = vadd.f32 %v1334_v48, %v1333_v6  ;;  %v12456_v62 = vshll.u32 %v1779_v36, 16  ;;  %v12458_v52 = vshrl.u32 %v1779_v36, 16  ;;  %v1289_v48 = vunpack.c.l.bf16 %v12313_v50 }
  0x8a   : > { %v1970_v61 = vrot.slane %v1968_v43, 4  ;;  %v1973_v42 = vrot.slane %v1971_v12, 5  ;;  %v1780_v38 = vld [vmem:[#allocation2 + $0x5c] sm:$0x1]  ;;  %v798_v56 = vrot.slane %v796_v39, 6 }
  0x8b   : > { %v1337_v34 = vadd.f32 %v1336_v11, %v1335_v58  ;;  %v1979_v53 = vrot.slane %v12456_v62, 5  ;;  %v1983_v5 = vrot.slane %v12458_v52, 4  ;;  %v1987_v11 = vshll.u32 %v1780_v38, 16  ;;  %v1070_v25 = vld [vmem:[#allocation2 + $0x60] sm:$0xe] }
  0x8c   : > { %v1974_v14 = vor.u32 %v1973_v42, %v1970_v61  ;;  %v1346_v58 = vsel %vm1290_vm3, %v1286_v31, 0.0  ;;  %v784_v31 = vrot.slane %v783_v30, 4  ;;  %v1071_v43 = vsel %vm12063_vm2, %v783_v30, %v1070_v25  ;;  %v1074_v0 = vld [vmem:[#allocation2 + $0x68] sm:$0x3] }
  0x8d   : > { %v1339_v23 = vadd.f32 %v1338_v1, %v1337_v34  ;;  %v1984_v1 = vor.u32 %v1983_v5, %v1979_v53  ;;  %v1989_v50 = vrot.slane %v1987_v11, 5  ;;  %1072 = vst [vmem:[#allocation2 + $0x60] sm:$0xe] %v1071_v43  ;;  %v1352_v61 = vsel %vm1290_vm3, %v1289_v48, 0.0  ;;  %v11684_v48 = vld [vmem:[%s11959_s18 + $0x30] sm:$0xff] }
  0x8e   : > { %v1975_v34 = vrot.slane %v1974_v14, 4  ;;  %v808_v5 = vshll.u32 %v12350_v21, 16  ;;  %v598_v14 = vld [vmem:[#allocation2 + $0x6c] sm:$0x3] }
  0x8f   : > { %v1341_v18 = vadd.f32 %v1340_v37, %v1339_v23  ;;  %v786_v37 = vshrl.u32 %v12325_v3, 16  ;;  %v1985_v59 = vrot.slane %v1984_v1, 4  ;;  %v1350_v3 = vsel %vm1290_vm3, %v1288_v4, 0.0 }
  0x90   : > { %v1980_v10 = vsel %vm11997_vm11, %v1975_v34, %v1979_v53  ;;  %v805_v53 = vshrl.u32 %v12350_v21, 16  ;;  %v599_v11 = vsel %vm11991_vm10, 0, %v598_v14 }
  0x91   : > { %v1343_v6 = vadd.f32 %v1342_v51, %v1341_v18  ;;  %v788_v23 = vrot.slane %v786_v37, 6  ;;  %v791_v51 = vrot.slane %v789_v47, 7  ;;  %v2263_v12 = vunpack.c.l.b16 %v1980_v10  ;;  %600 = vst [vmem:[#allocation2 + $0x6c] sm:$0x3] %v599_v11 }
  0x92   : > { %v799_v18 = vshll.u32 %v12342_v49, 16  ;;  %10960 = vmatmul.msk.bf16.gmra.mxu1 %vm1290_vm3, %v11684_v48  ;;  %v807_v37 = vrot.slane %v805_v53, 6  ;;  %v810_v47 = vrot.slane %v808_v5, 7  ;;  %v815_v5 = vshrl.u32 %v12373_v41, 16 }
  0x93   : > { %v1345_v20 = vadd.f32 %v1344_v13, %v1343_v6  ;;  %v1990_v13 = vsel %vm11997_vm11, %v1985_v59, %v1989_v50  ;;  %v792_v27 = vor.u32 %v791_v51, %v788_v23  ;;  %v649_v50 = vld [vmem:[#allocation2 + $0x74] sm:$0x6] }
  0x94   : > { %v2264_v63 = vunpack.c.l.b16 %v1990_v13  ;;  %v1781_v1 = vld [vmem:[#allocation2 + $0x60] sm:$0xf]  ;;  %v650_v25 = vsel %vm12007_vm13, 0, %v649_v50 }
  0x95   : > { %v1347_v36 = vadd.f32 %v1346_v58, %v1345_v20  ;;  %v793_v42 = vsel %vm12043_vm15, %v784_v31, %v792_v27  ;;  %v794_v40 = vrot.slane %v792_v27, 4  ;;  %v801_v58 = vrot.slane %v799_v18, 7  ;;  %651 = vst [vmem:[#allocation2 + $0x74] sm:$0x6] %v650_v25 }
  0x96   : > { %v12483_v38 = vpack.c.b16 %v2264_v63, %v2263_v12  ;;  %1073 = vst.msk [vmem:[#allocation2 + $0x64] sm:$0xf] %vm555_vm1, %v793_v42  ;;  %v1992_v20 = vshrl.u32 %v1781_v1, 16  ;;  %v1995_v34 = vshll.u32 %v1781_v1, 16  ;;  %v811_v12 = vor.u32 %v810_v47, %v807_v37 }
  0x97   : > { %v1349_v35 = vadd.f32 %v1348_v9, %v1347_v36  ;;  %v1075_v6 = vsel %vm11991_vm10, %v794_v40, %v1074_v0  ;;  %v802_v51 = vor.u32 %v801_v58, %v798_v56  ;;  %v824_v58 = vshrl.u32 %v12383_v22, 16 }
  0x98   : > { %10974 = vmatmul.msk.bf16.gmra.mxu2 %vm1290_vm3, %v12483_v38  ;;  %1076 = vst [vmem:[#allocation2 + $0x68] sm:$0x3] %v1075_v6  ;;  %10992 = vmatmul.msk.bf16.gmra.mxu3 %vm1290_vm3, %v12483_v38  ;;  %v1994_v59 = vrot.slane %v1992_v20, 4  ;;  %v1997_v23 = vrot.slane %v1995_v34, 5  ;;  %v1077_v0 = vld [vmem:[#allocation2 + $0x6c] sm:$0xe] }
  0x99   : > { %v1351_v4 = vadd.f32 %v1350_v3, %v1349_v35  ;;  %v803_v13 = vrot.slane %v802_v51, 4  ;;  %v1078_v42 = vsel %vm12063_vm2, %v802_v51, %v1077_v0  ;;  %v818_v6 = vshll.u32 %v12373_v41, 16 }
  0x9a   : > { %v1998_v3 = vor.u32 %v1997_v23, %v1994_v59  ;;  %1079 = vst [vmem:[#allocation2 + $0x6c] sm:$0xe] %v1078_v42  ;;  %v817_v20 = vrot.slane %v815_v5, 6  ;;  %v826_v23 = vrot.slane %v824_v58, 6  ;;  %v12542_v58 = vpop.f32.mrf.mxu1 }
  0x9b   : > { %v1353_v49 = vadd.f32 %v1352_v61, %v1351_v4  ;;  %v812_v61 = vsel %vm12043_vm15, %v803_v13, %v811_v12  ;;  %v820_v34 = vrot.slane %v818_v6, 7 }
  0x9c   : > { %v1999_v18 = vrot.slane %v1998_v3, 4  ;;  %1080 = vst.msk [vmem:[#allocation2 + $0x70] sm:$0xf] %vm555_vm1, %v812_v61  ;;  %v1081_v56 = vld [vmem:[#allocation2 + $0x74] sm:$0x3] }
  0x9d   : > { %v1354_v21 = vrot.slane %v1353_v49, 4  ;;  %v1782_v9 = vld [vmem:[#allocation2 + $0x64] sm:$0xf] }
  0x9e   : > { %v12500_v10 = vshll.u32 %v1782_v9, 16  ;;  %v12502_v31 = vshrl.u32 %v1782_v9, 16  ;;  %v11685_v9 = vld [vmem:[%s11959_s18 + $0x38] sm:$0xff] }
  0x9f   : > { %v1355_v30 = vadd.f32 %v1354_v21, %v1353_v49  ;;  %v1783_v43 = vld [vmem:[#allocation2 + $0x68] sm:$0x1]  ;;  %v813_v49 = vrot.slane %v811_v12, 4  ;;  %v827_v21 = vshll.u32 %v12383_v22, 16  ;;  %v821_v12 = vor.u32 %v820_v34, %v817_v20 }
  0xa0   : > { %17131 = vst [vmem:[#allocation14_spill] sm:$0xff] %v12500_v10  ;;  %v2003_v39 = vrot.slane %v12500_v10, 5  ;;  %v2007_v35 = vrot.slane %v12502_v31, 4  ;;  %v2011_v63 = vshll.u32 %v1783_v43, 16 }
  0xa1   : > { %v1356_v36 = vrot.slane %v1355_v30, 2  ;;  %17132 = vst [vmem:[#allocation15_spill] sm:$0xff] %v12502_v31  ;;  %v1082_v37 = vsel %vm11991_vm10, %v813_v49, %v1081_v56  ;;  %v829_v22 = vrot.slane %v827_v21, 7  ;;  %v834_v49 = vshrl.u32 %v12391_v24, 16 }
  0xa2   : > { %v2008_v4 = vor.u32 %v2007_v35, %v2003_v39  ;;  %v2013_v53 = vrot.slane %v2011_v63, 5  ;;  %v2004_v14 = vsel %vm11997_vm11, %v1999_v18, %v2003_v39  ;;  %1083 = vst [vmem:[#allocation2 + $0x74] sm:$0x3] %v1082_v37  ;;  %10961 = vmatmul.msk.bf16.gmra.mxu1 %vm1290_vm3, %v11685_v9  ;;  %v652_v35 = vld [vmem:[#allocation2 + $0x80] sm:$0x6] }
  0xa3   : > { %v1357_v27 = vadd.f32 %v1356_v36, %v1355_v30  ;;  %v2265_v1 = vunpack.c.l.b16 %v2004_v14  ;;  %v601_v30 = vld [vmem:[#allocation2 + $0x78] sm:$0x3]  ;;  %v1784_v36 = vld [vmem:[#allocation2 + $0x6c] sm:$0xf]  ;;  %v1785_v43 = vld [vmem:[#allocation2 + $0x70] sm:$0xf]  ;;  %v830_v61 = vor.u32 %v829_v22, %v826_v23 }
  0xa4   : > { %v2009_v11 = vrot.slane %v2008_v4, 4  ;;  %v602_v59 = vsel %vm11991_vm10, 0, %v601_v30  ;;  %v2016_v3 = vshrl.u32 %v1784_v36, 16  ;;  %v2019_v13 = vshll.u32 %v1784_v36, 16 }
  0xa5   : > { %v1358_v40 = vrot.slane %v1357_v27, 1  ;;  %603 = vst [vmem:[#allocation2 + $0x78] sm:$0x3] %v602_v59  ;;  %v12532_v39 = vshrl.u32 %v1785_v43, 16  ;;  %v653_v18 = vsel %vm12007_vm13, 0, %v652_v35  ;;  %v822_v14 = vrot.slane %v821_v12, 4 }
  0xa6   : > { %v2014_v41 = vsel %vm11997_vm11, %v2009_v11, %v2013_v53  ;;  %v2018_v63 = vrot.slane %v2016_v3, 4  ;;  %v2021_v0 = vrot.slane %v2019_v13, 5  ;;  %654 = vst [vmem:[#allocation2 + $0x80] sm:$0x6] %v653_v18  ;;  %v832_v34 = vrot.slane %v830_v61, 4  ;;  %v11686_v13 = vld [vmem:[%s11959_s18 + $0x40] sm:$0xff] }
  0xa7   : > { %v1359_v48 = vadd.f32 %v1358_v40, %v1357_v27  ;;  %v2266_v50 = vunpack.c.l.b16 %v2014_v41  ;;  %v12530_v27 = vshll.u32 %v1785_v43, 16  ;;  %17134 = vst [vmem:[#allocation17_spill] sm:$0xff] %v12532_v39  ;;  %v2031_v4 = vrot.slane %v12532_v39, 4  ;;  %v604_v43 = vld [vmem:[#allocation2 + $0x84] sm:$0x3] }
  0xa8   : > { %v2022_v53 = vor.u32 %v2021_v0, %v2018_v63  ;;  %v831_v37 = vsel %vm12043_vm15, %v822_v14, %v830_v61  ;;  %v843_v59 = vshrl.u32 %v12396_v45, 16  ;;  %v846_v23 = vshll.u32 %v12396_v45, 16  ;;  %v12565_v45 = vpop.f32.mrf.mxu1 }
  0xa9   : > { %v1360_v47 = vmul.f32 0.00390625, %v1359_v48  ;;  %v12524_v51 = vpack.c.b16 %v2266_v50, %v2265_v1  ;;  %17133 = vst [vmem:[#allocation16_spill] sm:$0xff] %v12530_v27  ;;  %v1786_v42 = vld [vmem:[#allocation2 + $0x74] sm:$0x1]  ;;  %v2027_v40 = vrot.slane %v12530_v27, 5  ;;  %v837_v48 = vshll.u32 %v12391_v24, 16 }
  0xaa   : > { %v2035_v5 = vshll.u32 %v1786_v42, 16  ;;  %v2023_v11 = vrot.slane %v2022_v53, 4  ;;  %1087 = vst.msk [vmem:[#allocation2 + $0x7c] sm:$0xf] %vm555_vm1, %v831_v37  ;;  %v836_v50 = vrot.slane %v834_v49, 6  ;;  %v845_v35 = vrot.slane %v843_v59, 6 }
  0xab   : > { %v1361_v25 = vpack.c.bf16 %v1360_v47, %v1360_v47  ;;  %10975 = vmatmul.msk.bf16.gmra.mxu2 %vm1290_vm3, %v12524_v51  ;;  %10993 = vmatmul.msk.bf16.gmra.mxu3 %vm1290_vm3, %v12524_v51  ;;  %v2032_v6 = vor.u32 %v2031_v4, %v2027_v40  ;;  %v839_v30 = vrot.slane %v837_v48, 7  ;;  %v848_v63 = vrot.slane %v846_v23, 7  ;;  %v655_v53 = vld [vmem:[#allocation2 + $0x8c] sm:$0x6] }
  0xac   : > { %v2037_v56 = vrot.slane %v2035_v5, 5  ;;  %v1084_v21 = vld [vmem:[#allocation2 + $0x78] sm:$0xe]  ;;  %v2028_v41 = vsel %vm11997_vm11, %v2023_v11, %v2027_v40  ;;  %v656_v14 = vsel %vm12007_vm13, 0, %v655_v53  ;;  %v853_v37 = vshrl.u32 %v12399_v32, 16 }
  0xad   : > { %10889 = vmatmul.msk.bf16.vlgmr.msra.gmra.mxu0 %vm1290_vm3, %v1361_v25  ;;  %v2033_v1 = vrot.slane %v2032_v6, 4  ;;  %v1085_v47 = vsel %vm12063_vm2, %v821_v12, %v1084_v21  ;;  %v2267_v20 = vunpack.c.l.b16 %v2028_v41  ;;  %v1088_v9 = vld [vmem:[#allocation2 + $0x80] sm:$0x3]  ;;  %v840_v3 = vor.u32 %v839_v30, %v836_v50  ;;  %657 = vst [vmem:[#allocation2 + $0x8c] sm:$0x6] %v656_v14 }
  0xae   : > { %1086 = vst [vmem:[#allocation2 + $0x78] sm:$0xe] %v1085_v47  ;;  %v1089_v22 = vsel %vm11991_vm10, %v832_v34, %v1088_v9  ;;  %v605_v12 = vsel %vm11991_vm10, 0, %v604_v43  ;;  %v849_v49 = vor.u32 %v848_v63, %v845_v35  ;;  %v856_v47 = vshll.u32 %v12399_v32, 16  ;;  %v607_v53 = vld [vmem:[#allocation2 + $0x90] sm:$0x3] }
  0xaf   : > { %v2038_v24 = vsel %vm11997_vm11, %v2033_v1, %v2037_v56  ;;  %1090 = vst [vmem:[#allocation2 + $0x80] sm:$0x3] %v1089_v22  ;;  %v841_v5 = vrot.slane %v840_v3, 4  ;;  %v855_v32 = vrot.slane %v853_v37, 6  ;;  %v862_v63 = vshrl.u32 %v12406_v60, 16 }
  0xb0   : > { %v2268_v25 = vunpack.c.l.b16 %v2038_v24  ;;  %606 = vst [vmem:[#allocation2 + $0x84] sm:$0x3] %v605_v12  ;;  %v851_v50 = vrot.slane %v849_v49, 4  ;;  %v12587_v23 = vpop.f32.mrf.mxu1  ;;  %v858_v22 = vrot.slane %v856_v47, 7 }
  0xb1   : > { %v1788_v18 = vld [vmem:[#allocation2 + $0x7c] sm:$0xf] }
  0xb2   : > { %v12557_v36 = vpack.c.b16 %v2268_v25, %v2267_v20  ;;  %10962 = vmatmul.msk.bf16.gmra.mxu1 %vm1290_vm3, %v11686_v13  ;;  %v12569_v40 = vshll.u32 %v1788_v18, 16  ;;  %v12571_v4 = vshrl.u32 %v1788_v18, 16  ;;  %v850_v25 = vsel %vm12043_vm15, %v841_v5, %v849_v49  ;;  %v12599_v18 = vld [vmem:[%s17009_s5] ss:$0 sm:$0xff]  ;;  %v11687_v5 = vld [vmem:[%s11959_s18 + $0x48] sm:$0xff] }
  0xb3   : > { %1094 = vst.msk [vmem:[#allocation2 + $0x88] sm:$0xf] %vm555_vm1, %v850_v25  ;;  %v1618_v49 = vmul.f32 %v12599_v18, %v12542_v58 }
  0xb4   : > { %17135 = vst [vmem:[#allocation18_spill] sm:$0xff] %v12569_v40  ;;  %v2051_v11 = vrot.slane %v12569_v40, 5  ;;  %v2055_v56 = vrot.slane %v12571_v4, 4  ;;  %v1095_v35 = vld [vmem:[#allocation2 + $0x8c] sm:$0x3] }
  0xb5   : > { %v1787_v0 = vld [vmem:[#allocation2 + $0x78] sm:$0xf]  ;;  %17136 = vst [vmem:[#allocation19_spill] sm:$0xff] %v12571_v4 }
  0xb6   : > { %v2040_v61 = vshrl.u32 %v1787_v0, 16  ;;  %v2043_v42 = vshll.u32 %v1787_v0, 16  ;;  %v1789_v48 = vld [vmem:[#allocation2 + $0x80] sm:$0x1]  ;;  %v2056_v41 = vor.u32 %v2055_v56, %v2051_v11  ;;  %v1096_v0 = vsel %vm11991_vm10, %v851_v50, %v1095_v35 }
  0xb7   : > { %v2059_v1 = vshll.u32 %v1789_v48, 16  ;;  %v1091_v34 = vld [vmem:[#allocation2 + $0x84] sm:$0xe]  ;;  %1097 = vst [vmem:[#allocation2 + $0x8c] sm:$0x3] %v1096_v0 }
  0xb8   : > { %v2045_v6 = vrot.slane %v2043_v42, 5  ;;  %v2057_v30 = vrot.slane %v2056_v41, 4  ;;  %v1092_v9 = vsel %vm12063_vm2, %v840_v3, %v1091_v34  ;;  %v865_v3 = vshll.u32 %v12406_v60, 16  ;;  %v12613_v48 = vld [vmem:[%s17010_s6] ss:$0 sm:$0xff] }
  0xb9   : > { %v2061_v20 = vrot.slane %v2059_v1, 5  ;;  %1093 = vst [vmem:[#allocation2 + $0x84] sm:$0xe] %v1092_v9 }
  0xba   : > { %v867_v14 = vrot.slane %v865_v3, 7  ;;  %v1791_v56 = vld [vmem:[#allocation2 + $0x88] sm:$0xf] }
  0xbb   : > { %10976 = vmatmul.msk.bf16.gmra.mxu2 %vm1290_vm3, %v12557_v36  ;;  %10994 = vmatmul.msk.bf16.gmra.mxu3 %vm1290_vm3, %v12557_v36  ;;  %v2062_v43 = vsel %vm11997_vm11, %v2057_v30, %v2061_v20  ;;  %v12620_v47 = vshll.u32 %v1791_v56, 16  ;;  %v12622_v58 = vshrl.u32 %v1791_v56, 16 }
  0xbc   : > { %v2270_v12 = vunpack.c.l.b16 %v2062_v43  ;;  %v1619_v43 = vmul.f32 %v12599_v18, %v12565_v45 }
  0xbd   : > { %11002 = vmatmul.msk.bf16.vlgmr.msrb.gmra.mxu0 %vm1290_vm3, %v12207_v19  ;;  %v2042_v19 = vrot.slane %v2040_v61, 4  ;;  %v859_v61 = vor.u32 %v858_v22, %v855_v32  ;;  %17137 = vst [vmem:[#allocation20_spill] sm:$0xff] %v12620_v47  ;;  %v2079_v32 = vrot.slane %v12622_v58, 4  ;;  %v1654_v22 = vadd.f32 %v12613_v48, %v1618_v49 }
  0xbe   : > { %17138 = vst [vmem:[#allocation21_spill] sm:$0xff] %v12622_v58  ;;  %v1792_v9 = vld [vmem:[#allocation2 + $0x8c] sm:$0x1] }
  0xbf   : > { %v2046_v21 = vor.u32 %v2045_v6, %v2042_v19  ;;  %v608_v19 = vsel %vm11991_vm10, 0, %v607_v53  ;;  %v864_v6 = vrot.slane %v862_v63, 6  ;;  %v860_v37 = vrot.slane %v859_v61, 4 }
  0xc0   : > { %v1790_v60 = vld [vmem:[#allocation2 + $0x84] sm:$0xf]  ;;  %609 = vst [vmem:[#allocation2 + $0x90] sm:$0x3] %v608_v19 }
  0xc1   : > { %v2047_v24 = vrot.slane %v2046_v21, 4  ;;  %v2064_v21 = vshrl.u32 %v1790_v60, 16  ;;  %v2067_v1 = vshll.u32 %v1790_v60, 16  ;;  %v868_v25 = vor.u32 %v867_v14, %v864_v6 }
  0xc2   : > { %10963 = vmatmul.msk.bf16.gmra.mxu1 %vm1290_vm3, %v11687_v5  ;;  %v1686_v14 = vmax.f32 %v1654_v22, 0.0  ;;  %v1655_v60 = vadd.f32 %v12613_v48, %v1619_v43 }
  0xc3   : > { %v2052_v59 = vsel %vm11997_vm11, %v2047_v24, %v2051_v11  ;;  %v12616_v11 = vpop.f32.mrf.mxu1  ;;  %v658_v24 = vld [vmem:[#allocation2 + $0x98] sm:$0x6]  ;;  %v2066_v20 = vrot.slane %v2064_v21, 4  ;;  %v2069_v34 = vrot.slane %v2067_v1, 5  ;;  %v870_v53 = vrot.slane %v868_v25, 4 }
  0xc4   : > { %v2269_v13 = vunpack.c.l.b16 %v2052_v59  ;;  %v2363_v41 = vpop.f32.mrf.mxu2  ;;  %v659_v30 = vsel %vm12007_vm13, 0, %v658_v24  ;;  %v2075_v59 = vrot.slane %v12620_v47, 5  ;;  %v869_v19 = vsel %vm12043_vm15, %v860_v37, %v868_v25 }
  0xc5   : > { %660 = vst [vmem:[#allocation2 + $0x98] sm:$0x6] %v659_v30 }
  0xc6   : > { %v12601_v42 = vpack.c.b16 %v2270_v12, %v2269_v13  ;;  %v2070_v13 = vor.u32 %v2069_v34, %v2066_v20  ;;  %v2083_v12 = vshll.u32 %v1792_v9, 16  ;;  %v2080_v35 = vor.u32 %v2079_v32, %v2075_v59  ;;  %1101 = vst.msk [vmem:[#allocation2 + $0x94] sm:$0xf] %vm555_vm1, %v869_v19  ;;  %v610_v20 = vld [vmem:[#allocation2 + $0x9c] sm:$0x3]  ;;  %v11688_v34 = vld [vmem:[%s11959_s18 + $0x50] sm:$0xff] }
  0xc7   : > { %v1098_v0 = vld [vmem:[#allocation2 + $0x90] sm:$0xe]  ;;  %v611_v30 = vsel %vm11991_vm10, 0, %v610_v20  ;;  %vm2771_vm1 = vsmask.f32 2304 }
  0xc8   : > { %v2071_v63 = vrot.slane %v2070_v13, 4  ;;  %v2085_v3 = vrot.slane %v2083_v12, 5  ;;  %v2081_v5 = vrot.slane %v2080_v35, 4  ;;  %v1099_v6 = vsel %vm12063_vm2, %v859_v61, %v1098_v0  ;;  %612 = vst [vmem:[#allocation2 + $0x9c] sm:$0x3] %v611_v30  ;;  %vm12846_vm5 = vmor %vm2771_vm1, %vm2772_vm4 }
  0xc9   : > { %1100 = vst [vmem:[#allocation2 + $0x90] sm:$0xe] %v1099_v6  ;;  %vm7887_vm1 = vcmask 195584   ;;  %vm8000_vm4 = vsmask.f32 4368 }
  0xca   : > { %v2076_v45 = vsel %vm11997_vm11, %v2071_v63, %v2075_v59  ;;  %v2086_v56 = vsel %vm11997_vm11, %v2081_v5, %v2085_v3 }
  0xcb   : > { %10977 = vmatmul.msk.bf16.gmra.mxu2 %vm1290_vm3, %v12601_v42  ;;  %10995 = vmatmul.msk.bf16.gmra.mxu3 %vm1290_vm3, %v12601_v42  ;;  %v12642_v49 = vpop.f32.mrf.mxu1  ;;  %v2271_v21 = vunpack.c.l.b16 %v2076_v45  ;;  %v2272_v1 = vunpack.c.l.b16 %v2086_v56 }
  0xcc   : > { %v1102_v37 = vld [vmem:[#allocation2 + $0x98] sm:$0x3]  ;;  %v2365_v35 = vpop.f32.mrf.mxu2 }
  0xcd   : > { %11003 = vmatmul.msk.bf16.gmra.mxu0 %vm1290_vm3, %v12274_v29  ;;  %v2467_v29 = vpop.f32.mrf.mxu3  ;;  %v1103_v61 = vsel %vm11991_vm10, %v870_v53, %v1102_v37  ;;  %v12649_v24 = vpack.c.b16 %v2272_v1, %v2271_v21  ;;  %v1794_v43 = vld [vmem:[#allocation2 + $0x94] sm:$0xf]  ;;  %v1620_v37 = vmul.f32 %v12599_v18, %v12587_v23 }
  0xce   : > { %v12626_v50 = vadd.f32 %v2467_v29, %v2363_v41  ;;  %v1718_v29 = vpack.c.bf16 %v1686_v14, %v1686_v14  ;;  %v1687_v41 = vmax.f32 %v1655_v60, 0.0  ;;  %1104 = vst [vmem:[#allocation2 + $0x98] sm:$0x3] %v1103_v61  ;;  %v12661_v63 = vshll.u32 %v1794_v43, 16 }
  0xcf   : > { %v12663_v3 = vshrl.u32 %v1794_v43, 16  ;;  %v1621_v61 = vmul.f32 %v12599_v18, %v12616_v11 }
  0xd0   : > { %v1793_v25 = vld [vmem:[#allocation2 + $0x90] sm:$0xf]  ;;  %v1719_v32 = vpack.c.bf16 %v1687_v41, %v1687_v41  ;;  %v7516_v22 = vunpack.c.l.b16 %v1718_v29  ;;  %17139 = vst [vmem:[#allocation22_spill] sm:$0xff] %v12661_v63  ;;  %v2099_v14 = vrot.slane %v12661_v63, 5 }
  0xd1   : > { %v2088_v13 = vshrl.u32 %v1793_v25, 16  ;;  %v2091_v12 = vshll.u32 %v1793_v25, 16  ;;  %17140 = vst [vmem:[#allocation23_spill] sm:$0xff] %v12663_v3  ;;  %v2103_v60 = vrot.slane %v12663_v3, 4  ;;  %v889_v25 = vrot.slane %v12268_v54, 4 }
  0xd2   : > { %10964 = vmatmul.msk.bf16.gmra.mxu1 %vm1290_vm3, %v11688_v34  ;;  %v7517_v53 = vunpack.c.l.b16 %v1719_v32  ;;  %v1105_v34 = vld [vmem:[#allocation2 + $0x9c] sm:$0xe]  ;;  %v1656_v32 = vadd.f32 %v12613_v48, %v1620_v37 }
  0xd3   : > { %v12657_v59 = vpop.f32.mrf.mxu1  ;;  %v2090_v5 = vrot.slane %v2088_v13, 4  ;;  %v2093_v19 = vrot.slane %v2091_v12, 5  ;;  %v2104_v29 = vor.u32 %v2103_v60, %v2099_v14  ;;  %v1106_v33 = vsel %vm12063_vm2, %v12256_v2, %v1105_v34 }
  0xd4   : > { %v7548_v56 = vpack.c.b16 %v7517_v53, %v7516_v22  ;;  %1107 = vst [vmem:[#allocation2 + $0x9c] sm:$0xe] %v1106_v33  ;;  %v1657_v22 = vadd.f32 %v12613_v48, %v1621_v61  ;;  %v2368_v15 = vpop.f32.mrf.mxu2  ;;  %vm7854_vm2 = vcmask 130048  }
  0xd5   : > { %v2469_v9 = vpop.f32.mrf.mxu3  ;;  %v1795_v6 = vld [vmem:[#allocation2 + $0x98] sm:$0x1]  ;;  %v2094_v21 = vor.u32 %v2093_v19, %v2090_v5  ;;  %v2105_v30 = vrot.slane %v2104_v29, 4 }
  0xd6   : > { %v12667_v0 = vadd.f32 %v2469_v9, %v2365_v35  ;;  %v2107_v1 = vshll.u32 %v1795_v6, 16  ;;  %7564 = vrot.lane.b32.xlu0 %v7548_v56, %s11839_s23  ;;  %v1689_v53 = vmax.f32 %v1657_v22, 0.0  ;;  %v11689_v19 = vld [vmem:[%s11959_s18 + $0x58] sm:$0xff] }
  0xd7   : > { %v2095_v41 = vrot.slane %v2094_v21, 4 }
  0xd8   : > { %v2109_v20 = vrot.slane %v2107_v1, 5  ;;  %v1721_v61 = vpack.c.bf16 %v1689_v53, %v1689_v53 }
  0xd9   : > { %v2100_v23 = vsel %vm11997_vm11, %v2095_v41, %v2099_v14  ;;  %v1797_v14 = vld [vmem:[#allocation2 + $0xa0] sm:$0xf] }
  0xda   : > { %v2110_v43 = vsel %vm11997_vm11, %v2105_v30, %v2109_v20  ;;  %v2273_v13 = vunpack.c.l.b16 %v2100_v23  ;;  %v12702_v26 = vshll.u32 %v1797_v14, 16  ;;  %v12704_v1 = vshrl.u32 %v1797_v14, 16 }
  0xdb   : > { %10978 = vmatmul.msk.bf16.gmra.mxu2 %vm1290_vm3, %v12649_v24  ;;  %10996 = vmatmul.msk.bf16.gmra.mxu3 %vm1290_vm3, %v12649_v24  ;;  %v12684_v11 = vpop.f32.mrf.mxu1  ;;  %v2274_v2 = vunpack.c.l.b16 %v2110_v43  ;;  %v1796_v6 = vld [vmem:[#allocation2 + $0x9c] sm:$0xf]  ;;  %v1623_v23 = vmul.f32 %v12599_v18, %v12657_v59 }
  0xdc   : > { %v2112_v56 = vshrl.u32 %v1796_v6, 16  ;;  %v2115_v21 = vshll.u32 %v1796_v6, 16  ;;  %17141 = vst [vmem:[#allocation24_spill] sm:$0xff] %v12702_v26  ;;  %v2370_v29 = vpop.f32.mrf.mxu2  ;;  %v2123_v34 = vrot.slane %v12702_v26, 5  ;;  %v2127_v30 = vrot.slane %v12704_v1, 4 }
  0xdd   : > { %11004 = vmatmul.msk.bf16.gmra.mxu0 %vm1290_vm3, %v12483_v38  ;;  %v661_v38 = vld [vmem:[#allocation2 + $0xa4] sm:$0x6]  ;;  %v2472_v9 = vpop.f32.mrf.mxu3  ;;  %v12694_v5 = vpack.c.b16 %v2274_v2, %v2273_v13  ;;  %17142 = vst [vmem:[#allocation25_spill] sm:$0xff] %v12704_v1  ;;  %v7519_v13 = vunpack.c.l.b16 %v1721_v61  ;;  %v2732_v1 = vld [vmem:[#allocation2 + $0x14] sm:$0x3] }
  0xde   : > { %v662_v45 = vsel %vm12007_vm13, 0, %v661_v38  ;;  %v12690_v12 = vadd.f32 %v2472_v9, %v2368_v15  ;;  %v1688_v38 = vmax.f32 %v1656_v32, 0.0  ;;  %v2114_v41 = vrot.slane %v2112_v56, 4 }
  0xdf   : > { %663 = vst [vmem:[#allocation2 + $0xa4] sm:$0x6] %v662_v45  ;;  %v2117_v20 = vrot.slane %v2115_v21, 5  ;;  %v1622_v9 = vmul.f32 %v12599_v18, %v12642_v49  ;;  %v2128_v32 = vor.u32 %v2127_v30, %v2123_v34 }
  0xe0   : > { %v1720_v37 = vpack.c.bf16 %v1688_v38, %v1688_v38 }
  0xe1   : > { %v2129_v2 = vrot.slane %v2128_v32, 4  ;;  %v1658_v53 = vadd.f32 %v12613_v48, %v1622_v9 }
  0xe2   : > { %10965 = vmatmul.msk.bf16.gmra.mxu1 %vm1290_vm3, %v11689_v19  ;;  %v7518_v43 = vunpack.c.l.b16 %v1720_v37  ;;  %v1659_v19 = vadd.f32 %v12613_v48, %v1623_v23 }
  0xe3   : > { %v12700_v45 = vpop.f32.mrf.mxu1  ;;  %v1690_v37 = vmax.f32 %v1658_v53, 0.0  ;;  %v1624_v53 = vmul.f32 %v12599_v18, %v12684_v11 }
  0xe4   : > { %v2373_v14 = vpop.f32.mrf.mxu2  ;;  %v12728_v21 = vpack.c.b16 %v7519_v13, %v7518_v43  ;;  %v1691_v61 = vmax.f32 %v1659_v19, 0.0 }
  0xe5   : > { %v2474_v60 = vpop.f32.mrf.mxu3  ;;  %v1722_v32 = vpack.c.bf16 %v1690_v37, %v1690_v37 }
  0xe6   : > { %v1109_v54 = vld [vmem:[#allocation2 + $0xa4] sm:$0x3]  ;;  %17144 = vst [vmem:[#allocation27_spill] sm:$0xff] %v12728_v21 }
  0xe7   : > { %v1110_v35 = vsel %vm11991_vm10, %v889_v25, %v1109_v54  ;;  %v2118_v25 = vor.u32 %v2117_v20, %v2114_v41  ;;  %v11690_v41 = vld [vmem:[%s11959_s18 + $0x60] sm:$0xff]  ;;  %v1799_v20 = vld [vmem:[#allocation2 + $0xa8] sm:$0xf]  ;;  %vm1208_vm10 = vsmask.f32 7938 }
  0xe8   : > { %1111 = vst [vmem:[#allocation2 + $0xa4] sm:$0x3] %v1110_v35  ;;  %vm15315_vm13 = vmand %vm1150_vm8, %vm1208_vm10 }
  0xe9   : > { %v2119_v15 = vrot.slane %v2118_v25, 4  ;;  %v2139_v25 = vshll.u32 %v1799_v20, 16 }
  0xeb   : > { %10979 = vmatmul.msk.bf16.gmra.mxu2 %vm1290_vm3, %v12694_v5  ;;  %10997 = vmatmul.msk.bf16.gmra.mxu3 %vm1290_vm3, %v12694_v5  ;;  %v2124_v38 = vsel %vm11997_vm11, %v2119_v15, %v2123_v34  ;;  %v12724_v6 = vpop.f32.mrf.mxu1  ;;  %v1800_v34 = vld [vmem:[#allocation2 + $0xac] sm:$0xf]  ;;  %v2141_v15 = vrot.slane %v2139_v25, 5 }
  0xec   : > { %v2275_v59 = vunpack.c.l.b16 %v2124_v38  ;;  %17143 = vst [vmem:[#allocation26_spill] sm:$0xff] %v12724_v6  ;;  %v12736_v9 = vshll.u32 %v1800_v34, 16  ;;  %v12738_v23 = vshrl.u32 %v1800_v34, 16  ;;  %v2375_v43 = vpop.f32.mrf.mxu2  ;;  %v1660_v34 = vadd.f32 %v12613_v48, %v1624_v53  ;;  %v1802_v53 = vld [vmem:[#allocation2 + $0xb4] sm:$0xf] }
  0xed   : > { %11005 = vmatmul.msk.bf16.gmra.mxu0 %vm1290_vm3, %v12524_v51  ;;  %v12710_v51 = vadd.f32 %v2474_v60, %v2370_v29  ;;  %v2477_v35 = vpop.f32.mrf.mxu3 }
  0xee   : > { %v12726_v56 = vadd.f32 %v2477_v35, %v2373_v14  ;;  %17145 = vst [vmem:[#allocation28_spill] sm:$0xff] %v12736_v9  ;;  %v1801_v35 = vld [vmem:[#allocation2 + $0xb0] sm:$0x1]  ;;  %v2151_v38 = vrot.slane %v12738_v23, 4 }
  0xef   : > { %v1798_v33 = vld [vmem:[#allocation2 + $0xa4] sm:$0x1]  ;;  %17146 = vst [vmem:[#allocation29_spill] sm:$0xff] %v12738_v23 }
  0xf0   : > { %v2131_v22 = vshll.u32 %v1798_v33, 16  ;;  %v2136_v33 = vshrl.u32 %v1799_v20, 16 }
  0xf2   : > { %v2133_v54 = vrot.slane %v2131_v22, 5  ;;  %10966 = vmatmul.msk.bf16.gmra.mxu1 %vm1290_vm3, %v11690_v41  ;;  %v1723_v22 = vpack.c.bf16 %v1691_v61, %v1691_v61 }
  0xf4   : > { %v2134_v49 = vsel %vm11997_vm11, %v2129_v2, %v2133_v54  ;;  %v2147_v2 = vrot.slane %v12736_v9, 5  ;;  %v12747_v54 = vpop.f32.mrf.mxu1  ;;  %v7521_v14 = vunpack.c.l.b16 %v1723_v22 }
  0xf5   : > { %v2276_v60 = vunpack.c.l.b16 %v2134_v49  ;;  %v2479_v30 = vpop.f32.mrf.mxu3  ;;  %17147 = vst [vmem:[#allocation30_spill] sm:$0xff] %v12747_v54  ;;  %v2155_v49 = vshll.u32 %v1801_v35, 16 }
  0xf6   : > { %v12744_v13 = vadd.f32 %v2479_v30, %v2375_v43  ;;  %v2152_v37 = vor.u32 %v2151_v38, %v2147_v2  ;;  %v1692_v43 = vmax.f32 %v1660_v34, 0.0  ;;  %v11691_v38 = vld [vmem:[%s11959_s18 + $0x68] sm:$0xff] }
  0xf7   : > { %v12730_v29 = vpack.c.b16 %v2276_v60, %v2275_v59  ;;  %v7520_v59 = vunpack.c.l.b16 %v1722_v32  ;;  %v1625_v60 = vmul.f32 %v12599_v18, %v12700_v45  ;;  %v2157_v41 = vrot.slane %v2155_v49, 5 }
  0xf8   : > { %v2153_v20 = vrot.slane %v2152_v37, 4  ;;  %v2160_v49 = vshrl.u32 %v1802_v53, 16 }
  0xf9   : > { %v1661_v11 = vadd.f32 %v12613_v48, %v1625_v60  ;;  %v12760_v22 = vpack.c.b16 %v7521_v14, %v7520_v59  ;;  %v2163_v60 = vshll.u32 %v1802_v53, 16  ;;  %v1724_v14 = vpack.c.bf16 %v1692_v43, %v1692_v43 }
  0xfa   : > { %v2158_v25 = vsel %vm11997_vm11, %v2153_v20, %v2157_v41  ;;  %v2162_v20 = vrot.slane %v2160_v49, 4 }
  0xfb   : > { %10980 = vmatmul.msk.bf16.gmra.mxu2 %vm1290_vm3, %v12730_v29  ;;  %10998 = vmatmul.msk.bf16.gmra.mxu3 %vm1290_vm3, %v12730_v29  ;;  %17148 = vst [vmem:[#allocation31_spill] sm:$0xff] %v12760_v22  ;;  %v2278_v45 = vunpack.c.l.b16 %v2158_v25  ;;  %v2165_v34 = vrot.slane %v2163_v60, 5  ;;  %v1804_v25 = vld [vmem:[#allocation2 + $0xbc] sm:$0x1] }
  0xfc   : > { %v2179_v43 = vshll.u32 %v1804_v25, 16  ;;  %v11692_v25 = vld [vmem:[%s11959_s18 + $0x70] sm:$0xff] }
  0xfd   : > { %11006 = vmatmul.msk.bf16.gmra.mxu0 %vm1290_vm3, %v12557_v36  ;;  %v2138_v36 = vrot.slane %v2136_v33, 4  ;;  %v2482_v30 = vpop.f32.mrf.mxu3 }
  0xff   : > { %v2142_v19 = vor.u32 %v2141_v15, %v2138_v36  ;;  %v1693_v36 = vmax.f32 %v1661_v11, 0.0  ;;  %v1559_v35 = vpop.f32.mrf.mxu1 }
 0x101   : > { %v2143_v61 = vrot.slane %v2142_v19, 4  ;;  %v1803_v19 = vld [vmem:[#allocation2 + $0xb8] sm:$0xf] }
 0x102   : > { %10967 = vmatmul.msk.bf16.gmra.mxu1 %vm1290_vm3, %v11691_v38  ;;  %v12768_v37 = vshll.u32 %v1803_v19, 16  ;;  %v12770_v59 = vshrl.u32 %v1803_v19, 16 }
 0x103   : > { %v2148_v33 = vsel %vm11997_vm11, %v2143_v61, %v2147_v2  ;;  %v2378_v2 = vpop.f32.mrf.mxu2  ;;  %v1725_v61 = vpack.c.bf16 %v1693_v36, %v1693_v36  ;;  %v7522_v36 = vunpack.c.l.b16 %v1724_v14 }
 0x104   : > { %v2277_v32 = vunpack.c.l.b16 %v2148_v33  ;;  %17149 = vst [vmem:[#allocation32_spill] sm:$0xff] %v12768_v37  ;;  %v12774_v41 = vadd.f32 %v2482_v30, %v2378_v2  ;;  %v2171_v33 = vrot.slane %v12768_v37, 5  ;;  %v2175_v11 = vrot.slane %v12770_v59, 4 }
 0x105   : > { %17150 = vst [vmem:[#allocation33_spill] sm:$0xff] %v12770_v59  ;;  %v7523_v38 = vunpack.c.l.b16 %v1725_v61  ;;  %v2181_v2 = vrot.slane %v2179_v43, 5  ;;  %v1808_v59 = vld [vmem:[#allocation2 + $0xcc] sm:$0xf] }
 0x106   : > { %v12762_v15 = vpack.c.b16 %v2278_v45, %v2277_v32  ;;  %v2166_v32 = vor.u32 %v2165_v34, %v2162_v20  ;;  %v2176_v45 = vor.u32 %v2175_v11, %v2171_v33 }
 0x107   : > { %v1561_v53 = vpop.f32.mrf.mxu1  ;;  %v12786_v34 = vpack.c.b16 %v7523_v38, %v7522_v36 }
 0x108   : > { %v2167_v30 = vrot.slane %v2166_v32, 4  ;;  %v2177_v19 = vrot.slane %v2176_v45, 4  ;;  %v1805_v32 = vld [vmem:[#allocation2 + $0xc0] sm:$0xf]  ;;  %v1806_v45 = vld [vmem:[#allocation2 + $0xc4] sm:$0xf] }
 0x109   : > { %17151 = vst [vmem:[#allocation34_spill] sm:$0xff] %v12786_v34  ;;  %v12796_v43 = vshll.u32 %v1806_v45, 16  ;;  %v12798_v36 = vshrl.u32 %v1806_v45, 16  ;;  %v1629_v34 = vmul.f32 %v12599_v18, %v1561_v53 }
 0x10a   : > { %v2172_v49 = vsel %vm11997_vm11, %v2167_v30, %v2171_v33  ;;  %v2182_v60 = vsel %vm11997_vm11, %v2177_v19, %v2181_v2  ;;  %v2184_v33 = vshrl.u32 %v1805_v32, 16 }
 0x10b   : > { %10981 = vmatmul.msk.bf16.gmra.mxu2 %vm1290_vm3, %v12762_v15  ;;  %10999 = vmatmul.msk.bf16.gmra.mxu3 %vm1290_vm3, %v12762_v15  ;;  %v2380_v21 = vpop.f32.mrf.mxu2  ;;  %v2279_v54 = vunpack.c.l.b16 %v2172_v49  ;;  %v2280_v20 = vunpack.c.l.b16 %v2182_v60  ;;  %17152 = vst [vmem:[#allocation35_spill] sm:$0xff] %v12796_v43  ;;  %v2195_v2 = vrot.slane %v12796_v43, 5  ;;  %v2199_v49 = vrot.slane %v12798_v36, 4 }
 0x10c   : > { %17153 = vst [vmem:[#allocation36_spill] sm:$0xff] %v12798_v36  ;;  %v2186_v30 = vrot.slane %v2184_v33, 4  ;;  %v11693_v36 = vld [vmem:[%s11959_s18 + $0x78] sm:$0xff]  ;;  %s11840_s18 = smov 16  }
 0x10d   : > { %11007 = vmatmul.msk.bf16.gmra.mxu0 %vm1290_vm3, %v12601_v42  ;;  %v2484_v42 = vpop.f32.mrf.mxu3  ;;  %v12788_v11 = vpack.c.b16 %v2280_v20, %v2279_v54  ;;  %v1628_v20 = vmul.f32 %v12599_v18, %v1559_v35  ;;  %v2200_v45 = vor.u32 %v2199_v49, %v2195_v2  ;;  %v1665_v35 = vadd.f32 %v12613_v48, %v1629_v34 }
 0x10e   : > { %v12784_v22 = vadd.f32 %v2484_v42, %v2380_v21  ;;  %v2187_v42 = vshll.u32 %v1805_v32, 16  ;;  %v2208_v34 = vshrl.u32 %v1808_v59, 16 }
 0x10f   : > { %v1564_v61 = vpop.f32.mrf.mxu1  ;;  %v1664_v33 = vadd.f32 %v12613_v48, %v1628_v20 }
 0x110   : > { %v2189_v19 = vrot.slane %v2187_v42, 5 }
 0x111   : > { %v1696_v20 = vmax.f32 %v1664_v33, 0.0 }
 0x112   : > { %10968 = vmatmul.msk.bf16.gmra.mxu1 %vm1290_vm3, %v11692_v25  ;;  %v2190_v32 = vor.u32 %v2189_v19, %v2186_v30 }
 0x113   : > { %v1728_v33 = vpack.c.bf16 %v1696_v20, %v1696_v20 }
 0x114   : > { %v2191_v37 = vrot.slane %v2190_v32, 4 }
 0x115   : > { %v2487_v14 = vpop.f32.mrf.mxu3 }
 0x116   : > { %v2196_v42 = vsel %vm11997_vm11, %v2191_v37, %v2195_v2  ;;  %v1809_v37 = vld [vmem:[#allocation2 + $0xd0] sm:$0xf] }
 0x117   : > { %v1566_v25 = vpop.f32.mrf.mxu1  ;;  %v2281_v19 = vunpack.c.l.b16 %v2196_v42  ;;  %v12827_v2 = vshll.u32 %v1809_v37, 16 }
 0x119   : > { %17155 = vst [vmem:[#allocation38_spill] sm:$0xff] %v12827_v2 }
 0x11b   : > { %10982 = vmatmul.msk.bf16.gmra.mxu2 %vm1290_vm3, %v12788_v11  ;;  %v2383_v21 = vpop.f32.mrf.mxu2  ;;  %11000 = vmatmul.msk.bf16.gmra.mxu3 %vm1290_vm3, %v12788_v11 }
 0x11c   : > { %v12802_v54 = vadd.f32 %v2487_v14, %v2383_v21  ;;  %v2201_v14 = vrot.slane %v2200_v45, 4  ;;  %v1697_v45 = vmax.f32 %v1665_v35, 0.0  ;;  %v1810_v35 = vld [vmem:[#allocation2 + $0xd4] sm:$0x1] }
 0x11d   : > { %11008 = vmatmul.msk.bf16.gmra.mxu0 %vm1290_vm3, %v12649_v24  ;;  %v2489_v38 = vpop.f32.mrf.mxu3  ;;  %v1807_v24 = vld [vmem:[#allocation2 + $0xc8] sm:$0x1]  ;;  %v2227_v26 = vshll.u32 %v1810_v35, 16 }
 0x11e   : > { %v2203_v60 = vshll.u32 %v1807_v24, 16 }
 0x11f   : > { %v1569_v32 = vpop.f32.mrf.mxu1 }
 0x120   : > { %v2205_v6 = vrot.slane %v2203_v60, 5 }
 0x122   : > { %v2206_v24 = vsel %vm11997_vm11, %v2201_v14, %v2205_v6  ;;  %v1630_v6 = vmul.f32 %v12599_v18, %v1564_v61  ;;  %10969 = vmatmul.msk.bf16.gmra.mxu1 %vm1290_vm3, %v11693_v36  ;;  %v12829_v14 = vshrl.u32 %v1809_v37, 16  ;;  %v2731_v61 = vld [vmem:[#allocation2 + $0xc] sm:$0xe]  ;;  %v2219_v36 = vrot.slane %v12827_v2, 5 }
 0x123   : > { %v2385_v21 = vpop.f32.mrf.mxu2  ;;  %v2282_v53 = vunpack.c.l.b16 %v2206_v24  ;;  %v1631_v37 = vmul.f32 %v12599_v18, %v1566_v25  ;;  %v2784_v2 = vrot.slane %v11977_v16, 6  ;;  %v2783_v25 = vrot.slane %v11979_v17, 5 }
 0x124   : > { %v12814_v43 = vadd.f32 %v2489_v38, %v2385_v21  ;;  %v2211_v38 = vshll.u32 %v1808_v59, 16  ;;  %17156 = vst [vmem:[#allocation39_spill] sm:$0xff] %v12829_v14  ;;  %v1729_v21 = vpack.c.bf16 %v1697_v45, %v1697_v45  ;;  %v2223_v59 = vrot.slane %v12829_v14, 4 }
 0x125   : > { %v2492_v30 = vpop.f32.mrf.mxu3  ;;  %v12818_v60 = vpack.c.b16 %v2282_v53, %v2281_v19  ;;  %v2775_v19 = vshrl.u32 %v2731_v61, 16  ;;  %v2778_v53 = vshll.u32 %v2731_v61, 16  ;;  %v7526_v14 = vunpack.c.l.b16 %v1728_v33 }
 0x126   : > { %v2213_v24 = vrot.slane %v2211_v38, 5  ;;  %v2224_v38 = vor.u32 %v2223_v59, %v2219_v36  ;;  %v7527_v57 = vunpack.c.l.b16 %v1729_v21 }
 0x127   : > { %v2777_v63 = vrot.slane %v2775_v19, 5  ;;  %v2780_v3 = vrot.slane %v2778_v53, 6  ;;  %v2792_v19 = vshll.u32 %v2732_v1, 16 }
 0x128   : > { %v2225_v47 = vrot.slane %v2224_v38, 4 }
 0x129   : > { %v2781_v58 = vor.u32 %v2780_v3, %v2777_v63  ;;  %v2785_v3 = vor.u32 %v2784_v2, %v2783_v25 }
 0x12a   : > { %v12816_v49 = vpop.f32.mrf.mxu0 }
 0x12b   : > { %17154 = vst [vmem:[#allocation37_spill] sm:$0xff] %v12816_v49  ;;  %10983 = vmatmul.msk.bf16.gmra.mxu2 %vm1290_vm3, %v12818_v60  ;;  %11001 = vmatmul.msk.bf16.gmra.mxu3 %vm1290_vm3, %v12818_v60  ;;  %v1666_v49 = vadd.f32 %v12613_v48, %v1630_v6  ;;  %v2229_v6 = vrot.slane %v2227_v26, 5  ;;  %v17157_v26 = vmov 0  ;;  %v2782_v63 = vrot.slane %v2781_v58, 4 }
 0x12c   : > { %v17158_v26 = vsel %vm12846_vm5, 4294967295, %v17157_v26  ;;  %v2787_v2 = vrot.slane %v2785_v3, 4 }
 0x12d   : > { %11009 = vmatmul.msk.bf16.gmra.mxu0 %vm1290_vm3, %v12694_v5  ;;  %v2494_v42 = vpop.f32.mrf.mxu3  ;;  %v2210_v5 = vrot.slane %v2208_v34, 4  ;;  %v1571_v34 = vpop.f32.mrf.mxu1  ;;  %v2230_v35 = vsel %vm11997_vm11, %v2225_v47, %v2229_v6  ;;  %17159 = vst [vmem:[#allocation40_spill] sm:$0xff] %v17158_v26  ;;  %v2786_v58 = vsel %vm12846_vm5, %v2782_v63, %v2785_v3 }
 0x12e   : > { %v2388_v9 = vpop.f32.mrf.mxu2 }
 0x12f   : > { %v2214_v23 = vor.u32 %v2213_v24, %v2210_v5  ;;  %v12837_v45 = vadd.f32 %v2492_v30, %v2388_v9  ;;  %v1698_v5 = vmax.f32 %v1666_v49, 0.0  ;;  %v1667_v24 = vadd.f32 %v12613_v48, %v1631_v37 }
 0x130   : > { %v2789_v30 = vshrl.u32 %v2732_v1, 16  ;;  %v1632_v49 = vmul.f32 %v12599_v18, %v1569_v32  ;;  %v2794_v32 = vrot.slane %v2792_v19, 6 }
 0x131   : > { %v2215_v61 = vrot.slane %v2214_v23, 4  ;;  %v2284_v23 = vunpack.c.l.b16 %v2230_v35  ;;  %v12853_v53 = vpack.c.bf16 %v1698_v5, %v1698_v5  ;;  %v1699_v47 = vmax.f32 %v1667_v24, 0.0  ;;  %v1811_v24 = vld [vmem:[#allocation2 + $0xd8] sm:$0xf] }
 0x132   : > { %v1381_v20 = vpop.f32.mrf.mxu0  ;;  %v2791_v21 = vrot.slane %v2789_v30, 5  ;;  %v1668_v25 = vadd.f32 %v12613_v48, %v1632_v49  ;;  %v2232_v30 = vshrl.u32 %v1811_v24, 16  ;;  %v2235_v35 = vshll.u32 %v1811_v24, 16 }
 0x133   : > { %v2220_v9 = vsel %vm11997_vm11, %v2215_v61, %v2219_v36  ;;  %v12851_v36 = vpack.c.b16 %v7527_v57, %v7526_v14  ;;  %v1633_v49 = vmul.f32 %v12599_v18, %v1571_v34 }
 0x134   : > { %v2283_v59 = vunpack.c.l.b16 %v2220_v9  ;;  %v2795_v5 = vor.u32 %v2794_v32, %v2791_v21  ;;  %v3142_v9 = vunpack.c.l.b16 %v2786_v58  ;;  %v2234_v19 = vrot.slane %v2232_v30, 4  ;;  %v1813_v58 = vld [vmem:[#allocation2 + $0xe0] sm:$0x1] }
 0x135   : > { %v2497_v33 = vpop.f32.mrf.mxu3  ;;  %17160 = vst [vmem:[#allocation41_spill] sm:$0xff] %v12851_v36  ;;  %v12859_v6 = vpop.f32.mrf.mxu1  ;;  %v1700_v57 = vmax.f32 %v1668_v25, 0.0 }
 0x136   : > { %v2390_v37 = vpop.f32.mrf.mxu2  ;;  %v12855_v20 = vpack.c.b16 %v2284_v23, %v2283_v59  ;;  %v1731_v23 = vpack.c.bf16 %v1699_v47, %v1699_v47  ;;  %v2796_v63 = vsel %vm12846_vm5, %v2787_v2, %v2795_v5  ;;  %v2251_v5 = vshll.u32 %v1813_v58, 16 }
 0x137   : > { %v12857_v61 = vadd.f32 %v2494_v42, %v2390_v37  ;;  %v1812_v42 = vld [vmem:[#allocation2 + $0xdc] sm:$0xf]  ;;  %v3143_v21 = vunpack.c.l.b16 %v2796_v63  ;;  %v2237_v37 = vrot.slane %v2235_v35, 5  ;;  %v2734_v35 = vld [vmem:[#allocation2 + $0x20] sm:$0x3]  ;;  %v2807_v58 = vrot.slane %v12052_v7, 6 }
 0x138   : > { %v12871_v59 = vshll.u32 %v1812_v42, 16  ;;  %v12878_v3 = vshrl.u32 %v1812_v42, 16 }
 0x139   : > { %v3174_v36 = vpack.c.b16 %v3143_v21, %v3142_v9  ;;  %v2238_v2 = vor.u32 %v2237_v37, %v2234_v19  ;;  %v2253_v21 = vrot.slane %v2251_v5, 5 }
 0x13a   : > { %v2619_v38 = vpop.f32.mrf.mxu0  ;;  %17162 = vst [vmem:[#allocation43_spill] sm:$0xff] %v12871_v59  ;;  %v2243_v32 = vrot.slane %v12871_v59, 5 }
 0x13b   : > { %v12864_v1 = vadd.f32 %v2619_v38, %v12626_v50  ;;  %v7528_v50 = vunpack.c.l.b16 %v12853_v53  ;;  %10984 = vmatmul.msk.bf16.gmra.mxu2 %vm1290_vm3, %v12855_v20  ;;  %17163 = vst [vmem:[#allocation44_spill] sm:$0xff] %v12878_v3  ;;  %v2733_v38 = vld [vmem:[#allocation2 + $0x18] sm:$0xe]  ;;  %v2247_v53 = vrot.slane %v12878_v3, 4  ;;  %v7529_v3 = vunpack.c.l.b16 %v1731_v23  ;;  %11018 = vmatmul.msk.bf16.vlgmr.msrb.gmra.mxu1 %vm1290_vm3, %v3174_v36 }
 0x13c   : > { %v2798_v47 = vshrl.u32 %v2733_v38, 16  ;;  %v2801_v24 = vshll.u32 %v2733_v38, 16  ;;  %v1669_v38 = vadd.f32 %v12613_v48, %v1633_v49  ;;  %v2239_v25 = vrot.slane %v2238_v2, 4 }
 0x13d   : > { %17161 = vst [vmem:[#allocation42_spill] sm:$0xff] %v12864_v1  ;;  %11010 = vmatmul.msk.bf16.gmra.mxu0 %vm1290_vm3, %v12730_v29  ;;  %v2499_v29 = vpop.f32.mrf.mxu3  ;;  %v12885_v34 = vpop.f32.mrf.mxu1  ;;  %v2248_v30 = vor.u32 %v2247_v53, %v2243_v32  ;;  %v2815_v36 = vshll.u32 %v2734_v35, 16 }
 0x13e   : > { %v2393_v14 = vpop.f32.mrf.mxu2  ;;  %v2800_v63 = vrot.slane %v2798_v47, 5  ;;  %v2803_v16 = vrot.slane %v2801_v24, 6  ;;  %v2244_v37 = vsel %vm11997_vm11, %v2239_v25, %v2243_v32  ;;  %v2739_v47 = vld [vmem:[#allocation2 + $0x3c] sm:$0xe]  ;;  %v1701_v24 = vmax.f32 %v1669_v38, 0.0 }
 0x13f   : > { %v12883_v1 = vadd.f32 %v2497_v33, %v2393_v14  ;;  %v2249_v9 = vrot.slane %v2248_v30, 4  ;;  %v2806_v33 = vrot.slane %v12054_v8, 5  ;;  %v12893_v14 = vpack.c.bf16 %v1700_v57, %v1700_v57  ;;  %v2740_v38 = vld [vmem:[#allocation2 + $0x44] sm:$0x3]  ;;  %v17168_v32 = vld [vmem:[#allocation7_spill] sm:$0xff] }
 0x140   : > { %v2804_v19 = vor.u32 %v2803_v16, %v2800_v63  ;;  %v2285_v49 = vunpack.c.l.b16 %v2244_v37  ;;  %v2817_v57 = vrot.slane %v2815_v36, 6  ;;  %v2867_v30 = vshrl.u32 %v2739_v47, 16 }
 0x141   : > { %v2254_v23 = vsel %vm11997_vm11, %v2249_v9, %v2253_v21  ;;  %v2808_v5 = vor.u32 %v2807_v58, %v2806_v33  ;;  %v2870_v63 = vshll.u32 %v2739_v47, 16  ;;  %v1634_v25 = vmul.f32 %v12599_v18, %v12859_v6 }
 0x142   : > { %v2621_v42 = vpop.f32.mrf.mxu0  ;;  %v2805_v53 = vrot.slane %v2804_v19, 4  ;;  %v2286_v16 = vunpack.c.l.b16 %v2254_v23  ;;  %v1733_v23 = vpack.c.bf16 %v1701_v24, %v1701_v24  ;;  %v2875_v47 = vrot.slane %v12159_v46, 5 }
 0x143   : > { %v12888_v59 = vadd.f32 %v2621_v42, %v12667_v0  ;;  %v2812_v0 = vshrl.u32 %v2734_v35, 16  ;;  %v2810_v21 = vrot.slane %v2808_v5, 4  ;;  %v2872_v36 = vrot.slane %v2870_v63, 6 }
 0x144   : > { %v2809_v35 = vsel %vm12846_vm5, %v2805_v53, %v2808_v5  ;;  %v12909_v33 = vpack.c.b16 %v2286_v16, %v2285_v49  ;;  %v2881_v5 = vshrl.u32 %v2740_v38, 16  ;;  %v1670_v49 = vadd.f32 %v12613_v48, %v1634_v25 }
 0x145   : > { %17164 = vst [vmem:[#allocation45_spill] sm:$0xff] %v12888_v59  ;;  %v2502_v2 = vpop.f32.mrf.mxu3  ;;  %v2814_v42 = vrot.slane %v2812_v0, 5  ;;  %v12900_v59 = vpack.c.b16 %v7529_v3, %v7528_v50  ;;  %v12911_v58 = vpop.f32.mrf.mxu1  ;;  %v2869_v3 = vrot.slane %v2867_v30, 5  ;;  %v3144_v6 = vunpack.c.l.b16 %v2809_v35  ;;  %v2736_v35 = vld [vmem:[#allocation2 + $0x2c] sm:$0x3] }
 0x146   : > { %v2395_v9 = vpop.f32.mrf.mxu2  ;;  %v17167_v24 = vrot.slane %v12155_v44, 6  ;;  %v2883_v30 = vrot.slane %v2881_v5, 5  ;;  %v7531_v46 = vunpack.c.l.b16 %v1733_v23  ;;  %v2835_v5 = vshrl.u32 %v2736_v35, 16 }
 0x147   : > { %17165 = vst [vmem:[#allocation46_spill] sm:$0xff] %v12900_v59  ;;  %v12907_v37 = vadd.f32 %v2499_v29, %v2395_v9  ;;  %v2818_v50 = vor.u32 %v2817_v57, %v2814_v42  ;;  %v2884_v29 = vshll.u32 %v2740_v38, 16  ;;  %v2735_v9 = vld [vmem:[#allocation2 + $0x24] sm:$0xe]  ;;  %v2873_v42 = vor.u32 %v2872_v36, %v2869_v3 }
 0x148   : > { %v2877_v57 = vor.u32 %v17167_v24, %v2875_v47  ;;  %v1635_v38 = vmul.f32 %v12599_v18, %v12885_v34  ;;  %v2829_v59 = vrot.slane %v17168_v32, 5  ;;  %v1702_v23 = vmax.f32 %v1670_v49, 0.0 }
 0x149   : > { %v2819_v53 = vsel %vm12846_vm5, %v2810_v21, %v2818_v50  ;;  %v2886_v63 = vrot.slane %v2884_v29, 6  ;;  %v2824_v21 = vshll.u32 %v2735_v9, 16  ;;  %v2874_v50 = vrot.slane %v2873_v42, 4 }
 0x14a   : > { %v2624_v19 = vpop.f32.mrf.mxu0  ;;  %v3145_v16 = vunpack.c.l.b16 %v2819_v53  ;;  %v2879_v53 = vrot.slane %v2877_v57, 4  ;;  %v2838_v29 = vshll.u32 %v2736_v35, 16  ;;  %v17171_v49 = vunpack.c.l.b16 %v12893_v14 }
 0x14b   : > { %v12914_v0 = vadd.f32 %v2624_v19, %v12690_v12  ;;  %v2821_v12 = vshrl.u32 %v2735_v9, 16  ;;  %10985 = vmatmul.msk.bf16.gmra.mxu2 %vm1290_vm3, %v12909_v33  ;;  %v2887_v3 = vor.u32 %v2886_v63, %v2883_v30  ;;  %v2826_v36 = vrot.slane %v2824_v21, 6 }
 0x14c   : > { %v3175_v19 = vpack.c.b16 %v3145_v16, %v3144_v6  ;;  %v2878_v47 = vsel %vm12846_vm5, %v2874_v50, %v2877_v57  ;;  %v2837_v63 = vrot.slane %v2835_v5, 5  ;;  %v2840_v21 = vrot.slane %v2838_v29, 6 }
 0x14d   : > { %17166 = vst [vmem:[#allocation47_spill] sm:$0xff] %v12914_v0  ;;  %11011 = vmatmul.msk.bf16.gmra.mxu0 %vm1290_vm3, %v12762_v15  ;;  %v2504_v15 = vpop.f32.mrf.mxu3  ;;  %v2823_v25 = vrot.slane %v2821_v12, 5  ;;  %v12933_v18 = vpop.f32.mrf.mxu1  ;;  %v2888_v34 = vsel %vm12846_vm5, %v2879_v53, %v2887_v3  ;;  %v3150_v6 = vunpack.c.l.b16 %v2878_v47  ;;  %v1671_v12 = vadd.f32 %v12613_v48, %v1635_v38 }
 0x14e   : > { %v2398_v0 = vpop.f32.mrf.mxu2  ;;  %11019 = vmatmul.msk.bf16.gmra.mxu1 %vm1290_vm3, %v3175_v19  ;;  %v3151_v57 = vunpack.c.l.b16 %v2888_v34  ;;  %v12950_v53 = vpack.c.b16 %v7531_v46, %v17171_v49  ;;  %v12952_v48 = vpack.c.bf16 %v1702_v23, %v1702_v23  ;;  %v2841_v19 = vor.u32 %v2840_v21, %v2837_v63  ;;  %v17173_v34 = vld [vmem:[#allocation13_spill] sm:$0xff] }
 0x14f   : > { %v12931_v24 = vadd.f32 %v2502_v2, %v2398_v0  ;;  %v2827_v16 = vor.u32 %v2826_v36, %v2823_v25  ;;  %v17170_v2 = vrot.slane %v12087_v55, 6  ;;  %v1703_v38 = vmax.f32 %v1671_v12, 0.0  ;;  %v2742_v12 = vld [vmem:[#allocation2 + $0x50] sm:$0x3] }
 0x150   : > { %v12944_v35 = vpack.c.b16 %v3151_v57, %v3150_v6  ;;  %17172 = vst [vmem:[#allocation48_spill] sm:$0xff] %v12950_v53  ;;  %v2898_v14 = vrot.slane %v17173_v34, 5  ;;  %v7532_v63 = vunpack.c.l.b16 %v12952_v48 }
 0x151   : > { %v2828_v30 = vrot.slane %v2827_v16, 4  ;;  %v2831_v0 = vor.u32 %v17170_v2, %v2829_v59  ;;  %v1735_v21 = vpack.c.bf16 %v1703_v38, %v1703_v38  ;;  %v2737_v38 = vld [vmem:[#allocation2 + $0x30] sm:$0xe] }
 0x152   : > { %v2626_v9 = vpop.f32.mrf.mxu0  ;;  %11050 = vmatmul.msk.bf16.vlgmr.msrb.gmra.mxu3 %vm1290_vm3, %v12944_v35 }
 0x153   : > { %v12938_v42 = vadd.f32 %v2626_v9, %v12710_v51  ;;  %v2832_v50 = vsel %vm12846_vm5, %v2828_v30, %v2831_v0  ;;  %v2833_v25 = vrot.slane %v2831_v0, 4  ;;  %v2741_v51 = vld [vmem:[#allocation2 + $0x48] sm:$0xe]  ;;  %v17174_v30 = vld [vmem:[#allocation12_spill] sm:$0xff]  ;;  %v7533_v34 = vunpack.c.l.b16 %v1735_v21 }
 0x154   : > { %v2890_v3 = vshrl.u32 %v2741_v51, 16  ;;  %v3146_v36 = vunpack.c.l.b16 %v2832_v50  ;;  %v2893_v47 = vshll.u32 %v2741_v51, 16  ;;  %v2899_v2 = vrot.slane %v17174_v30, 6  ;;  %v1758_v50 = vld [vmem:[%s17011_s7 + $0x10] sm:$0x3]  ;;  %v17176_v30 = vld [vmem:[#allocation9_spill] sm:$0xff] }
 0x155   : > { %17169 = vst [vmem:[#allocation7_spill] sm:$0xff] %v12938_v42  ;;  %v2507_v59 = vpop.f32.mrf.mxu3  ;;  %v2842_v29 = vsel %vm12846_vm5, %v2833_v25, %v2841_v19  ;;  %v12961_v23 = vpop.f32.mrf.mxu1  ;;  %v4857_v25 = vld [vmem:[%s17014_s10 + $0x6] sm:$0x3]  ;;  %v4595_v49 = vsel %vm1366_vm0, %v1758_v50, 0  ;;  %v12985_v19 = vld [vmem:[%s17009_s5] ss:$0 sm:$0xff] }
 0x156   : > { %v2400_v5 = vpop.f32.mrf.mxu2  ;;  %v2892_v9 = vrot.slane %v2890_v3, 5  ;;  %v3147_v16 = vunpack.c.l.b16 %v2842_v29  ;;  %v2895_v57 = vrot.slane %v2893_v47, 6  ;;  %v5036_v48 = vsel %vm1366_vm0, %v4857_v25, 0  ;;  %4604 = vmatpush.bf16.msra.mxu2 %v4595_v49 }
 0x157   : > { %v12959_v6 = vadd.f32 %v2504_v15, %v2400_v5  ;;  %v1752_v15 = vld [vmem:[%s17011_s7 + $0x4] sm:$0x3]  ;;  %v1636_v3 = vmul.f32 %v12985_v19, %v12911_v58  ;;  %v2900_v5 = vor.u32 %v2899_v2, %v2898_v14  ;;  %v2904_v29 = vshrl.u32 %v2742_v12, 16  ;;  %5045 = vmatpush.bf16.msra.mxu3 %v5036_v48  ;;  %v13003_v48 = vld [vmem:[%s17010_s6] ss:$0 sm:$0xff] }
 0x158   : > { %v3176_v51 = vpack.c.b16 %v3147_v16, %v3146_v36  ;;  %v1755_v36 = vld [vmem:[%s17011_s7 + $0xa] sm:$0x3]  ;;  %v2896_v47 = vor.u32 %v2895_v57, %v2892_v9  ;;  %v2738_v16 = vld [vmem:[#allocation2 + $0x38] sm:$0x3]  ;;  %v2844_v50 = vshrl.u32 %v2737_v38, 16  ;;  %v1637_v58 = vmul.f32 %v12985_v19, %v12933_v18 }
 0x159   : > { %v2902_v53 = vrot.slane %v2900_v5, 4  ;;  %v2906_v9 = vrot.slane %v2904_v29, 5 }
 0x15a   : > { %v2629_v46 = vpop.f32.mrf.mxu0  ;;  %v2897_v49 = vrot.slane %v2896_v47, 4  ;;  %v2846_v57 = vrot.slane %v2844_v50, 5  ;;  %v1672_v47 = vadd.f32 %v13003_v48, %v1636_v3  ;;  %v2861_v3 = vshll.u32 %v2738_v16, 16 }
 0x15b   : > { %v12965_v0 = vadd.f32 %v2629_v46, %v12726_v56  ;;  %v4231_v56 = vsel %vm1366_vm0, %v1752_v15, 0  ;;  %11034 = vmatmul.msk.bf16.vlgmr.msrb.gmra.mxu2 %vm1290_vm3, %v3176_v51  ;;  %v2907_v46 = vshll.u32 %v2742_v12, 16  ;;  %v2847_v15 = vshll.u32 %v2737_v38, 16  ;;  %v17177_v38 = vld [vmem:[#allocation8_spill] sm:$0xff] }
 0x15c   : > { %4240 = vmatpush.bf16.msra.mxu0 %v4231_v56  ;;  %v2852_v56 = vrot.slane %v17176_v30, 5  ;;  %v2901_v12 = vsel %vm12846_vm5, %v2897_v49, %v2900_v5  ;;  %v2853_v44 = vrot.slane %v17177_v38, 6  ;;  %v1673_v5 = vadd.f32 %v13003_v48, %v1637_v58 }
 0x15d   : > { %17175 = vst [vmem:[#allocation49_spill] sm:$0xff] %v12965_v0  ;;  %11012 = vmatmul.msk.bf16.gmra.mxu0 %vm1290_vm3, %v12788_v11  ;;  %v4413_v11 = vsel %vm1366_vm0, %v1755_v36, 0  ;;  %v2509_v25 = vpop.f32.mrf.mxu3  ;;  %v2909_v14 = vrot.slane %v2907_v46, 6  ;;  %v2849_v2 = vrot.slane %v2847_v15, 6  ;;  %v2858_v0 = vshrl.u32 %v2738_v16, 16 }
 0x15e   : > { %4422 = vmatpush.bf16.msra.mxu1 %v4413_v11  ;;  %v2403_v36 = vpop.f32.mrf.mxu2  ;;  %v1586_v11 = vpop.f32.mrf.mxu1  ;;  %v3152_v15 = vunpack.c.l.b16 %v2901_v12  ;;  %v2854_v49 = vor.u32 %v2853_v44, %v2852_v56  ;;  %v1704_v44 = vmax.f32 %v1672_v47, 0.0  ;;  %v1705_v56 = vmax.f32 %v1673_v5, 0.0 }
 0x15f   : > { %v13006_v29 = vadd.f32 %v2507_v59, %v2403_v36  ;;  %v2910_v46 = vor.u32 %v2909_v14, %v2906_v9  ;;  %v2850_v21 = vor.u32 %v2849_v2, %v2846_v57  ;;  %11020 = vmatmul.msk.bf16.gmra.mxu1 %vm1290_vm3, %v3176_v51  ;;  %v2860_v30 = vrot.slane %v2858_v0, 5 }
 0x160   : > { %v2856_v14 = vrot.slane %v2854_v49, 4  ;;  %v2863_v57 = vrot.slane %v2861_v3, 6  ;;  %v13017_v2 = vpack.c.b16 %v7533_v34, %v7532_v63  ;;  %v2922_v34 = vrot.slane %v12456_v62, 6 }
 0x161   : > { %v2911_v42 = vsel %vm12846_vm5, %v2902_v53, %v2910_v46  ;;  %v2851_v38 = vrot.slane %v2850_v21, 4  ;;  %v2744_v53 = vld [vmem:[#allocation2 + $0x5c] sm:$0x3] }
 0x162   : > { %v2631_v18 = vpop.f32.mrf.mxu0  ;;  %v3153_v59 = vunpack.c.l.b16 %v2911_v42  ;;  %17178 = vst [vmem:[#allocation50_spill] sm:$0xff] %v13017_v2  ;;  %v2864_v12 = vor.u32 %v2863_v57, %v2860_v30  ;;  %v2927_v5 = vshrl.u32 %v2744_v53, 16  ;;  %v2930_v57 = vshll.u32 %v2744_v53, 16 }
 0x163   : > { %v13009_v50 = vadd.f32 %v2631_v18, %v12744_v13  ;;  %v2855_v9 = vsel %vm12846_vm5, %v2851_v38, %v2854_v49  ;;  %v2743_v13 = vld [vmem:[#allocation2 + $0x54] sm:$0xe]  ;;  %v2921_v38 = vrot.slane %v12458_v52, 5 }
 0x164   : > { %v13019_v58 = vpack.c.b16 %v3153_v59, %v3152_v15  ;;  %v2913_v36 = vshrl.u32 %v2743_v13, 16  ;;  %v2916_v18 = vshll.u32 %v2743_v13, 16  ;;  %v3148_v0 = vunpack.c.l.b16 %v2855_v9 }
 0x165   : > { %v2512_v51 = vpop.f32.mrf.mxu3  ;;  %v2865_v47 = vsel %vm12846_vm5, %v2856_v14, %v2864_v12  ;;  %v2923_v59 = vor.u32 %v2922_v34, %v2921_v38  ;;  %v2929_v9 = vrot.slane %v2927_v5, 5  ;;  %v1736_v13 = vpack.c.bf16 %v1704_v44, %v1704_v44 }
 0x166   : > { %11051 = vmatmul.msk.bf16.gmra.mxu3 %vm1290_vm3, %v13019_v58  ;;  %v2405_v42 = vpop.f32.mrf.mxu2  ;;  %v2915_v16 = vrot.slane %v2913_v36, 5  ;;  %v13029_v21 = vpop.f32.mrf.mxu1  ;;  %v2918_v30 = vrot.slane %v2916_v18, 6  ;;  %v3149_v49 = vunpack.c.l.b16 %v2865_v47  ;;  %v1737_v36 = vpack.c.bf16 %v1705_v56, %v1705_v56 }
 0x167   : > { %v13025_v46 = vadd.f32 %v2509_v25, %v2405_v42  ;;  %v2925_v14 = vrot.slane %v2923_v59, 4  ;;  %v2932_v12 = vrot.slane %v2930_v57, 6  ;;  %v1638_v18 = vmul.f32 %v12985_v19, %v12961_v23 }
 0x168   : > { %v2919_v3 = vor.u32 %v2918_v30, %v2915_v16  ;;  %v3177_v25 = vpack.c.b16 %v3149_v49, %v3148_v0  ;;  %v1639_v44 = vmul.f32 %v12985_v19, %v1586_v11  ;;  %v7535_v56 = vunpack.c.l.b16 %v1737_v36 }
 0x169   : > { %v2933_v38 = vor.u32 %v2932_v12, %v2929_v9  ;;  %v1674_v5 = vadd.f32 %v13003_v48, %v1638_v18 }
 0x16a   : > { %v2634_v63 = vpop.f32.mrf.mxu0  ;;  %v2920_v42 = vrot.slane %v2919_v3, 4  ;;  %v1675_v11 = vadd.f32 %v13003_v48, %v1639_v44  ;;  %v1814_v44 = vld [vmem:[#allocation2 + $0xe4] sm:$0xf] }
 0x16b   : > { %v13032_v15 = vadd.f32 %v2634_v63, %v12774_v41  ;;  %11035 = vmatmul.msk.bf16.gmra.mxu2 %vm1290_vm3, %v3177_v25  ;;  %v2934_v23 = vsel %vm12846_vm5, %v2925_v14, %v2933_v38  ;;  %v2746_v14 = vld [vmem:[#allocation2 + $0x68] sm:$0x3] }
 0x16c   : > { %v2924_v16 = vsel %vm12846_vm5, %v2920_v42, %v2923_v59  ;;  %v3155_v49 = vunpack.c.l.b16 %v2934_v23  ;;  %v2745_v59 = vld [vmem:[#allocation2 + $0x60] sm:$0xe]  ;;  %v1707_v42 = vmax.f32 %v1675_v11, 0.0  ;;  %v2953_v11 = vshll.u32 %v2746_v14, 16 }
 0x16d   : > { %11013 = vmatmul.msk.bf16.gmra.mxu0 %vm1290_vm3, %v12818_v60  ;;  %v2514_v41 = vpop.f32.mrf.mxu3  ;;  %v3154_v34 = vunpack.c.l.b16 %v2924_v16  ;;  %v7534_v60 = vunpack.c.l.b16 %v1736_v13  ;;  %v2936_v13 = vshrl.u32 %v2745_v59, 16  ;;  %v2939_v36 = vshll.u32 %v2745_v59, 16 }
 0x16e   : > { %v2408_v53 = vpop.f32.mrf.mxu2  ;;  %v1591_v47 = vpop.f32.mrf.mxu1  ;;  %v1640_v59 = vmul.f32 %v12985_v19, %v13029_v21 }
 0x16f   : > { %v13042_v63 = vadd.f32 %v2512_v51, %v2408_v53  ;;  %11021 = vmatmul.msk.bf16.gmra.mxu1 %vm1290_vm3, %v3177_v25  ;;  %v13052_v3 = vpack.c.b16 %v3155_v49, %v3154_v34  ;;  %v13054_v9 = vpack.c.b16 %v7535_v56, %v7534_v60  ;;  %v1706_v51 = vmax.f32 %v1674_v5, 0.0  ;;  %v1815_v56 = vld [vmem:[#allocation2 + $0xe8] sm:$0xf] }
 0x170   : > { %v2938_v12 = vrot.slane %v2936_v13, 5  ;;  %v2941_v25 = vrot.slane %v2939_v36, 6  ;;  %v2944_v53 = vrot.slane %v12502_v31, 5  ;;  %v2945_v34 = vrot.slane %v12500_v10, 6 }
 0x171   : > { %17179 = vst [vmem:[#allocation51_spill] sm:$0xff] %v13054_v9  ;;  %v2950_v49 = vshrl.u32 %v2746_v14, 16  ;;  %v2548_v13 = vshrl.u32 %v1814_v44, 16  ;;  %v2551_v36 = vshll.u32 %v1814_v44, 16  ;;  %v1641_v44 = vmul.f32 %v12985_v19, %v1591_v47 }
 0x172   : > { %v2636_v0 = vpop.f32.mrf.mxu0  ;;  %v2942_v23 = vor.u32 %v2941_v25, %v2938_v12  ;;  %v2946_v5 = vor.u32 %v2945_v34, %v2944_v53  ;;  %v13075_v12 = vshrl.u32 %v1815_v56, 16 }
 0x173   : > { %v13047_v30 = vadd.f32 %v2636_v0, %v12784_v22  ;;  %v1738_v0 = vpack.c.bf16 %v1706_v51, %v1706_v51  ;;  %v2952_v2 = vrot.slane %v2950_v49, 5  ;;  %v13073_v51 = vshll.u32 %v1815_v56, 16 }
 0x174   : > { %v2948_v9 = vrot.slane %v2946_v5, 4  ;;  %17181 = vst [vmem:[#allocation53_spill] sm:$0xff] %v13075_v12  ;;  %v2553_v10 = vrot.slane %v2551_v36, 5 }
 0x175   : > { %v2517_v57 = vpop.f32.mrf.mxu3  ;;  %17180 = vst [vmem:[#allocation52_spill] sm:$0xff] %v13073_v51  ;;  %v7536_v25 = vunpack.c.l.b16 %v1738_v0 }
 0x176   : > { %11052 = vmatmul.msk.bf16.gmra.mxu3 %vm1290_vm3, %v13052_v3  ;;  %v2410_v22 = vpop.f32.mrf.mxu2  ;;  %v13060_v38 = vpop.f32.mrf.mxu1 }
 0x177   : > { %v13058_v16 = vadd.f32 %v2514_v41, %v2410_v22  ;;  %v1739_v41 = vpack.c.bf16 %v1707_v42, %v1707_v42  ;;  %v2943_v22 = vrot.slane %v2942_v23, 4 }
 0x179   : > { %v7537_v21 = vunpack.c.l.b16 %v1739_v41  ;;  %v1816_v41 = vld [vmem:[#allocation2 + $0xec] sm:$0x1] }
 0x17a   : > { %v2639_v18 = vpop.f32.mrf.mxu0 }
 0x17b   : > { %v13065_v60 = vadd.f32 %v2639_v18, %v12802_v54  ;;  %v2955_v54 = vrot.slane %v2953_v11, 6  ;;  %11036 = vmatmul.msk.bf16.gmra.mxu2 %vm1290_vm3, %v12944_v35  ;;  %v1676_v18 = vadd.f32 %v13003_v48, %v1640_v59  ;;  %v2550_v11 = vrot.slane %v2548_v13, 4 }
 0x17d   : > { %11014 = vmatmul.msk.bf16.gmra.mxu0 %vm1290_vm3, %v12855_v20  ;;  %v2519_v14 = vpop.f32.mrf.mxu3  ;;  %v2947_v20 = vsel %vm12846_vm5, %v2943_v22, %v2946_v5  ;;  %v2956_v42 = vor.u32 %v2955_v54, %v2952_v2  ;;  %v2559_v2 = vrot.slane %v13073_v51, 5  ;;  %v2563_v5 = vrot.slane %v13075_v12, 4  ;;  %v2747_v22 = vld [vmem:[#allocation2 + $0x6c] sm:$0xe] }
 0x17e   : > { %v2413_v53 = vpop.f32.mrf.mxu2  ;;  %v3156_v34 = vunpack.c.l.b16 %v2947_v20  ;;  %v1596_v56 = vpop.f32.mrf.mxu1  ;;  %v1708_v13 = vmax.f32 %v1676_v18, 0.0  ;;  %v2554_v36 = vor.u32 %v2553_v10, %v2550_v11  ;;  %v2567_v54 = vshll.u32 %v1816_v41, 16 }
 0x17f   : > { %v13081_v49 = vadd.f32 %v2517_v57, %v2413_v53  ;;  %v2957_v0 = vsel %vm12846_vm5, %v2948_v9, %v2956_v42  ;;  %11022 = vmatmul.msk.bf16.gmra.mxu1 %vm1290_vm3, %v12944_v35  ;;  %v1677_v57 = vadd.f32 %v13003_v48, %v1641_v44  ;;  %v13095_v9 = vpack.c.b16 %v7537_v21, %v7536_v25 }
 0x180   : > { %v3157_v47 = vunpack.c.l.b16 %v2957_v0  ;;  %v2959_v42 = vshrl.u32 %v2747_v22, 16  ;;  %v2962_v53 = vshll.u32 %v2747_v22, 16  ;;  %v2748_v0 = vld [vmem:[#allocation2 + $0x74] sm:$0x3]  ;;  %v2967_v25 = vrot.slane %v12532_v39, 5 }
 0x181   : > { %17183 = vst [vmem:[#allocation55_spill] sm:$0xff] %v13095_v9  ;;  %v2968_v21 = vrot.slane %v12530_v27, 6  ;;  %v1817_v22 = vld [vmem:[#allocation2 + $0xf0] sm:$0xf]  ;;  %v2976_v12 = vshll.u32 %v2748_v0, 16 }
 0x182   : > { %v2641_v23 = vpop.f32.mrf.mxu0  ;;  %v13093_v59 = vpack.c.b16 %v3157_v47, %v3156_v34  ;;  %v2961_v51 = vrot.slane %v2959_v42, 5  ;;  %v2964_v44 = vrot.slane %v2962_v53, 6  ;;  %v1740_v47 = vpack.c.bf16 %v1708_v13, %v1708_v13 }
 0x183   : > { %v13086_v31 = vadd.f32 %v2641_v23, %v12814_v43  ;;  %v2564_v43 = vor.u32 %v2563_v5, %v2559_v2  ;;  %v1709_v23 = vmax.f32 %v1677_v57, 0.0  ;;  %v2555_v5 = vrot.slane %v2554_v36, 4 }
 0x184   : > { %v2569_v57 = vrot.slane %v2567_v54, 5  ;;  %v2965_v9 = vor.u32 %v2964_v44, %v2961_v51  ;;  %v2969_v42 = vor.u32 %v2968_v21, %v2967_v25  ;;  %v2973_v53 = vshrl.u32 %v2748_v0, 16 }
 0x185   : > { %17182 = vst [vmem:[#allocation54_spill] sm:$0xff] %v13086_v31  ;;  %v2522_v20 = vpop.f32.mrf.mxu3  ;;  %v2565_v41 = vrot.slane %v2564_v43, 4  ;;  %v1642_v13 = vmul.f32 %v12985_v19, %v13060_v38  ;;  %v7538_v36 = vunpack.c.l.b16 %v1740_v47  ;;  %v2572_v51 = vshrl.u32 %v1817_v22, 16 }
 0x186   : > { %11053 = vmatmul.msk.bf16.gmra.mxu3 %vm1290_vm3, %v13093_v59  ;;  %v2415_v35 = vpop.f32.mrf.mxu2  ;;  %v13101_v10 = vpop.f32.mrf.mxu1  ;;  %v2966_v27 = vrot.slane %v2965_v9, 4  ;;  %v2971_v39 = vrot.slane %v2969_v42, 4  ;;  %v2575_v43 = vshll.u32 %v1817_v22, 16  ;;  %v2560_v0 = vsel %vm11997_vm11, %v2555_v5, %v2559_v2 }
 0x187   : > { %v13099_v18 = vadd.f32 %v2519_v14, %v2415_v35  ;;  %v1741_v14 = vpack.c.bf16 %v1709_v23, %v1709_v23  ;;  %v1818_v35 = vld [vmem:[#allocation2 + $0xf4] sm:$0xf]  ;;  %v1643_v23 = vmul.f32 %v12985_v19, %v1596_v56  ;;  %v2574_v56 = vrot.slane %v2572_v51, 4 }
 0x188   : > { %v2970_v38 = vsel %vm12846_vm5, %v2966_v27, %v2969_v42  ;;  %v13121_v44 = vshll.u32 %v1818_v35, 16  ;;  %v13123_v47 = vshrl.u32 %v1818_v35, 16  ;;  %v2595_v35 = vunpack.c.l.b16 %v2560_v0 }
 0x189   : > { %v3158_v25 = vunpack.c.l.b16 %v2970_v38  ;;  %v7539_v22 = vunpack.c.l.b16 %v1741_v14 }
 0x18a   : > { %v2644_v34 = vpop.f32.mrf.mxu0  ;;  %17185 = vst [vmem:[#allocation57_spill] sm:$0xff] %v13121_v44 }
 0x18b   : > { %v13106_v11 = vadd.f32 %v2644_v34, %v12837_v45  ;;  %v2975_v45 = vrot.slane %v2973_v53, 5  ;;  %v2978_v34 = vrot.slane %v2976_v12, 6  ;;  %11037 = vmatmul.msk.bf16.gmra.mxu2 %vm1290_vm3, %v13019_v58  ;;  %17186 = vst [vmem:[#allocation58_spill] sm:$0xff] %v13123_v47  ;;  %v1678_v53 = vadd.f32 %v13003_v48, %v1642_v13 }
 0x18c   : > { %v1679_v13 = vadd.f32 %v13003_v48, %v1643_v23 }
 0x18d   : > { %17184 = vst [vmem:[#allocation56_spill] sm:$0xff] %v13106_v11  ;;  %11015 = vmatmul.msk.bf16.gmra.mxu0 %vm1290_vm3, %v12909_v33  ;;  %v2524_v54 = vpop.f32.mrf.mxu3  ;;  %v2570_v33 = vsel %vm11997_vm11, %v2565_v41, %v2569_v57  ;;  %v2979_v9 = vor.u32 %v2978_v34, %v2975_v45  ;;  %v2577_v57 = vrot.slane %v2575_v43, 5  ;;  %v2583_v45 = vrot.slane %v13121_v44, 5  ;;  %v2750_v44 = vld [vmem:[#allocation2 + $0x80] sm:$0x3] }
 0x18e   : > { %v2418_v12 = vpop.f32.mrf.mxu2  ;;  %v13128_v5 = vpop.f32.mrf.mxu1  ;;  %v2596_v14 = vunpack.c.l.b16 %v2570_v33  ;;  %v2587_v34 = vrot.slane %v13123_v47, 4  ;;  %v1710_v51 = vmax.f32 %v1678_v53, 0.0  ;;  %v1711_v33 = vmax.f32 %v1679_v13, 0.0 }
 0x18f   : > { %v13126_v2 = vadd.f32 %v2522_v20, %v2418_v12  ;;  %v2980_v27 = vsel %vm12846_vm5, %v2971_v39, %v2979_v9  ;;  %11023 = vmatmul.msk.bf16.gmra.mxu1 %vm1290_vm3, %v13019_v58  ;;  %v1819_v20 = vld [vmem:[#allocation2 + $0xf8] sm:$0x1]  ;;  %v2749_v39 = vld [vmem:[#allocation2 + $0x78] sm:$0xe]  ;;  %v2578_v43 = vor.u32 %v2577_v57, %v2574_v56  ;;  %v2990_v53 = vrot.slane %v12571_v4, 5 }
 0x190   : > { %v3159_v42 = vunpack.c.l.b16 %v2980_v27  ;;  %v2982_v12 = vshrl.u32 %v2749_v39, 16  ;;  %v2985_v58 = vshll.u32 %v2749_v39, 16  ;;  %v2591_v0 = vshll.u32 %v1819_v20, 16 }
 0x191   : > { %v2588_v27 = vor.u32 %v2587_v34, %v2583_v45  ;;  %v2991_v56 = vrot.slane %v12569_v40, 6  ;;  %v2996_v34 = vshrl.u32 %v2750_v44, 16  ;;  %v2999_v39 = vshll.u32 %v2750_v44, 16 }
 0x192   : > { %v2646_v21 = vpop.f32.mrf.mxu0  ;;  %v13140_v38 = vpack.c.b16 %v3159_v42, %v3158_v25  ;;  %v2984_v47 = vrot.slane %v2982_v12, 5  ;;  %v2987_v25 = vrot.slane %v2985_v58, 6  ;;  %v2593_v58 = vrot.slane %v2591_v0, 5 }
 0x193   : > { %v13133_v41 = vadd.f32 %v2646_v21, %v12857_v61  ;;  %v13142_v61 = vpack.c.b16 %v7539_v22, %v7538_v36  ;;  %v2599_v21 = vpack.c.b16 %v2596_v14, %v2595_v35  ;;  %v3726_v22 = vld [vmem:[#allocation2 + $0xc] sm:$0xc]  ;;  %v1742_v35 = vpack.c.bf16 %v1710_v51, %v1710_v51  ;;  %v17189_v51 = vld [vmem:[#allocation4_spill] sm:$0xff] }
 0x194   : > { %v2579_v14 = vrot.slane %v2578_v43, 4  ;;  %v2988_v13 = vor.u32 %v2987_v25, %v2984_v47  ;;  %v2992_v20 = vor.u32 %v2991_v56, %v2990_v53  ;;  %v2589_v12 = vrot.slane %v2588_v27, 4 }
 0x195   : > { %17187 = vst [vmem:[#allocation59_spill] sm:$0xff] %v13133_v41  ;;  %v2527_v9 = vpop.f32.mrf.mxu3  ;;  %v2998_v4 = vrot.slane %v2996_v34, 5  ;;  %v3001_v31 = vrot.slane %v2999_v39, 6  ;;  %v3775_v40 = vrot.slane %v11979_v17, 6  ;;  %v3776_v43 = vrot.slane %v17189_v51, 7 }
 0x196   : > { %17188 = vst [vmem:[#allocation60_spill] sm:$0xff] %v13142_v61  ;;  %11054 = vmatmul.msk.bf16.gmra.mxu3 %vm1290_vm3, %v13140_v38  ;;  %v2420_v23 = vpop.f32.mrf.mxu2  ;;  %v13148_v36 = vpop.f32.mrf.mxu1  ;;  %v2989_v61 = vrot.slane %v2988_v13, 4  ;;  %v2994_v11 = vrot.slane %v2992_v20, 4  ;;  %v7540_v44 = vunpack.c.l.b16 %v1742_v35  ;;  %v2584_v27 = vsel %vm11997_vm11, %v2579_v14, %v2583_v45 }
 0x197   : > { %v13146_v41 = vadd.f32 %v2524_v54, %v2420_v23  ;;  %v1743_v54 = vpack.c.bf16 %v1711_v33, %v1711_v33  ;;  %v3767_v23 = vshrl.u32 %v3726_v22, 16  ;;  %v3002_v33 = vor.u32 %v3001_v31, %v2998_v4 }
 0x198   : > { %v2594_v25 = vsel %vm11997_vm11, %v2589_v12, %v2593_v58  ;;  %v1645_v45 = vmul.f32 %v12985_v19, %v13128_v5  ;;  %v2597_v39 = vunpack.c.l.b16 %v2584_v27 }
 0x199   : > { %v7541_v0 = vunpack.c.l.b16 %v1743_v54  ;;  %v3769_v35 = vrot.slane %v3767_v23, 6  ;;  %v3003_v31 = vsel %vm12846_vm5, %v2994_v11, %v3002_v33  ;;  %v2598_v54 = vunpack.c.l.b16 %v2594_v25  ;;  %v2752_v25 = vld [vmem:[#allocation2 + $0x8c] sm:$0x3] }
 0x19a   : > { %v2649_v42 = vpop.f32.mrf.mxu0  ;;  %v3161_v14 = vunpack.c.l.b16 %v3003_v31  ;;  %v1681_v5 = vadd.f32 %v13003_v48, %v1645_v45 }
 0x19b   : > { %v13153_v57 = vadd.f32 %v2649_v42, %v12883_v1  ;;  %11038 = vmatmul.msk.bf16.gmra.mxu2 %vm1290_vm3, %v13052_v3  ;;  %v3770_v1 = vshll.u32 %v3726_v22, 16  ;;  %v3727_v42 = vld [vmem:[#allocation2 + $0x14] sm:$0x7]  ;;  %v1644_v22 = vmul.f32 %v12985_v19, %v13101_v10  ;;  %v13184_v58 = vpack.c.b16 %v7541_v0, %v7540_v44  ;;  %v3728_v0 = vld [vmem:[#allocation2 + $0x18] sm:$0xc] }
 0x19c   : > { %v3784_v10 = vshll.u32 %v3727_v42, 16 }
 0x19d   : > { %11016 = vmatmul.msk.bf16.gmra.mxu0 %vm1290_vm3, %v2599_v21  ;;  %v2529_v47 = vpop.f32.mrf.mxu3  ;;  %v2993_v21 = vsel %vm12846_vm5, %v2989_v61, %v2992_v20  ;;  %v3772_v61 = vrot.slane %v3770_v1, 7  ;;  %v3781_v20 = vshrl.u32 %v3727_v42, 16  ;;  %v1680_v11 = vadd.f32 %v13003_v48, %v1644_v22  ;;  %17190 = vst [vmem:[#allocation4_spill] sm:$0xff] %v13184_v58 }
 0x19e   : > { %v2423_v17 = vpop.f32.mrf.mxu2  ;;  %v3160_v53 = vunpack.c.l.b16 %v2993_v21  ;;  %v1606_v34 = vpop.f32.mrf.mxu1  ;;  %v3786_v33 = vrot.slane %v3784_v10, 7 }
 0x19f   : > { %v13168_v13 = vadd.f32 %v2527_v9, %v2423_v17  ;;  %11024 = vmatmul.msk.bf16.gmra.mxu1 %vm1290_vm3, %v13052_v3  ;;  %v13179_v9 = vor.u32 %v3776_v43, %v3775_v40  ;;  %v3773_v23 = vor.u32 %v3772_v61, %v3769_v35  ;;  %v3783_v21 = vrot.slane %v3781_v20, 6  ;;  %v17192_v35 = vld [vmem:[#allocation20_spill] sm:$0xff] }
 0x1a0   : > { %v13181_v12 = vpack.c.b16 %v3161_v14, %v3160_v53  ;;  %v2600_v43 = vpack.c.b16 %v2598_v54, %v2597_v39  ;;  %v3014_v31 = vrot.slane %v17192_v35, 6  ;;  %v1712_v61 = vmax.f32 %v1680_v11, 0.0 }
 0x1a1   : > { %v3779_v40 = vrot.slane %v13179_v9, 4  ;;  %v1713_v14 = vmax.f32 %v1681_v5, 0.0  ;;  %v3774_v20 = vrot.slane %v3773_v23, 4  ;;  %v3787_v10 = vor.u32 %v3786_v33, %v3783_v21 }
 0x1a2   : > { %v2651_v56 = vpop.f32.mrf.mxu0  ;;  %v1744_v35 = vpack.c.bf16 %v1712_v61, %v1712_v61 }
 0x1a3   : > { %v13173_v4 = vadd.f32 %v2651_v56, %v12907_v37  ;;  %v2751_v37 = vld [vmem:[#allocation2 + $0x84] sm:$0xe]  ;;  %v17191_v56 = vld [vmem:[#allocation21_spill] sm:$0xff]  ;;  %v3778_v11 = vsel %vm12043_vm15, %v3774_v20, %v13179_v9  ;;  %v1745_v33 = vpack.c.bf16 %v1713_v14, %v1713_v14  ;;  %v3798_v14 = vrot.slane %v12054_v8, 6 }
 0x1a4   : > { %v3005_v51 = vshrl.u32 %v2751_v37, 16  ;;  %v3008_v3 = vshll.u32 %v2751_v37, 16  ;;  %v3013_v22 = vrot.slane %v17191_v56, 5  ;;  %v4134_v8 = vunpack.c.l.b16 %v3778_v11 }
 0x1a5   : > { %v2532_v1 = vpop.f32.mrf.mxu3 }
 0x1a6   : > { %11055 = vmatmul.msk.bf16.gmra.mxu3 %vm1290_vm3, %v13181_v12  ;;  %v2425_v27 = vpop.f32.mrf.mxu2  ;;  %v3007_v17 = vrot.slane %v3005_v51, 5  ;;  %v3010_v53 = vrot.slane %v3008_v3, 6  ;;  %v13197_v39 = vpop.f32.mrf.mxu1  ;;  %v3015_v37 = vor.u32 %v3014_v31, %v3013_v22  ;;  %v3019_v51 = vshrl.u32 %v2752_v25, 16 }
 0x1a7   : > { %v13190_v44 = vadd.f32 %v2529_v47, %v2425_v27  ;;  %v3790_v47 = vshrl.u32 %v3728_v0, 16  ;;  %v3793_v3 = vshll.u32 %v3728_v0, 16  ;;  %v3022_v27 = vshll.u32 %v2752_v25, 16 }
 0x1a8   : > { %v3011_v54 = vor.u32 %v3010_v53, %v3007_v17  ;;  %v3021_v58 = vrot.slane %v3019_v51, 5  ;;  %v3017_v23 = vrot.slane %v3015_v37, 4  ;;  %v3788_v25 = vsel %vm12043_vm15, %v3779_v40, %v3787_v10  ;;  %v3729_v17 = vld [vmem:[#allocation2 + $0x20] sm:$0x7] }
 0x1a9   : > { %v3024_v21 = vrot.slane %v3022_v27, 6  ;;  %v1647_v0 = vmul.f32 %v12985_v19, %v1606_v34  ;;  %v3792_v53 = vrot.slane %v3790_v47, 6  ;;  %v3795_v22 = vrot.slane %v3793_v3, 7 }
 0x1aa   : > { %v2654_v42 = vpop.f32.mrf.mxu0  ;;  %v3012_v28 = vrot.slane %v3011_v54, 4  ;;  %v3804_v10 = vshrl.u32 %v3729_v17, 16  ;;  %v3807_v51 = vshll.u32 %v3729_v17, 16  ;;  %v7542_v34 = vunpack.c.l.b16 %v1744_v35  ;;  %v2753_v17 = vld [vmem:[#allocation2 + $0x90] sm:$0xe] }
 0x1ab   : > { %v13195_v45 = vadd.f32 %v2654_v42, %v12931_v24  ;;  %11039 = vmatmul.msk.bf16.gmra.mxu2 %vm1290_vm3, %v13093_v59  ;;  %v3025_v31 = vor.u32 %v3024_v21, %v3021_v58  ;;  %v7543_v58 = vunpack.c.l.b16 %v1745_v33  ;;  %v4135_v47 = vunpack.c.l.b16 %v3788_v25  ;;  %v2754_v33 = vld [vmem:[#allocation2 + $0x98] sm:$0x3]  ;;  %v17289_v24 = vld [vmem:[#allocation60_spill] sm:$0xff] }
 0x1ac   : > { %v3016_v42 = vsel %vm12846_vm5, %v3012_v28, %v3015_v37  ;;  %v3796_v3 = vor.u32 %v3795_v22, %v3792_v53 }
 0x1ad   : > { %11017 = vmatmul.msk.bf16.gmra.mxu0 %vm1290_vm3, %v2600_v43  ;;  %v2534_v5 = vpop.f32.mrf.mxu3  ;;  %v1646_v43 = vmul.f32 %v12985_v19, %v13148_v36  ;;  %v3799_v36 = vrot.slane %v12052_v7, 7  ;;  %v3162_v54 = vunpack.c.l.b16 %v3016_v42  ;;  %v3026_v28 = vsel %vm12846_vm5, %v3017_v23, %v3025_v31 }
 0x1ae   : > { %v2428_v9 = vpop.f32.mrf.mxu2  ;;  %v3163_v37 = vunpack.c.l.b16 %v3026_v28  ;;  %v1683_v7 = vadd.f32 %v13003_v48, %v1647_v0  ;;  %v1611_v27 = vpop.f32.mrf.mxu1  ;;  %v3806_v42 = vrot.slane %v3804_v10, 6  ;;  %v3031_v23 = vshll.u32 %v2753_v17, 16 }
 0x1af   : > { %v13212_v20 = vadd.f32 %v2532_v1, %v2428_v9  ;;  %11025 = vmatmul.msk.bf16.gmra.mxu1 %vm1290_vm3, %v13093_v59  ;;  %v1682_v1 = vadd.f32 %v13003_v48, %v1646_v43  ;;  %v3809_v59 = vrot.slane %v3807_v51, 7  ;;  %v13227_v31 = vpack.c.b16 %v7543_v58, %v7542_v34  ;;  %v17196_v51 = vld [vmem:[#allocation22_spill] sm:$0xff] }
 0x1b0   : > { %v13225_v21 = vpack.c.b16 %v3163_v37, %v3162_v54  ;;  %v4166_v43 = vpack.c.b16 %v4135_v47, %v4134_v8  ;;  %v1715_v11 = vmax.f32 %v1683_v7, 0.0  ;;  %v3797_v25 = vrot.slane %v3796_v3, 4  ;;  %v17195_v54 = vld [vmem:[#allocation23_spill] sm:$0xff]  ;;  %v3730_v47 = vld [vmem:[#allocation2 + $0x24] sm:$0xc] }
 0x1b1   : > { %v1714_v35 = vmax.f32 %v1682_v1, 0.0  ;;  %17194 = vst [vmem:[#allocation21_spill] sm:$0xff] %v13227_v31  ;;  %v3036_v10 = vrot.slane %v17195_v54, 5  ;;  %v3037_v28 = vrot.slane %v17196_v51, 6  ;;  %v3810_v58 = vor.u32 %v3809_v59, %v3806_v42 }
 0x1b2   : > { %v2656_v61 = vpop.f32.mrf.mxu0  ;;  %v3042_v37 = vshrl.u32 %v2754_v33, 16  ;;  %v3813_v59 = vshrl.u32 %v3730_v47, 16 }
 0x1b3   : > { %v13217_v40 = vadd.f32 %v2656_v61, %v12959_v6  ;;  %v3800_v6 = vor.u32 %v3799_v36, %v3798_v14  ;;  %v3028_v61 = vshrl.u32 %v2753_v17, 16  ;;  %v3033_v36 = vrot.slane %v3031_v23, 6 }
 0x1b4   : > { %v1746_v8 = vpack.c.bf16 %v1714_v35, %v1714_v35  ;;  %v3038_v3 = vor.u32 %v3037_v28, %v3036_v10  ;;  %v3045_v17 = vshll.u32 %v2754_v33, 16  ;;  %v1747_v23 = vpack.c.bf16 %v1715_v11, %v1715_v11  ;;  %v3731_v28 = vld [vmem:[#allocation2 + $0x2c] sm:$0x7] }
 0x1b5   : > { %v2537_v9 = vpop.f32.mrf.mxu3  ;;  %v3030_v53 = vrot.slane %v3028_v61, 5  ;;  %v3802_v34 = vrot.slane %v3800_v6, 4  ;;  %v3044_v61 = vrot.slane %v3042_v37, 5 }
 0x1b6   : > { %11056 = vmatmul.msk.bf16.gmra.mxu3 %vm1290_vm3, %v13225_v21  ;;  %v2430_v0 = vpop.f32.mrf.mxu2  ;;  %v3040_v31 = vrot.slane %v3038_v3, 4  ;;  %v3047_v51 = vrot.slane %v3045_v17, 6  ;;  %v7544_v33 = vunpack.c.l.b16 %v1746_v8  ;;  %v7545_v37 = vunpack.c.l.b16 %v1747_v23 }
 0x1b7   : > { %v13231_v14 = vadd.f32 %v2534_v5, %v2430_v0  ;;  %v3034_v7 = vor.u32 %v3033_v36, %v3030_v53  ;;  %v3801_v5 = vsel %vm12043_vm15, %v3797_v25, %v3800_v6  ;;  %v3811_v42 = vsel %vm12043_vm15, %v3802_v34, %v3810_v58  ;;  %v17197_v36 = vld [vmem:[#allocation42_spill] sm:$0xff] }
 0x1b8   : > { %v3816_v53 = vshll.u32 %v3730_v47, 16  ;;  %v3048_v11 = vor.u32 %v3047_v51, %v3044_v61  ;;  %v4136_v25 = vunpack.c.l.b16 %v3801_v5  ;;  %v3821_v5 = vrot.slane %v17168_v32, 6 }
 0x1b9   : > { %v3035_v0 = vrot.slane %v3034_v7, 4  ;;  %v4137_v7 = vunpack.c.l.b16 %v3811_v42  ;;  %v3822_v61 = vrot.slane %v12087_v55, 7  ;;  %v13268_v42 = vpack.c.b16 %v7545_v37, %v7544_v33  ;;  %v17200_v37 = vld [vmem:[#allocation25_spill] sm:$0xff] }
 0x1ba   : > { %v2659_v22 = vpop.f32.mrf.mxu0  ;;  %v3049_v8 = vsel %vm12846_vm5, %v3040_v31, %v3048_v11  ;;  %v3830_v31 = vshll.u32 %v3731_v28, 16 }
 0x1bb   : > { %v13236_v1 = vadd.f32 %v2659_v22, %v13006_v29  ;;  %v1648_v29 = vmul.f32 %v12985_v19, %v13197_v39  ;;  %11040 = vmatmul.msk.bf16.gmra.mxu2 %vm1290_vm3, %v13140_v38  ;;  %v3039_v6 = vsel %vm12846_vm5, %v3035_v0, %v3038_v3  ;;  %v1649_v22 = vmul.f32 %v12985_v19, %v1611_v27 }
 0x1bc   : > { %v3164_v34 = vunpack.c.l.b16 %v3039_v6  ;;  %v3815_v19 = vrot.slane %v3813_v59, 6  ;;  %v3165_v27 = vunpack.c.l.b16 %v3049_v8  ;;  %v3818_v3 = vrot.slane %v3816_v53, 7  ;;  %17198 = vst [vmem:[#allocation6_spill] sm:$0xff] %v13268_v42 }
 0x1bd   : > { %11066 = vmatmul.msk.bf16.vlgmr.msra.gmra.mxu0 %vm1290_vm3, %v4166_v43  ;;  %v2539_v35 = vpop.f32.mrf.mxu3  ;;  %v3250_v43 = vpop.f32.mrf.mxu1  ;;  %v1684_v51 = vadd.f32 %v13003_v48, %v1648_v29  ;;  %v1685_v23 = vadd.f32 %v13003_v48, %v1649_v22  ;;  %v4167_v29 = vpack.c.b16 %v4137_v7, %v4136_v25  ;;  %v3823_v53 = vor.u32 %v3822_v61, %v3821_v5 }
 0x1be   : > { %v13251_v39 = vadd.f32 %v3250_v43, %v17197_v36  ;;  %v2433_v10 = vpop.f32.mrf.mxu2  ;;  %v13266_v0 = vpack.c.b16 %v3165_v27, %v3164_v34  ;;  %v3819_v11 = vor.u32 %v3818_v3, %v3815_v19  ;;  %v3059_v7 = vrot.slane %v17200_v37, 5 }
 0x1bf   : > { %v13253_v17 = vadd.f32 %v2537_v9, %v2433_v10  ;;  %11026 = vmatmul.msk.bf16.gmra.mxu1 %vm1290_vm3, %v13140_v38  ;;  %v3827_v9 = vshrl.u32 %v3731_v28, 16  ;;  %v1716_v38 = vmax.f32 %v1684_v51, 0.0  ;;  %v2756_v10 = vld [vmem:[#allocation2 + $0xa4] sm:$0x3]  ;;  %v1717_v55 = vmax.f32 %v1685_v23, 0.0 }
 0x1c0   : > { %v3832_v28 = vrot.slane %v3830_v31, 7  ;;  %v17201_v51 = vld [vmem:[#allocation24_spill] sm:$0xff]  ;;  %v3065_v5 = vshrl.u32 %v2756_v10, 16 }
 0x1c1   : > { %v3829_v36 = vrot.slane %v3827_v9, 6  ;;  %v3060_v19 = vrot.slane %v17201_v51, 6  ;;  %v1748_v61 = vpack.c.bf16 %v1716_v38, %v1716_v38  ;;  %v3732_v9 = vld [vmem:[#allocation2 + $0x30] sm:$0xc]  ;;  %v2758_v51 = vld [vmem:[#allocation2 + $0xb0] sm:$0x3] }
 0x1c2   : > { %v2661_v58 = vpop.f32.mrf.mxu0 }
 0x1c3   : > { %v13258_v47 = vadd.f32 %v2661_v58, %v13025_v46  ;;  %v2755_v46 = vld [vmem:[#allocation2 + $0x9c] sm:$0xe]  ;;  %v17199_v58 = vld [vmem:[#allocation45_spill] sm:$0xff]  ;;  %v3061_v23 = vor.u32 %v3060_v19, %v3059_v7 }
 0x1c4   : > { %v3051_v43 = vshrl.u32 %v2755_v46, 16  ;;  %v3054_v6 = vshll.u32 %v2755_v46, 16  ;;  %v3068_v46 = vshll.u32 %v2756_v10, 16  ;;  %v17202_v7 = vld [vmem:[#allocation47_spill] sm:$0xff] }
 0x1c5   : > { %v2542_v59 = vpop.f32.mrf.mxu3  ;;  %v3252_v32 = vpop.f32.mrf.mxu1 }
 0x1c6   : > { %v13271_v8 = vadd.f32 %v3252_v32, %v17199_v58  ;;  %11057 = vmatmul.msk.bf16.gmra.mxu3 %vm1290_vm3, %v13266_v0  ;;  %v2435_v48 = vpop.f32.mrf.mxu2  ;;  %v3053_v33 = vrot.slane %v3051_v43, 5  ;;  %v3056_v22 = vrot.slane %v3054_v6, 6  ;;  %v3820_v43 = vrot.slane %v3819_v11, 4 }
 0x1c7   : > { %v13275_v34 = vadd.f32 %v2539_v35, %v2435_v48  ;;  %v3825_v6 = vrot.slane %v3823_v53, 4  ;;  %v3067_v35 = vrot.slane %v3065_v5, 5  ;;  %v1749_v32 = vpack.c.bf16 %v1717_v55, %v1717_v55 }
 0x1c8   : > { %v3057_v3 = vor.u32 %v3056_v22, %v3053_v33  ;;  %v3833_v58 = vor.u32 %v3832_v28, %v3829_v36  ;;  %v3063_v48 = vrot.slane %v3061_v23, 4  ;;  %v3070_v42 = vrot.slane %v3068_v46, 6  ;;  %v3733_v28 = vld [vmem:[#allocation2 + $0x38] sm:$0x7] }
 0x1c9   : > { %v3839_v33 = vshll.u32 %v3732_v9, 16  ;;  %v3824_v11 = vsel %vm12043_vm15, %v3820_v43, %v3823_v53  ;;  %v7547_v5 = vunpack.c.l.b16 %v1749_v32  ;;  %v17205_v32 = vld [vmem:[#allocation8_spill] sm:$0xff] }
 0x1ca   : > { %v2664_v25 = vpop.f32.mrf.mxu0  ;;  %v3058_v31 = vrot.slane %v3057_v3, 4 }
 0x1cb   : > { %v13280_v27 = vadd.f32 %v2664_v25, %v13042_v63  ;;  %11041 = vmatmul.msk.bf16.gmra.mxu2 %vm1290_vm3, %v13181_v12  ;;  %v3836_v63 = vshrl.u32 %v3732_v9, 16  ;;  %v3071_v25 = vor.u32 %v3070_v42, %v3067_v35  ;;  %v3834_v9 = vsel %vm12043_vm15, %v3825_v6, %v3833_v58 }
 0x1cc   : > { %v3062_v38 = vsel %vm12846_vm5, %v3058_v31, %v3061_v23  ;;  %v3841_v23 = vrot.slane %v3839_v33, 7  ;;  %v17204_v31 = vld [vmem:[#allocation9_spill] sm:$0xff]  ;;  %v3853_v6 = vshll.u32 %v3733_v28, 16  ;;  %v4139_v58 = vunpack.c.l.b16 %v3834_v9 }
 0x1cd   : > { %11067 = vmatmul.msk.bf16.gmra.mxu0 %vm1290_vm3, %v4167_v29  ;;  %v3255_v22 = vpop.f32.mrf.mxu1  ;;  %v2544_v10 = vpop.f32.mrf.mxu3  ;;  %v7546_v29 = vunpack.c.l.b16 %v1748_v61  ;;  %v3166_v19 = vunpack.c.l.b16 %v3062_v38  ;;  %v3072_v42 = vsel %vm12846_vm5, %v3063_v48, %v3071_v25  ;;  %v3838_v53 = vrot.slane %v3836_v63, 6  ;;  %v2757_v48 = vld [vmem:[#allocation2 + $0xa8] sm:$0xe] }
 0x1ce   : > { %v13290_v55 = vadd.f32 %v3255_v22, %v17202_v7  ;;  %v2438_v36 = vpop.f32.mrf.mxu2  ;;  %v3167_v43 = vunpack.c.l.b16 %v3072_v42  ;;  %v3844_v35 = vrot.slane %v17204_v31, 6  ;;  %v3845_v38 = vrot.slane %v17205_v32, 7  ;;  %v17207_v32 = vld [vmem:[#allocation7_spill] sm:$0xff] }
 0x1cf   : > { %v13294_v46 = vadd.f32 %v2542_v59, %v2438_v36  ;;  %11027 = vmatmul.msk.bf16.gmra.mxu1 %vm1290_vm3, %v13181_v12  ;;  %v3850_v22 = vshrl.u32 %v3733_v28, 16  ;;  %v4138_v59 = vunpack.c.l.b16 %v3824_v11  ;;  %v13307_v25 = vpack.c.b16 %v7547_v5, %v7546_v29 }
 0x1d0   : > { %v13305_v7 = vpack.c.b16 %v3167_v43, %v3166_v19  ;;  %v3074_v63 = vshrl.u32 %v2757_v48, 16  ;;  %v3077_v33 = vshll.u32 %v2757_v48, 16  ;;  %v3846_v36 = vor.u32 %v3845_v38, %v3844_v35  ;;  %v17209_v35 = vld [vmem:[#allocation28_spill] sm:$0xff] }
 0x1d1   : > { %17206 = vst [vmem:[#allocation42_spill] sm:$0xff] %v13307_v25  ;;  %v3855_v12 = vrot.slane %v3853_v6, 7  ;;  %v13309_v31 = vpack.c.b16 %v4139_v58, %v4138_v59  ;;  %v3083_v38 = vrot.slane %v17209_v35, 6  ;;  %v3088_v58 = vshrl.u32 %v2758_v51, 16  ;;  %v17213_v35 = vld [vmem:[#allocation10_spill] sm:$0xff] }
 0x1d2   : > { %v2666_v3 = vpop.f32.mrf.mxu0  ;;  %v3076_v28 = vrot.slane %v3074_v63, 5  ;;  %v3079_v29 = vrot.slane %v3077_v33, 6  ;;  %v3848_v48 = vrot.slane %v3846_v36, 4  ;;  %v3091_v63 = vshll.u32 %v2758_v51, 16 }
 0x1d3   : > { %v13299_v61 = vadd.f32 %v2666_v3, %v13058_v16  ;;  %v3842_v16 = vor.u32 %v3841_v23, %v3838_v53  ;;  %v3852_v3 = vrot.slane %v3850_v22, 6  ;;  %v3734_v53 = vld [vmem:[#allocation2 + $0x3c] sm:$0xc]  ;;  %v17208_v23 = vld [vmem:[#allocation29_spill] sm:$0xff]  ;;  %v3090_v25 = vrot.slane %v3088_v58, 5 }
 0x1d4   : > { %v3082_v43 = vrot.slane %v17208_v23, 5  ;;  %v3080_v59 = vor.u32 %v3079_v29, %v3076_v28  ;;  %v3862_v33 = vshll.u32 %v3734_v53, 16  ;;  %v17211_v29 = vld [vmem:[#allocation49_spill] sm:$0xff] }
 0x1d5   : > { %17203 = vst [vmem:[#allocation23_spill] sm:$0xff] %v13299_v61  ;;  %v3257_v42 = vpop.f32.mrf.mxu1  ;;  %v3614_v9 = vpop.f32.mrf.mxu3  ;;  %v3843_v6 = vrot.slane %v3842_v16, 4  ;;  %v3093_v61 = vrot.slane %v3091_v63, 6 }
 0x1d6   : > { %v13312_v37 = vadd.f32 %v3257_v42, %v17207_v32  ;;  %11058 = vmatmul.msk.bf16.gmra.mxu3 %vm1290_vm3, %v13305_v7  ;;  %v2440_v11 = vpop.f32.mrf.mxu2  ;;  %v3856_v42 = vor.u32 %v3855_v12, %v3852_v3  ;;  %v3084_v32 = vor.u32 %v3083_v38, %v3082_v43  ;;  %v3735_v12 = vld [vmem:[#allocation2 + $0x44] sm:$0x7]  ;;  %v3864_v38 = vrot.slane %v3862_v33, 7 }
 0x1d7   : > { %v13316_v5 = vadd.f32 %v2544_v10, %v2440_v11  ;;  %v3859_v10 = vshrl.u32 %v3734_v53, 16  ;;  %v3081_v11 = vrot.slane %v3080_v59, 4  ;;  %v3847_v16 = vsel %vm12043_vm15, %v3843_v6, %v3846_v36 }
 0x1d8   : > { %v3086_v23 = vrot.slane %v3084_v32, 4  ;;  %v3857_v51 = vsel %vm12043_vm15, %v3848_v48, %v3856_v42  ;;  %v3094_v28 = vor.u32 %v3093_v61, %v3090_v25  ;;  %v3868_v36 = vrot.slane %v17213_v35, 7 }
 0x1d9   : > { %v3861_v43 = vrot.slane %v3859_v10, 6  ;;  %v3873_v25 = vshrl.u32 %v3735_v12, 16  ;;  %v3876_v42 = vshll.u32 %v3735_v12, 16  ;;  %v4140_v33 = vunpack.c.l.b16 %v3847_v16 }
 0x1da   : > { %v2669_v19 = vpop.f32.mrf.mxu0  ;;  %v3095_v48 = vsel %vm12846_vm5, %v3086_v23, %v3094_v28 }
 0x1db   : > { %v13321_v22 = vadd.f32 %v2669_v19, %v13081_v49  ;;  %11042 = vmatmul.msk.bf16.gmra.mxu2 %vm1290_vm3, %v13225_v21  ;;  %v3085_v49 = vsel %vm12846_vm5, %v3081_v11, %v3084_v32  ;;  %v17212_v32 = vld [vmem:[#allocation11_spill] sm:$0xff]  ;;  %v3169_v10 = vunpack.c.l.b16 %v3095_v48  ;;  %v3878_v23 = vrot.slane %v3876_v42, 7 }
 0x1dc   : > { %v3168_v59 = vunpack.c.l.b16 %v3085_v49  ;;  %v3867_v11 = vrot.slane %v17212_v32, 6  ;;  %v4141_v49 = vunpack.c.l.b16 %v3857_v51  ;;  %v3875_v32 = vrot.slane %v3873_v25, 6 }
 0x1dd   : > { %17210 = vst [vmem:[#allocation45_spill] sm:$0xff] %v13321_v22  ;;  %11068 = vmatmul.msk.bf16.gmra.mxu0 %vm1290_vm3, %v13309_v31  ;;  %v3260_v3 = vpop.f32.mrf.mxu1  ;;  %v3616_v6 = vpop.f32.mrf.mxu3 }
 0x1de   : > { %v13334_v19 = vadd.f32 %v3260_v3, %v17211_v29  ;;  %v3432_v53 = vpop.f32.mrf.mxu2  ;;  %v3865_v3 = vor.u32 %v3864_v38, %v3861_v43  ;;  %v13348_v29 = vpack.c.b16 %v3169_v10, %v3168_v59  ;;  %v3869_v35 = vor.u32 %v3868_v36, %v3867_v11  ;;  %v17216_v36 = vld [vmem:[#allocation32_spill] sm:$0xff] }
 0x1df   : > { %v3512_v63 = vadd.f32 %v3432_v53, %v13251_v39  ;;  %11028 = vmatmul.msk.bf16.gmra.mxu1 %vm1290_vm3, %v13225_v21  ;;  %v2759_v53 = vld [vmem:[#allocation2 + $0xb4] sm:$0xe]  ;;  %v3106_v48 = vrot.slane %v17216_v36, 6  ;;  %v3879_v42 = vor.u32 %v3878_v23, %v3875_v32 }
 0x1e0   : > { %v3097_v28 = vshrl.u32 %v2759_v53, 16  ;;  %v3866_v22 = vrot.slane %v3865_v3, 4  ;;  %v3871_v38 = vrot.slane %v3869_v35, 4 }
 0x1e1   : > { %v13346_v39 = vadd.f32 %v3614_v9, %v3512_v63  ;;  %v17215_v63 = vld [vmem:[#allocation33_spill] sm:$0xff] }
 0x1e2   : > { %v2671_v58 = vpop.f32.mrf.mxu0  ;;  %v3099_v16 = vrot.slane %v3097_v28, 5  ;;  %v3105_v11 = vrot.slane %v17215_v63, 5  ;;  %v3880_v32 = vsel %vm12043_vm15, %v3871_v38, %v3879_v42 }
 0x1e3   : > { %v13342_v61 = vadd.f32 %v2671_v58, %v13099_v18  ;;  %v3100_v18 = vshll.u32 %v2759_v53, 16  ;;  %v13350_v58 = vpack.c.b16 %v4141_v49, %v4140_v33  ;;  %v3736_v49 = vld [vmem:[#allocation2 + $0x48] sm:$0xc] }
 0x1e4   : > { %v3107_v3 = vor.u32 %v3106_v48, %v3105_v11  ;;  %v3882_v23 = vshrl.u32 %v3736_v49, 16 }
 0x1e5   : > { %17214 = vst [vmem:[#allocation47_spill] sm:$0xff] %v13342_v61  ;;  %v3262_v12 = vpop.f32.mrf.mxu1  ;;  %v2760_v61 = vld [vmem:[#allocation2 + $0xbc] sm:$0x3]  ;;  %v3102_v51 = vrot.slane %v3100_v18, 6 }
 0x1e6   : > { %v13353_v21 = vadd.f32 %v3262_v12, %v13009_v50  ;;  %11059 = vmatmul.msk.bf16.gmra.mxu3 %vm1290_vm3, %v13348_v29  ;;  %v3434_v9 = vpop.f32.mrf.mxu2  ;;  %v3111_v10 = vshrl.u32 %v2760_v61, 16  ;;  %v3114_v53 = vshll.u32 %v2760_v61, 16  ;;  %v3109_v12 = vrot.slane %v3107_v3, 4 }
 0x1e7   : > { %v3513_v59 = vadd.f32 %v3434_v9, %v13271_v8  ;;  %v3103_v50 = vor.u32 %v3102_v51, %v3099_v16  ;;  %v3885_v16 = vshll.u32 %v3736_v49, 16 }
 0x1e8   : > { %v3113_v18 = vrot.slane %v3111_v10, 5  ;;  %v3116_v9 = vrot.slane %v3114_v53, 6  ;;  %v17218_v53 = vld [vmem:[#allocation13_spill] sm:$0xff] }
 0x1e9   : > { %v3619_v33 = vpop.f32.mrf.mxu3  ;;  %v13363_v28 = vadd.f32 %v3616_v6, %v3513_v59  ;;  %v3104_v8 = vrot.slane %v3103_v50, 4  ;;  %v3737_v59 = vld [vmem:[#allocation2 + $0x50] sm:$0x7]  ;;  %v3887_v49 = vrot.slane %v3885_v16, 7 }
 0x1ea   : > { %v2674_v43 = vpop.f32.mrf.mxu0  ;;  %v3117_v51 = vor.u32 %v3116_v9, %v3113_v18  ;;  %v17219_v18 = vld [vmem:[#allocation12_spill] sm:$0xff] }
 0x1eb   : > { %v13361_v25 = vadd.f32 %v2674_v43, %v13126_v2  ;;  %v3870_v2 = vsel %vm12043_vm15, %v3866_v22, %v3869_v35  ;;  %11043 = vmatmul.msk.bf16.gmra.mxu2 %vm1290_vm3, %v13266_v0  ;;  %v3108_v6 = vsel %vm12846_vm5, %v3104_v8, %v3107_v3  ;;  %v4143_v35 = vunpack.c.l.b16 %v3880_v32 }
 0x1ec   : > { %v3170_v11 = vunpack.c.l.b16 %v3108_v6  ;;  %v4142_v22 = vunpack.c.l.b16 %v3870_v2  ;;  %v3118_v38 = vsel %vm12846_vm5, %v3109_v12, %v3117_v51  ;;  %v3884_v3 = vrot.slane %v3882_v23, 6 }
 0x1ed   : > { %11069 = vmatmul.msk.bf16.gmra.mxu0 %vm1290_vm3, %v13350_v58  ;;  %v3265_v61 = vpop.f32.mrf.mxu1  ;;  %v3890_v8 = vrot.slane %v17218_v53, 6  ;;  %v3891_v9 = vrot.slane %v17219_v18, 7  ;;  %v3896_v2 = vshrl.u32 %v3737_v59, 16  ;;  %v3899_v6 = vshll.u32 %v3737_v59, 16 }
 0x1ee   : > { %v13376_v43 = vadd.f32 %v3265_v61, %v13032_v15  ;;  %v3437_v50 = vpop.f32.mrf.mxu2  ;;  %v3171_v15 = vunpack.c.l.b16 %v3118_v38  ;;  %v13392_v23 = vpack.c.b16 %v4143_v35, %v4142_v22  ;;  %v2762_v38 = vld [vmem:[#allocation2 + $0xc8] sm:$0x3]  ;;  %v17221_v22 = vld [vmem:[#allocation35_spill] sm:$0xff] }
 0x1ef   : > { %v3514_v10 = vadd.f32 %v3437_v50, %v13290_v55  ;;  %11029 = vmatmul.msk.bf16.gmra.mxu1 %vm1290_vm3, %v13266_v0  ;;  %v3892_v0 = vor.u32 %v3891_v9, %v3890_v8  ;;  %v3898_v50 = vrot.slane %v3896_v2, 6  ;;  %v3901_v53 = vrot.slane %v3899_v6, 7  ;;  %v3738_v9 = vld [vmem:[#allocation2 + $0x54] sm:$0xc] }
 0x1f0   : > { %v13388_v61 = vpack.c.b16 %v3171_v15, %v3170_v11  ;;  %v17220_v15 = vld [vmem:[#allocation36_spill] sm:$0xff]  ;;  %v3129_v35 = vrot.slane %v17221_v22, 6 }
 0x1f1   : > { %v3621_v32 = vpop.f32.mrf.mxu3  ;;  %v13390_v12 = vadd.f32 %v3619_v33, %v3514_v10 }
 0x1f2   : > { %v2676_v48 = vpop.f32.mrf.mxu0 }
 0x1f3   : > { %v13381_v42 = vadd.f32 %v2676_v48, %v13146_v41  ;;  %v2761_v41 = vld [vmem:[#allocation2 + $0xc0] sm:$0xe]  ;;  %v3888_v48 = vor.u32 %v3887_v49, %v3884_v3  ;;  %v3134_v3 = vshrl.u32 %v2762_v38, 16 }
 0x1f4   : > { %v3120_v51 = vshrl.u32 %v2761_v41, 16  ;;  %v3123_v55 = vshll.u32 %v2761_v41, 16  ;;  %v3128_v41 = vrot.slane %v17220_v15, 5  ;;  %v3902_v15 = vor.u32 %v3901_v53, %v3898_v50  ;;  %v3739_v53 = vld [vmem:[#allocation2 + $0x5c] sm:$0x7] }
 0x1f5   : > { %17217 = vst [vmem:[#allocation9_spill] sm:$0xff] %v13381_v42  ;;  %v3267_v16 = vpop.f32.mrf.mxu1  ;;  %v3889_v2 = vrot.slane %v3888_v48, 4  ;;  %v3136_v36 = vrot.slane %v3134_v3, 5  ;;  %v3905_v42 = vshrl.u32 %v3738_v9, 16 }
 0x1f6   : > { %v13395_v18 = vadd.f32 %v3267_v16, %v13047_v30  ;;  %11060 = vmatmul.msk.bf16.gmra.mxu3 %vm1290_vm3, %v13388_v61  ;;  %v3122_v59 = vrot.slane %v3120_v51, 5  ;;  %v3125_v33 = vrot.slane %v3123_v55, 6  ;;  %v3439_v10 = vpop.f32.mrf.mxu2  ;;  %v3130_v16 = vor.u32 %v3129_v35, %v3128_v41 }
 0x1f7   : > { %v3515_v8 = vadd.f32 %v3439_v10, %v13312_v37  ;;  %v3137_v51 = vshll.u32 %v2762_v38, 16  ;;  %v3894_v55 = vrot.slane %v3892_v0, 4  ;;  %v3907_v35 = vrot.slane %v3905_v42, 6 }
 0x1f8   : > { %v3126_v30 = vor.u32 %v3125_v33, %v3122_v59  ;;  %v3893_v59 = vsel %vm12043_vm15, %v3889_v2, %v3892_v0 }
 0x1f9   : > { %v3624_v6 = vpop.f32.mrf.mxu3  ;;  %v13407_v22 = vadd.f32 %v3621_v32, %v3515_v8  ;;  %v3903_v50 = vsel %vm12043_vm15, %v3894_v55, %v3902_v15  ;;  %v3913_v8 = vrot.slane %v12458_v52, 6  ;;  %v3914_v15 = vrot.slane %v12456_v62, 7 }
 0x1fa   : > { %v2679_v11 = vpop.f32.mrf.mxu0  ;;  %v3127_v63 = vrot.slane %v3126_v30, 4  ;;  %v4144_v30 = vunpack.c.l.b16 %v3893_v59  ;;  %v4145_v2 = vunpack.c.l.b16 %v3903_v50 }
 0x1fb   : > { %v13402_v49 = vadd.f32 %v2679_v11, %v13168_v13  ;;  %v3908_v13 = vshll.u32 %v3738_v9, 16  ;;  %v3132_v11 = vrot.slane %v3130_v16, 4  ;;  %11044 = vmatmul.msk.bf16.gmra.mxu2 %vm1290_vm3, %v13305_v7  ;;  %v3922_v9 = vshll.u32 %v3739_v53, 16 }
 0x1fc   : > { %v3131_v37 = vsel %vm12846_vm5, %v3127_v63, %v3130_v16  ;;  %v3915_v55 = vor.u32 %v3914_v15, %v3913_v8  ;;  %v17225_v8 = vld [vmem:[#allocation38_spill] sm:$0xff] }
 0x1fd   : > { %17222 = vst [vmem:[#allocation8_spill] sm:$0xff] %v13402_v49  ;;  %11070 = vmatmul.msk.bf16.gmra.mxu0 %vm1290_vm3, %v13392_v23  ;;  %v3139_v49 = vrot.slane %v3137_v51, 6  ;;  %v3270_v48 = vpop.f32.mrf.mxu1  ;;  %v3172_v33 = vunpack.c.l.b16 %v3131_v37  ;;  %v3910_v3 = vrot.slane %v3908_v13, 7  ;;  %v3924_v62 = vrot.slane %v3922_v9, 7 }
 0x1fe   : > { %v13418_v32 = vadd.f32 %v3270_v48, %v13065_v60  ;;  %v3442_v41 = vpop.f32.mrf.mxu2  ;;  %v2764_v48 = vld [vmem:[#allocation2 + $0xd4] sm:$0x3] }
 0x1ff   : > { %v3140_v38 = vor.u32 %v3139_v49, %v3136_v36  ;;  %v3516_v0 = vadd.f32 %v3442_v41, %v13334_v19  ;;  %11030 = vmatmul.msk.bf16.gmra.mxu1 %vm1290_vm3, %v13305_v7  ;;  %v3919_v49 = vshrl.u32 %v3739_v53, 16  ;;  %v3911_v51 = vor.u32 %v3910_v3, %v3907_v35  ;;  %v3740_v41 = vld [vmem:[#allocation2 + $0x60] sm:$0xc]  ;;  %v17224_v35 = vld [vmem:[#allocation39_spill] sm:$0xff] }
 0x200   : > { %v13434_v7 = vpack.c.b16 %v4145_v2, %v4144_v30  ;;  %v3371_v3 = vrot.slane %v17224_v35, 5 }
 0x201   : > { %v3141_v63 = vsel %vm12846_vm5, %v3132_v11, %v3140_v38  ;;  %v3626_v42 = vpop.f32.mrf.mxu3  ;;  %v13432_v16 = vadd.f32 %v3624_v6, %v3516_v0  ;;  %v3921_v11 = vrot.slane %v3919_v49, 6  ;;  %v17223_v38 = vld [vmem:[#allocation54_spill] sm:$0xff]  ;;  %v3377_v0 = vshrl.u32 %v2764_v48, 16 }
 0x202   : > { %v2681_v10 = vpop.f32.mrf.mxu0  ;;  %v3173_v60 = vunpack.c.l.b16 %v3141_v63  ;;  %v3372_v63 = vrot.slane %v17225_v8, 6 }
 0x203   : > { %v13424_v36 = vadd.f32 %v2681_v10, %v13190_v44  ;;  %v2763_v44 = vld [vmem:[#allocation2 + $0xcc] sm:$0xe]  ;;  %v3925_v30 = vor.u32 %v3924_v62, %v3921_v11 }
 0x204   : > { %v13430_v52 = vpack.c.b16 %v3173_v60, %v3172_v33  ;;  %v3363_v13 = vshrl.u32 %v2763_v44, 16  ;;  %v3366_v19 = vshll.u32 %v2763_v44, 16  ;;  %v3912_v33 = vrot.slane %v3911_v51, 4 }
 0x205   : > { %v3272_v37 = vpop.f32.mrf.mxu1  ;;  %v3917_v60 = vrot.slane %v3915_v55, 4  ;;  %v3373_v44 = vor.u32 %v3372_v63, %v3371_v3  ;;  %v3928_v51 = vshrl.u32 %v3740_v41, 16 }
 0x206   : > { %v13437_v53 = vadd.f32 %v3272_v37, %v17223_v38  ;;  %11061 = vmatmul.msk.bf16.gmra.mxu3 %vm1290_vm3, %v13430_v52  ;;  %v3365_v59 = vrot.slane %v3363_v13, 5  ;;  %v3368_v6 = vrot.slane %v3366_v19, 6  ;;  %v3444_v10 = vpop.f32.mrf.mxu2  ;;  %v3379_v13 = vrot.slane %v3377_v0, 5 }
 0x207   : > { %v3517_v49 = vadd.f32 %v3444_v10, %v13353_v21  ;;  %v3380_v19 = vshll.u32 %v2764_v48, 16  ;;  %v3931_v37 = vshll.u32 %v3740_v41, 16  ;;  %v3375_v35 = vrot.slane %v3373_v44, 4  ;;  %v3741_v21 = vld [vmem:[#allocation2 + $0x68] sm:$0x7] }
 0x208   : > { %v3369_v9 = vor.u32 %v3368_v6, %v3365_v59  ;;  %v3916_v62 = vsel %vm12043_vm15, %v3912_v33, %v3915_v55  ;;  %v3926_v48 = vsel %vm12043_vm15, %v3917_v60, %v3925_v30  ;;  %v3930_v10 = vrot.slane %v3928_v51, 6 }
 0x209   : > { %v3629_v2 = vpop.f32.mrf.mxu3  ;;  %v13449_v8 = vadd.f32 %v3626_v42, %v3517_v49  ;;  %v3933_v41 = vrot.slane %v3931_v37, 7  ;;  %v17228_v49 = vld [vmem:[#allocation15_spill] sm:$0xff]  ;;  %v3945_v30 = vshll.u32 %v3741_v21, 16  ;;  %v4146_v51 = vunpack.c.l.b16 %v3916_v62 }
 0x20a   : > { %v2684_v50 = vpop.f32.mrf.mxu0  ;;  %v3370_v38 = vrot.slane %v3369_v9, 4  ;;  %v3936_v9 = vrot.slane %v17228_v49, 6  ;;  %v4147_v37 = vunpack.c.l.b16 %v3926_v48 }
 0x20b   : > { %v13444_v15 = vadd.f32 %v2684_v50, %v13212_v20  ;;  %v3382_v20 = vrot.slane %v3380_v19, 6  ;;  %11045 = vmatmul.msk.bf16.gmra.mxu2 %vm1290_vm3, %v13348_v29  ;;  %v17227_v50 = vld [vmem:[#allocation56_spill] sm:$0xff]  ;;  %v17229_v19 = vld [vmem:[#allocation14_spill] sm:$0xff] }
 0x20c   : > { %v3374_v11 = vsel %vm12846_vm5, %v3370_v38, %v3373_v44  ;;  %v3937_v44 = vrot.slane %v17229_v19, 7  ;;  %v3942_v38 = vshrl.u32 %v3741_v21, 16 }
 0x20d   : > { %17226 = vst [vmem:[#allocation7_spill] sm:$0xff] %v13444_v15  ;;  %11071 = vmatmul.msk.bf16.gmra.mxu0 %vm1290_vm3, %v13434_v7  ;;  %v3275_v59 = vpop.f32.mrf.mxu1  ;;  %v3383_v6 = vor.u32 %v3382_v20, %v3379_v13  ;;  %v3408_v3 = vunpack.c.l.b16 %v3374_v11  ;;  %v3934_v11 = vor.u32 %v3933_v41, %v3930_v10 }
 0x20e   : > { %v13460_v42 = vadd.f32 %v3275_v59, %v17227_v50  ;;  %v3447_v0 = vpop.f32.mrf.mxu2  ;;  %v3938_v49 = vor.u32 %v3937_v44, %v3936_v9  ;;  %v17232_v9 = vld [vmem:[#allocation44_spill] sm:$0xff] }
 0x20f   : > { %v3384_v55 = vsel %vm12846_vm5, %v3375_v35, %v3383_v6  ;;  %v3518_v60 = vadd.f32 %v3447_v0, %v13376_v43  ;;  %11031 = vmatmul.msk.bf16.gmra.mxu1 %vm1290_vm3, %v13348_v29  ;;  %v2765_v35 = vld [vmem:[#allocation2 + $0xd8] sm:$0xe]  ;;  %v3944_v6 = vrot.slane %v3942_v38, 6  ;;  %v13476_v43 = vpack.c.b16 %v4147_v37, %v4146_v51  ;;  %v2766_v0 = vld [vmem:[#allocation2 + $0xe0] sm:$0x3] }
 0x210   : > { %v3409_v13 = vunpack.c.l.b16 %v3384_v55  ;;  %v3389_v19 = vshll.u32 %v2765_v35, 16  ;;  %v3935_v29 = vrot.slane %v3934_v11, 4  ;;  %v17231_v55 = vld [vmem:[#allocation59_spill] sm:$0xff]  ;;  %v3940_v41 = vrot.slane %v3938_v49, 4 }
 0x211   : > { %v3631_v20 = vpop.f32.mrf.mxu3  ;;  %v13474_v50 = vadd.f32 %v3629_v2, %v3518_v60  ;;  %v3394_v44 = vrot.slane %v17232_v9, 5  ;;  %v17233_v38 = vld [vmem:[#allocation43_spill] sm:$0xff] }
 0x212   : > { %v2686_v63 = vpop.f32.mrf.mxu0  ;;  %v13472_v59 = vpack.c.b16 %v3409_v13, %v3408_v3  ;;  %v3391_v2 = vrot.slane %v3389_v19, 6  ;;  %v3395_v60 = vrot.slane %v17233_v38, 6  ;;  %v3403_v19 = vshll.u32 %v2766_v0, 16 }
 0x213   : > { %v13467_v33 = vadd.f32 %v2686_v63, %v13231_v14  ;;  %v3947_v14 = vrot.slane %v3945_v30, 7  ;;  %v3386_v63 = vshrl.u32 %v2765_v35, 16  ;;  %v3400_v30 = vshrl.u32 %v2766_v0, 16 }
 0x214   : > { %v3405_v15 = vrot.slane %v3403_v19, 6 }
 0x215   : > { %17230 = vst [vmem:[#allocation49_spill] sm:$0xff] %v13467_v33  ;;  %v3277_v21 = vpop.f32.mrf.mxu1  ;;  %v3388_v48 = vrot.slane %v3386_v63, 5  ;;  %v3948_v51 = vor.u32 %v3947_v14, %v3944_v6  ;;  %v3402_v63 = vrot.slane %v3400_v30, 5 }
 0x216   : > { %v13479_v62 = vadd.f32 %v3277_v21, %v17231_v55  ;;  %11062 = vmatmul.msk.bf16.gmra.mxu3 %vm1290_vm3, %v13472_v59  ;;  %v3449_v3 = vpop.f32.mrf.mxu2  ;;  %v3742_v21 = vld [vmem:[#allocation2 + $0x6c] sm:$0xc]  ;;  %v3396_v55 = vor.u32 %v3395_v60, %v3394_v44 }
 0x217   : > { %v3519_v37 = vadd.f32 %v3449_v3, %v13395_v18  ;;  %v3392_v11 = vor.u32 %v3391_v2, %v3388_v48  ;;  %v3949_v18 = vsel %vm12043_vm15, %v3940_v41, %v3948_v51  ;;  %v3951_v6 = vshrl.u32 %v3742_v21, 16 }
 0x218   : > { %v3398_v38 = vrot.slane %v3396_v55, 4  ;;  %v3954_v48 = vshll.u32 %v3742_v21, 16  ;;  %v3406_v2 = vor.u32 %v3405_v15, %v3402_v63  ;;  %v17236_v21 = vld [vmem:[#allocation16_spill] sm:$0xff] }
 0x219   : > { %v3634_v35 = vpop.f32.mrf.mxu3  ;;  %v3393_v33 = vrot.slane %v3392_v11, 4  ;;  %v13491_v9 = vadd.f32 %v3631_v20, %v3519_v37  ;;  %v3953_v51 = vrot.slane %v3951_v6, 6  ;;  %v17235_v37 = vld [vmem:[#allocation17_spill] sm:$0xff] }
 0x21a   : > { %v2689_v10 = vpop.f32.mrf.mxu0  ;;  %v3407_v41 = vsel %vm12846_vm5, %v3398_v38, %v3406_v2  ;;  %v3956_v15 = vrot.slane %v3954_v48, 7  ;;  %v3959_v11 = vrot.slane %v17235_v37, 6 }
 0x21b   : > { %v13486_v13 = vadd.f32 %v2689_v10, %v13253_v17  ;;  %v3939_v17 = vsel %vm12043_vm15, %v3935_v29, %v3938_v49  ;;  %11046 = vmatmul.msk.bf16.gmra.mxu2 %vm1290_vm3, %v13388_v61  ;;  %v3397_v14 = vsel %vm12846_vm5, %v3393_v33, %v3396_v55  ;;  %v3743_v10 = vld [vmem:[#allocation2 + $0x74] sm:$0x7]  ;;  %v4149_v29 = vunpack.c.l.b16 %v3949_v18 }
 0x21c   : > { %v3410_v3 = vunpack.c.l.b16 %v3397_v14  ;;  %v4148_v49 = vunpack.c.l.b16 %v3939_v17  ;;  %v3960_v55 = vrot.slane %v17236_v21, 7  ;;  %v3965_v63 = vshrl.u32 %v3743_v10, 16  ;;  %v3744_v21 = vld [vmem:[#allocation2 + $0x78] sm:$0xc]  ;;  %v17260_v26 = vld [vmem:[#allocation49_spill] sm:$0xff] }
 0x21d   : > { %11072 = vmatmul.msk.bf16.gmra.mxu0 %vm1290_vm3, %v13476_v43  ;;  %v3280_v0 = vpop.f32.mrf.mxu1  ;;  %v3968_v17 = vshll.u32 %v3743_v10, 16 }
 0x21e   : > { %v13502_v20 = vadd.f32 %v3280_v0, %v13153_v57  ;;  %v3452_v60 = vpop.f32.mrf.mxu2  ;;  %v3411_v57 = vunpack.c.l.b16 %v3407_v41  ;;  %v13518_v6 = vpack.c.b16 %v4149_v29, %v4148_v49  ;;  %v3957_v0 = vor.u32 %v3956_v15, %v3953_v51  ;;  %v17238_v49 = vld [vmem:[#allocation52_spill] sm:$0xff] }
 0x21f   : > { %v3520_v33 = vadd.f32 %v3452_v60, %v13418_v32  ;;  %11032 = vmatmul.msk.bf16.gmra.mxu1 %vm1290_vm3, %v13388_v61  ;;  %v3961_v61 = vor.u32 %v3960_v55, %v3959_v11  ;;  %v3967_v2 = vrot.slane %v3965_v63, 6  ;;  %v3970_v60 = vrot.slane %v3968_v17, 7 }
 0x220   : > { %v13514_v18 = vpack.c.b16 %v3411_v57, %v3410_v3  ;;  %v17237_v57 = vld [vmem:[#allocation53_spill] sm:$0xff]  ;;  %v3554_v29 = vrot.slane %v17238_v49, 6  ;;  %v3958_v55 = vrot.slane %v3957_v0, 4 }
 0x221   : > { %v3636_v19 = vpop.f32.mrf.mxu3  ;;  %v13516_v38 = vadd.f32 %v3634_v35, %v3520_v33  ;;  %v3553_v37 = vrot.slane %v17237_v57, 5 }
 0x222   : > { %v2691_v44 = vpop.f32.mrf.mxu0 }
 0x223   : > { %v13507_v30 = vadd.f32 %v2691_v44, %v13275_v34  ;;  %v2767_v34 = vld [vmem:[#allocation2 + $0xe4] sm:$0xe]  ;;  %v2768_v44 = vld [vmem:[#allocation2 + $0xec] sm:$0x3]  ;;  %v3555_v17 = vor.u32 %v3554_v29, %v3553_v37 }
 0x224   : > { %v3545_v14 = vshrl.u32 %v2767_v34, 16  ;;  %v3548_v32 = vshll.u32 %v2767_v34, 16  ;;  %v3559_v51 = vshrl.u32 %v2768_v44, 16 }
 0x225   : > { %17234 = vst [vmem:[#allocation11_spill] sm:$0xff] %v13507_v30  ;;  %v3282_v48 = vpop.f32.mrf.mxu1  ;;  %v3974_v30 = vshrl.u32 %v3744_v21, 16 }
 0x226   : > { %v13521_v41 = vadd.f32 %v3282_v48, %v13173_v4  ;;  %11063 = vmatmul.msk.bf16.gmra.mxu3 %vm1290_vm3, %v13514_v18  ;;  %v3547_v10 = vrot.slane %v3545_v14, 5  ;;  %v3550_v35 = vrot.slane %v3548_v32, 6  ;;  %v3454_v33 = vpop.f32.mrf.mxu2  ;;  %v3561_v34 = vrot.slane %v3559_v51, 5 }
 0x227   : > { %v3521_v11 = vadd.f32 %v3454_v33, %v13437_v53  ;;  %v3562_v14 = vshll.u32 %v2768_v44, 16  ;;  %v3963_v32 = vrot.slane %v3961_v61, 4  ;;  %v3971_v48 = vor.u32 %v3970_v60, %v3967_v2  ;;  %v3745_v60 = vld [vmem:[#allocation2 + $0x80] sm:$0x7] }
 0x228   : > { %v3551_v4 = vor.u32 %v3550_v35, %v3547_v10  ;;  %v3962_v10 = vsel %vm12043_vm15, %v3958_v55, %v3961_v61  ;;  %v3976_v29 = vrot.slane %v3974_v30, 6 }
 0x229   : > { %v3639_v63 = vpop.f32.mrf.mxu3  ;;  %v13533_v49 = vadd.f32 %v3636_v19, %v3521_v11  ;;  %v3972_v2 = vsel %vm12043_vm15, %v3963_v32, %v3971_v48  ;;  %v17240_v11 = vld [vmem:[#allocation19_spill] sm:$0xff] }
 0x22a   : > { %v2694_v3 = vpop.f32.mrf.mxu0  ;;  %v3552_v57 = vrot.slane %v3551_v4, 4  ;;  %v17241_v4 = vld [vmem:[#allocation18_spill] sm:$0xff]  ;;  %v4151_v32 = vunpack.c.l.b16 %v3972_v2 }
 0x22b   : > { %v13528_v15 = vadd.f32 %v2694_v3, %v13294_v46  ;;  %v3977_v46 = vshll.u32 %v3744_v21, 16  ;;  %v3557_v3 = vrot.slane %v3555_v17, 4  ;;  %11047 = vmatmul.msk.bf16.gmra.mxu2 %vm1290_vm3, %v13430_v52  ;;  %v3982_v21 = vrot.slane %v17240_v11, 6  ;;  %v2770_v11 = vld [vmem:[#allocation2 + $0xf8] sm:$0x3] }
 0x22c   : > { %v3556_v53 = vsel %vm12846_vm5, %v3552_v57, %v3555_v17  ;;  %v3983_v55 = vrot.slane %v17241_v4, 7  ;;  %v3988_v17 = vshrl.u32 %v3745_v60, 16 }
 0x22d   : > { %17239 = vst [vmem:[#allocation10_spill] sm:$0xff] %v13528_v15  ;;  %11073 = vmatmul.msk.bf16.gmra.mxu0 %vm1290_vm3, %v13518_v6  ;;  %v3564_v15 = vrot.slane %v3562_v14, 6  ;;  %v3285_v0 = vpop.f32.mrf.mxu1  ;;  %v3590_v35 = vunpack.c.l.b16 %v3556_v53  ;;  %v3979_v51 = vrot.slane %v3977_v46, 7  ;;  %v4150_v14 = vunpack.c.l.b16 %v3962_v10  ;;  %v2769_v53 = vld [vmem:[#allocation2 + $0xf0] sm:$0xe] }
 0x22e   : > { %v13544_v19 = vadd.f32 %v3285_v0, %v13195_v45  ;;  %v3457_v37 = vpop.f32.mrf.mxu2  ;;  %v3568_v0 = vshrl.u32 %v2769_v53, 16 }
 0x22f   : > { %v3565_v44 = vor.u32 %v3564_v15, %v3561_v34  ;;  %v3522_v61 = vadd.f32 %v3457_v37, %v13460_v42  ;;  %11033 = vmatmul.msk.bf16.gmra.mxu1 %vm1290_vm3, %v13430_v52  ;;  %v3991_v34 = vshll.u32 %v3745_v60, 16  ;;  %v3990_v42 = vrot.slane %v3988_v17, 6 }
 0x230   : > { %v13558_v4 = vpack.c.b16 %v4151_v32, %v4150_v14  ;;  %v3570_v10 = vrot.slane %v3568_v0, 5 }
 0x231   : > { %v3566_v57 = vsel %vm12846_vm5, %v3557_v3, %v3565_v44  ;;  %v3641_v30 = vpop.f32.mrf.mxu3  ;;  %v13556_v46 = vadd.f32 %v3639_v63, %v3522_v61  ;;  %v3980_v3 = vor.u32 %v3979_v51, %v3976_v29  ;;  %v3571_v44 = vshll.u32 %v2769_v53, 16  ;;  %v17242_v29 = vld [vmem:[#allocation58_spill] sm:$0xff] }
 0x232   : > { %v2696_v33 = vpop.f32.mrf.mxu0  ;;  %v3591_v45 = vunpack.c.l.b16 %v3566_v57  ;;  %v3576_v51 = vrot.slane %v17242_v29, 5  ;;  %v3582_v61 = vshrl.u32 %v2770_v11, 16  ;;  %v3585_v53 = vshll.u32 %v2770_v11, 16 }
 0x233   : > { %v13550_v15 = vadd.f32 %v2696_v33, %v13316_v5  ;;  %v3984_v5 = vor.u32 %v3983_v55, %v3982_v21  ;;  %v3993_v33 = vrot.slane %v3991_v34, 7  ;;  %v3573_v2 = vrot.slane %v3571_v44, 6  ;;  %v17243_v21 = vld [vmem:[#allocation57_spill] sm:$0xff]  ;;  %v3746_v44 = vld [vmem:[#allocation2 + $0x84] sm:$0xc] }
 0x234   : > { %v3594_v48 = vpack.c.b16 %v3591_v45, %v3590_v35  ;;  %v3981_v60 = vrot.slane %v3980_v3, 4  ;;  %v3577_v57 = vrot.slane %v17243_v21, 6  ;;  %v3587_v21 = vrot.slane %v3585_v53, 6  ;;  %v17244_v53 = vld [vmem:[#allocation20_spill] sm:$0xff] }
 0x235   : > { %v3287_v37 = vpop.f32.mrf.mxu1  ;;  %v3986_v45 = vrot.slane %v3984_v5, 4  ;;  %v3994_v34 = vor.u32 %v3993_v33, %v3990_v42 }
 0x236   : > { %v13561_v52 = vadd.f32 %v3287_v37, %v13217_v40  ;;  %11064 = vmatmul.msk.bf16.gmra.mxu3 %vm1290_vm3, %v3594_v48  ;;  %v3459_v35 = vpop.f32.mrf.mxu2  ;;  %v3574_v40 = vor.u32 %v3573_v2, %v3570_v10  ;;  %v3578_v32 = vor.u32 %v3577_v57, %v3576_v51  ;;  %v3584_v48 = vrot.slane %v3582_v61, 5 }
 0x237   : > { %v3523_v17 = vadd.f32 %v3459_v35, %v13479_v62  ;;  %v3985_v62 = vsel %vm12043_vm15, %v3981_v60, %v3984_v5  ;;  %v3995_v42 = vsel %vm12043_vm15, %v3986_v45, %v3994_v34  ;;  %v3997_v10 = vshrl.u32 %v3746_v44, 16  ;;  %v3747_v60 = vld [vmem:[#allocation2 + $0x8c] sm:$0x7] }
 0x238   : > { %v3575_v3 = vrot.slane %v3574_v40, 4  ;;  %v3580_v37 = vrot.slane %v3578_v32, 4  ;;  %v3588_v11 = vor.u32 %v3587_v21, %v3584_v48  ;;  %v4000_v2 = vshll.u32 %v3746_v44, 16 }
 0x239   : > { %v3644_v14 = vpop.f32.mrf.mxu3  ;;  %v13572_v0 = vadd.f32 %v3641_v30, %v3523_v17  ;;  %v4153_v61 = vunpack.c.l.b16 %v3995_v42  ;;  %v3999_v17 = vrot.slane %v3997_v10, 6  ;;  %v4005_v48 = vrot.slane %v17191_v56, 6 }
 0x23a   : > { %v4242_v63 = vpop.f32.mrf.mxu0  ;;  %v4002_v40 = vrot.slane %v4000_v2, 7  ;;  %v4014_v44 = vshll.u32 %v3747_v60, 16 }
 0x23b   : > { %v13567_v55 = vadd.f32 %v4242_v63, %v13346_v39  ;;  %11048 = vmatmul.msk.bf16.gmra.mxu2 %vm1290_vm3, %v13472_v59  ;;  %v3579_v39 = vsel %vm12846_vm5, %v3575_v3, %v3578_v32  ;;  %v3589_v59 = vsel %vm12846_vm5, %v3580_v37, %v3588_v11  ;;  %v4011_v3 = vshrl.u32 %v3747_v60, 16 }
 0x23c   : > { %v3592_v63 = vunpack.c.l.b16 %v3579_v39  ;;  %v3593_v21 = vunpack.c.l.b16 %v3589_v59  ;;  %v4003_v39 = vor.u32 %v4002_v40, %v3999_v17  ;;  %v3748_v59 = vld [vmem:[#allocation2 + $0x90] sm:$0xc] }
 0x23d   : > { %11074 = vmatmul.msk.bf16.gmra.mxu0 %vm1290_vm3, %v13558_v4  ;;  %v3290_v33 = vpop.f32.mrf.mxu1 }
 0x23e   : > { %v13583_v30 = vadd.f32 %v3290_v33, %v13236_v1  ;;  %v3462_v51 = vpop.f32.mrf.mxu2  ;;  %v4152_v1 = vunpack.c.l.b16 %v3985_v62  ;;  %v3595_v34 = vpack.c.b16 %v3593_v21, %v3592_v63  ;;  %v4013_v33 = vrot.slane %v4011_v3, 6  ;;  %v13626_v3 = vld [vmem:[#allocation2 + $0x24] sm:$0xff] }
 0x23f   : > { %v3524_v5 = vadd.f32 %v3462_v51, %v13502_v20  ;;  %11082 = vmatmul.msk.bf16.vlgmr.msra.gmra.mxu1 %vm1290_vm3, %v13309_v31  ;;  %v4004_v63 = vrot.slane %v4003_v39, 4  ;;  %v4023_v21 = vshll.u32 %v3748_v59, 16  ;;  %v17245_v39 = vld [vmem:[#allocation22_spill] sm:$0xff] }
 0x240   : > { %v13597_v37 = vpack.c.b16 %v4153_v61, %v4152_v1 }
 0x241   : > { %v3646_v45 = vpop.f32.mrf.mxu3  ;;  %v13593_v32 = vadd.f32 %v3644_v14, %v3524_v5  ;;  %v4016_v14 = vrot.slane %v4014_v44, 7 }
 0x242   : > { %v4244_v35 = vpop.f32.mrf.mxu0 }
 0x243   : > { %v13588_v57 = vadd.f32 %v4244_v35, %v13363_v28  ;;  %v4006_v28 = vrot.slane %v17244_v53, 7  ;;  %v4017_v51 = vor.u32 %v4016_v14, %v4013_v33 }
 0x245   : > { %v3292_v20 = vpop.f32.mrf.mxu1  ;;  %v4007_v42 = vor.u32 %v4006_v28, %v4005_v48  ;;  %v4025_v28 = vrot.slane %v4023_v21, 7 }
 0x246   : > { %v13600_v31 = vadd.f32 %v3292_v20, %v13258_v47  ;;  %11065 = vmatmul.msk.bf16.gmra.mxu3 %vm1290_vm3, %v3595_v34  ;;  %v3464_v11 = vpop.f32.mrf.mxu2  ;;  %v4028_v20 = vrot.slane %v17195_v54, 6 }
 0x247   : > { %v3525_v10 = vadd.f32 %v3464_v11, %v13521_v41  ;;  %v4009_v47 = vrot.slane %v4007_v42, 4  ;;  %v4020_v41 = vshrl.u32 %v3748_v59, 16 }
 0x249   : > { %v3649_v2 = vpop.f32.mrf.mxu3  ;;  %v13609_v35 = vadd.f32 %v3646_v45, %v3525_v10  ;;  %v4018_v61 = vsel %vm12043_vm15, %v4009_v47, %v4017_v51  ;;  %v4022_v53 = vrot.slane %v4020_v41, 6  ;;  %v4858_v41 = vld [vmem:[%s17014_s10 + $0x8] sm:$0x3] }
 0x24a   : > { %v4247_v62 = vpop.f32.mrf.mxu0 }
 0x24b   : > { %v13604_v56 = vadd.f32 %v4247_v62, %v13390_v12  ;;  %11049 = vmatmul.msk.bf16.gmra.mxu2 %vm1290_vm3, %v13514_v18  ;;  %v4008_v12 = vsel %vm12043_vm15, %v4004_v63, %v4007_v42  ;;  %v3749_v18 = vld [vmem:[#allocation2 + $0x98] sm:$0x7]  ;;  %v4026_v14 = vor.u32 %v4025_v28, %v4022_v53 }
 0x24c   : > { %v4154_v34 = vunpack.c.l.b16 %v4008_v12  ;;  %v4034_v62 = vshrl.u32 %v3749_v18, 16  ;;  %v4037_v42 = vshll.u32 %v3749_v18, 16  ;;  %v4854_v12 = vld [vmem:[%s17014_s10] sm:$0x3] }
 0x24d   : > { %11075 = vmatmul.msk.bf16.gmra.mxu0 %vm1290_vm3, %v13597_v37  ;;  %v3295_v5 = vpop.f32.mrf.mxu1 }
 0x24e   : > { %v13616_v60 = vadd.f32 %v3295_v5, %v13280_v27  ;;  %v3467_v45 = vpop.f32.mrf.mxu2  ;;  %v4155_v27 = vunpack.c.l.b16 %v4018_v61  ;;  %v4039_v47 = vrot.slane %v4037_v42, 7  ;;  %v4855_v5 = vld [vmem:[%s17014_s10 + $0x2] sm:$0x3]  ;;  %v6228_v61 = vsel %vm1366_vm0, %v4858_v41, 0 }
 0x24f   : > { %v3526_v40 = vadd.f32 %v3467_v45, %v13544_v19  ;;  %11083 = vmatmul.msk.bf16.gmra.mxu1 %vm1290_vm3, %v13350_v58  ;;  %v17246_v58 = vld [vmem:[#allocation23_spill] sm:$0xff]  ;;  %v4860_v45 = vld [vmem:[%s17014_s10 + $0xc] sm:$0x3]  ;;  %6237 = vmatpush.bf16.msrb.mxu3 %v6228_v61  ;;  %v17249_v61 = vld [vmem:[#allocation24_spill] sm:$0xff] }
 0x250   : > { %v13632_v33 = vpack.c.b16 %v4155_v27, %v4154_v34  ;;  %v3750_v27 = vld [vmem:[#allocation2 + $0x9c] sm:$0xc]  ;;  %v5268_v53 = vsel %vm1366_vm0, %v4860_v45, 0 }
 0x251   : > { %v3651_v48 = vpop.f32.mrf.mxu3  ;;  %v13628_v44 = vadd.f32 %v3649_v2, %v3526_v40  ;;  %v4036_v2 = vrot.slane %v4034_v62, 6  ;;  %5277 = vmatpush.bf16.msrb.mxu1 %v5268_v53  ;;  %v4046_v62 = vshll.u32 %v3750_v27, 16 }
 0x252   : > { %v4249_v1 = vpop.f32.mrf.mxu0 }
 0x253   : > { %v13621_v17 = vadd.f32 %v4249_v1, %v13407_v22  ;;  %v4029_v22 = vrot.slane %v17245_v39, 7  ;;  %v6002_v1 = vsel %vm1366_vm0, %v4855_v5, 0  ;;  %v4040_v34 = vor.u32 %v4039_v47, %v4036_v2  ;;  %v17247_v39 = vld [vmem:[#allocation45_spill] sm:$0xff]  ;;  %v3751_v2 = vld [vmem:[#allocation2 + $0xa4] sm:$0x7] }
 0x254   : > { %6011 = vmatpush.bf16.msrb.mxu2 %v6002_v1  ;;  %v4048_v5 = vrot.slane %v4046_v62, 7  ;;  %v17248_v1 = vld [vmem:[#allocation25_spill] sm:$0xff]  ;;  %v4060_v45 = vshll.u32 %v3751_v2, 16 }
 0x255   : > { %v3297_v19 = vpop.f32.mrf.mxu1  ;;  %v4030_v63 = vor.u32 %v4029_v22, %v4028_v20 }
 0x256   : > { %v13635_v11 = vadd.f32 %v3297_v19, %v17246_v58  ;;  %11178 = vmatmul.msk.bf16.vlgmr.msra.gmra.mxu3 %vm1290_vm3, %v13626_v3  ;;  %v3469_v51 = vpop.f32.mrf.mxu2 }
 0x257   : > { %v3527_v59 = vadd.f32 %v3469_v51, %v13561_v52  ;;  %v4027_v52 = vrot.slane %v4026_v14, 4  ;;  %v4032_v18 = vrot.slane %v4030_v63, 4 }
 0x259   : > { %v3654_v21 = vpop.f32.mrf.mxu3  ;;  %v13660_v40 = vadd.f32 %v3651_v48, %v3527_v59  ;;  %v4031_v20 = vsel %vm12043_vm15, %v4027_v52, %v4030_v63  ;;  %v4043_v48 = vshrl.u32 %v3750_v27, 16  ;;  %v4041_v19 = vsel %vm12043_vm15, %v4032_v18, %v4040_v34 }
 0x25a   : > { %v4252_v10 = vpop.f32.mrf.mxu0  ;;  %v4156_v63 = vunpack.c.l.b16 %v4031_v20  ;;  %v4157_v51 = vunpack.c.l.b16 %v4041_v19  ;;  %v4057_v52 = vshrl.u32 %v3751_v2, 16  ;;  %v4062_v20 = vrot.slane %v4060_v45, 7 }
 0x25b   : > { %v13640_v54 = vadd.f32 %v4252_v10, %v13432_v16  ;;  %v5152_v16 = vsel %vm1366_vm0, %v4854_v12, 0  ;;  %11098 = vmatmul.msk.bf16.vlgmr.msra.gmra.mxu2 %vm1290_vm3, %v13392_v23  ;;  %v4045_v59 = vrot.slane %v4043_v48, 6  ;;  %v13678_v12 = vld [vmem:[#allocation2 + $0x30] sm:$0xff] }
 0x25c   : > { %5161 = vmatpush.bf16.msrb.mxu0 %v5152_v16  ;;  %v4051_v16 = vrot.slane %v17248_v1, 6  ;;  %v13684_v18 = vpack.c.b16 %v4157_v51, %v4156_v63  ;;  %v3752_v63 = vld [vmem:[#allocation2 + $0xa8] sm:$0xc] }
 0x25d   : > { %11076 = vmatmul.msk.bf16.gmra.mxu0 %vm1290_vm3, %v13632_v33  ;;  %v3300_v28 = vpop.f32.mrf.mxu1  ;;  %v4049_v34 = vor.u32 %v4048_v5, %v4045_v59  ;;  %v4069_v5 = vshll.u32 %v3752_v63, 16 }
 0x25e   : > { %v13668_v22 = vadd.f32 %v3300_v28, %v17247_v39  ;;  %v3472_v14 = vpop.f32.mrf.mxu2 }
 0x25f   : > { %v3528_v10 = vadd.f32 %v3472_v14, %v13583_v30  ;;  %11084 = vmatmul.msk.bf16.gmra.mxu1 %vm1290_vm3, %v13392_v23  ;;  %v17250_v23 = vld [vmem:[#allocation47_spill] sm:$0xff]  ;;  %v4050_v19 = vrot.slane %v4049_v34, 4 }
 0x261   : > { %v3656_v47 = vpop.f32.mrf.mxu3  ;;  %v13680_v41 = vadd.f32 %v3654_v21, %v3528_v10  ;;  %v4059_v21 = vrot.slane %v4057_v52, 6  ;;  %v3753_v52 = vld [vmem:[#allocation2 + $0xb0] sm:$0x7] }
 0x262   : > { %v4254_v42 = vpop.f32.mrf.mxu0 }
 0x263   : > { %v13673_v58 = vadd.f32 %v4254_v42, %v13449_v8  ;;  %v4052_v8 = vrot.slane %v17249_v61, 7  ;;  %v4063_v2 = vor.u32 %v4062_v20, %v4059_v21  ;;  %v17251_v21 = vld [vmem:[#allocation29_spill] sm:$0xff] }
 0x264   : > { %v4074_v20 = vrot.slane %v17251_v21, 6  ;;  %v17254_v21 = vld [vmem:[#allocation8_spill] sm:$0xff] }
 0x265   : > { %v3302_v30 = vpop.f32.mrf.mxu1  ;;  %v4053_v28 = vor.u32 %v4052_v8, %v4051_v16 }
 0x266   : > { %v13687_v27 = vadd.f32 %v3302_v30, %v17250_v23  ;;  %11179 = vmatmul.msk.bf16.gmra.mxu3 %vm1290_vm3, %v13678_v12  ;;  %v3474_v39 = vpop.f32.mrf.mxu2  ;;  %v4071_v23 = vrot.slane %v4069_v5, 7 }
 0x267   : > { %v3529_v62 = vadd.f32 %v3474_v39, %v13600_v31  ;;  %v4055_v10 = vrot.slane %v4053_v28, 4  ;;  %v4066_v31 = vshrl.u32 %v3752_v63, 16  ;;  %v17252_v39 = vld [vmem:[#allocation28_spill] sm:$0xff] }
 0x269   : > { %v3659_v42 = vpop.f32.mrf.mxu3  ;;  %v13697_v14 = vadd.f32 %v3656_v47, %v3529_v62  ;;  %v4064_v47 = vsel %vm12043_vm15, %v4055_v10, %v4063_v2  ;;  %v4068_v34 = vrot.slane %v4066_v31, 6  ;;  %v4080_v62 = vshrl.u32 %v3753_v52, 16 }
 0x26a   : > { %v4257_v53 = vpop.f32.mrf.mxu0 }
 0x26b   : > { %v13692_v48 = vadd.f32 %v4257_v53, %v13474_v50  ;;  %11099 = vmatmul.msk.bf16.gmra.mxu2 %vm1290_vm3, %v13434_v7  ;;  %v4054_v50 = vsel %vm12043_vm15, %v4050_v19, %v4053_v28  ;;  %v13714_v53 = vld [vmem:[#allocation2 + $0x3c] sm:$0xff]  ;;  %v4083_v19 = vshll.u32 %v3753_v52, 16  ;;  %v4072_v2 = vor.u32 %v4071_v23, %v4068_v34  ;;  %v3754_v34 = vld [vmem:[#allocation2 + $0xb4] sm:$0xc] }
 0x26c   : > { %v4158_v45 = vunpack.c.l.b16 %v4054_v50 }
 0x26d   : > { %11077 = vmatmul.msk.bf16.gmra.mxu0 %vm1290_vm3, %v13684_v18  ;;  %v3305_v51 = vpop.f32.mrf.mxu1  ;;  %v4085_v31 = vrot.slane %v4083_v19, 7 }
 0x26e   : > { %v13704_v59 = vadd.f32 %v3305_v51, %v13361_v25  ;;  %v3477_v16 = vpop.f32.mrf.mxu2  ;;  %v4159_v25 = vunpack.c.l.b16 %v4064_v47 }
 0x26f   : > { %v3530_v8 = vadd.f32 %v3477_v16, %v13616_v60  ;;  %11085 = vmatmul.msk.bf16.gmra.mxu1 %vm1290_vm3, %v13434_v7  ;;  %v17253_v7 = vld [vmem:[#allocation9_spill] sm:$0xff] }
 0x270   : > { %v13720_v10 = vpack.c.b16 %v4159_v25, %v4158_v45 }
 0x271   : > { %v3661_v30 = vpop.f32.mrf.mxu3  ;;  %v13716_v28 = vadd.f32 %v3659_v42, %v3530_v8  ;;  %v4082_v42 = vrot.slane %v4080_v62, 6  ;;  %v4073_v8 = vrot.slane %v4072_v2, 4  ;;  %v3755_v2 = vld [vmem:[#allocation2 + $0xbc] sm:$0x7] }
 0x272   : > { %v4259_v1 = vpop.f32.mrf.mxu0 }
 0x273   : > { %v13709_v61 = vadd.f32 %v4259_v1, %v13491_v9  ;;  %v4075_v9 = vrot.slane %v17252_v39, 7  ;;  %v4086_v25 = vor.u32 %v4085_v31, %v4082_v42  ;;  %v4092_v39 = vshll.u32 %v3754_v34, 16 }
 0x275   : > { %v3307_v60 = vpop.f32.mrf.mxu1  ;;  %v4076_v50 = vor.u32 %v4075_v9, %v4074_v20  ;;  %v4094_v31 = vrot.slane %v4092_v39, 7 }
 0x276   : > { %v13723_v63 = vadd.f32 %v3307_v60, %v17253_v7  ;;  %11180 = vmatmul.msk.bf16.gmra.mxu3 %vm1290_vm3, %v13714_v53  ;;  %v3479_v5 = vpop.f32.mrf.mxu2 }
 0x277   : > { %v3531_v47 = vadd.f32 %v3479_v5, %v13635_v11  ;;  %v4078_v45 = vrot.slane %v4076_v50, 4  ;;  %v4089_v11 = vshrl.u32 %v3754_v34, 16  ;;  %v13750_v5 = vld [vmem:[#allocation2 + $0x48] sm:$0xff]  ;;  %v4103_v34 = vshrl.u32 %v3755_v2, 16 }
 0x279   : > { %v3664_v16 = vpop.f32.mrf.mxu3  ;;  %v13733_v52 = vadd.f32 %v3661_v30, %v3531_v47  ;;  %v4087_v30 = vsel %vm12043_vm15, %v4078_v45, %v4086_v25  ;;  %v4091_v42 = vrot.slane %v4089_v11, 6  ;;  %v17256_v25 = vld [vmem:[#allocation32_spill] sm:$0xff] }
 0x27a   : > { %v4262_v51 = vpop.f32.mrf.mxu0 }
 0x27b   : > { %v13728_v1 = vadd.f32 %v4262_v51, %v13516_v38  ;;  %11100 = vmatmul.msk.bf16.gmra.mxu2 %vm1290_vm3, %v13476_v43  ;;  %v4077_v38 = vsel %vm12043_vm15, %v4073_v8, %v4076_v50  ;;  %v4161_v50 = vunpack.c.l.b16 %v4087_v30  ;;  %v17255_v8 = vld [vmem:[#allocation33_spill] sm:$0xff] }
 0x27c   : > { %v4160_v7 = vunpack.c.l.b16 %v4077_v38  ;;  %v4097_v45 = vrot.slane %v17255_v8, 6 }
 0x27d   : > { %11078 = vmatmul.msk.bf16.gmra.mxu0 %vm1290_vm3, %v13720_v10  ;;  %v3310_v23 = vpop.f32.mrf.mxu1 }
 0x27e   : > { %v13740_v20 = vadd.f32 %v3310_v23, %v17254_v21  ;;  %v3482_v62 = vpop.f32.mrf.mxu2  ;;  %v4106_v23 = vshll.u32 %v3755_v2, 16  ;;  %v13756_v21 = vpack.c.b16 %v4161_v50, %v4160_v7 }
 0x27f   : > { %v3532_v60 = vadd.f32 %v3482_v62, %v13668_v22  ;;  %11086 = vmatmul.msk.bf16.gmra.mxu1 %vm1290_vm3, %v13476_v43 }
 0x280   : > { %v4108_v39 = vrot.slane %v4106_v23, 7 }
 0x281   : > { %v3666_v51 = vpop.f32.mrf.mxu3  ;;  %v13752_v47 = vadd.f32 %v3664_v16, %v3532_v60  ;;  %v4105_v16 = vrot.slane %v4103_v34, 6 }
 0x282   : > { %v4264_v9 = vpop.f32.mrf.mxu0 }
 0x283   : > { %v13745_v19 = vadd.f32 %v4264_v9, %v13533_v49  ;;  %v4098_v49 = vrot.slane %v17256_v25, 7  ;;  %v4095_v9 = vor.u32 %v4094_v31, %v4091_v42  ;;  %v4109_v42 = vor.u32 %v4108_v39, %v4105_v16  ;;  %v3756_v31 = vld [vmem:[#allocation2 + $0xc0] sm:$0xc] }
 0x285   : > { %v3312_v22 = vpop.f32.mrf.mxu1  ;;  %v4099_v11 = vor.u32 %v4098_v49, %v4097_v45  ;;  %v4096_v7 = vrot.slane %v4095_v9, 4  ;;  %v17257_v45 = vld [vmem:[#allocation7_spill] sm:$0xff]  ;;  %v4115_v49 = vshll.u32 %v3756_v31, 16 }
 0x286   : > { %v13759_v43 = vadd.f32 %v3312_v22, %v13424_v36  ;;  %11181 = vmatmul.msk.bf16.gmra.mxu3 %vm1290_vm3, %v13750_v5  ;;  %v3484_v30 = vpop.f32.mrf.mxu2 }
 0x287   : > { %v3533_v60 = vadd.f32 %v3484_v30, %v13687_v27  ;;  %v4101_v50 = vrot.slane %v4099_v11, 4  ;;  %v4112_v27 = vshrl.u32 %v3756_v31, 16 }
 0x289   : > { %v3669_v2 = vpop.f32.mrf.mxu3  ;;  %v13769_v36 = vadd.f32 %v3666_v51, %v3533_v60  ;;  %v4110_v51 = vsel %vm12043_vm15, %v4101_v50, %v4109_v42  ;;  %v4114_v30 = vrot.slane %v4112_v27, 6  ;;  %v4117_v60 = vrot.slane %v4115_v49, 7  ;;  %v17258_v50 = vld [vmem:[#allocation36_spill] sm:$0xff] }
 0x28a   : > { %v4267_v38 = vpop.f32.mrf.mxu0  ;;  %v4163_v39 = vunpack.c.l.b16 %v4110_v51  ;;  %v4120_v42 = vrot.slane %v17258_v50, 6 }
 0x28b   : > { %v13764_v62 = vadd.f32 %v4267_v38, %v13556_v46  ;;  %11101 = vmatmul.msk.bf16.gmra.mxu2 %vm1290_vm3, %v13518_v6  ;;  %v4100_v46 = vsel %vm12043_vm15, %v4096_v7, %v4099_v11  ;;  %v3757_v38 = vld [vmem:[#allocation2 + $0xc8] sm:$0x7]  ;;  %v13786_v7 = vld [vmem:[#allocation2 + $0x54] sm:$0xff]  ;;  %v4118_v27 = vor.u32 %v4117_v60, %v4114_v30 }
 0x28c   : > { %v4162_v11 = vunpack.c.l.b16 %v4100_v46 }
 0x28d   : > { %11079 = vmatmul.msk.bf16.gmra.mxu0 %vm1290_vm3, %v13756_v21  ;;  %v3315_v8 = vpop.f32.mrf.mxu1 }
 0x28e   : > { %v13776_v25 = vadd.f32 %v3315_v8, %v17257_v45  ;;  %v3487_v23 = vpop.f32.mrf.mxu2  ;;  %v17259_v8 = vld [vmem:[#allocation35_spill] sm:$0xff]  ;;  %v4126_v45 = vshrl.u32 %v3757_v38, 16 }
 0x28f   : > { %v3534_v9 = vadd.f32 %v3487_v23, %v13704_v59  ;;  %11087 = vmatmul.msk.bf16.gmra.mxu1 %vm1290_vm3, %v13518_v6  ;;  %v13792_v23 = vpack.c.b16 %v4163_v39, %v4162_v11 }
 0x290   : > { %v4128_v51 = vrot.slane %v4126_v45, 6 }
 0x291   : > { %v3671_v16 = vpop.f32.mrf.mxu3  ;;  %v13788_v31 = vadd.f32 %v3669_v2, %v3534_v9 }
 0x292   : > { %v4269_v34 = vpop.f32.mrf.mxu0 }
 0x293   : > { %v13781_v22 = vadd.f32 %v4269_v34, %v13572_v0  ;;  %v4121_v0 = vrot.slane %v17259_v8, 7  ;;  %v4129_v34 = vshll.u32 %v3757_v38, 16 }
 0x295   : > { %v3317_v59 = vpop.f32.mrf.mxu1  ;;  %v4122_v49 = vor.u32 %v4121_v0, %v4120_v42  ;;  %v4131_v2 = vrot.slane %v4129_v34, 7 }
 0x296   : > { %v3357_v6 = vadd.f32 %v3317_v59, %v17260_v26  ;;  %11182 = vmatmul.msk.bf16.gmra.mxu3 %vm1290_vm3, %v13786_v7  ;;  %v3489_v9 = vpop.f32.mrf.mxu2  ;;  %v4119_v26 = vrot.slane %v4118_v27, 4 }
 0x297   : > { %v3535_v8 = vadd.f32 %v3489_v9, %v13723_v63  ;;  %v4124_v39 = vrot.slane %v4122_v49, 4  ;;  %v4132_v59 = vor.u32 %v4131_v2, %v4128_v51  ;;  %v17261_v9 = vld [vmem:[#allocation11_spill] sm:$0xff] }
 0x299   : > { %v3674_v38 = vpop.f32.mrf.mxu3  ;;  %v13803_v11 = vadd.f32 %v3671_v16, %v3535_v8  ;;  %v4133_v63 = vsel %vm12043_vm15, %v4124_v39, %v4132_v59 }
 0x29a   : > { %v4272_v46 = vpop.f32.mrf.mxu0  ;;  %v4165_v27 = vunpack.c.l.b16 %v4133_v63 }
 0x29b   : > { %v13798_v50 = vadd.f32 %v4272_v46, %v13593_v32  ;;  %11102 = vmatmul.msk.bf16.gmra.mxu2 %vm1290_vm3, %v13558_v4  ;;  %v4123_v32 = vsel %vm12043_vm15, %v4119_v26, %v4122_v49 }
 0x29c   : > { %v4164_v46 = vunpack.c.l.b16 %v4123_v32 }
 0x29d   : > { %11080 = vmatmul.msk.bf16.gmra.mxu0 %vm1290_vm3, %v13792_v23  ;;  %v3320_v30 = vpop.f32.mrf.mxu1 }
 0x29e   : > { %v3358_v60 = vadd.f32 %v3320_v30, %v13486_v13  ;;  %v3492_v0 = vpop.f32.mrf.mxu2  ;;  %v13818_v13 = vld [vmem:[#allocation2 + $0x60] sm:$0xff]  ;;  %v13822_v2 = vpack.c.b16 %v4165_v27, %v4164_v46  ;;  %v17262_v30 = vld [vmem:[#allocation10_spill] sm:$0xff] }
 0x29f   : > { %v3536_v45 = vadd.f32 %v3492_v0, %v13740_v20  ;;  %11088 = vmatmul.msk.bf16.gmra.mxu1 %vm1290_vm3, %v13558_v4  ;;  %v11694_v27 = vld [vmem:[#allocation2] sm:$0xff] }
 0x2a1   : > { %v3676_v34 = vpop.f32.mrf.mxu3  ;;  %v13820_v51 = vadd.f32 %v3674_v38, %v3536_v45  ;;  %v13844_v45 = vld [vmem:[#allocation2 + $0x6c] sm:$0xff] }
 0x2a2   : > { %v4274_v42 = vpop.f32.mrf.mxu0 }
 0x2a3   : > { %v13813_v16 = vadd.f32 %v4274_v42, %v13609_v35 }
 0x2a5   : > { %v3322_v49 = vpop.f32.mrf.mxu1 }
 0x2a6   : > { %v3359_v8 = vadd.f32 %v3322_v49, %v17261_v9  ;;  %11183 = vmatmul.msk.bf16.gmra.mxu3 %vm1290_vm3, %v13818_v13  ;;  %v3494_v20 = vpop.f32.mrf.mxu2 }
 0x2a7   : > { %v3537_v4 = vadd.f32 %v3494_v20, %v13759_v43 }
 0x2a9   : > { %v3679_v39 = vpop.f32.mrf.mxu3  ;;  %v13833_v38 = vadd.f32 %v3676_v34, %v3537_v4 }
 0x2aa   : > { %v4277_v35 = vpop.f32.mrf.mxu0 }
 0x2ab   : > { %v13828_v26 = vadd.f32 %v4277_v35, %v13628_v44  ;;  %11103 = vmatmul.msk.bf16.gmra.mxu2 %vm1290_vm3, %v13597_v37 }
 0x2ad   : > { %11081 = vmatmul.msk.bf16.gmra.mxu0 %vm1290_vm3, %v13822_v2  ;;  %v3325_v59 = vpop.f32.mrf.mxu1 }
 0x2ae   : > { %v3360_v42 = vadd.f32 %v3325_v59, %v17262_v30  ;;  %v3497_v63 = vpop.f32.mrf.mxu2 }
 0x2af   : > { %v3538_v44 = vadd.f32 %v3497_v63, %v13776_v25  ;;  %11089 = vmatmul.msk.bf16.gmra.mxu1 %vm1290_vm3, %v13597_v37 }
 0x2b1   : > { %v3681_v43 = vpop.f32.mrf.mxu3  ;;  %v13846_v34 = vadd.f32 %v3679_v39, %v3538_v44  ;;  %v11695_v44 = vld [vmem:[#allocation2 + $0xc] sm:$0xff] }
 0x2b2   : > { %v4279_v32 = vpop.f32.mrf.mxu0 }
 0x2b3   : > { %v13839_v0 = vadd.f32 %v4279_v32, %v13660_v40 }
 0x2b5   : > { %v3327_v46 = vpop.f32.mrf.mxu1 }
 0x2b6   : > { %v3361_v49 = vadd.f32 %v3327_v46, %v13550_v15  ;;  %11184 = vmatmul.msk.bf16.gmra.mxu3 %vm1290_vm3, %v13844_v45  ;;  %v3499_v40 = vpop.f32.mrf.mxu2 }
 0x2b7   : > { %v3539_v25 = vadd.f32 %v3499_v40, %v3357_v6  ;;  %v13864_v6 = vld [vmem:[#allocation2 + $0x78] sm:$0xff] }
 0x2b9   : > { %v3684_v20 = vpop.f32.mrf.mxu3  ;;  %v13855_v37 = vadd.f32 %v3681_v43, %v3539_v25 }
 0x2ba   : > { %v4282_v9 = vpop.f32.mrf.mxu0 }
 0x2bb   : > { %v13852_v35 = vadd.f32 %v4282_v9, %v13680_v41  ;;  %11104 = vmatmul.msk.bf16.gmra.mxu2 %vm1290_vm3, %v13632_v33 }
 0x2bd   : > { %11206 = vmatmul.msk.bf16.vlgmr.msrb.gmra.mxu0 %vm1290_vm3, %v11694_v27  ;;  %v4424_v4 = vpop.f32.mrf.mxu1 }
 0x2be   : > { %v3502_v15 = vpop.f32.mrf.mxu2 }
 0x2bf   : > { %v3540_v30 = vadd.f32 %v3502_v15, %v3358_v60  ;;  %11090 = vmatmul.msk.bf16.gmra.mxu1 %vm1290_vm3, %v13632_v33 }
 0x2c1   : > { %v3686_v41 = vpop.f32.mrf.mxu3  ;;  %v13866_v32 = vadd.f32 %v3684_v20, %v3540_v30 }
 0x2c2   : > { %v4284_v39 = vpop.f32.mrf.mxu0 }
 0x2c3   : > { %v13860_v59 = vadd.f32 %v4284_v39, %v13697_v14 }
 0x2c5   : > { %v4426_v63 = vpop.f32.mrf.mxu1 }
 0x2c6   : > { %11185 = vmatmul.msk.bf16.gmra.mxu3 %vm1290_vm3, %v13864_v6  ;;  %v3504_v46 = vpop.f32.mrf.mxu2 }
 0x2c7   : > { %v3541_v14 = vadd.f32 %v3504_v46, %v3359_v8  ;;  %v13883_v8 = vld [vmem:[#allocation2 + $0x84] sm:$0xff] }
 0x2c9   : > { %v3689_v60 = vpop.f32.mrf.mxu3  ;;  %v13874_v33 = vadd.f32 %v3686_v41, %v3541_v14  ;;  %v11696_v41 = vld [vmem:[#allocation2 + $0x18] sm:$0xff] }
 0x2ca   : > { %v4287_v43 = vpop.f32.mrf.mxu0 }
 0x2cb   : > { %v13871_v27 = vadd.f32 %v4287_v43, %v13716_v28  ;;  %11105 = vmatmul.msk.bf16.gmra.mxu2 %vm1290_vm3, %v13684_v18 }
 0x2cd   : > { %11207 = vmatmul.msk.bf16.gmra.mxu0 %vm1290_vm3, %v11695_v44  ;;  %v4429_v9 = vpop.f32.mrf.mxu1 }
 0x2ce   : > { %v3507_v25 = vpop.f32.mrf.mxu2 }
 0x2cf   : > { %v3542_v39 = vadd.f32 %v3507_v25, %v3360_v42  ;;  %11091 = vmatmul.msk.bf16.gmra.mxu1 %vm1290_vm3, %v13684_v18 }
 0x2d1   : > { %v3691_v28 = vpop.f32.mrf.mxu3  ;;  %v13885_v15 = vadd.f32 %v3689_v60, %v3542_v39  ;;  %v4504_v60 = vadd.f32 %v4424_v4, %v13567_v55  ;;  %v11706_v4 = vld [vmem:[#allocation2 + $0x90] sm:$0xff] }
 0x2d2   : > { %v4289_v40 = vpop.f32.mrf.mxu0 }
 0x2d3   : > { %v13879_v20 = vadd.f32 %v4289_v40, %v13733_v52 }
 0x2d5   : > { %v4431_v30 = vpop.f32.mrf.mxu1 }
 0x2d6   : > { %11186 = vmatmul.msk.bf16.gmra.mxu3 %vm1290_vm3, %v13883_v8  ;;  %v3509_v43 = vpop.f32.mrf.mxu2 }
 0x2d7   : > { %v3543_v52 = vadd.f32 %v3509_v43, %v3361_v49  ;;  %v4505_v43 = vadd.f32 %v4426_v63, %v13588_v57 }
 0x2d9   : > { %v13892_v42 = vpop.f32.mrf.mxu3  ;;  %v13895_v18 = vadd.f32 %v3691_v28, %v3543_v52 }
 0x2da   : > { %v4292_v44 = vpop.f32.mrf.mxu0 }
 0x2db   : > { %v13890_v46 = vadd.f32 %v4292_v44, %v13752_v47  ;;  %11106 = vmatmul.msk.bf16.gmra.mxu2 %vm1290_vm3, %v13720_v10  ;;  %v13906_v47 = vld [vmem:[%s17012_s8] ss:$0 sm:$0xff] }
 0x2dd   : > { %11208 = vmatmul.msk.bf16.gmra.mxu0 %vm1290_vm3, %v11696_v41  ;;  %v4434_v14 = vpop.f32.mrf.mxu1 }
 0x2de   : > { %v13901_v40 = vadd.f32 %v4434_v14, %v13640_v54  ;;  %v4606_v25 = vpop.f32.mrf.mxu2  ;;  %v13919_v54 = vld [vmem:[%s17013_s9] ss:$0 sm:$0xff] }
 0x2df   : > { %v4686_v28 = vadd.f32 %v4606_v25, %v4504_v60  ;;  %11092 = vmatmul.msk.bf16.gmra.mxu1 %vm1290_vm3, %v13720_v10 }
 0x2e1   : > { %v13913_v41 = vpop.f32.mrf.mxu3  ;;  %v4722_v55 = vmul.f32 %v13906_v47, %v4686_v28 }
 0x2e2   : > { %v4294_v49 = vpop.f32.mrf.mxu0 }
 0x2e3   : > { %v13909_v39 = vadd.f32 %v4294_v49, %v13769_v36  ;;  %v4758_v36 = vadd.f32 %v13919_v54, %v4722_v55  ;;  %v4506_v55 = vadd.f32 %v4429_v9, %v13604_v56  ;;  %v11707_v56 = vld [vmem:[#allocation2 + $0x9c] sm:$0xff] }
 0x2e5   : > { %v4436_v44 = vpop.f32.mrf.mxu1  ;;  %v4790_v28 = vmax.f32 %v4758_v36, 0.0 }
 0x2e6   : > { %v13924_v52 = vadd.f32 %v4436_v44, %v13673_v58  ;;  %11187 = vmatmul.msk.bf16.gmra.mxu3 %vm1290_vm3, %v11706_v4  ;;  %v4608_v14 = vpop.f32.mrf.mxu2 }
 0x2e7   : > { %v4687_v49 = vadd.f32 %v4608_v14, %v4505_v43  ;;  %v4822_v4 = vpack.c.bf16 %v4790_v28, %v4790_v28 }
 0x2e9   : > { %v13930_v25 = vpop.f32.mrf.mxu3  ;;  %v4723_v57 = vmul.f32 %v13906_v47, %v4687_v49  ;;  %v7628_v9 = vunpack.c.l.b16 %v4822_v4 }
 0x2ea   : > { %v4297_v10 = vpop.f32.mrf.mxu0  ;;  %17263 = vst [vmem:[#allocation13_spill] sm:$0xff] %v13930_v25 }
 0x2eb   : > { %v13928_v60 = vadd.f32 %v4297_v10, %v13788_v31  ;;  %v4759_v63 = vadd.f32 %v13919_v54, %v4723_v57  ;;  %11107 = vmatmul.msk.bf16.gmra.mxu2 %vm1290_vm3, %v13756_v21 }
 0x2ed   : > { %11209 = vmatmul.msk.bf16.gmra.mxu0 %vm1290_vm3, %v13626_v3  ;;  %v4439_v58 = vpop.f32.mrf.mxu1  ;;  %v4791_v31 = vmax.f32 %v4759_v63, 0.0 }
 0x2ee   : > { %v13940_v44 = vadd.f32 %v4439_v58, %v13692_v48  ;;  %v4611_v10 = vpop.f32.mrf.mxu2  ;;  %v4507_v58 = vadd.f32 %v4431_v30, %v13621_v17 }
 0x2ef   : > { %v4688_v36 = vadd.f32 %v4611_v10, %v4506_v55  ;;  %11093 = vmatmul.msk.bf16.gmra.mxu1 %vm1290_vm3, %v13756_v21  ;;  %v4823_v14 = vpack.c.bf16 %v4791_v31, %v4791_v31  ;;  %v11774_v21 = vld [vmem:[%s17009_s5] ss:$0 sm:$0xff]  ;;  %v17264_v55 = vld [vmem:[#allocation26_spill] sm:$0xff] }
 0x2f0   : > { %v1626_v4 = vmul.f32 %v11774_v21, %v17264_v55  ;;  %v17265_v31 = vld [vmem:[#allocation30_spill] sm:$0xff] }
 0x2f1   : > { %v13947_v49 = vpop.f32.mrf.mxu3  ;;  %v4724_v57 = vmul.f32 %v13906_v47, %v4688_v36  ;;  %v7629_v28 = vunpack.c.l.b16 %v4823_v14 }
 0x2f2   : > { %v4299_v43 = vpop.f32.mrf.mxu0 }
 0x2f3   : > { %v13943_v3 = vadd.f32 %v4299_v43, %v13803_v11  ;;  %v7660_v63 = vpack.c.b16 %v7629_v28, %v7628_v9  ;;  %v4760_v25 = vadd.f32 %v13919_v54, %v4724_v57  ;;  %v1627_v43 = vmul.f32 %v11774_v21, %v17265_v31 }
 0x2f5   : > { %v4441_v48 = vpop.f32.mrf.mxu1  ;;  %7676 = vrot.lane.b32.xlu0 %v7660_v63, %s11840_s18  ;;  %v4792_v57 = vmax.f32 %v4760_v25, 0.0 }
 0x2f6   : > { %v13953_v11 = vadd.f32 %v4441_v48, %v13709_v61  ;;  %11188 = vmatmul.msk.bf16.gmra.mxu3 %vm1290_vm3, %v11707_v56  ;;  %v4613_v17 = vpop.f32.mrf.mxu2  ;;  %v11775_v56 = vld [vmem:[%s17010_s6] ss:$0 sm:$0xff] }
 0x2f7   : > { %v4689_v61 = vadd.f32 %v4613_v17, %v4507_v58  ;;  %v1662_v9 = vadd.f32 %v11775_v56, %v1626_v4  ;;  %v1663_v28 = vadd.f32 %v11775_v56, %v1627_v43  ;;  %v4824_v25 = vpack.c.bf16 %v4792_v57, %v4792_v57 }
 0x2f9   : > { %v13965_v36 = vpop.f32.mrf.mxu3  ;;  %v4725_v14 = vmul.f32 %v13906_v47, %v4689_v61  ;;  %v1694_v21 = vmax.f32 %v1662_v9, 0.0  ;;  %v1695_v55 = vmax.f32 %v1663_v28, 0.0  ;;  %v7630_v56 = vunpack.c.l.b16 %v4824_v25 }
 0x2fa   : > { %v4302_v10 = vpop.f32.mrf.mxu0 }
 0x2fb   : > { %v13963_v30 = vadd.f32 %v4302_v10, %v13820_v51  ;;  %11108 = vmatmul.msk.bf16.gmra.mxu2 %vm1290_vm3, %v13792_v23  ;;  %v4761_v51 = vadd.f32 %v13919_v54, %v4725_v14  ;;  %v11708_v14 = vld [vmem:[#allocation2 + $0xa8] sm:$0xff]  ;;  %v1726_v9 = vpack.c.bf16 %v1694_v21, %v1694_v21  ;;  %v1727_v28 = vpack.c.bf16 %v1695_v55, %v1695_v55 }
 0x2fd   : > { %11210 = vmatmul.msk.bf16.gmra.mxu0 %vm1290_vm3, %v13678_v12  ;;  %v4444_v63 = vpop.f32.mrf.mxu1  ;;  %v17266_v12 = vld [vmem:[#allocation31_spill] sm:$0xff]  ;;  %v4793_v58 = vmax.f32 %v4761_v51, 0.0 }
 0x2fe   : > { %v13977_v48 = vadd.f32 %v4444_v63, %v13728_v1  ;;  %7568 = vrot.lane.b32.xlu0 %v17266_v12, %s11839_s23  ;;  %v4616_v10 = vpop.f32.mrf.mxu2 }
 0x2ff   : > { %v4690_v43 = vadd.f32 %v4616_v10, %v13901_v40  ;;  %11094 = vmatmul.msk.bf16.gmra.mxu1 %vm1290_vm3, %v13792_v23  ;;  %v4825_v17 = vpack.c.bf16 %v4793_v58, %v4793_v58  ;;  %v17267_v23 = vld [vmem:[#allocation34_spill] sm:$0xff]  ;;  %v7524_v40 = vunpack.c.l.b16 %v1726_v9  ;;  %v7525_v58 = vunpack.c.l.b16 %v1727_v28  ;;  %v17269_v28 = vld [vmem:[#allocation39_spill] sm:$0xff] }
 0x301   : > { %v13987_v1 = vpop.f32.mrf.mxu3  ;;  %v4726_v61 = vmul.f32 %v13906_v47, %v4690_v43  ;;  %v7631_v57 = vunpack.c.l.b16 %v4825_v17 }
 0x302   : > { %v4304_v31 = vpop.f32.mrf.mxu0 }
 0x303   : > { %v13982_v4 = vadd.f32 %v4304_v31, %v13833_v38  ;;  %v7661_v51 = vpack.c.b16 %v7631_v57, %v7630_v56  ;;  %v4762_v38 = vadd.f32 %v13919_v54, %v4726_v61  ;;  %v7552_v56 = vpack.c.b16 %v7525_v58, %v7524_v40  ;;  %v3759_v57 = vld [vmem:[#allocation2 + $0xd4] sm:$0x7] }
 0x305   : > { %v4446_v63 = vpop.f32.mrf.mxu1  ;;  %7678 = vrot.lane.b32.xlu2 %v7661_v51, %s11840_s18  ;;  %v4794_v43 = vmax.f32 %v4762_v38, 0.0  ;;  %v4363_v51 = vrot.slane %v17269_v28, 6  ;;  %v4372_v38 = vshll.u32 %v3759_v57, 16 }
 0x306   : > { %v13992_v12 = vadd.f32 %v4446_v63, %v13745_v19  ;;  %11189 = vmatmul.msk.bf16.gmra.mxu3 %vm1290_vm3, %v11708_v14  ;;  %7570 = vrot.lane.b32.xlu0 %v17267_v23, %s11839_s23  ;;  %v4618_v25 = vpop.f32.mrf.mxu2  ;;  %v3758_v19 = vld [vmem:[#allocation2 + $0xcc] sm:$0xc]  ;;  %v17270_v23 = vld [vmem:[#allocation38_spill] sm:$0xff] }
 0x307   : > { %v4691_v55 = vadd.f32 %v4618_v25, %v13924_v52  ;;  %v4355_v61 = vshrl.u32 %v3758_v19, 16  ;;  %v4358_v14 = vshll.u32 %v3758_v19, 16  ;;  %v4826_v25 = vpack.c.bf16 %v4794_v43, %v4794_v43 }
 0x309   : > { %v14002_v10 = vpop.f32.mrf.mxu3  ;;  %v4727_v17 = vmul.f32 %v13906_v47, %v4691_v55  ;;  %v4360_v52 = vrot.slane %v4358_v14, 7  ;;  %v4374_v14 = vrot.slane %v4372_v38, 7 }
 0x30a   : > { %v4307_v31 = vpop.f32.mrf.mxu0  ;;  %17268 = vst [vmem:[#allocation12_spill] sm:$0xff] %v14002_v10 }
 0x30b   : > { %v13999_v21 = vadd.f32 %v4307_v31, %v13846_v34  ;;  %v4763_v9 = vadd.f32 %v13919_v54, %v4727_v17  ;;  %11109 = vmatmul.msk.bf16.gmra.mxu2 %vm1290_vm3, %v13822_v2  ;;  %v4357_v34 = vrot.slane %v4355_v61, 6  ;;  %v4364_v31 = vrot.slane %v17270_v23, 7 }
 0x30d   : > { %11211 = vmatmul.msk.bf16.gmra.mxu0 %vm1290_vm3, %v13714_v53  ;;  %v4449_v63 = vpop.f32.mrf.mxu1  ;;  %v4369_v53 = vshrl.u32 %v3759_v57, 16  ;;  %v4795_v55 = vmax.f32 %v4763_v9, 0.0  ;;  %v4361_v40 = vor.u32 %v4360_v52, %v4357_v34  ;;  %v4365_v10 = vor.u32 %v4364_v31, %v4363_v51  ;;  %v11709_v52 = vld [vmem:[#allocation2 + $0xb4] sm:$0xff] }
 0x30e   : > { %v14013_v19 = vadd.f32 %v4449_v63, %v13764_v62  ;;  %7572 = vrot.lane.b32.xlu0 %v7552_v56, %s11839_s23  ;;  %v4621_v17 = vpop.f32.mrf.mxu2  ;;  %v7632_v63 = vunpack.c.l.b16 %v4826_v25 }
 0x30f   : > { %v4371_v61 = vrot.slane %v4369_v53, 6  ;;  %v4692_v23 = vadd.f32 %v4621_v17, %v13940_v44  ;;  %11095 = vmatmul.msk.bf16.gmra.mxu1 %vm1290_vm3, %v13822_v2  ;;  %v4362_v43 = vrot.slane %v4361_v40, 4  ;;  %v4827_v57 = vpack.c.bf16 %v4795_v55, %v4795_v55 }
 0x310   : > { %v4367_v9 = vrot.slane %v4365_v10, 4 }
 0x311   : > { %v14022_v62 = vpop.f32.mrf.mxu3  ;;  %v4375_v56 = vor.u32 %v4374_v14, %v4371_v61  ;;  %v4728_v34 = vmul.f32 %v13906_v47, %v4692_v23  ;;  %v4366_v51 = vsel %vm12043_vm15, %v4362_v43, %v4365_v10  ;;  %v3760_v43 = vld [vmem:[#allocation2 + $0xd8] sm:$0xc] }
 0x312   : > { %v4309_v58 = vpop.f32.mrf.mxu0  ;;  %v4400_v31 = vunpack.c.l.b16 %v4366_v51 }
 0x313   : > { %v14017_v28 = vadd.f32 %v4309_v58, %v13855_v37  ;;  %v7633_v37 = vunpack.c.l.b16 %v4827_v57  ;;  %v4376_v44 = vsel %vm12043_vm15, %v4367_v9, %v4375_v56  ;;  %v4764_v55 = vadd.f32 %v13919_v54, %v4728_v34  ;;  %v17272_v58 = vld [vmem:[#allocation41_spill] sm:$0xff]  ;;  %v3761_v34 = vld [vmem:[#allocation2 + $0xe0] sm:$0x7] }
 0x314   : > { %v4401_v53 = vunpack.c.l.b16 %v4376_v44  ;;  %v4378_v9 = vshrl.u32 %v3760_v43, 16  ;;  %v4381_v56 = vshll.u32 %v3760_v43, 16  ;;  %v17274_v44 = vld [vmem:[#allocation43_spill] sm:$0xff] }
 0x315   : > { %v14029_v2 = vpack.c.b16 %v7633_v37, %v7632_v63  ;;  %v4451_v38 = vpop.f32.mrf.mxu1 }
 0x316   : > { %v14033_v40 = vadd.f32 %v4451_v38, %v13781_v22  ;;  %11190 = vmatmul.msk.bf16.gmra.mxu3 %vm1290_vm3, %v11709_v52  ;;  %7574 = vrot.lane.b32.xlu0 %v17272_v58, %s11839_s23  ;;  %v4623_v25 = vpop.f32.mrf.mxu2  ;;  %v4404_v14 = vpack.c.b16 %v4401_v53, %v4400_v31  ;;  %v4796_v22 = vmax.f32 %v4764_v55, 0.0  ;;  %v4383_v51 = vrot.slane %v4381_v56, 7 }
 0x317   : > { %17271 = vst [vmem:[#allocation54_spill] sm:$0xff] %v14029_v2  ;;  %v4693_v61 = vadd.f32 %v4623_v25, %v13953_v11  ;;  %v17273_v11 = vld [vmem:[#allocation44_spill] sm:$0xff]  ;;  %v4387_v31 = vrot.slane %v17274_v44, 7  ;;  %v4392_v53 = vshrl.u32 %v3761_v34, 16  ;;  %v4395_v38 = vshll.u32 %v3761_v34, 16  ;;  %v17275_v25 = vld [vmem:[#allocation46_spill] sm:$0xff] }
 0x318   : > { %v4386_v63 = vrot.slane %v17273_v11, 6  ;;  %v4828_v58 = vpack.c.bf16 %v4796_v22, %v4796_v22 }
 0x319   : > { %v14042_v23 = vpop.f32.mrf.mxu3  ;;  %v4729_v57 = vmul.f32 %v13906_v47, %v4693_v61  ;;  %v4394_v56 = vrot.slane %v4392_v53, 6  ;;  %v4397_v2 = vrot.slane %v4395_v38, 7 }
 0x31a   : > { %v4312_v10 = vpop.f32.mrf.mxu0 }
 0x31b   : > { %v14039_v17 = vadd.f32 %v4312_v10, %v13866_v32  ;;  %v4765_v52 = vadd.f32 %v13919_v54, %v4729_v57  ;;  %11110 = vmatmul.msk.bf16.gmra.mxu2 %vm1290_vm3, %v4404_v14  ;;  %v4380_v32 = vrot.slane %v4378_v9, 6  ;;  %v4388_v9 = vor.u32 %v4387_v31, %v4386_v63 }
 0x31c   : > { %v7634_v31 = vunpack.c.l.b16 %v4828_v58 }
 0x31d   : > { %11212 = vmatmul.msk.bf16.gmra.mxu0 %vm1290_vm3, %v13750_v5  ;;  %v4454_v37 = vpop.f32.mrf.mxu1  ;;  %v4797_v55 = vmax.f32 %v4765_v52, 0.0  ;;  %v4384_v61 = vor.u32 %v4383_v51, %v4380_v32  ;;  %v4390_v52 = vrot.slane %v4388_v9, 4  ;;  %v11710_v51 = vld [vmem:[#allocation2 + $0xc0] sm:$0xff] }
 0x31e   : > { %v14052_v10 = vadd.f32 %v4454_v37, %v13798_v50  ;;  %7576 = vrot.lane.b32.xlu0 %v17275_v25, %s11839_s23  ;;  %v4626_v57 = vpop.f32.mrf.mxu2  ;;  %v4398_v37 = vor.u32 %v4397_v2, %v4394_v56 }
 0x31f   : > { %v4694_v44 = vadd.f32 %v4626_v57, %v13977_v48  ;;  %11096 = vmatmul.msk.bf16.gmra.mxu1 %vm1290_vm3, %v4404_v14  ;;  %v4385_v22 = vrot.slane %v4384_v61, 4  ;;  %v4829_v34 = vpack.c.bf16 %v4797_v55, %v4797_v55  ;;  %v17277_v61 = vld [vmem:[#allocation48_spill] sm:$0xff] }
 0x321   : > { %v14061_v50 = vpop.f32.mrf.mxu3  ;;  %v4730_v32 = vmul.f32 %v13906_v47, %v4694_v44  ;;  %v4389_v63 = vsel %vm12043_vm15, %v4385_v22, %v4388_v9  ;;  %v7635_v53 = vunpack.c.l.b16 %v4829_v34  ;;  %v3762_v22 = vld [vmem:[#allocation2 + $0xe4] sm:$0xc] }
 0x322   : > { %v4314_v43 = vpop.f32.mrf.mxu0  ;;  %v4402_v48 = vunpack.c.l.b16 %v4389_v63 }
 0x323   : > { %v14057_v11 = vadd.f32 %v4314_v43, %v13874_v33  ;;  %v4399_v33 = vsel %vm12043_vm15, %v4390_v52, %v4398_v37  ;;  %v14068_v14 = vpack.c.b16 %v7635_v53, %v7634_v31  ;;  %v4766_v25 = vadd.f32 %v13919_v54, %v4730_v32  ;;  %v3763_v32 = vld [vmem:[#allocation2 + $0xec] sm:$0x7] }
 0x324   : > { %v4403_v38 = vunpack.c.l.b16 %v4399_v33  ;;  %v4537_v52 = vshrl.u32 %v3762_v22, 16  ;;  %v4540_v37 = vshll.u32 %v3762_v22, 16  ;;  %v17279_v33 = vld [vmem:[#allocation52_spill] sm:$0xff] }
 0x325   : > { %17276 = vst [vmem:[#allocation56_spill] sm:$0xff] %v14068_v14  ;;  %v4456_v55 = vpop.f32.mrf.mxu1 }
 0x326   : > { %v14072_v2 = vadd.f32 %v4456_v55, %v13813_v16  ;;  %11191 = vmatmul.msk.bf16.gmra.mxu3 %vm1290_vm3, %v11710_v51  ;;  %7578 = vrot.lane.b32.xlu0 %v17277_v61, %s11839_s23  ;;  %v4628_v43 = vpop.f32.mrf.mxu2  ;;  %v4405_v56 = vpack.c.b16 %v4403_v38, %v4402_v48  ;;  %v4798_v16 = vmax.f32 %v4766_v25, 0.0  ;;  %v4542_v63 = vrot.slane %v4540_v37, 7 }
 0x327   : > { %v4695_v9 = vadd.f32 %v4628_v43, %v13992_v12  ;;  %v17278_v12 = vld [vmem:[#allocation53_spill] sm:$0xff]  ;;  %v4546_v48 = vrot.slane %v17279_v33, 7  ;;  %v4551_v38 = vshrl.u32 %v3763_v32, 16  ;;  %v4554_v55 = vshll.u32 %v3763_v32, 16  ;;  %v17280_v43 = vld [vmem:[#allocation50_spill] sm:$0xff] }
 0x328   : > { %v4545_v31 = vrot.slane %v17278_v12, 6  ;;  %v4830_v61 = vpack.c.bf16 %v4798_v16, %v4798_v16 }
 0x329   : > { %v14081_v44 = vpop.f32.mrf.mxu3  ;;  %v4731_v34 = vmul.f32 %v13906_v47, %v4695_v9  ;;  %v4553_v37 = vrot.slane %v4551_v38, 6  ;;  %v4556_v14 = vrot.slane %v4554_v55, 7 }
 0x32a   : > { %v4317_v58 = vpop.f32.mrf.mxu0 }
 0x32b   : > { %v14078_v57 = vadd.f32 %v4317_v58, %v13885_v15  ;;  %v4767_v51 = vadd.f32 %v13919_v54, %v4731_v34  ;;  %11111 = vmatmul.msk.bf16.gmra.mxu2 %vm1290_vm3, %v4405_v56  ;;  %v4539_v15 = vrot.slane %v4537_v52, 6  ;;  %v4547_v52 = vor.u32 %v4546_v48, %v4545_v31 }
 0x32d   : > { %11213 = vmatmul.msk.bf16.gmra.mxu0 %vm1290_vm3, %v13786_v7  ;;  %v4459_v53 = vpop.f32.mrf.mxu1  ;;  %v4799_v25 = vmax.f32 %v4767_v51, 0.0  ;;  %v4543_v9 = vor.u32 %v4542_v63, %v4539_v15  ;;  %v4549_v51 = vrot.slane %v4547_v52, 4  ;;  %v7636_v63 = vunpack.c.l.b16 %v4830_v61 }
 0x32e   : > { %v14091_v58 = vadd.f32 %v4459_v53, %v13828_v26  ;;  %7580 = vrot.lane.b32.xlu0 %v17280_v43, %s11839_s23  ;;  %v4631_v34 = vpop.f32.mrf.mxu2  ;;  %v4557_v53 = vor.u32 %v4556_v14, %v4553_v37  ;;  %v11711_v43 = vld [vmem:[#allocation2 + $0xcc] sm:$0xff]  ;;  %v17283_v14 = vld [vmem:[#allocation51_spill] sm:$0xff] }
 0x32f   : > { %v4696_v33 = vadd.f32 %v4631_v34, %v14013_v19  ;;  %11097 = vmatmul.msk.bf16.gmra.mxu1 %vm1290_vm3, %v4405_v56  ;;  %v4544_v16 = vrot.slane %v4543_v9, 4  ;;  %v4831_v32 = vpack.c.bf16 %v4799_v25, %v4799_v25 }
 0x331   : > { %v14100_v26 = vpop.f32.mrf.mxu3  ;;  %v4548_v15 = vsel %vm12043_vm15, %v4544_v16, %v4547_v52  ;;  %v7637_v31 = vunpack.c.l.b16 %v4831_v32  ;;  %v4732_v48 = vmul.f32 %v13906_v47, %v4696_v33  ;;  %v3764_v33 = vld [vmem:[#allocation2 + $0xf0] sm:$0xc] }
 0x332   : > { %v4319_v22 = vpop.f32.mrf.mxu0  ;;  %17281 = vst [vmem:[#allocation15_spill] sm:$0xff] %v14100_v26  ;;  %v4582_v19 = vunpack.c.l.b16 %v4548_v15  ;;  %v4560_v16 = vshrl.u32 %v3764_v33, 16  ;;  %v4563_v32 = vshll.u32 %v3764_v33, 16  ;;  %v5398_v26 = vld [vmem:[#allocation2 + $0x1c] sm:$0xf] }
 0x333   : > { %v14096_v12 = vadd.f32 %v4319_v22, %v13895_v18  ;;  %v4558_v18 = vsel %vm12043_vm15, %v4549_v51, %v4557_v53  ;;  %v14107_v56 = vpack.c.b16 %v7637_v31, %v7636_v63  ;;  %v4768_v9 = vadd.f32 %v13919_v54, %v4732_v48  ;;  %v3765_v53 = vld [vmem:[#allocation2 + $0xf8] sm:$0x7]  ;;  %v17285_v48 = vld [vmem:[#allocation57_spill] sm:$0xff] }
 0x334   : > { %v4583_v38 = vunpack.c.l.b16 %v4558_v18  ;;  %v4562_v15 = vrot.slane %v4560_v16, 6  ;;  %v4565_v63 = vrot.slane %v4563_v32, 7  ;;  %v4569_v18 = vrot.slane %v17285_v48, 7 }
 0x335   : > { %17282 = vst [vmem:[#allocation14_spill] sm:$0xff] %v14107_v56  ;;  %v4461_v55 = vpop.f32.mrf.mxu1  ;;  %v4800_v51 = vmax.f32 %v4768_v9, 0.0 }
 0x336   : > { %v14110_v25 = vadd.f32 %v4461_v55, %v13839_v0  ;;  %11192 = vmatmul.msk.bf16.gmra.mxu3 %vm1290_vm3, %v11711_v43  ;;  %7582 = vrot.lane.b32.xlu0 %v17283_v14, %s11839_s23  ;;  %v4633_v22 = vpop.f32.mrf.mxu2  ;;  %v4586_v52 = vpack.c.b16 %v4583_v38, %v4582_v19  ;;  %v4574_v19 = vshrl.u32 %v3765_v53, 16  ;;  %v4577_v38 = vshll.u32 %v3765_v53, 16  ;;  %v17286_v14 = vld [vmem:[#allocation55_spill] sm:$0xff] }
 0x337   : > { %v4697_v34 = vadd.f32 %v4633_v22, %v14033_v40  ;;  %v4568_v40 = vrot.slane %v17242_v29, 6  ;;  %v4566_v9 = vor.u32 %v4565_v63, %v4562_v15  ;;  %v11712_v63 = vld [vmem:[#allocation2 + $0xd8] sm:$0xff] }
 0x338   : > { %v4579_v29 = vrot.slane %v4577_v38, 7 }
 0x339   : > { %v14119_v37 = vpop.f32.mrf.mxu3  ;;  %v4733_v0 = vmul.f32 %v13906_v47, %v4697_v34  ;;  %v4832_v34 = vpack.c.bf16 %v4800_v51, %v4800_v51  ;;  %v4570_v33 = vor.u32 %v4569_v18, %v4568_v40  ;;  %v4567_v32 = vrot.slane %v4566_v9, 4  ;;  %v5401_v18 = vld [vmem:[#allocation2 + $0x28] sm:$0xf] }
 0x33a   : > { %v14115_v61 = vpop.f32.mrf.mxu0  ;;  %17284 = vst [vmem:[#allocation59_spill] sm:$0xff] %v14119_v37  ;;  %v5397_v37 = vld [vmem:[#allocation2 + $0x18] sm:$0xe] }
 0x33b   : > { %v4769_v43 = vadd.f32 %v13919_v54, %v4733_v0  ;;  %11112 = vmatmul.msk.bf16.gmra.mxu2 %vm1290_vm3, %v4586_v52  ;;  %v4576_v0 = vrot.slane %v4574_v19, 6  ;;  %v4571_v51 = vsel %vm12043_vm15, %v4567_v32, %v4570_v33  ;;  %v7638_v19 = vunpack.c.l.b16 %v4832_v34 }
 0x33d   : > { %11214 = vmatmul.msk.bf16.gmra.mxu0 %vm1290_vm3, %v13818_v13  ;;  %v4464_v31 = vpop.f32.mrf.mxu1  ;;  %v4801_v13 = vmax.f32 %v4769_v43, 0.0  ;;  %v4572_v43 = vrot.slane %v4570_v33, 4 }
 0x33e   : > { %v14129_v55 = vadd.f32 %v4464_v31, %v13852_v35  ;;  %7584 = vrot.lane.b32.xlu0 %v17286_v14, %s11839_s23  ;;  %v4636_v52 = vpop.f32.mrf.mxu2  ;;  %v4580_v31 = vor.u32 %v4579_v29, %v4576_v0  ;;  %v5402_v0 = vld [vmem:[#allocation2 + $0x2c] sm:$0x3]  ;;  %v5551_v29 = vshrl.u32 %v5401_v18, 16 }
 0x33f   : > { %v4698_v16 = vadd.f32 %v4636_v52, %v14052_v10  ;;  %11234 = vmatmul.msk.bf16.vlgmr.msrb.gmra.mxu1 %vm1290_vm3, %v13750_v5  ;;  %v4833_v53 = vpack.c.bf16 %v4801_v13, %v4801_v13  ;;  %v5400_v10 = vld [vmem:[#allocation2 + $0x24] sm:$0xe]  ;;  %v4584_v5 = vunpack.c.l.b16 %v4571_v51  ;;  %v5561_v51 = vshrl.u32 %v5402_v0, 16 }
 0x340   : > { %v4581_v48 = vsel %vm12043_vm15, %v4572_v43, %v4580_v31  ;;  %v5542_v13 = vshrl.u32 %v5400_v10, 16  ;;  %v5545_v14 = vshll.u32 %v5400_v10, 16  ;;  %v5553_v31 = vrot.slane %v5551_v29, 5 }
 0x341   : > { %v14138_v35 = vpop.f32.mrf.mxu3  ;;  %v4734_v15 = vmul.f32 %v13906_v47, %v4698_v16  ;;  %v7639_v40 = vunpack.c.l.b16 %v4833_v53  ;;  %v4585_v38 = vunpack.c.l.b16 %v4581_v48  ;;  %v5554_v16 = vshll.u32 %v5401_v18, 16 }
 0x342   : > { %v14133_v22 = vpop.f32.mrf.mxu0  ;;  %17287 = vst [vmem:[#allocation17_spill] sm:$0xff] %v14138_v35  ;;  %v5544_v34 = vrot.slane %v5542_v13, 5  ;;  %v5547_v43 = vrot.slane %v5545_v14, 6  ;;  %v5564_v10 = vshll.u32 %v5402_v0, 16  ;;  %vm7820_vm15 = vcmask 64512  }
 0x343   : > { %v4770_v9 = vadd.f32 %v13919_v54, %v4734_v15  ;;  %v14146_v56 = vpack.c.b16 %v7639_v40, %v7638_v19  ;;  %v5556_v15 = vrot.slane %v5554_v16, 6  ;;  %v4587_v40 = vpack.c.b16 %v4585_v38, %v4584_v5  ;;  %v5393_v5 = vld [vmem:[#allocation2 + $0x8] sm:$0x3] }
 0x344   : > { %v5548_v19 = vor.u32 %v5547_v43, %v5544_v34  ;;  %v5566_v14 = vrot.slane %v5564_v10, 6  ;;  %v5477_v10 = vshrl.u32 %v5393_v5, 16 }
 0x345   : > { %v4466_v52 = vpop.f32.mrf.mxu1  ;;  %17288 = vst [vmem:[#allocation16_spill] sm:$0xff] %v14146_v56  ;;  %v4802_v18 = vmax.f32 %v4770_v9, 0.0  ;;  %v5391_v56 = vld [vmem:[#allocation2] sm:$0xe] }
 0x346   : > { %v14149_v33 = vadd.f32 %v4466_v52, %v13860_v59  ;;  %11193 = vmatmul.msk.bf16.gmra.mxu3 %vm1290_vm3, %v11712_v63  ;;  %7586 = vrot.lane.b32.xlu0 %v17289_v24, %s11839_s23  ;;  %v4638_v53 = vpop.f32.mrf.mxu2  ;;  %v5557_v63 = vor.u32 %v5556_v15, %v5553_v31  ;;  %v5563_v52 = vrot.slane %v5561_v51, 5  ;;  %v5392_v24 = vld [vmem:[#allocation2 + $0x4] sm:$0xf]  ;;  %v5458_v29 = vshrl.u32 %v5391_v56, 16 }
 0x347   : > { %v4699_v48 = vadd.f32 %v4638_v53, %v14072_v2  ;;  %v5461_v16 = vshll.u32 %v5391_v56, 16  ;;  %v5549_v35 = vrot.slane %v5548_v19, 4  ;;  %v5467_v38 = vshrl.u32 %v5392_v24, 16 }
 0x348   : > { %v5559_v2 = vrot.slane %v5557_v63, 4  ;;  %v5470_v9 = vshll.u32 %v5392_v24, 16  ;;  %v5567_v34 = vor.u32 %v5566_v14, %v5563_v52  ;;  %v5460_v53 = vrot.slane %v5458_v29, 5  ;;  %v17292_v24 = vld [vmem:[#allocation4_spill] sm:$0xff] }
 0x349   : > { %v14157_v59 = vpop.f32.mrf.mxu3  ;;  %v4735_v13 = vmul.f32 %v13906_v47, %v4699_v48  ;;  %v5463_v43 = vrot.slane %v5461_v16, 6  ;;  %v5469_v51 = vrot.slane %v5467_v38, 5  ;;  %v4834_v14 = vpack.c.bf16 %v4802_v18, %v4802_v18 }
 0x34a   : > { %v14154_v32 = vpop.f32.mrf.mxu0  ;;  %17290 = vst [vmem:[#allocation19_spill] sm:$0xff] %v14157_v59  ;;  %v5472_v48 = vrot.slane %v5470_v9, 6  ;;  %v5480_v9 = vshll.u32 %v5393_v5, 16 }
 0x34b   : > { %v4771_v0 = vadd.f32 %v13919_v54, %v4735_v13  ;;  %11113 = vmatmul.msk.bf16.gmra.mxu2 %vm1290_vm3, %v4587_v40  ;;  %v5568_v40 = vsel %vm12846_vm5, %v5559_v2, %v5567_v34 }
 0x34c   : > { %v5912_v16 = vunpack.c.l.b16 %v5568_v40 }
 0x34d   : > { %11215 = vmatmul.msk.bf16.gmra.mxu0 %vm1290_vm3, %v13844_v45  ;;  %v4469_v31 = vpop.f32.mrf.mxu1  ;;  %v5558_v45 = vsel %vm12846_vm5, %v5549_v35, %v5557_v63  ;;  %v4803_v56 = vmax.f32 %v4771_v0, 0.0  ;;  %v5464_v35 = vor.u32 %v5463_v43, %v5460_v53  ;;  %v5473_v63 = vor.u32 %v5472_v48, %v5469_v51  ;;  %v5403_v43 = vld [vmem:[#allocation2 + $0x30] sm:$0xe]  ;;  %v5404_v51 = vld [vmem:[#allocation2 + $0x34] sm:$0xf] }
 0x34e   : > { %v14167_v19 = vadd.f32 %v4469_v31, %v13871_v27  ;;  %7588 = vrot.lane.b32.xlu0 %v17292_v24, %s11839_s23  ;;  %v5911_v52 = vunpack.c.l.b16 %v5558_v45  ;;  %v4641_v29 = vpop.f32.mrf.mxu2  ;;  %v5479_v27 = vrot.slane %v5477_v10, 5  ;;  %v5482_v45 = vrot.slane %v5480_v9, 6 }
 0x34f   : > { %v4700_v38 = vadd.f32 %v4641_v29, %v14091_v58  ;;  %11235 = vmatmul.msk.bf16.gmra.mxu1 %vm1290_vm3, %v13786_v7  ;;  %v4835_v0 = vpack.c.bf16 %v4803_v56, %v4803_v56  ;;  %v5465_v24 = vrot.slane %v5464_v35, 4  ;;  %v5475_v34 = vrot.slane %v5473_v63, 4 }
 0x350   : > { %v14180_v2 = vpack.c.b16 %v5912_v16, %v5911_v52  ;;  %v7640_v58 = vunpack.c.l.b16 %v4834_v14  ;;  %v5483_v48 = vor.u32 %v5482_v45, %v5479_v27  ;;  %v5570_v7 = vshrl.u32 %v5403_v43, 16  ;;  %v17295_v16 = vld [vmem:[#allocation21_spill] sm:$0xff] }
 0x351   : > { %v14178_v31 = vpop.f32.mrf.mxu3  ;;  %v7641_v18 = vunpack.c.l.b16 %v4835_v0  ;;  %v5474_v53 = vsel %vm12846_vm5, %v5465_v24, %v5473_v63  ;;  %v5573_v5 = vshll.u32 %v5403_v43, 16  ;;  %v5579_v56 = vshrl.u32 %v5404_v51, 16  ;;  %v5405_v0 = vld [vmem:[#allocation2 + $0x38] sm:$0x3]  ;;  %v4861_v43 = vld [vmem:[%s17014_s10 + $0xe] sm:$0x3] }
 0x352   : > { %v14173_v13 = vpop.f32.mrf.mxu0  ;;  %17293 = vst [vmem:[#allocation18_spill] sm:$0xff] %v14178_v31  ;;  %v5905_v40 = vunpack.c.l.b16 %v5474_v53  ;;  %v5582_v29 = vshll.u32 %v5404_v51, 16  ;;  %v5484_v14 = vsel %vm12846_vm5, %v5475_v34, %v5483_v48  ;;  %v5572_v35 = vrot.slane %v5570_v7, 5  ;;  %v4859_v53 = vld [vmem:[%s17014_s10 + $0xa] sm:$0x3] }
 0x353   : > { %v14184_v31 = vpack.c.b16 %v7641_v18, %v7640_v58  ;;  %v5906_v9 = vunpack.c.l.b16 %v5484_v14  ;;  %v5575_v24 = vrot.slane %v5573_v5, 6  ;;  %v5581_v45 = vrot.slane %v5579_v56, 5  ;;  %v4862_v34 = vld [vmem:[%s17014_s10 + $0x10] sm:$0x3]  ;;  %v4856_v56 = vld [vmem:[%s17014_s10 + $0x4] sm:$0x3] }
 0x354   : > { %v5584_v18 = vrot.slane %v5582_v29, 6  ;;  %v7053_v48 = vsel %vm1366_vm0, %v4859_v53, 0  ;;  %v6454_v7 = vsel %vm1366_vm0, %v4861_v43, 0  ;;  %v4736_v5 = vmul.f32 %v13906_v47, %v4700_v38  ;;  %v5395_v14 = vld [vmem:[#allocation2 + $0x10] sm:$0xf] }
 0x355   : > { %v4471_v10 = vpop.f32.mrf.mxu1  ;;  %17294 = vst [vmem:[#allocation58_spill] sm:$0xff] %v14184_v31  ;;  %v5937_v58 = vpack.c.b16 %v5906_v9, %v5905_v40  ;;  %7062 = vmatpush.bf16.msra.mxu2 %v7053_v48  ;;  %v5576_v29 = vor.u32 %v5575_v24, %v5572_v35  ;;  %v5589_v40 = vshrl.u32 %v5405_v0, 16  ;;  %6463 = vmatpush.bf16.msra.mxu0 %v6454_v7  ;;  %v5592_v9 = vshll.u32 %v5405_v0, 16  ;;  %v17297_v0 = vld [vmem:[#allocation6_spill] sm:$0xff] }
 0x356   : > { %v14187_v52 = vadd.f32 %v4471_v10, %v13879_v20  ;;  %11266 = vmatmul.msk.bf16.vlgmr.msrb.gmra.mxu3 %vm1290_vm3, %v14180_v2  ;;  %7590 = vrot.lane.b32.xlu0 %v17295_v16, %s11839_s23  ;;  %v4643_v27 = vpop.f32.mrf.mxu2  ;;  %v5394_v10 = vld [vmem:[#allocation2 + $0xc] sm:$0xe]  ;;  %v5585_v16 = vor.u32 %v5584_v18, %v5581_v45  ;;  %v5495_v18 = vshrl.u32 %v5395_v14, 16  ;;  %v4772_v7 = vadd.f32 %v13919_v54, %v4736_v5 }
 0x357   : > { %v4701_v20 = vadd.f32 %v4643_v27, %v14110_v25  ;;  %v7225_v25 = vsel %vm1366_vm0, %v4862_v34, 0  ;;  %v6881_v27 = vsel %vm1366_vm0, %v4856_v56, 0  ;;  %v5486_v53 = vshrl.u32 %v5394_v10, 16 }
 0x358   : > { %7234 = vmatpush.bf16.msra.mxu3 %v7225_v25  ;;  %v5489_v43 = vshll.u32 %v5394_v10, 16  ;;  %6890 = vmatpush.bf16.msra.mxu1 %v6881_v27  ;;  %v5577_v38 = vrot.slane %v5576_v29, 4  ;;  %v5587_v34 = vrot.slane %v5585_v16, 4  ;;  %v5591_v48 = vrot.slane %v5589_v40, 5 }
 0x359   : > { %v14207_v51 = vpop.f32.mrf.mxu3  ;;  %v5594_v35 = vrot.slane %v5592_v9, 6  ;;  %v5488_v24 = vrot.slane %v5486_v53, 5  ;;  %v5498_v10 = vshll.u32 %v5395_v14, 16  ;;  %v5497_v9 = vrot.slane %v5495_v18, 5  ;;  %v5406_v18 = vld [vmem:[#allocation2 + $0x3c] sm:$0xe] }
 0x35a   : > { %v14195_v63 = vpop.f32.mrf.mxu0  ;;  %17296 = vst [vmem:[#allocation20_spill] sm:$0xff] %v14207_v51  ;;  %v5491_v45 = vrot.slane %v5489_v43, 6  ;;  %vm6669_vm0 = vcmask 1040384  }
 0x35b   : > { %11250 = vmatmul.msk.bf16.vlgmr.msrb.gmra.mxu2 %vm1290_vm3, %v5937_v58  ;;  %v5396_v58 = vld [vmem:[#allocation2 + $0x14] sm:$0x3]  ;;  %v5595_v40 = vor.u32 %v5594_v35, %v5591_v48  ;;  %v5500_v43 = vrot.slane %v5498_v10, 6  ;;  %v4804_v48 = vmax.f32 %v4772_v7, 0.0  ;;  %v5601_v7 = vshll.u32 %v5406_v18, 16  ;;  %vm14718_vm7 = vmor %vm6669_vm0, %vm6670_vm6 }
 0x35c   : > { %v5492_v27 = vor.u32 %v5491_v45, %v5488_v24  ;;  %v5508_v51 = vshll.u32 %v5396_v58, 16  ;;  %vm10047_vm6 = vcmask 1042432  }
 0x35d   : > { %11216 = vmatmul.msk.bf16.gmra.mxu0 %vm1290_vm3, %v13864_v6  ;;  %v4737_v6 = vmul.f32 %v13906_v47, %v4701_v20  ;;  %v4474_v31 = vpop.f32.mrf.mxu1  ;;  %v5586_v20 = vsel %vm12846_vm5, %v5577_v38, %v5585_v16  ;;  %v5596_v16 = vsel %vm12846_vm5, %v5587_v34, %v5595_v40  ;;  %v5505_v38 = vshrl.u32 %v5396_v58, 16 }
 0x35e   : > { %v14223_v25 = vadd.f32 %v4474_v31, %v13890_v46  ;;  %7592 = vrot.lane.b32.xlu0 %v17297_v0, %s11839_s23  ;;  %v4646_v29 = vpop.f32.mrf.mxu2  ;;  %v11776_v46 = vld [vmem:[#allocation2 + $0x60] sm:$0xff]  ;;  %v5913_v31 = vunpack.c.l.b16 %v5586_v20  ;;  %v5493_v14 = vrot.slane %v5492_v27, 4  ;;  %v5914_v35 = vunpack.c.l.b16 %v5596_v16 }
 0x35f   : > { %v4773_v53 = vadd.f32 %v13919_v54, %v4737_v6  ;;  %v4702_v5 = vadd.f32 %v4646_v29, %v14129_v55  ;;  %11236 = vmatmul.msk.bf16.gmra.mxu1 %vm1290_vm3, %v11776_v46  ;;  %v5501_v24 = vor.u32 %v5500_v43, %v5497_v9  ;;  %v5507_v45 = vrot.slane %v5505_v38, 5  ;;  %v5407_v55 = vld [vmem:[#allocation2 + $0x40] sm:$0xf]  ;;  %v5408_v27 = vld [vmem:[#allocation2 + $0x44] sm:$0x3] }
 0x360   : > { %v5510_v6 = vrot.slane %v5508_v51, 6  ;;  %v14238_v59 = vpack.c.b16 %v5914_v35, %v5913_v31  ;;  %v5598_v58 = vshrl.u32 %v5406_v18, 16  ;;  %v17299_v51 = vld [vmem:[#allocation42_spill] sm:$0xff]  ;;  %v5607_v31 = vshrl.u32 %v5407_v55, 16 }
 0x361   : > { %v14234_v0 = vpop.f32.mrf.mxu3  ;;  %v4805_v29 = vmax.f32 %v4773_v53, 0.0  ;;  %v5502_v20 = vsel %vm12846_vm5, %v5493_v14, %v5501_v24  ;;  %v5503_v10 = vrot.slane %v5501_v24, 4  ;;  %v4738_v46 = vmul.f32 %v13906_v47, %v4702_v5 }
 0x362   : > { %v14229_v56 = vpop.f32.mrf.mxu0  ;;  %17298 = vst [vmem:[#allocation22_spill] sm:$0xff] %v14234_v0  ;;  %v5511_v40 = vor.u32 %v5510_v6, %v5507_v45  ;;  %v5907_v53 = vunpack.c.l.b16 %v5502_v20  ;;  %v5610_v43 = vshll.u32 %v5407_v55, 16  ;;  %v5600_v38 = vrot.slane %v5598_v58, 5 }
 0x363   : > { %v5603_v35 = vrot.slane %v5601_v7, 6  ;;  %v5617_v24 = vshrl.u32 %v5408_v27, 16  ;;  %v14257_v18 = vpack.c.bf16 %v4805_v29, %v4805_v29  ;;  %v4774_v20 = vadd.f32 %v13919_v54, %v4738_v46 }
 0x364   : > { %v5512_v14 = vsel %vm12846_vm5, %v5503_v10, %v5511_v40  ;;  %v5612_v0 = vrot.slane %v5610_v43, 6  ;;  %v5514_v7 = vshrl.u32 %v5397_v37, 16  ;;  %v5399_v43 = vld [vmem:[#allocation2 + $0x20] sm:$0x3] }
 0x365   : > { %v4476_v34 = vpop.f32.mrf.mxu1  ;;  %v5908_v6 = vunpack.c.l.b16 %v5512_v14  ;;  %v5604_v55 = vor.u32 %v5603_v35, %v5600_v38  ;;  %v5619_v40 = vrot.slane %v5617_v24, 5  ;;  %v5523_v14 = vshrl.u32 %v5398_v26, 16 }
 0x366   : > { %v14244_v9 = vadd.f32 %v4476_v34, %v13909_v39  ;;  %11267 = vmatmul.msk.bf16.gmra.mxu3 %vm1290_vm3, %v14238_v59  ;;  %7594 = vrot.lane.b32.xlu0 %v17299_v51, %s11839_s23  ;;  %v4648_v5 = vpop.f32.mrf.mxu2  ;;  %v14254_v39 = vpack.c.bf16 %v4804_v48, %v4804_v48  ;;  %v5609_v51 = vrot.slane %v5607_v31, 5  ;;  %v5526_v38 = vshll.u32 %v5398_v26, 16 }
 0x367   : > { %v4703_v45 = vadd.f32 %v4648_v5, %v14149_v33  ;;  %v5938_v10 = vpack.c.b16 %v5908_v6, %v5907_v53  ;;  %v5620_v33 = vshll.u32 %v5408_v27, 16  ;;  %v5605_v58 = vrot.slane %v5604_v55, 4 }
 0x368   : > { %v5613_v29 = vor.u32 %v5612_v0, %v5609_v51  ;;  %v5517_v5 = vshll.u32 %v5397_v37, 16  ;;  %v5516_v53 = vrot.slane %v5514_v7, 5  ;;  %v4806_v27 = vmax.f32 %v4774_v20, 0.0 }
 0x369   : > { %v14260_v34 = vpop.f32.mrf.mxu3  ;;  %v4739_v48 = vmul.f32 %v13906_v47, %v4703_v45  ;;  %v5622_v31 = vrot.slane %v5620_v33, 6  ;;  %v5525_v51 = vrot.slane %v5523_v14, 5  ;;  %v5533_v26 = vshrl.u32 %v5399_v43, 16 }
 0x36a   : > { %v14250_v16 = vpop.f32.mrf.mxu0  ;;  %v5615_v47 = vrot.slane %v5613_v29, 4  ;;  %v5519_v24 = vrot.slane %v5517_v5, 6 }
 0x36b   : > { %v4775_v46 = vadd.f32 %v13919_v54, %v4739_v48  ;;  %11251 = vmatmul.msk.bf16.gmra.mxu2 %vm1290_vm3, %v5938_v10  ;;  %v5623_v37 = vor.u32 %v5622_v31, %v5619_v40  ;;  %v5528_v48 = vrot.slane %v5526_v38, 6  ;;  %v7642_v31 = vunpack.c.l.b16 %v14254_v39  ;;  %v5410_v39 = vld [vmem:[#allocation2 + $0x4c] sm:$0xf] }
 0x36c   : > { %v5520_v55 = vor.u32 %v5519_v24, %v5516_v53  ;;  %v5535_v14 = vrot.slane %v5533_v26, 5  ;;  %v5409_v24 = vld [vmem:[#allocation2 + $0x48] sm:$0xe]  ;;  %v5635_v26 = vshrl.u32 %v5410_v39, 16 }
 0x36d   : > { %11217 = vmatmul.msk.bf16.gmra.mxu0 %vm1290_vm3, %v13883_v8  ;;  %v4479_v35 = vpop.f32.mrf.mxu1  ;;  %v5614_v8 = vsel %vm12846_vm5, %v5605_v58, %v5613_v29  ;;  %v4807_v10 = vmax.f32 %v4775_v46, 0.0  ;;  %v11777_v58 = vld [vmem:[#allocation2 + $0x6c] sm:$0xff]  ;;  %v5624_v20 = vsel %vm12846_vm5, %v5615_v47, %v5623_v37  ;;  %v5529_v5 = vor.u32 %v5528_v48, %v5525_v51  ;;  %v14284_v46 = vld [vmem:[%s17012_s8] ss:$0 sm:$0xff] }
 0x36e   : > { %v14270_v0 = vadd.f32 %v4479_v35, %v13928_v60  ;;  %v5915_v45 = vunpack.c.l.b16 %v5614_v8  ;;  %v4651_v6 = vpop.f32.mrf.mxu2  ;;  %v5536_v60 = vshll.u32 %v5399_v43, 16  ;;  %v5916_v40 = vunpack.c.l.b16 %v5624_v20 }
 0x36f   : > { %v4704_v33 = vadd.f32 %v4651_v6, %v14167_v19  ;;  %11237 = vmatmul.msk.bf16.gmra.mxu1 %vm1290_vm3, %v11777_v58  ;;  %v5521_v7 = vrot.slane %v5520_v55, 4  ;;  %v7643_v35 = vunpack.c.l.b16 %v14257_v18  ;;  %v4838_v8 = vpack.c.bf16 %v4806_v27, %v4806_v27  ;;  %v5411_v58 = vld [vmem:[#allocation2 + $0x50] sm:$0x3]  ;;  %v14297_v18 = vld [vmem:[%s17013_s9] ss:$0 sm:$0xff] }
 0x370   : > { %v5538_v38 = vrot.slane %v5536_v60, 6  ;;  %v14288_v43 = vpack.c.b16 %v5916_v40, %v5915_v45  ;;  %v5531_v53 = vrot.slane %v5529_v5, 4  ;;  %v5626_v55 = vshrl.u32 %v5409_v24, 16 }
 0x371   : > { %v14278_v29 = vpop.f32.mrf.mxu3  ;;  %v4740_v19 = vmul.f32 %v14284_v46, %v4704_v33  ;;  %v5530_v47 = vsel %vm12846_vm5, %v5521_v7, %v5529_v5  ;;  %v4839_v51 = vpack.c.bf16 %v4807_v10, %v4807_v10  ;;  %v5629_v33 = vshll.u32 %v5409_v24, 16 }
 0x372   : > { %v14272_v54 = vpop.f32.mrf.mxu0  ;;  %v5539_v37 = vor.u32 %v5538_v38, %v5535_v14  ;;  %v5909_v6 = vunpack.c.l.b16 %v5530_v47  ;;  %v5638_v20 = vshll.u32 %v5410_v39, 16  ;;  %v14292_v60 = vpack.c.b16 %v7643_v35, %v7642_v31 }
 0x373   : > { %v4776_v27 = vadd.f32 %v14297_v18, %v4740_v19  ;;  %v5628_v40 = vrot.slane %v5626_v55, 5  ;;  %v5631_v14 = vrot.slane %v5629_v33, 6  ;;  %v5637_v38 = vrot.slane %v5635_v26, 5 }
 0x374   : > { %17300 = vst [vmem:[#allocation23_spill] sm:$0xff] %v14292_v60  ;;  %v5540_v10 = vsel %vm12846_vm5, %v5531_v53, %v5539_v37  ;;  %v5640_v35 = vrot.slane %v5638_v20, 6  ;;  %v5645_v19 = vshrl.u32 %v5411_v58, 16  ;;  %v14312_v60 = vld [vmem:[#allocation2 + $0x90] sm:$0xff]  ;;  %v5648_v55 = vshll.u32 %v5411_v58, 16 }
 0x375   : > { %v4481_v48 = vpop.f32.mrf.mxu1  ;;  %v5910_v31 = vunpack.c.l.b16 %v5540_v10  ;;  %v5632_v39 = vor.u32 %v5631_v14, %v5628_v40  ;;  %v4808_v33 = vmax.f32 %v4776_v27, 0.0  ;;  %v7644_v20 = vunpack.c.l.b16 %v4838_v8 }
 0x376   : > { %v14301_v45 = vadd.f32 %v4481_v48, %v13943_v3  ;;  %11268 = vmatmul.msk.bf16.gmra.mxu3 %vm1290_vm3, %v14288_v43  ;;  %v4653_v5 = vpop.f32.mrf.mxu2  ;;  %v5641_v48 = vor.u32 %v5640_v35, %v5637_v38  ;;  %v5647_v37 = vrot.slane %v5645_v19, 5  ;;  %v7645_v10 = vunpack.c.l.b16 %v4839_v51 }
 0x377   : > { %v4705_v47 = vadd.f32 %v4653_v5, %v14187_v52  ;;  %v5939_v3 = vpack.c.b16 %v5910_v31, %v5909_v6  ;;  %v5633_v26 = vrot.slane %v5632_v39, 4  ;;  %v5650_v40 = vrot.slane %v5648_v55, 6 }
 0x378   : > { %v5643_v6 = vrot.slane %v5641_v48, 4  ;;  %v14321_v14 = vpack.c.b16 %v7645_v10, %v7644_v20  ;;  %v4840_v8 = vpack.c.bf16 %v4808_v33, %v4808_v33  ;;  %v5413_v33 = vld [vmem:[#allocation2 + $0x58] sm:$0xf] }
 0x379   : > { %v14310_v24 = vpop.f32.mrf.mxu3  ;;  %v4741_v53 = vmul.f32 %v14284_v46, %v4705_v47  ;;  %v5642_v31 = vsel %vm12846_vm5, %v5633_v26, %v5641_v48  ;;  %v5651_v58 = vor.u32 %v5650_v40, %v5647_v37  ;;  %v5412_v26 = vld [vmem:[#allocation2 + $0x54] sm:$0xe]  ;;  %v5663_v40 = vshrl.u32 %v5413_v33, 16 }
 0x37a   : > { %v14307_v7 = vpop.f32.mrf.mxu0  ;;  %17301 = vst [vmem:[#allocation45_spill] sm:$0xff] %v14321_v14  ;;  %v5917_v47 = vunpack.c.l.b16 %v5642_v31  ;;  %v7646_v20 = vunpack.c.l.b16 %v4840_v8  ;;  %v5414_v31 = vld [vmem:[#allocation2 + $0x5c] sm:$0x3] }
 0x37b   : > { %v4777_v52 = vadd.f32 %v14297_v18, %v4741_v53  ;;  %11252 = vmatmul.msk.bf16.gmra.mxu2 %vm1290_vm3, %v5939_v3  ;;  %v11781_v3 = vld [vmem:[#allocation2 + $0x78] sm:$0xff]  ;;  %v5652_v39 = vsel %vm12846_vm5, %v5643_v6, %v5651_v58 }
 0x37c   : > { %v5918_v53 = vunpack.c.l.b16 %v5652_v39  ;;  %v5665_v39 = vrot.slane %v5663_v40, 5 }
 0x37d   : > { %11218 = vmatmul.msk.bf16.gmra.mxu0 %vm1290_vm3, %v14312_v60  ;;  %v4484_v5 = vpop.f32.mrf.mxu1  ;;  %v4809_v38 = vmax.f32 %v4777_v52, 0.0  ;;  %v5654_v52 = vshrl.u32 %v5412_v26, 16 }
 0x37e   : > { %v14324_v35 = vadd.f32 %v4484_v5, %v13963_v30  ;;  %v4656_v51 = vpop.f32.mrf.mxu2  ;;  %v14335_v37 = vpack.c.b16 %v5918_v53, %v5917_v47 }
 0x37f   : > { %v4706_v19 = vadd.f32 %v4656_v51, %v14223_v25  ;;  %11238 = vmatmul.msk.bf16.gmra.mxu1 %vm1290_vm3, %v11781_v3  ;;  %v4841_v55 = vpack.c.bf16 %v4809_v38, %v4809_v38  ;;  %v5657_v25 = vshll.u32 %v5412_v26, 16  ;;  %v5666_v51 = vshll.u32 %v5413_v33, 16 }
 0x380   : > { %v5656_v58 = vrot.slane %v5654_v52, 5  ;;  %v5676_v26 = vshll.u32 %v5414_v31, 16 }
 0x381   : > { %v14332_v48 = vpop.f32.mrf.mxu3  ;;  %v4742_v30 = vmul.f32 %v14284_v46, %v4706_v19  ;;  %v7647_v10 = vunpack.c.l.b16 %v4841_v55  ;;  %v5659_v47 = vrot.slane %v5657_v25, 6  ;;  %v5668_v53 = vrot.slane %v5666_v51, 6 }
 0x382   : > { %v14326_v27 = vpop.f32.mrf.mxu0  ;;  %17302 = vst [vmem:[#allocation25_spill] sm:$0xff] %v14332_v48  ;;  %v5673_v55 = vshrl.u32 %v5414_v31, 16 }
 0x383   : > { %v14337_v3 = vpack.c.b16 %v7647_v10, %v7646_v20  ;;  %v4778_v6 = vadd.f32 %v14297_v18, %v4742_v30  ;;  %v5660_v20 = vor.u32 %v5659_v47, %v5656_v58  ;;  %v5669_v30 = vor.u32 %v5668_v53, %v5665_v39 }
 0x385   : > { %v4486_v5 = vpop.f32.mrf.mxu1  ;;  %17303 = vst [vmem:[#allocation24_spill] sm:$0xff] %v14337_v3  ;;  %v14350_v3 = vld [vmem:[#allocation2 + $0x9c] sm:$0xff]  ;;  %v5661_v25 = vrot.slane %v5660_v20, 4  ;;  %v4810_v40 = vmax.f32 %v4778_v6, 0.0  ;;  %v5671_v51 = vrot.slane %v5669_v30, 4 }
 0x386   : > { %v14341_v38 = vadd.f32 %v4486_v5, %v13982_v4  ;;  %11269 = vmatmul.msk.bf16.gmra.mxu3 %vm1290_vm3, %v14335_v37  ;;  %v4658_v19 = vpop.f32.mrf.mxu2  ;;  %v5675_v4 = vrot.slane %v5673_v55, 5  ;;  %v5678_v5 = vrot.slane %v5676_v26, 6 }
 0x387   : > { %v4707_v33 = vadd.f32 %v4658_v19, %v14244_v9  ;;  %v5670_v9 = vsel %vm12846_vm5, %v5661_v25, %v5669_v30  ;;  %v4842_v26 = vpack.c.bf16 %v4810_v40, %v4810_v40  ;;  %v5416_v25 = vld [vmem:[#allocation2 + $0x64] sm:$0xf] }
 0x388   : > { %v5679_v14 = vor.u32 %v5678_v5, %v5675_v4  ;;  %v5919_v53 = vunpack.c.l.b16 %v5670_v9  ;;  %v5691_v40 = vshrl.u32 %v5416_v25, 16 }
 0x389   : > { %v14348_v10 = vpop.f32.mrf.mxu3  ;;  %v4743_v52 = vmul.f32 %v14284_v46, %v4707_v33 }
 0x38a   : > { %v14345_v8 = vpop.f32.mrf.mxu0  ;;  %17304 = vst [vmem:[#allocation47_spill] sm:$0xff] %v14348_v10  ;;  %v5680_v47 = vsel %vm12846_vm5, %v5671_v51, %v5679_v14  ;;  %v7648_v51 = vunpack.c.l.b16 %v4842_v26 }
 0x38b   : > { %v4779_v31 = vadd.f32 %v14297_v18, %v4743_v52  ;;  %11253 = vmatmul.msk.bf16.gmra.mxu2 %vm1290_vm3, %v14180_v2  ;;  %v5920_v6 = vunpack.c.l.b16 %v5680_v47  ;;  %v11783_v2 = vld [vmem:[#allocation2 + $0x84] sm:$0xff]  ;;  %v5415_v52 = vld [vmem:[#allocation2 + $0x60] sm:$0xe] }
 0x38c   : > { %v5685_v9 = vshll.u32 %v5415_v52, 16  ;;  %v5417_v47 = vld [vmem:[#allocation2 + $0x68] sm:$0x3] }
 0x38d   : > { %11219 = vmatmul.msk.bf16.gmra.mxu0 %vm1290_vm3, %v14350_v3  ;;  %v4489_v58 = vpop.f32.mrf.mxu1  ;;  %v4811_v19 = vmax.f32 %v4779_v31, 0.0  ;;  %v14372_v5 = vpack.c.b16 %v5920_v6, %v5919_v53  ;;  %v5682_v31 = vshrl.u32 %v5415_v52, 16  ;;  %v5704_v10 = vshll.u32 %v5417_v47, 16 }
 0x38e   : > { %v14363_v39 = vadd.f32 %v4489_v58, %v13999_v21  ;;  %v4661_v33 = vpop.f32.mrf.mxu2  ;;  %v5687_v6 = vrot.slane %v5685_v9, 6 }
 0x38f   : > { %v4708_v20 = vadd.f32 %v4661_v33, %v14270_v0  ;;  %11239 = vmatmul.msk.bf16.gmra.mxu1 %vm1290_vm3, %v11783_v2  ;;  %v4843_v30 = vpack.c.bf16 %v4811_v19, %v4811_v19  ;;  %v5694_v0 = vshll.u32 %v5416_v25, 16  ;;  %v5684_v53 = vrot.slane %v5682_v31, 5 }
 0x391   : > { %v14369_v4 = vpop.f32.mrf.mxu3  ;;  %v4744_v14 = vmul.f32 %v14284_v46, %v4708_v20  ;;  %v7649_v21 = vunpack.c.l.b16 %v4843_v30  ;;  %v5693_v30 = vrot.slane %v5691_v40, 5  ;;  %v5696_v52 = vrot.slane %v5694_v0, 6 }
 0x392   : > { %v14365_v55 = vpop.f32.mrf.mxu0  ;;  %17305 = vst [vmem:[#allocation29_spill] sm:$0xff] %v14369_v4  ;;  %v5701_v4 = vshrl.u32 %v5417_v47, 16  ;;  %v5688_v25 = vor.u32 %v5687_v6, %v5684_v53 }
 0x393   : > { %v14374_v33 = vpack.c.b16 %v7649_v21, %v7648_v51  ;;  %v4780_v19 = vadd.f32 %v14297_v18, %v4744_v14  ;;  %v5697_v14 = vor.u32 %v5696_v52, %v5693_v30 }
 0x394   : > { %v5689_v9 = vrot.slane %v5688_v25, 4 }
 0x395   : > { %v4491_v58 = vpop.f32.mrf.mxu1  ;;  %17306 = vst [vmem:[#allocation28_spill] sm:$0xff] %v14374_v33  ;;  %v14387_v33 = vld [vmem:[#allocation2 + $0xa8] sm:$0xff]  ;;  %v4812_v40 = vmax.f32 %v4780_v19, 0.0  ;;  %v5699_v0 = vrot.slane %v5697_v14, 4 }
 0x396   : > { %v14378_v2 = vadd.f32 %v4491_v58, %v14017_v28  ;;  %11270 = vmatmul.msk.bf16.gmra.mxu3 %vm1290_vm3, %v14372_v5  ;;  %v4663_v26 = vpop.f32.mrf.mxu2  ;;  %v5703_v28 = vrot.slane %v5701_v4, 5  ;;  %v5706_v58 = vrot.slane %v5704_v10, 6 }
 0x397   : > { %v4709_v21 = vadd.f32 %v4663_v26, %v14301_v45  ;;  %v5698_v45 = vsel %vm12846_vm5, %v5689_v9, %v5697_v14  ;;  %v4844_v52 = vpack.c.bf16 %v4812_v40, %v4812_v40 }
 0x398   : > { %v5707_v48 = vor.u32 %v5706_v58, %v5703_v28  ;;  %v5921_v26 = vunpack.c.l.b16 %v5698_v45  ;;  %v5418_v58 = vld [vmem:[#allocation2 + $0x6c] sm:$0xe] }
 0x399   : > { %v14385_v51 = vpop.f32.mrf.mxu3  ;;  %v4745_v31 = vmul.f32 %v14284_v46, %v4709_v21  ;;  %v7650_v9 = vunpack.c.l.b16 %v4844_v52 }
 0x39a   : > { %v14382_v20 = vpop.f32.mrf.mxu0  ;;  %17307 = vst [vmem:[#allocation9_spill] sm:$0xff] %v14385_v51  ;;  %v5708_v4 = vsel %vm12846_vm5, %v5699_v0, %v5707_v48  ;;  %v5710_v0 = vshrl.u32 %v5418_v58, 16 }
 0x39b   : > { %v4781_v47 = vadd.f32 %v14297_v18, %v4745_v31  ;;  %11254 = vmatmul.msk.bf16.gmra.mxu2 %vm1290_vm3, %v14238_v59  ;;  %v5922_v19 = vunpack.c.l.b16 %v5708_v4  ;;  %v5419_v31 = vld [vmem:[#allocation2 + $0x70] sm:$0xf] }
 0x39c   : > { %v5719_v40 = vshrl.u32 %v5419_v31, 16 }
 0x39d   : > { %11220 = vmatmul.msk.bf16.gmra.mxu0 %vm1290_vm3, %v14387_v33  ;;  %v4494_v10 = vpop.f32.mrf.mxu1  ;;  %v4813_v53 = vmax.f32 %v4781_v47, 0.0  ;;  %v14410_v28 = vpack.c.b16 %v5922_v19, %v5921_v26  ;;  %v5713_v47 = vshll.u32 %v5418_v58, 16  ;;  %v5712_v26 = vrot.slane %v5710_v0, 5 }
 0x39e   : > { %v14400_v6 = vadd.f32 %v4494_v10, %v14039_v17  ;;  %v4666_v21 = vpop.f32.mrf.mxu2  ;;  %v5420_v10 = vld [vmem:[#allocation2 + $0x74] sm:$0x3] }
 0x39f   : > { %v4710_v25 = vadd.f32 %v4666_v21, %v14324_v35  ;;  %11240 = vmatmul.msk.bf16.gmra.mxu1 %vm1290_vm3, %v14312_v60  ;;  %v4845_v59 = vpack.c.bf16 %v4813_v53, %v4813_v53  ;;  %v5722_v35 = vshll.u32 %v5419_v31, 16  ;;  %v5715_v19 = vrot.slane %v5713_v47, 6 }
 0x3a0   : > { %v5729_v58 = vshrl.u32 %v5420_v10, 16 }
 0x3a1   : > { %v14407_v14 = vpop.f32.mrf.mxu3  ;;  %v4746_v48 = vmul.f32 %v14284_v46, %v4710_v25  ;;  %v7651_v17 = vunpack.c.l.b16 %v4845_v59  ;;  %v5721_v25 = vrot.slane %v5719_v40, 5  ;;  %v5724_v59 = vrot.slane %v5722_v35, 6 }
 0x3a2   : > { %v14402_v30 = vpop.f32.mrf.mxu0  ;;  %17308 = vst [vmem:[#allocation8_spill] sm:$0xff] %v14407_v14  ;;  %v5732_v14 = vshll.u32 %v5420_v10, 16  ;;  %v5716_v31 = vor.u32 %v5715_v19, %v5712_v26 }
 0x3a3   : > { %v14412_v4 = vpack.c.b16 %v7651_v17, %v7650_v9  ;;  %v4782_v60 = vadd.f32 %v14297_v18, %v4746_v48  ;;  %v5725_v48 = vor.u32 %v5724_v59, %v5721_v25 }
 0x3a4   : > { %v5717_v47 = vrot.slane %v5716_v31, 4 }
 0x3a5   : > { %v4496_v45 = vpop.f32.mrf.mxu1  ;;  %17309 = vst [vmem:[#allocation33_spill] sm:$0xff] %v14412_v4  ;;  %v14425_v4 = vld [vmem:[#allocation2 + $0xb4] sm:$0xff]  ;;  %v4814_v40 = vmax.f32 %v4782_v60, 0.0  ;;  %v5727_v35 = vrot.slane %v5725_v48, 4 }
 0x3a6   : > { %v14416_v53 = vadd.f32 %v4496_v45, %v14057_v11  ;;  %11271 = vmatmul.msk.bf16.gmra.mxu3 %vm1290_vm3, %v14410_v28  ;;  %v4668_v52 = vpop.f32.mrf.mxu2  ;;  %v5731_v11 = vrot.slane %v5729_v58, 5  ;;  %v5734_v45 = vrot.slane %v5732_v14, 6 }
 0x3a7   : > { %v4711_v17 = vadd.f32 %v4668_v52, %v14341_v38  ;;  %v5726_v38 = vsel %vm12846_vm5, %v5717_v47, %v5725_v48  ;;  %v4846_v58 = vpack.c.bf16 %v4814_v40, %v4814_v40 }
 0x3a8   : > { %v5735_v51 = vor.u32 %v5734_v45, %v5731_v11  ;;  %v5923_v25 = vunpack.c.l.b16 %v5726_v38  ;;  %v5421_v45 = vld [vmem:[#allocation2 + $0x78] sm:$0xe] }
 0x3a9   : > { %v14423_v9 = vpop.f32.mrf.mxu3  ;;  %v4747_v0 = vmul.f32 %v14284_v46, %v4711_v17  ;;  %v7652_v47 = vunpack.c.l.b16 %v4846_v58 }
 0x3aa   : > { %v14420_v21 = vpop.f32.mrf.mxu0  ;;  %17310 = vst [vmem:[#allocation32_spill] sm:$0xff] %v14423_v9  ;;  %v5736_v26 = vsel %vm12846_vm5, %v5727_v35, %v5735_v51  ;;  %v5738_v35 = vshrl.u32 %v5421_v45, 16 }
 0x3ab   : > { %v4783_v10 = vadd.f32 %v14297_v18, %v4747_v0  ;;  %11255 = vmatmul.msk.bf16.gmra.mxu2 %vm1290_vm3, %v14288_v43  ;;  %v5924_v60 = vunpack.c.l.b16 %v5736_v26  ;;  %v5422_v0 = vld [vmem:[#allocation2 + $0x7c] sm:$0xf] }
 0x3ac   : > { %v5747_v40 = vshrl.u32 %v5422_v0, 16 }
 0x3ad   : > { %11221 = vmatmul.msk.bf16.gmra.mxu0 %vm1290_vm3, %v14425_v4  ;;  %v4499_v14 = vpop.f32.mrf.mxu1  ;;  %v4815_v19 = vmax.f32 %v4783_v10, 0.0  ;;  %v14448_v11 = vpack.c.b16 %v5924_v60, %v5923_v25  ;;  %v5741_v10 = vshll.u32 %v5421_v45, 16  ;;  %v5740_v25 = vrot.slane %v5738_v35, 5 }
 0x3ae   : > { %v14438_v52 = vadd.f32 %v4499_v14, %v14078_v57  ;;  %v4671_v17 = vpop.f32.mrf.mxu2  ;;  %v5423_v14 = vld [vmem:[#allocation2 + $0x80] sm:$0x3] }
 0x3af   : > { %v4712_v31 = vadd.f32 %v4671_v17, %v14363_v39  ;;  %11241 = vmatmul.msk.bf16.gmra.mxu1 %vm1290_vm3, %v14350_v3  ;;  %v4847_v43 = vpack.c.bf16 %v4815_v19, %v4815_v19  ;;  %v5750_v39 = vshll.u32 %v5422_v0, 16  ;;  %v5743_v60 = vrot.slane %v5741_v10, 6 }
 0x3b0   : > { %v5757_v45 = vshrl.u32 %v5423_v14, 16 }
 0x3b1   : > { %v14445_v48 = vpop.f32.mrf.mxu3  ;;  %v4748_v51 = vmul.f32 %v14284_v46, %v4712_v31  ;;  %v7653_v57 = vunpack.c.l.b16 %v4847_v43  ;;  %v5749_v31 = vrot.slane %v5747_v40, 5  ;;  %v5752_v43 = vrot.slane %v5750_v39, 6 }
 0x3b2   : > { %v14440_v59 = vpop.f32.mrf.mxu0  ;;  %17311 = vst [vmem:[#allocation7_spill] sm:$0xff] %v14445_v48  ;;  %v5760_v48 = vshll.u32 %v5423_v14, 16  ;;  %v5744_v0 = vor.u32 %v5743_v60, %v5740_v25  ;;  %v5164_v14 = vadd.f32 %v14115_v61, %v13892_v42 }
 0x3b3   : > { %v14450_v26 = vpack.c.b16 %v7653_v57, %v7652_v47  ;;  %v4784_v3 = vadd.f32 %v14297_v18, %v4748_v51  ;;  %v5753_v51 = vor.u32 %v5752_v43, %v5749_v31 }
 0x3b4   : > { %v5745_v10 = vrot.slane %v5744_v0, 4 }
 0x3b5   : > { %v4501_v38 = vpop.f32.mrf.mxu1  ;;  %17312 = vst [vmem:[#allocation36_spill] sm:$0xff] %v14450_v26  ;;  %v4816_v26 = vmax.f32 %v4784_v3, 0.0  ;;  %v5755_v9 = vrot.slane %v5753_v51, 4 }
 0x3b6   : > { %v14454_v19 = vadd.f32 %v4501_v38, %v14096_v12  ;;  %11272 = vmatmul.msk.bf16.gmra.mxu3 %vm1290_vm3, %v14448_v11  ;;  %v4673_v58 = vpop.f32.mrf.mxu2  ;;  %v5759_v12 = vrot.slane %v5757_v45, 5  ;;  %v5762_v38 = vrot.slane %v5760_v48, 6  ;;  %v5754_v48 = vsel %vm12846_vm5, %v5745_v10, %v5753_v51 }
 0x3b7   : > { %v4713_v57 = vadd.f32 %v4673_v58, %v14378_v2  ;;  %v5925_v3 = vunpack.c.l.b16 %v5754_v48  ;;  %v4848_v42 = vpack.c.bf16 %v4816_v26, %v4816_v26  ;;  %v5166_v26 = vadd.f32 %v14133_v22, %v13913_v41 }
 0x3b8   : > { %v5763_v40 = vor.u32 %v5762_v38, %v5759_v12  ;;  %v5424_v12 = vld [vmem:[#allocation2 + $0x84] sm:$0xe]  ;;  %v5425_v38 = vld [vmem:[#allocation2 + $0x88] sm:$0xf] }
 0x3b9   : > { %v14461_v47 = vpop.f32.mrf.mxu3  ;;  %v4749_v35 = vmul.f32 %v14284_v46, %v4713_v57  ;;  %v5766_v10 = vshrl.u32 %v5424_v12, 16 }
 0x3ba   : > { %v14458_v17 = vpop.f32.mrf.mxu0  ;;  %v5764_v25 = vsel %vm12846_vm5, %v5755_v9, %v5763_v40  ;;  %v5769_v40 = vshll.u32 %v5424_v12, 16 }
 0x3bb   : > { %v4785_v2 = vadd.f32 %v14297_v18, %v4749_v35  ;;  %11256 = vmatmul.msk.bf16.gmra.mxu2 %vm1290_vm3, %v14335_v37  ;;  %v5926_v31 = vunpack.c.l.b16 %v5764_v25  ;;  %v7654_v35 = vunpack.c.l.b16 %v4848_v42 }
 0x3bd   : > { %11282 = vmatmul.msk.bf16.vlgmr.msra.gmra.mxu0 %vm1290_vm3, %v14335_v37  ;;  %v5279_v39 = vpop.f32.mrf.mxu1  ;;  %v4817_v60 = vmax.f32 %v4785_v2, 0.0  ;;  %v14485_v9 = vpack.c.b16 %v5926_v31, %v5925_v3  ;;  %v5426_v2 = vld [vmem:[#allocation2 + $0x8c] sm:$0x3]  ;;  %v5771_v3 = vrot.slane %v5769_v40, 6 }
 0x3be   : > { %v14475_v58 = vadd.f32 %v5279_v39, %v5164_v14  ;;  %v4676_v61 = vpop.f32.mrf.mxu2 }
 0x3bf   : > { %v4714_v45 = vadd.f32 %v4676_v61, %v14400_v6  ;;  %11242 = vmatmul.msk.bf16.gmra.mxu1 %vm1290_vm3, %v14387_v33  ;;  %v4849_v37 = vpack.c.bf16 %v4817_v60, %v4817_v60  ;;  %v5775_v6 = vshrl.u32 %v5425_v38, 16  ;;  %v5778_v33 = vshll.u32 %v5425_v38, 16 }
 0x3c0   : > { %v5768_v60 = vrot.slane %v5766_v10, 5  ;;  %v5785_v61 = vshrl.u32 %v5426_v2, 16 }
 0x3c1   : > { %v14482_v57 = vpop.f32.mrf.mxu3  ;;  %v4750_v0 = vmul.f32 %v14284_v46, %v4714_v45  ;;  %v7655_v51 = vunpack.c.l.b16 %v4849_v37  ;;  %v5777_v22 = vrot.slane %v5775_v6, 5  ;;  %v5780_v42 = vrot.slane %v5778_v33, 6  ;;  %v17314_v33 = vld [vmem:[#allocation13_spill] sm:$0xff] }
 0x3c2   : > { %v14477_v43 = vpop.f32.mrf.mxu0  ;;  %v5788_v45 = vshll.u32 %v5426_v2, 16  ;;  %v5787_v38 = vrot.slane %v5785_v61, 5  ;;  %v5169_v2 = vadd.f32 %v14154_v32, %v17314_v33 }
 0x3c3   : > { %v14489_v48 = vpack.c.b16 %v7655_v51, %v7654_v35  ;;  %v4786_v39 = vadd.f32 %v14297_v18, %v4750_v0  ;;  %v5772_v51 = vor.u32 %v5771_v3, %v5768_v60  ;;  %v5781_v0 = vor.u32 %v5780_v42, %v5777_v22 }
 0x3c4   : > { %v5790_v35 = vrot.slane %v5788_v45, 6 }
 0x3c5   : > { %v5281_v14 = vpop.f32.mrf.mxu1  ;;  %17313 = vst [vmem:[#allocation35_spill] sm:$0xff] %v14489_v48  ;;  %v5773_v10 = vrot.slane %v5772_v51, 4  ;;  %v4818_v40 = vmax.f32 %v4786_v39, 0.0 }
 0x3c6   : > { %v14492_v25 = vadd.f32 %v5281_v14, %v5166_v26  ;;  %11273 = vmatmul.msk.bf16.gmra.mxu3 %vm1290_vm3, %v14485_v9  ;;  %v4678_v41 = vpop.f32.mrf.mxu2  ;;  %v5783_v14 = vrot.slane %v5781_v0, 4  ;;  %v5791_v6 = vor.u32 %v5790_v35, %v5787_v38 }
 0x3c7   : > { %v4715_v37 = vadd.f32 %v4678_v41, %v14416_v53  ;;  %v5782_v60 = vsel %vm12846_vm5, %v5773_v10, %v5781_v0  ;;  %v4850_v32 = vpack.c.bf16 %v4818_v40, %v4818_v40  ;;  %v5427_v10 = vld [vmem:[#allocation2 + $0x90] sm:$0xe]  ;;  %v5171_v40 = vadd.f32 %v14173_v13, %v13947_v49 }
 0x3c8   : > { %v5792_v41 = vsel %vm12846_vm5, %v5783_v14, %v5791_v6  ;;  %v5927_v39 = vunpack.c.l.b16 %v5782_v60  ;;  %v5428_v14 = vld [vmem:[#allocation2 + $0x94] sm:$0xf]  ;;  %v5794_v33 = vshrl.u32 %v5427_v10, 16  ;;  %v5429_v60 = vld [vmem:[#allocation2 + $0x98] sm:$0x3] }
 0x3c9   : > { %v14499_v12 = vpop.f32.mrf.mxu3  ;;  %v4751_v26 = vmul.f32 %v14284_v46, %v4715_v37  ;;  %v5928_v61 = vunpack.c.l.b16 %v5792_v41  ;;  %v7656_v6 = vunpack.c.l.b16 %v4850_v32 }
 0x3ca   : > { %v14496_v31 = vpop.f32.mrf.mxu0 }
 0x3cb   : > { %v4787_v53 = vadd.f32 %v14297_v18, %v4751_v26  ;;  %11257 = vmatmul.msk.bf16.gmra.mxu2 %vm1290_vm3, %v14372_v5  ;;  %v14523_v35 = vpack.c.b16 %v5928_v61, %v5927_v39  ;;  %v5796_v39 = vrot.slane %v5794_v33, 5 }
 0x3cd   : > { %11283 = vmatmul.msk.bf16.gmra.mxu0 %vm1290_vm3, %v14372_v5  ;;  %v5284_v3 = vpop.f32.mrf.mxu1  ;;  %v4819_v22 = vmax.f32 %v4787_v53, 0.0 }
 0x3ce   : > { %v14513_v42 = vadd.f32 %v5284_v3, %v5169_v2  ;;  %v4681_v37 = vpop.f32.mrf.mxu2  ;;  %v5797_v2 = vshll.u32 %v5427_v10, 16 }
 0x3cf   : > { %v4716_v51 = vadd.f32 %v4681_v37, %v14438_v52  ;;  %11243 = vmatmul.msk.bf16.gmra.mxu1 %vm1290_vm3, %v14425_v4  ;;  %v4851_v5 = vpack.c.bf16 %v4819_v22, %v4819_v22  ;;  %v5803_v52 = vshrl.u32 %v5428_v14, 16  ;;  %v5806_v4 = vshll.u32 %v5428_v14, 16 }
 0x3d0   : > { %v5799_v61 = vrot.slane %v5797_v2, 6 }
 0x3d1   : > { %v14520_v0 = vpop.f32.mrf.mxu3  ;;  %v4752_v38 = vmul.f32 %v14284_v46, %v4716_v51  ;;  %v7657_v26 = vunpack.c.l.b16 %v4851_v5  ;;  %v5805_v13 = vrot.slane %v5803_v52, 5  ;;  %v5808_v37 = vrot.slane %v5806_v4, 6 }
 0x3d2   : > { %v14515_v45 = vpop.f32.mrf.mxu0  ;;  %17315 = vst [vmem:[#allocation49_spill] sm:$0xff] %v14520_v0  ;;  %v5813_v51 = vshrl.u32 %v5429_v60, 16  ;;  %v5816_v5 = vshll.u32 %v5429_v60, 16  ;;  %v5174_v52 = vadd.f32 %v14195_v63, %v13965_v36 }
 0x3d3   : > { %v14527_v3 = vpack.c.b16 %v7657_v26, %v7656_v6  ;;  %v4788_v41 = vadd.f32 %v14297_v18, %v4752_v38  ;;  %v5800_v26 = vor.u32 %v5799_v61, %v5796_v39  ;;  %v5809_v6 = vor.u32 %v5808_v37, %v5805_v13  ;;  %v11786_v37 = vld [vmem:[#allocation2 + $0xc0] sm:$0xff] }
 0x3d4   : > { %v5815_v38 = vrot.slane %v5813_v51, 5 }
 0x3d5   : > { %v5286_v53 = vpop.f32.mrf.mxu1  ;;  %17316 = vst [vmem:[#allocation11_spill] sm:$0xff] %v14527_v3  ;;  %v5801_v2 = vrot.slane %v5800_v26, 4  ;;  %v5811_v3 = vrot.slane %v5809_v6, 4  ;;  %v5430_v26 = vld [vmem:[#allocation2 + $0x9c] sm:$0xe] }
 0x3d6   : > { %v14530_v22 = vadd.f32 %v5286_v53, %v5171_v40  ;;  %11274 = vmatmul.msk.bf16.gmra.mxu3 %vm1290_vm3, %v14523_v35  ;;  %v4683_v49 = vpop.f32.mrf.mxu2  ;;  %v5818_v40 = vrot.slane %v5816_v5, 6  ;;  %v4820_v53 = vmax.f32 %v4788_v41, 0.0 }
 0x3d7   : > { %v4717_v10 = vadd.f32 %v4683_v49, %v14454_v19  ;;  %v5810_v19 = vsel %vm12846_vm5, %v5801_v2, %v5809_v6  ;;  %v5431_v6 = vld [vmem:[#allocation2 + $0xa0] sm:$0xf] }
 0x3d8   : > { %v5819_v48 = vor.u32 %v5818_v40, %v5815_v38  ;;  %v5929_v41 = vunpack.c.l.b16 %v5810_v19  ;;  %v4852_v36 = vpack.c.bf16 %v4820_v53, %v4820_v53  ;;  %v5822_v40 = vshrl.u32 %v5430_v26, 16 }
 0x3d9   : > { %v6239_v14 = vpop.f32.mrf.mxu3  ;;  %v4753_v33 = vmul.f32 %v14284_v46, %v4717_v10  ;;  %v5831_v2 = vshrl.u32 %v5431_v6, 16 }
 0x3da   : > { %v14534_v32 = vpop.f32.mrf.mxu0  ;;  %v5820_v39 = vsel %vm12846_vm5, %v5811_v3, %v5819_v48  ;;  %v5176_v3 = vadd.f32 %v14229_v56, %v13987_v1  ;;  %v7658_v38 = vunpack.c.l.b16 %v4852_v36 }
 0x3db   : > { %v4789_v60 = vadd.f32 %v14297_v18, %v4753_v33  ;;  %11258 = vmatmul.msk.bf16.gmra.mxu2 %vm1290_vm3, %v14410_v28  ;;  %v5930_v49 = vunpack.c.l.b16 %v5820_v39  ;;  %v5825_v33 = vshll.u32 %v5430_v26, 16  ;;  %v5833_v39 = vrot.slane %v5831_v2, 5 }
 0x3dd   : > { %11284 = vmatmul.msk.bf16.gmra.mxu0 %vm1290_vm3, %v14410_v28  ;;  %v5289_v4 = vpop.f32.mrf.mxu1  ;;  %v4821_v46 = vmax.f32 %v4789_v60, 0.0  ;;  %v14555_v5 = vpack.c.b16 %v5930_v49, %v5929_v41 }
 0x3de   : > { %v14549_v61 = vadd.f32 %v5289_v4, %v5174_v52  ;;  %v6013_v63 = vpop.f32.mrf.mxu2  ;;  %v5432_v52 = vld [vmem:[#allocation2 + $0xa4] sm:$0x3]  ;;  %v5827_v4 = vrot.slane %v5825_v33, 6 }
 0x3df   : > { %v6093_v18 = vadd.f32 %v6013_v63, %v14475_v58  ;;  %11244 = vmatmul.msk.bf16.gmra.mxu1 %vm1290_vm3, %v11786_v37  ;;  %v4853_v28 = vpack.c.bf16 %v4821_v46, %v4821_v46  ;;  %v5834_v58 = vshll.u32 %v5431_v6, 16  ;;  %v5841_v41 = vshrl.u32 %v5432_v52, 16 }
 0x3e0   : > { %v5844_v49 = vshll.u32 %v5432_v52, 16 }
 0x3e1   : > { %v6241_v51 = vpop.f32.mrf.mxu3  ;;  %v14557_v10 = vadd.f32 %v6239_v14, %v6093_v18  ;;  %v7659_v48 = vunpack.c.l.b16 %v4853_v28  ;;  %v5824_v14 = vrot.slane %v5822_v40, 5  ;;  %v5836_v46 = vrot.slane %v5834_v58, 6  ;;  %v17318_v40 = vld [vmem:[#allocation12_spill] sm:$0xff] }
 0x3e2   : > { %v14551_v13 = vpop.f32.mrf.mxu0  ;;  %v5843_v28 = vrot.slane %v5841_v41, 5  ;;  %v5179_v33 = vadd.f32 %v14250_v16, %v17318_v40  ;;  %v11787_v16 = vld [vmem:[#allocation2 + $0xcc] sm:$0xff]  ;;  %v5181_v41 = vadd.f32 %v14272_v54, %v14022_v62 }
 0x3e3   : > { %v14561_v60 = vpack.c.b16 %v7659_v48, %v7658_v38  ;;  %v5828_v63 = vor.u32 %v5827_v4, %v5824_v14  ;;  %v5837_v37 = vor.u32 %v5836_v46, %v5833_v39  ;;  %v5846_v48 = vrot.slane %v5844_v49, 6  ;;  %v5433_v49 = vld [vmem:[#allocation2 + $0xa8] sm:$0xe] }
 0x3e5   : > { %v5291_v53 = vpop.f32.mrf.mxu1  ;;  %17317 = vst [vmem:[#allocation10_spill] sm:$0xff] %v14561_v60  ;;  %v5839_v6 = vrot.slane %v5837_v37, 4  ;;  %v5847_v38 = vor.u32 %v5846_v48, %v5843_v28  ;;  %v17325_v60 = vld [vmem:[#allocation19_spill] sm:$0xff] }
 0x3e6   : > { %v14563_v19 = vadd.f32 %v5291_v53, %v5176_v3  ;;  %11275 = vmatmul.msk.bf16.gmra.mxu3 %vm1290_vm3, %v14555_v5  ;;  %v6015_v56 = vpop.f32.mrf.mxu2  ;;  %v5829_v3 = vrot.slane %v5828_v63, 4  ;;  %v5850_v63 = vshrl.u32 %v5433_v49, 16 }
 0x3e7   : > { %v6094_v36 = vadd.f32 %v6015_v56, %v14492_v25  ;;  %v5848_v58 = vsel %vm12846_vm5, %v5839_v6, %v5847_v38  ;;  %v5435_v6 = vld [vmem:[#allocation2 + $0xb0] sm:$0x3] }
 0x3e8   : > { %v5838_v25 = vsel %vm12846_vm5, %v5829_v3, %v5837_v37  ;;  %v5853_v37 = vshll.u32 %v5433_v49, 16  ;;  %v5852_v38 = vrot.slane %v5850_v63, 5  ;;  %v5869_v54 = vshrl.u32 %v5435_v6, 16 }
 0x3e9   : > { %v6244_v18 = vpop.f32.mrf.mxu3  ;;  %v14572_v26 = vadd.f32 %v6241_v51, %v6094_v36  ;;  %v5931_v52 = vunpack.c.l.b16 %v5838_v25  ;;  %v5932_v51 = vunpack.c.l.b16 %v5848_v58  ;;  %v5434_v36 = vld [vmem:[#allocation2 + $0xac] sm:$0xf] }
 0x3ea   : > { %v14567_v1 = vpop.f32.mrf.mxu0  ;;  %v5859_v28 = vshrl.u32 %v5434_v36, 16  ;;  %v5862_v48 = vshll.u32 %v5434_v36, 16  ;;  %v5855_v40 = vrot.slane %v5853_v37, 6  ;;  %v5184_v37 = vadd.f32 %v14307_v7, %v14042_v23  ;;  %v11788_v23 = vld [vmem:[#allocation2 + $0xd8] sm:$0xff] }
 0x3eb   : > { %11259 = vmatmul.msk.bf16.gmra.mxu2 %vm1290_vm3, %v14448_v11  ;;  %v14588_v56 = vpack.c.b16 %v5932_v51, %v5931_v52 }
 0x3ec   : > { %v5864_v62 = vrot.slane %v5862_v48, 6  ;;  %v5856_v52 = vor.u32 %v5855_v40, %v5852_v38 }
 0x3ed   : > { %11285 = vmatmul.msk.bf16.gmra.mxu0 %vm1290_vm3, %v14448_v11  ;;  %v5294_v2 = vpop.f32.mrf.mxu1 }
 0x3ee   : > { %v14582_v53 = vadd.f32 %v5294_v2, %v5179_v33  ;;  %v6018_v4 = vpop.f32.mrf.mxu2  ;;  %v5872_v2 = vshll.u32 %v5435_v6, 16 }
 0x3ef   : > { %v6095_v39 = vadd.f32 %v6018_v4, %v14513_v42  ;;  %11245 = vmatmul.msk.bf16.gmra.mxu1 %vm1290_vm3, %v11787_v16 }
 0x3f0   : > { %v5874_v16 = vrot.slane %v5872_v2, 6  ;;  %v5437_v2 = vld [vmem:[#allocation2 + $0xb8] sm:$0xf] }
 0x3f1   : > { %v6246_v11 = vpop.f32.mrf.mxu3  ;;  %v14590_v46 = vadd.f32 %v6244_v18, %v6095_v39  ;;  %v5861_v18 = vrot.slane %v5859_v28, 5  ;;  %v5871_v39 = vrot.slane %v5869_v54, 5  ;;  %v5436_v54 = vld [vmem:[#allocation2 + $0xb4] sm:$0xe] }
 0x3f2   : > { %v14584_v14 = vpop.f32.mrf.mxu0 }
 0x3f3   : > { %v5865_v4 = vor.u32 %v5864_v62, %v5861_v18  ;;  %v5875_v63 = vor.u32 %v5874_v16, %v5871_v39  ;;  %v5186_v62 = vadd.f32 %v14326_v27, %v14061_v50  ;;  %v5890_v39 = vshll.u32 %v5437_v2, 16 }
 0x3f5   : > { %v5296_v3 = vpop.f32.mrf.mxu1  ;;  %v5867_v36 = vrot.slane %v5865_v4, 4  ;;  %v5892_v50 = vrot.slane %v5890_v39, 6 }
 0x3f6   : > { %v14594_v42 = vadd.f32 %v5296_v3, %v5181_v41  ;;  %11276 = vmatmul.msk.bf16.gmra.mxu3 %vm1290_vm3, %v14588_v56  ;;  %v6020_v25 = vpop.f32.mrf.mxu2  ;;  %v5857_v41 = vrot.slane %v5856_v52, 4  ;;  %v5881_v52 = vshll.u32 %v5436_v54, 16 }
 0x3f7   : > { %v6096_v58 = vadd.f32 %v6020_v25, %v14530_v22  ;;  %v5876_v48 = vsel %vm12846_vm5, %v5867_v36, %v5875_v63 }
 0x3f8   : > { %v5866_v22 = vsel %vm12846_vm5, %v5857_v41, %v5865_v4  ;;  %v5887_v4 = vshrl.u32 %v5437_v2, 16  ;;  %v5438_v41 = vld [vmem:[#allocation2 + $0xbc] sm:$0x3]  ;;  %v5883_v63 = vrot.slane %v5881_v52, 6  ;;  %v5189_v52 = vadd.f32 %v14345_v8, %v14081_v44 }
 0x3f9   : > { %v6249_v51 = vpop.f32.mrf.mxu3  ;;  %v14603_v49 = vadd.f32 %v6246_v11, %v6096_v58  ;;  %v5933_v6 = vunpack.c.l.b16 %v5866_v22  ;;  %v5934_v11 = vunpack.c.l.b16 %v5876_v48  ;;  %v5878_v58 = vshrl.u32 %v5436_v54, 16 }
 0x3fa   : > { %v14598_v33 = vpop.f32.mrf.mxu0  ;;  %v5897_v27 = vshrl.u32 %v5438_v41, 16 }
 0x3fb   : > { %11260 = vmatmul.msk.bf16.gmra.mxu2 %vm1290_vm3, %v14485_v9  ;;  %v5880_v36 = vrot.slane %v5878_v58, 5 }
 0x3fd   : > { %11286 = vmatmul.msk.bf16.gmra.mxu0 %vm1290_vm3, %v14485_v9  ;;  %v5299_v28 = vpop.f32.mrf.mxu1  ;;  %v14619_v9 = vpack.c.b16 %v5934_v11, %v5933_v6  ;;  %v5884_v6 = vor.u32 %v5883_v63, %v5880_v36 }
 0x3fe   : > { %v14613_v3 = vadd.f32 %v5299_v28, %v5184_v37  ;;  %v6023_v40 = vpop.f32.mrf.mxu2  ;;  %v5900_v28 = vshll.u32 %v5438_v41, 16 }
 0x3ff   : > { %v6097_v18 = vadd.f32 %v6023_v40, %v14549_v61  ;;  %11246 = vmatmul.msk.bf16.gmra.mxu1 %vm1290_vm3, %v11788_v23 }
 0x400   : > { %v5902_v23 = vrot.slane %v5900_v28, 6  ;;  %v5439_v28 = vld [vmem:[#allocation2 + $0xc0] sm:$0xe] }
 0x401   : > { %v6251_v7 = vpop.f32.mrf.mxu3  ;;  %v14621_v25 = vadd.f32 %v6249_v51, %v6097_v18  ;;  %v5889_v51 = vrot.slane %v5887_v4, 5  ;;  %v5899_v18 = vrot.slane %v5897_v27, 5 }
 0x402   : > { %v14615_v38 = vpop.f32.mrf.mxu0 }
 0x403   : > { %v5893_v40 = vor.u32 %v5892_v50, %v5889_v51  ;;  %v5903_v58 = vor.u32 %v5902_v23, %v5899_v18  ;;  %v17319_v50 = vld [vmem:[#allocation15_spill] sm:$0xff] }
 0x404   : > { %v5191_v27 = vadd.f32 %v14365_v55, %v17319_v50 }
 0x405   : > { %v5301_v16 = vpop.f32.mrf.mxu1  ;;  %v5895_v2 = vrot.slane %v5893_v40, 4 }
 0x406   : > { %v14625_v61 = vadd.f32 %v5301_v16, %v5186_v62  ;;  %11277 = vmatmul.msk.bf16.gmra.mxu3 %vm1290_vm3, %v14619_v9  ;;  %v6025_v22 = vpop.f32.mrf.mxu2  ;;  %v5885_v62 = vrot.slane %v5884_v6, 4  ;;  %v6126_v6 = vshrl.u32 %v5439_v28, 16 }
 0x407   : > { %v6098_v48 = vadd.f32 %v6025_v22, %v14563_v19  ;;  %v11713_v19 = vld [vmem:[#allocation2 + $0xe4] sm:$0xff]  ;;  %v5904_v16 = vsel %vm12846_vm5, %v5895_v2, %v5903_v58 }
 0x408   : > { %v5894_v4 = vsel %vm12846_vm5, %v5885_v62, %v5893_v40  ;;  %v5936_v36 = vunpack.c.l.b16 %v5904_v16  ;;  %v6129_v40 = vshll.u32 %v5439_v28, 16  ;;  %v5441_v2 = vld [vmem:[#allocation2 + $0xc8] sm:$0x3] }
 0x409   : > { %v6254_v11 = vpop.f32.mrf.mxu3  ;;  %v14634_v54 = vadd.f32 %v6251_v7, %v6098_v48  ;;  %v5935_v7 = vunpack.c.l.b16 %v5894_v4  ;;  %v5440_v48 = vld [vmem:[#allocation2 + $0xc4] sm:$0xf]  ;;  %v6148_v16 = vshll.u32 %v5441_v2, 16 }
 0x40a   : > { %v14629_v37 = vpop.f32.mrf.mxu0  ;;  %v6135_v18 = vshrl.u32 %v5440_v48, 16  ;;  %v6138_v23 = vshll.u32 %v5440_v48, 16 }
 0x40b   : > { %11261 = vmatmul.msk.bf16.gmra.mxu2 %vm1290_vm3, %v14523_v35 }
 0x40c   : > { %v6140_v55 = vrot.slane %v6138_v23, 6 }
 0x40d   : > { %11287 = vmatmul.msk.bf16.gmra.mxu0 %vm1290_vm3, %v14523_v35  ;;  %v5304_v39 = vpop.f32.mrf.mxu1  ;;  %v14650_v35 = vpack.c.b16 %v5936_v36, %v5935_v7 }
 0x40e   : > { %v14644_v41 = vadd.f32 %v5304_v39, %v5189_v52  ;;  %v6028_v51 = vpop.f32.mrf.mxu2  ;;  %v6131_v52 = vrot.slane %v6129_v40, 6  ;;  %v6145_v39 = vshrl.u32 %v5441_v2, 16 }
 0x40f   : > { %v6099_v44 = vadd.f32 %v6028_v51, %v14582_v53  ;;  %11247 = vmatmul.msk.bf16.gmra.mxu1 %vm1290_vm3, %v11713_v19  ;;  %v6128_v53 = vrot.slane %v6126_v6, 5 }
 0x410   : > { %v6147_v50 = vrot.slane %v6145_v39, 5 }
 0x411   : > { %v6256_v8 = vpop.f32.mrf.mxu3  ;;  %v14652_v22 = vadd.f32 %v6254_v11, %v6099_v44  ;;  %v6137_v11 = vrot.slane %v6135_v18, 5  ;;  %v6132_v36 = vor.u32 %v6131_v52, %v6128_v53  ;;  %v17320_v18 = vld [vmem:[#allocation59_spill] sm:$0xff] }
 0x412   : > { %v14646_v63 = vpop.f32.mrf.mxu0  ;;  %v5194_v23 = vadd.f32 %v14382_v20, %v17320_v18 }
 0x413   : > { %v6141_v44 = vor.u32 %v6140_v55, %v6137_v11  ;;  %v6133_v28 = vrot.slane %v6132_v36, 4 }
 0x415   : > { %v5306_v62 = vpop.f32.mrf.mxu1  ;;  %v6143_v6 = vrot.slane %v6141_v44, 4 }
 0x416   : > { %v14656_v58 = vadd.f32 %v5306_v62, %v5191_v27  ;;  %11278 = vmatmul.msk.bf16.gmra.mxu3 %vm1290_vm3, %v14650_v35  ;;  %v6030_v4 = vpop.f32.mrf.mxu2  ;;  %v6150_v27 = vrot.slane %v6148_v16, 6  ;;  %v6142_v62 = vsel %vm12846_vm5, %v6133_v28, %v6141_v44  ;;  %v5442_v44 = vld [vmem:[#allocation2 + $0xcc] sm:$0xe] }
 0x417   : > { %v6100_v7 = vadd.f32 %v6030_v4, %v14594_v42  ;;  %v11714_v42 = vld [vmem:[#allocation2 + $0xf0] sm:$0xff]  ;;  %v6157_v28 = vshll.u32 %v5442_v44, 16 }
 0x418   : > { %v6151_v40 = vor.u32 %v6150_v27, %v6147_v50  ;;  %v5443_v50 = vld [vmem:[#allocation2 + $0xd0] sm:$0xf]  ;;  %v6154_v27 = vshrl.u32 %v5442_v44, 16 }
 0x419   : > { %v6259_v51 = vpop.f32.mrf.mxu3  ;;  %v14665_v48 = vadd.f32 %v6256_v8, %v6100_v7  ;;  %v6209_v8 = vunpack.c.l.b16 %v6142_v62  ;;  %v17322_v7 = vld [vmem:[#allocation17_spill] sm:$0xff] }
 0x41a   : > { %v14660_v19 = vpop.f32.mrf.mxu0  ;;  %v6152_v53 = vsel %vm12846_vm5, %v6143_v6, %v6151_v40  ;;  %v5196_v36 = vadd.f32 %v14402_v30, %v17322_v7  ;;  %v6163_v6 = vshrl.u32 %v5443_v50, 16  ;;  %v6166_v40 = vshll.u32 %v5443_v50, 16 }
 0x41b   : > { %11262 = vmatmul.msk.bf16.gmra.mxu2 %vm1290_vm3, %v14555_v5  ;;  %v6210_v11 = vunpack.c.l.b16 %v6152_v53 }
 0x41c   : > { %v6168_v30 = vrot.slane %v6166_v40, 6  ;;  %v5199_v40 = vadd.f32 %v14420_v21, %v17325_v60 }
 0x41d   : > { %11288 = vmatmul.msk.bf16.gmra.mxu0 %vm1290_vm3, %v14555_v5  ;;  %v5309_v2 = vpop.f32.mrf.mxu1  ;;  %v14681_v39 = vpack.c.b16 %v6210_v11, %v6209_v8 }
 0x41e   : > { %v14675_v52 = vadd.f32 %v5309_v2, %v5194_v23  ;;  %v6033_v55 = vpop.f32.mrf.mxu2  ;;  %v5444_v23 = vld [vmem:[#allocation2 + $0xd4] sm:$0x3] }
 0x41f   : > { %v6101_v20 = vadd.f32 %v6033_v55, %v14613_v3  ;;  %11248 = vmatmul.msk.bf16.gmra.mxu1 %vm1290_vm3, %v11714_v42  ;;  %v6156_v3 = vrot.slane %v6154_v27, 5  ;;  %v6159_v42 = vrot.slane %v6157_v28, 6  ;;  %v6173_v8 = vshrl.u32 %v5444_v23, 16 }
 0x420   : > { %v6176_v11 = vshll.u32 %v5444_v23, 16 }
 0x421   : > { %v6261_v5 = vpop.f32.mrf.mxu3  ;;  %v14683_v16 = vadd.f32 %v6259_v51, %v6101_v20  ;;  %v6165_v51 = vrot.slane %v6163_v6, 5  ;;  %v6160_v20 = vor.u32 %v6159_v42, %v6156_v3  ;;  %v6175_v50 = vrot.slane %v6173_v8, 5 }
 0x422   : > { %v14677_v4 = vpop.f32.mrf.mxu0 }
 0x423   : > { %17321 = vst [vmem:[#allocation26_spill] sm:$0xff] %v14683_v16  ;;  %v6169_v44 = vor.u32 %v6168_v30, %v6165_v51  ;;  %v5236_v15 = vadd.f32 %v14677_v4, %v14482_v57 }
 0x425   : > { %v5311_v18 = vpop.f32.mrf.mxu1  ;;  %v6171_v28 = vrot.slane %v6169_v44, 4 }
 0x426   : > { %v14687_v62 = vadd.f32 %v5311_v18, %v5196_v36  ;;  %11279 = vmatmul.msk.bf16.gmra.mxu3 %vm1290_vm3, %v14681_v39  ;;  %v6035_v53 = vpop.f32.mrf.mxu2  ;;  %v6178_v36 = vrot.slane %v6176_v11, 6  ;;  %v6161_v18 = vrot.slane %v6160_v20, 4  ;;  %v6577_v20 = vld [vmem:[#allocation2] sm:$0x8] }
 0x427   : > { %v6102_v55 = vadd.f32 %v6035_v53, %v14625_v61  ;;  %v11715_v61 = vld [vmem:[#allocation2 + $0xfc] sm:$0xff] }
 0x428   : > { %v6179_v6 = vor.u32 %v6178_v36, %v6175_v50  ;;  %v6170_v23 = vsel %vm12846_vm5, %v6161_v18, %v6169_v44  ;;  %v6578_v44 = vld [vmem:[#allocation2 + $0x8] sm:$0x7]  ;;  %v11298_v36 = vrot.slane %v6577_v20, 11 }
 0x429   : > { %v6264_v7 = vpop.f32.mrf.mxu3  ;;  %v14696_v27 = vadd.f32 %v6261_v5, %v6102_v55  ;;  %v6211_v5 = vunpack.c.l.b16 %v6170_v23  ;;  %v5446_v23 = vld [vmem:[#allocation2 + $0xdc] sm:$0xf] }
 0x42a   : > { %v14691_v2 = vpop.f32.mrf.mxu0  ;;  %v6180_v42 = vsel %vm12846_vm5, %v6171_v28, %v6179_v6  ;;  %v5445_v28 = vld [vmem:[#allocation2 + $0xd8] sm:$0xe]  ;;  %v17328_v6 = vld [vmem:[#allocation18_spill] sm:$0xff] }
 0x42b   : > { %17323 = vst [vmem:[#allocation30_spill] sm:$0xff] %v14691_v2  ;;  %11263 = vmatmul.msk.bf16.gmra.mxu2 %vm1290_vm3, %v14588_v56  ;;  %v6212_v53 = vunpack.c.l.b16 %v6180_v42  ;;  %v6185_v42 = vshll.u32 %v5445_v28, 16 }
 0x42c   : > { %17324 = vst [vmem:[#allocation31_spill] sm:$0xff] %v14696_v27 }
 0x42d   : > { %11289 = vmatmul.msk.bf16.gmra.mxu0 %vm1290_vm3, %v14588_v56  ;;  %v5314_v3 = vpop.f32.mrf.mxu1  ;;  %v11789_v56 = vld [vmem:[#allocation2 + $0x4] sm:$0xf]  ;;  %v14712_v55 = vpack.c.b16 %v6212_v53, %v6211_v5  ;;  %v5447_v53 = vld [vmem:[#allocation2 + $0xe0] sm:$0x3]  ;;  %v6187_v27 = vrot.slane %v6185_v42, 6 }
 0x42e   : > { %v14706_v51 = vadd.f32 %v5314_v3, %v5199_v40  ;;  %v6038_v8 = vpop.f32.mrf.mxu2  ;;  %v6674_v11 = vrot.slane %v11789_v56, 7  ;;  %v5201_v40 = vadd.f32 %v14440_v59, %v17328_v6  ;;  %v6182_v3 = vshrl.u32 %v5445_v28, 16 }
 0x42f   : > { %v6103_v21 = vadd.f32 %v6038_v8, %v14644_v41  ;;  %11249 = vmatmul.msk.bf16.gmra.mxu1 %vm1290_vm3, %v11715_v61  ;;  %v6677_v61 = vrot.slane %v6578_v44, 7  ;;  %v6191_v8 = vshrl.u32 %v5446_v23, 16 }
 0x430   : > { %v6676_v18 = vrot.slane %v6674_v11, 4  ;;  %v6184_v44 = vrot.slane %v6182_v3, 5 }
 0x431   : > { %v6266_v60 = vpop.f32.mrf.mxu3  ;;  %v14714_v50 = vadd.f32 %v6264_v7, %v6103_v21  ;;  %v6675_v7 = vsel %vm14718_vm7, %v11298_v36, %v6674_v11  ;;  %v6194_v21 = vshll.u32 %v5446_v23, 16  ;;  %v6193_v16 = vrot.slane %v6191_v8, 5  ;;  %v17331_v8 = vld [vmem:[#allocation20_spill] sm:$0xff] }
 0x432   : > { %v14708_v30 = vpop.f32.mrf.mxu0  ;;  %v6678_v59 = vsel %vm14718_vm7, %v6676_v18, %v6677_v61  ;;  %v6784_v20 = vunpack.c.l.b16 %v6675_v7  ;;  %v6204_v23 = vshll.u32 %v5447_v53, 16  ;;  %v6188_v0 = vor.u32 %v6187_v27, %v6184_v44  ;;  %v11790_v44 = vld [vmem:[#allocation2 + $0x10] sm:$0xf] }
 0x433   : > { %17326 = vst [vmem:[#allocation34_spill] sm:$0xff] %v14708_v30  ;;  %v6785_v28 = vunpack.c.l.b16 %v6678_v59  ;;  %v6196_v30 = vrot.slane %v6194_v21, 6  ;;  %v17343_v4 = vld [vmem:[#allocation30_spill] sm:$0xff] }
 0x434   : > { %17327 = vst [vmem:[#allocation39_spill] sm:$0xff] %v14714_v50  ;;  %v6206_v61 = vrot.slane %v6204_v23, 6  ;;  %v6189_v42 = vrot.slane %v6188_v0, 4  ;;  %v11791_v23 = vld [vmem:[#allocation2 + $0x4c] sm:$0xf] }
 0x435   : > { %v5316_v5 = vpop.f32.mrf.mxu1  ;;  %v6197_v2 = vor.u32 %v6196_v30, %v6193_v16 }
 0x436   : > { %v14724_v56 = vadd.f32 %v5316_v5, %v5201_v40  ;;  %11280 = vmatmul.msk.bf16.gmra.mxu3 %vm1290_vm3, %v14712_v55  ;;  %v6040_v50 = vpop.f32.mrf.mxu2  ;;  %v6201_v40 = vshrl.u32 %v5447_v53, 16 }
 0x437   : > { %v6104_v36 = vadd.f32 %v6040_v50, %v14656_v58  ;;  %v6199_v7 = vrot.slane %v6197_v2, 4  ;;  %v6816_v58 = vpack.c.b16 %v6785_v28, %v6784_v20  ;;  %v6198_v16 = vsel %vm12846_vm5, %v6189_v42, %v6197_v2  ;;  %v6579_v28 = vld [vmem:[#allocation2 + $0xc] sm:$0x8] }
 0x438   : > { %v6203_v18 = vrot.slane %v6201_v40, 5 }
 0x439   : > { %v6269_v5 = vpop.f32.mrf.mxu3  ;;  %v14736_v3 = vadd.f32 %v6266_v60, %v6104_v36  ;;  %v6213_v60 = vunpack.c.l.b16 %v6198_v16  ;;  %v6580_v36 = vld [vmem:[#allocation2 + $0x14] sm:$0x7] }
 0x43a   : > { %v6465_v6 = vpop.f32.mrf.mxu0  ;;  %v6207_v50 = vor.u32 %v6206_v61, %v6203_v18  ;;  %v6716_v18 = vrot.slane %v11791_v23, 7  ;;  %v11299_v61 = vrot.slane %v6579_v28, 11 }
 0x43b   : > { %v14731_v11 = vadd.f32 %v6465_v6, %v14557_v10  ;;  %v5204_v10 = vadd.f32 %v14458_v17, %v17331_v8  ;;  %11264 = vmatmul.msk.bf16.gmra.mxu2 %vm1290_vm3, %v14619_v9  ;;  %v6681_v6 = vrot.slane %v11790_v44, 7 }
 0x43c   : > { %v6208_v30 = vsel %vm12846_vm5, %v6199_v7, %v6207_v50  ;;  %v6684_v7 = vrot.slane %v6580_v36, 7  ;;  %v5209_v36 = vadd.f32 %v14496_v31, %v14260_v34  ;;  %v6583_v34 = vld [vmem:[#allocation2 + $0x24] sm:$0x8]  ;;  %v6584_v31 = vld [vmem:[#allocation2 + $0x2c] sm:$0x7] }
 0x43d   : > { %11290 = vmatmul.msk.bf16.gmra.mxu0 %vm1290_vm3, %v14619_v9  ;;  %v5319_v53 = vpop.f32.mrf.mxu1  ;;  %v6214_v59 = vunpack.c.l.b16 %v6208_v30  ;;  %v6683_v42 = vrot.slane %v6681_v6, 4 }
 0x43e   : > { %v14744_v27 = vadd.f32 %v5319_v53, %v5204_v10  ;;  %v6043_v21 = vpop.f32.mrf.mxu2  ;;  %v6682_v10 = vsel %vm14718_vm7, %v11299_v61, %v6681_v6 }
 0x43f   : > { %v6105_v9 = vadd.f32 %v6043_v21, %v14675_v52  ;;  %11314 = vmatmul.msk.bf16.vlgmr.msra.gmra.mxu1 %vm1290_vm3, %v6816_v58  ;;  %v14753_v2 = vpack.c.b16 %v6214_v59, %v6213_v60  ;;  %v6685_v58 = vsel %vm14718_vm7, %v6683_v42, %v6684_v7  ;;  %v6786_v60 = vunpack.c.l.b16 %v6682_v10  ;;  %v6589_v59 = vld [vmem:[#allocation2 + $0x48] sm:$0x8] }
 0x440   : > { %v11304_v44 = vrot.slane %v6589_v59, 11 }
 0x441   : > { %v6271_v20 = vpop.f32.mrf.mxu3  ;;  %v14755_v40 = vadd.f32 %v6269_v5, %v6105_v9  ;;  %v6718_v5 = vrot.slane %v6716_v18, 4  ;;  %v6590_v9 = vld [vmem:[#allocation2 + $0x50] sm:$0x7] }
 0x442   : > { %v6467_v0 = vpop.f32.mrf.mxu0  ;;  %v6719_v6 = vrot.slane %v6590_v9, 7  ;;  %v6581_v9 = vld [vmem:[#allocation2 + $0x18] sm:$0x8] }
 0x443   : > { %v14749_v17 = vadd.f32 %v6467_v0, %v14572_v26  ;;  %v17332_v26 = vld [vmem:[#allocation22_spill] sm:$0xff]  ;;  %v6787_v0 = vunpack.c.l.b16 %v6685_v58 }
 0x444   : > { %v5206_v8 = vadd.f32 %v14477_v43, %v17332_v26  ;;  %v6720_v23 = vsel %vm14718_vm7, %v6718_v5, %v6719_v6 }
 0x445   : > { %v5321_v52 = vpop.f32.mrf.mxu1  ;;  %v6797_v26 = vunpack.c.l.b16 %v6720_v23 }
 0x446   : > { %v14763_v50 = vadd.f32 %v5321_v52, %v5206_v8  ;;  %11281 = vmatmul.msk.bf16.gmra.mxu3 %vm1290_vm3, %v14753_v2  ;;  %v6045_v16 = vpop.f32.mrf.mxu2 }
 0x447   : > { %v6106_v43 = vadd.f32 %v6045_v16, %v14687_v62  ;;  %v6717_v62 = vsel %vm14718_vm7, %v11304_v44, %v6716_v18  ;;  %v11301_v18 = vrot.slane %v6583_v34, 11  ;;  %v6698_v16 = vrot.slane %v6584_v31, 7  ;;  %v6582_v44 = vld [vmem:[#allocation2 + $0x20] sm:$0x7] }
 0x448   : > { %v6796_v7 = vunpack.c.l.b16 %v6717_v62  ;;  %v5211_v62 = vadd.f32 %v14515_v45, %v14278_v29 }
 0x449   : > { %v6274_v21 = vpop.f32.mrf.mxu3  ;;  %v14773_v28 = vadd.f32 %v6271_v20, %v6106_v43  ;;  %v11792_v20 = vld [vmem:[#allocation2 + $0x28] sm:$0xf]  ;;  %v11793_v43 = vld [vmem:[#allocation2 + $0x1c] sm:$0xf] }
 0x44a   : > { %v6470_v53 = vpop.f32.mrf.mxu0  ;;  %v6695_v8 = vrot.slane %v11792_v20, 7 }
 0x44b   : > { %v14768_v30 = vadd.f32 %v6470_v53, %v14590_v46  ;;  %11265 = vmatmul.msk.bf16.gmra.mxu2 %vm1290_vm3, %v14650_v35  ;;  %v6817_v46 = vpack.c.b16 %v6787_v0, %v6786_v60  ;;  %v6688_v60 = vrot.slane %v11793_v43, 7  ;;  %v14790_v0 = vpack.c.b16 %v6797_v26, %v6796_v7 }
 0x44c   : > { %v6697_v5 = vrot.slane %v6695_v8, 4  ;;  %v6696_v59 = vsel %vm14718_vm7, %v11301_v18, %v6695_v8 }
 0x44d   : > { %11291 = vmatmul.msk.bf16.gmra.mxu0 %vm1290_vm3, %v14650_v35  ;;  %v5324_v61 = vpop.f32.mrf.mxu1 }
 0x44e   : > { %v14783_v42 = vadd.f32 %v5324_v61, %v5209_v36  ;;  %v6048_v10 = vpop.f32.mrf.mxu2  ;;  %v11300_v36 = vrot.slane %v6581_v9, 11  ;;  %v6691_v61 = vrot.slane %v6582_v44, 7  ;;  %v6585_v44 = vld [vmem:[#allocation2 + $0x30] sm:$0x8] }
 0x44f   : > { %v6107_v58 = vadd.f32 %v6048_v10, %v14706_v51  ;;  %11315 = vmatmul.msk.bf16.gmra.mxu1 %vm1290_vm3, %v6817_v46  ;;  %v6790_v51 = vunpack.c.l.b16 %v6696_v59  ;;  %v6690_v46 = vrot.slane %v6688_v60, 4 }
 0x450   : > { %v6689_v26 = vsel %vm14718_vm7, %v11300_v36, %v6688_v60  ;;  %v11794_v60 = vld [vmem:[#allocation2 + $0x34] sm:$0xf] }
 0x451   : > { %v6276_v53 = vpop.f32.mrf.mxu3  ;;  %v14794_v6 = vadd.f32 %v6274_v21, %v6107_v58  ;;  %v6692_v21 = vsel %vm14718_vm7, %v6690_v46, %v6691_v61  ;;  %v6788_v34 = vunpack.c.l.b16 %v6689_v26  ;;  %v6591_v46 = vld [vmem:[#allocation2 + $0x54] sm:$0x8] }
 0x452   : > { %v6472_v52 = vpop.f32.mrf.mxu0  ;;  %v6789_v31 = vunpack.c.l.b16 %v6692_v21  ;;  %v11305_v26 = vrot.slane %v6591_v46, 11 }
 0x453   : > { %v14786_v35 = vadd.f32 %v6472_v52, %v14603_v49  ;;  %v6699_v49 = vsel %vm14718_vm7, %v6697_v5, %v6698_v16  ;;  %v5214_v5 = vadd.f32 %v14534_v32, %v14310_v24  ;;  %v11302_v24 = vrot.slane %v6585_v44, 11 }
 0x454   : > { %v6791_v23 = vunpack.c.l.b16 %v6699_v49  ;;  %v6818_v16 = vpack.c.b16 %v6789_v31, %v6788_v34  ;;  %v6586_v49 = vld [vmem:[#allocation2 + $0x38] sm:$0x7] }
 0x455   : > { %v5326_v7 = vpop.f32.mrf.mxu1  ;;  %v6705_v36 = vrot.slane %v6586_v49, 7 }
 0x456   : > { %v14802_v20 = vadd.f32 %v5326_v7, %v5211_v62  ;;  %11352 = vmatmul.msk.bf16.vlgmr.msra.gmra.mxu3 %vm1290_vm3, %v14790_v0  ;;  %v6050_v52 = vpop.f32.mrf.mxu2  ;;  %v14808_v10 = vpack.c.b16 %v6791_v23, %v6790_v51  ;;  %v6592_v62 = vld [vmem:[#allocation2 + $0x5c] sm:$0x7]  ;;  %v11795_v23 = vld [vmem:[#allocation2 + $0x58] sm:$0xf] }
 0x457   : > { %v6108_v45 = vadd.f32 %v6050_v52, %v14724_v56  ;;  %v6702_v56 = vrot.slane %v11794_v60, 7  ;;  %v6723_v61 = vrot.slane %v11795_v23, 7  ;;  %v6726_v21 = vrot.slane %v6592_v62, 7 }
 0x459   : > { %v6279_v58 = vpop.f32.mrf.mxu3  ;;  %v14816_v18 = vadd.f32 %v6276_v53, %v6108_v45  ;;  %v6704_v32 = vrot.slane %v6702_v56, 4  ;;  %v6703_v7 = vsel %vm14718_vm7, %v11302_v24, %v6702_v56  ;;  %v6724_v31 = vsel %vm14718_vm7, %v11305_v26, %v6723_v61  ;;  %v14843_v24 = vld [vmem:[#allocation2 + $0xe8] sm:$0xf]  ;;  %v5450_v26 = vld [vmem:[#allocation2 + $0xec] sm:$0x3] }
 0x45a   : > { %v6475_v8 = vpop.f32.mrf.mxu0  ;;  %v6792_v45 = vunpack.c.l.b16 %v6703_v7  ;;  %v6361_v23 = vshrl.u32 %v14843_v24, 16 }
 0x45b   : > { %v14811_v29 = vadd.f32 %v6475_v8, %v14621_v25  ;;  %11333 = vmatmul.msk.bf16.vlgmr.msra.gmra.mxu2 %vm1290_vm3, %v14808_v10  ;;  %v6725_v8 = vrot.slane %v6723_v61, 4 }
 0x45d   : > { %11292 = vmatmul.msk.bf16.gmra.mxu0 %vm1290_vm3, %v14681_v39  ;;  %v5329_v43 = vpop.f32.mrf.mxu1 }
 0x45e   : > { %v14822_v25 = vadd.f32 %v5329_v43, %v5214_v5  ;;  %v6053_v9 = vpop.f32.mrf.mxu2  ;;  %v6798_v43 = vunpack.c.l.b16 %v6724_v31 }
 0x45f   : > { %v6109_v53 = vadd.f32 %v6053_v9, %v14744_v27  ;;  %11316 = vmatmul.msk.bf16.gmra.mxu1 %vm1290_vm3, %v6818_v16  ;;  %v17333_v27 = vld [vmem:[#allocation25_spill] sm:$0xff]  ;;  %v6727_v16 = vsel %vm14718_vm7, %v6725_v8, %v6726_v21  ;;  %v5448_v9 = vld [vmem:[#allocation2 + $0xe4] sm:$0xe] }
 0x460   : > { %v5216_v52 = vadd.f32 %v14551_v13, %v17333_v27  ;;  %v6363_v27 = vrot.slane %v6361_v23, 5  ;;  %v11797_v23 = vld [vmem:[#allocation2 + $0x64] sm:$0xf] }
 0x461   : > { %v6281_v51 = vpop.f32.mrf.mxu3  ;;  %v14839_v60 = vadd.f32 %v6279_v58, %v6109_v53  ;;  %v6352_v58 = vshrl.u32 %v5448_v9, 16  ;;  %v6355_v53 = vshll.u32 %v5448_v9, 16 }
 0x462   : > { %v6477_v59 = vpop.f32.mrf.mxu0 }
 0x463   : > { %v14825_v39 = vadd.f32 %v6477_v59, %v14634_v54  ;;  %v6706_v54 = vsel %vm14718_vm7, %v6704_v32, %v6705_v36  ;;  %v6799_v59 = vunpack.c.l.b16 %v6727_v16  ;;  %v6357_v8 = vrot.slane %v6355_v53, 6  ;;  %v6587_v16 = vld [vmem:[#allocation2 + $0x3c] sm:$0x8]  ;;  %v6594_v53 = vld [vmem:[#allocation2 + $0x68] sm:$0x7] }
 0x464   : > { %v6793_v34 = vunpack.c.l.b16 %v6706_v54  ;;  %v6354_v54 = vrot.slane %v6352_v58, 5  ;;  %v11303_v9 = vrot.slane %v6587_v16, 11  ;;  %v6593_v58 = vld [vmem:[#allocation2 + $0x60] sm:$0x8] }
 0x465   : > { %v5331_v5 = vpop.f32.mrf.mxu1  ;;  %v14851_v46 = vpack.c.b16 %v6799_v59, %v6798_v43  ;;  %v6588_v43 = vld [vmem:[#allocation2 + $0x44] sm:$0x7] }
 0x466   : > { %v14841_v56 = vadd.f32 %v5331_v5, %v5216_v52  ;;  %v6055_v49 = vpop.f32.mrf.mxu2  ;;  %v14849_v36 = vpack.c.b16 %v6793_v34, %v6792_v45  ;;  %v11796_v52 = vld [vmem:[#allocation2 + $0x40] sm:$0xf]  ;;  %v6371_v5 = vshrl.u32 %v5450_v26, 16 }
 0x467   : > { %v6110_v32 = vadd.f32 %v6055_v49, %v14763_v50  ;;  %11353 = vmatmul.msk.bf16.gmra.mxu3 %vm1290_vm3, %v14851_v46  ;;  %v17335_v50 = vld [vmem:[#allocation47_spill] sm:$0xff]  ;;  %v6709_v45 = vrot.slane %v11796_v52, 7  ;;  %v17336_v52 = vld [vmem:[#allocation29_spill] sm:$0xff] }
 0x468   : > { %v5219_v7 = vadd.f32 %v14567_v1, %v17335_v50  ;;  %v6730_v50 = vrot.slane %v11797_v23, 7 }
 0x469   : > { %v6284_v62 = vpop.f32.mrf.mxu3  ;;  %v14858_v61 = vadd.f32 %v6281_v51, %v6110_v32  ;;  %v6712_v32 = vrot.slane %v6588_v43, 7 }
 0x46a   : > { %v6480_v44 = vpop.f32.mrf.mxu0 }
 0x46b   : > { %v14846_v13 = vadd.f32 %v6480_v44, %v14652_v22  ;;  %17334 = vst [vmem:[#allocation38_spill] sm:$0xff] %v14858_v61  ;;  %v6364_v22 = vshll.u32 %v14843_v24, 16  ;;  %11334 = vmatmul.msk.bf16.gmra.mxu2 %vm1290_vm3, %v14849_v36  ;;  %v6711_v44 = vrot.slane %v6709_v45, 4 }
 0x46d   : > { %11293 = vmatmul.msk.bf16.gmra.mxu0 %vm1290_vm3, %v14712_v55  ;;  %v5334_v21 = vpop.f32.mrf.mxu1  ;;  %v6366_v31 = vrot.slane %v6364_v22, 6  ;;  %v6374_v22 = vshll.u32 %v5450_v26, 16 }
 0x46e   : > { %v14865_v55 = vadd.f32 %v5334_v21, %v5219_v7  ;;  %v6058_v51 = vpop.f32.mrf.mxu2  ;;  %v6710_v7 = vsel %vm14718_vm7, %v11303_v9, %v6709_v45  ;;  %v11306_v21 = vrot.slane %v6593_v58, 11 }
 0x46f   : > { %v6111_v59 = vadd.f32 %v6058_v51, %v14783_v42  ;;  %11317 = vmatmul.msk.bf16.gmra.mxu1 %vm1290_vm3, %v14808_v10  ;;  %v5221_v42 = vadd.f32 %v14584_v14, %v17336_v52  ;;  %v6713_v10 = vsel %vm14718_vm7, %v6711_v44, %v6712_v32  ;;  %v6358_v51 = vor.u32 %v6357_v8, %v6354_v54 }
 0x470   : > { %v6794_v16 = vunpack.c.l.b16 %v6710_v7  ;;  %v6795_v43 = vunpack.c.l.b16 %v6713_v10  ;;  %v6731_v61 = vsel %vm14718_vm7, %v11306_v21, %v6730_v50  ;;  %v6367_v23 = vor.u32 %v6366_v31, %v6363_v27  ;;  %v5451_v27 = vld [vmem:[#allocation2 + $0xf0] sm:$0xe]  ;;  %v17338_v21 = vld [vmem:[#allocation9_spill] sm:$0xff] }
 0x471   : > { %v6286_v49 = vpop.f32.mrf.mxu3  ;;  %v6800_v9 = vunpack.c.l.b16 %v6731_v61  ;;  %v14883_v58 = vadd.f32 %v6284_v62, %v6111_v59  ;;  %v6376_v14 = vrot.slane %v6374_v22, 6  ;;  %v6359_v62 = vrot.slane %v6358_v51, 4 }
 0x472   : > { %v6482_v34 = vpop.f32.mrf.mxu0  ;;  %v14888_v8 = vpack.c.b16 %v6795_v43, %v6794_v16  ;;  %v6369_v61 = vrot.slane %v6367_v23, 4  ;;  %v6380_v22 = vshrl.u32 %v5451_v27, 16  ;;  %v5453_v43 = vld [vmem:[#allocation2 + $0xf8] sm:$0x3] }
 0x473   : > { %v14868_v1 = vadd.f32 %v6482_v34, %v14665_v48  ;;  %v6733_v48 = vrot.slane %v6594_v53, 7  ;;  %v6732_v34 = vrot.slane %v6730_v50, 4  ;;  %v6373_v53 = vrot.slane %v6371_v5, 5  ;;  %v14892_v50 = vld [vmem:[#allocation2 + $0xf4] sm:$0xf] }
 0x474   : > { %v6368_v51 = vsel %vm12846_vm5, %v6359_v62, %v6367_v23 }
 0x475   : > { %v5336_v26 = vpop.f32.mrf.mxu1  ;;  %v6734_v45 = vsel %vm14718_vm7, %v6732_v34, %v6733_v48  ;;  %v6377_v5 = vor.u32 %v6376_v14, %v6373_v53  ;;  %v5224_v48 = vadd.f32 %v14598_v33, %v17338_v21  ;;  %v6392_v34 = vshll.u32 %v14892_v50, 16  ;;  %v11798_v14 = vld [vmem:[#allocation2 + $0x70] sm:$0xf] }
 0x476   : > { %v14885_v52 = vadd.f32 %v5336_v26, %v5221_v42  ;;  %v6801_v44 = vunpack.c.l.b16 %v6734_v45  ;;  %v6060_v32 = vpop.f32.mrf.mxu2  ;;  %v6389_v42 = vshrl.u32 %v14892_v50, 16  ;;  %v6382_v26 = vrot.slane %v6380_v22, 5 }
 0x477   : > { %v6112_v54 = vadd.f32 %v6060_v32, %v14802_v20  ;;  %v11723_v20 = vld [vmem:[%s17017_s13 + $0x38] sm:$0xff]  ;;  %v6435_v32 = vunpack.c.l.b16 %v6368_v51  ;;  %v6394_v23 = vrot.slane %v6392_v34, 6 }
 0x478   : > { %v14890_v7 = vpack.c.b16 %v6801_v44, %v6800_v9  ;;  %8655 = vmatpush.bf16.msrb.mxu0 %v11723_v20  ;;  %v6391_v53 = vrot.slane %v6389_v42, 5  ;;  %v6737_v44 = vrot.slane %v11798_v14, 7  ;;  %v6402_v20 = vshll.u32 %v5453_v43, 16 }
 0x479   : > { %v6289_v31 = vpop.f32.mrf.mxu3  ;;  %v14901_v59 = vadd.f32 %v6286_v49, %v6112_v54  ;;  %v6378_v49 = vsel %vm12846_vm5, %v6369_v61, %v6377_v5  ;;  %v6595_v61 = vld [vmem:[#allocation2 + $0x6c] sm:$0x8]  ;;  %v6596_v5 = vld [vmem:[#allocation2 + $0x74] sm:$0x7] }
 0x47a   : > { %11354 = vmatmul.msk.bf16.gmra.mxu3 %vm1290_vm3, %v14890_v7  ;;  %v6436_v54 = vunpack.c.l.b16 %v6378_v49  ;;  %v11307_v21 = vrot.slane %v6595_v61, 11  ;;  %v6740_v22 = vrot.slane %v6596_v5, 7 }
 0x47b   : > { %17337 = vst [vmem:[#allocation41_spill] sm:$0xff] %v14901_v59  ;;  %11335 = vmatmul.msk.bf16.gmra.mxu2 %vm1290_vm3, %v14888_v8  ;;  %v6404_v59 = vrot.slane %v6402_v20, 6 }
 0x47c   : > { %v6441_v34 = vpack.c.b16 %v6436_v54, %v6435_v32 }
 0x47d   : > { %11294 = vmatmul.msk.bf16.gmra.mxu0 %vm1290_vm3, %v14753_v2  ;;  %v6383_v2 = vshll.u32 %v5451_v27, 16  ;;  %v5339_v10 = vpop.f32.mrf.mxu1  ;;  %v6399_v27 = vshrl.u32 %v5453_v43, 16  ;;  %v6395_v43 = vor.u32 %v6394_v23, %v6391_v53 }
 0x47e   : > { %v14913_v16 = vadd.f32 %v5339_v10, %v5224_v48  ;;  %v6063_v33 = vpop.f32.mrf.mxu2  ;;  %v6739_v48 = vrot.slane %v6737_v44, 4 }
 0x47f   : > { %v6113_v45 = vadd.f32 %v6063_v33, %v14822_v25  ;;  %v6385_v9 = vrot.slane %v6383_v2, 6  ;;  %11318 = vmatmul.msk.bf16.gmra.mxu1 %vm1290_vm3, %v14849_v36  ;;  %v17339_v25 = vld [vmem:[#allocation8_spill] sm:$0xff]  ;;  %v6738_v36 = vsel %vm14718_vm7, %v11307_v21, %v6737_v44  ;;  %v6401_v61 = vrot.slane %v6399_v27, 5 }
 0x480   : > { %v5226_v2 = vadd.f32 %v14615_v38, %v17339_v25  ;;  %v6741_v42 = vsel %vm14718_vm7, %v6739_v48, %v6740_v22  ;;  %v6802_v33 = vunpack.c.l.b16 %v6738_v36  ;;  %v5454_v25 = vld [vmem:[#allocation2 + $0xfc] sm:$0xe]  ;;  %v14931_v21 = vld [vmem:[#allocation2 + $0x100] sm:$0xf]  ;;  %v5456_v36 = vld [vmem:[#allocation2 + $0x104] sm:$0x3] }
 0x481   : > { %v6291_v62 = vpop.f32.mrf.mxu3  ;;  %v14918_v10 = vadd.f32 %v6289_v31, %v6113_v45  ;;  %v6386_v51 = vor.u32 %v6385_v9, %v6382_v26  ;;  %v6803_v14 = vunpack.c.l.b16 %v6741_v42  ;;  %v6397_v9 = vrot.slane %v6395_v43, 4  ;;  %v17341_v27 = vld [vmem:[#allocation32_spill] sm:$0xff] }
 0x482   : > { %v6405_v32 = vor.u32 %v6404_v59, %v6401_v61  ;;  %v6408_v54 = vshrl.u32 %v5454_v25, 16  ;;  %v6411_v23 = vshll.u32 %v5454_v25, 16  ;;  %v5229_v20 = vadd.f32 %v14629_v37, %v17341_v27 }
 0x483   : > { %v14928_v45 = vpack.c.b16 %v6803_v14, %v6802_v33  ;;  %v6387_v26 = vrot.slane %v6386_v51, 4  ;;  %v6420_v48 = vshll.u32 %v14931_v21, 16  ;;  %v11799_v14 = vld [vmem:[#allocation2 + $0x7c] sm:$0xf]  ;;  %v6430_v25 = vshll.u32 %v5456_v36, 16 }
 0x484   : > { %v6413_v37 = vrot.slane %v6411_v23, 6  ;;  %v6744_v61 = vrot.slane %v11799_v14, 7 }
 0x485   : > { %v5341_v49 = vpop.f32.mrf.mxu1  ;;  %v6396_v59 = vsel %vm12846_vm5, %v6387_v26, %v6395_v43  ;;  %v6422_v33 = vrot.slane %v6420_v48, 6 }
 0x486   : > { %v14926_v5 = vadd.f32 %v5341_v49, %v5226_v2  ;;  %v6065_v31 = vpop.f32.mrf.mxu2 }
 0x487   : > { %v6114_v38 = vadd.f32 %v6065_v31, %v14841_v56  ;;  %v6417_v56 = vshrl.u32 %v14931_v21, 16  ;;  %v6437_v31 = vunpack.c.l.b16 %v6396_v59 }
 0x489   : > { %v6294_v44 = vpop.f32.mrf.mxu3  ;;  %v14936_v53 = vadd.f32 %v6291_v62, %v6114_v38  ;;  %v6406_v62 = vsel %vm12846_vm5, %v6397_v9, %v6405_v32  ;;  %v6419_v49 = vrot.slane %v6417_v56, 5  ;;  %v6427_v38 = vshrl.u32 %v5456_v36, 16  ;;  %v6597_v9 = vld [vmem:[#allocation2 + $0x78] sm:$0x8]  ;;  %v6598_v32 = vld [vmem:[#allocation2 + $0x80] sm:$0x7] }
 0x48a   : > { %11355 = vmatmul.msk.bf16.gmra.mxu3 %vm1290_vm3, %v14928_v45  ;;  %v6438_v43 = vunpack.c.l.b16 %v6406_v62  ;;  %v11308_v27 = vrot.slane %v6597_v9, 11 }
 0x48b   : > { %17340 = vst [vmem:[#allocation44_spill] sm:$0xff] %v14936_v53  ;;  %11336 = vmatmul.msk.bf16.gmra.mxu2 %vm1290_vm3, %v14790_v0  ;;  %v6423_v14 = vor.u32 %v6422_v33, %v6419_v49  ;;  %v6429_v9 = vrot.slane %v6427_v38, 5  ;;  %v6432_v53 = vrot.slane %v6430_v25, 6  ;;  %v11800_v25 = vld [vmem:[#allocation2 + $0x88] sm:$0xf] }
 0x48d   : > { %11295 = vmatmul.msk.bf16.gmra.mxu0 %vm1290_vm3, %v6441_v34  ;;  %v5344_v22 = vpop.f32.mrf.mxu1  ;;  %v6410_v34 = vrot.slane %v6408_v54, 5  ;;  %v6747_v54 = vrot.slane %v6598_v32, 7 }
 0x48e   : > { %v14948_v2 = vadd.f32 %v5344_v22, %v5229_v20  ;;  %v6068_v42 = vpop.f32.mrf.mxu2  ;;  %v6746_v20 = vrot.slane %v6744_v61, 4  ;;  %v6442_v22 = vpack.c.b16 %v6438_v43, %v6437_v31  ;;  %v6433_v31 = vor.u32 %v6432_v53, %v6429_v9 }
 0x48f   : > { %v6115_v51 = vadd.f32 %v6068_v42, %v14865_v55  ;;  %11319 = vmatmul.msk.bf16.gmra.mxu1 %vm1290_vm3, %v14888_v8  ;;  %v17342_v55 = vld [vmem:[#allocation7_spill] sm:$0xff]  ;;  %v6745_v8 = vsel %vm14718_vm7, %v11308_v27, %v6744_v61  ;;  %v6414_v59 = vor.u32 %v6413_v37, %v6410_v34  ;;  %v6425_v27 = vrot.slane %v6423_v14, 4 }
 0x490   : > { %v5231_v56 = vadd.f32 %v14646_v63, %v17342_v55  ;;  %v6748_v48 = vsel %vm14718_vm7, %v6746_v20, %v6747_v54  ;;  %v6804_v36 = vunpack.c.l.b16 %v6745_v8  ;;  %v5234_v37 = vadd.f32 %v14660_v19, %v14461_v47  ;;  %v6599_v54 = vld [vmem:[#allocation2 + $0x84] sm:$0x8] }
 0x491   : > { %v6296_v26 = vpop.f32.mrf.mxu3  ;;  %v14953_v23 = vadd.f32 %v6294_v44, %v6115_v51  ;;  %v6805_v42 = vunpack.c.l.b16 %v6748_v48  ;;  %v6415_v61 = vrot.slane %v6414_v59, 4  ;;  %v6434_v33 = vsel %vm12846_vm5, %v6425_v27, %v6433_v31 }
 0x492   : > { %v6440_v19 = vunpack.c.l.b16 %v6434_v33  ;;  %v11309_v8 = vrot.slane %v6599_v54, 11  ;;  %v5239_v27 = vadd.f32 %v17343_v4, %v14499_v12  ;;  %v17345_v54 = vld [vmem:[#allocation34_spill] sm:$0xff] }
 0x493   : > { %v14963_v51 = vpack.c.b16 %v6805_v42, %v6804_v36 }
 0x495   : > { %v5346_v62 = vpop.f32.mrf.mxu1 }
 0x496   : > { %v14961_v32 = vadd.f32 %v5346_v62, %v5231_v56  ;;  %v6070_v44 = vpop.f32.mrf.mxu2  ;;  %v6600_v56 = vld [vmem:[#allocation2 + $0x8c] sm:$0x7] }
 0x497   : > { %v6116_v63 = vadd.f32 %v6070_v44, %v14885_v52  ;;  %v6424_v52 = vsel %vm12846_vm5, %v6415_v61, %v6423_v14  ;;  %vm15431_vm5 = vmor %vm1158_vm9, %vm8000_vm4 }
 0x498   : > { %v6439_v47 = vunpack.c.l.b16 %v6424_v52 }
 0x499   : > { %v6299_v55 = vpop.f32.mrf.mxu3  ;;  %v14969_v34 = vadd.f32 %v6296_v26, %v6116_v63  ;;  %v6751_v26 = vrot.slane %v11800_v25, 7  ;;  %v6602_v25 = vld [vmem:[#allocation2 + $0x98] sm:$0x7] }
 0x49a   : > { %11356 = vmatmul.msk.bf16.gmra.mxu3 %vm1290_vm3, %v14963_v51  ;;  %v6443_v14 = vpack.c.b16 %v6440_v19, %v6439_v47  ;;  %v6761_v19 = vrot.slane %v6602_v25, 7 }
 0x49b   : > { %11337 = vmatmul.msk.bf16.gmra.mxu2 %vm1290_vm3, %v14851_v46  ;;  %v6753_v48 = vrot.slane %v6751_v26, 4 }
 0x49d   : > { %11296 = vmatmul.msk.bf16.gmra.mxu0 %vm1290_vm3, %v6442_v22  ;;  %v5349_v49 = vpop.f32.mrf.mxu1  ;;  %v6754_v22 = vrot.slane %v6600_v56, 7 }
 0x49e   : > { %v5387_v43 = vadd.f32 %v5349_v49, %v5234_v37  ;;  %v6073_v53 = vpop.f32.mrf.mxu2 }
 0x49f   : > { %v6117_v38 = vadd.f32 %v6073_v53, %v14913_v16  ;;  %11320 = vmatmul.msk.bf16.gmra.mxu1 %vm1290_vm3, %v14790_v0  ;;  %v6752_v16 = vsel %vm14718_vm7, %v11309_v8, %v6751_v26  ;;  %v6755_v0 = vsel %vm14718_vm7, %v6753_v48, %v6754_v22 }
 0x4a0   : > { %v6806_v36 = vunpack.c.l.b16 %v6752_v16  ;;  %v6807_v42 = vunpack.c.l.b16 %v6755_v0 }
 0x4a1   : > { %v6301_v20 = vpop.f32.mrf.mxu3  ;;  %v14982_v59 = vadd.f32 %v6299_v55, %v6117_v38  ;;  %v6601_v38 = vld [vmem:[#allocation2 + $0x90] sm:$0x8] }
 0x4a2   : > { %v14990_v63 = vpack.c.b16 %v6807_v42, %v6806_v36  ;;  %v11310_v26 = vrot.slane %v6601_v38, 11 }
 0x4a5   : > { %v5351_v62 = vpop.f32.mrf.mxu1 }
 0x4a6   : > { %v5388_v9 = vadd.f32 %v5351_v62, %v5236_v15  ;;  %v6075_v44 = vpop.f32.mrf.mxu2 }
 0x4a7   : > { %v6118_v55 = vadd.f32 %v6075_v44, %v14926_v5  ;;  %v11801_v5 = vld [vmem:[#allocation2 + $0x94] sm:$0xf] }
 0x4a8   : > { %v6758_v33 = vrot.slane %v11801_v5, 7 }
 0x4a9   : > { %v6304_v61 = vpop.f32.mrf.mxu3  ;;  %v14996_v57 = vadd.f32 %v6301_v20, %v6118_v55  ;;  %v17344_v20 = vld [vmem:[#allocation49_spill] sm:$0xff] }
 0x4aa   : > { %11357 = vmatmul.msk.bf16.gmra.mxu3 %vm1290_vm3, %v14990_v63  ;;  %v6760_v47 = vrot.slane %v6758_v33, 4  ;;  %v5241_v56 = vadd.f32 %v17345_v54, %v17344_v20  ;;  %v6759_v8 = vsel %vm14718_vm7, %v11310_v26, %v6758_v33 }
 0x4ab   : > { %11338 = vmatmul.msk.bf16.gmra.mxu2 %vm1290_vm3, %v14890_v7  ;;  %v6808_v48 = vunpack.c.l.b16 %v6759_v8 }
 0x4ad   : > { %11297 = vmatmul.msk.bf16.gmra.mxu0 %vm1290_vm3, %v6443_v14  ;;  %v5354_v31 = vpop.f32.mrf.mxu1 }
 0x4ae   : > { %v5389_v37 = vadd.f32 %v5354_v31, %v5239_v27  ;;  %v6078_v49 = vpop.f32.mrf.mxu2  ;;  %v6603_v31 = vld [vmem:[#allocation2 + $0x9c] sm:$0x8] }
 0x4af   : > { %v6119_v52 = vadd.f32 %v6078_v49, %v14948_v2  ;;  %11321 = vmatmul.msk.bf16.gmra.mxu1 %vm1290_vm3, %v14851_v46  ;;  %v6762_v2 = vsel %vm14718_vm7, %v6760_v47, %v6761_v19  ;;  %v11311_v49 = vrot.slane %v6603_v31, 11 }
 0x4b0   : > { %v6809_v22 = vunpack.c.l.b16 %v6762_v2 }
 0x4b1   : > { %v6306_v53 = vpop.f32.mrf.mxu3  ;;  %v15005_v12 = vadd.f32 %v6304_v61, %v6119_v52  ;;  %v11802_v61 = vld [vmem:[#allocation2 + $0xa0] sm:$0xf] }
 0x4b2   : > { %v15013_v0 = vpack.c.b16 %v6809_v22, %v6808_v48  ;;  %v6765_v4 = vrot.slane %v11802_v61, 7 }
 0x4b4   : > { %v6767_v52 = vrot.slane %v6765_v4, 4 }
 0x4b5   : > { %v5356_v46 = vpop.f32.mrf.mxu1 }
 0x4b6   : > { %v5390_v15 = vadd.f32 %v5356_v46, %v5241_v56  ;;  %v6080_v16 = vpop.f32.mrf.mxu2  ;;  %v11803_v46 = vld [vmem:[#allocation2 + $0xac] sm:$0xf] }
 0x4b7   : > { %v6120_v62 = vadd.f32 %v6080_v16, %v14961_v32  ;;  %v6604_v32 = vld [vmem:[#allocation2 + $0xa4] sm:$0x7]  ;;  %v6772_v48 = vrot.slane %v11803_v46, 7  ;;  %v6605_v16 = vld [vmem:[#allocation2 + $0xa8] sm:$0x8] }
 0x4b8   : > { %v6768_v5 = vrot.slane %v6604_v32, 7 }
 0x4b9   : > { %v6309_v36 = vpop.f32.mrf.mxu3  ;;  %v15018_v42 = vadd.f32 %v6306_v53, %v6120_v62  ;;  %v6766_v53 = vsel %vm14718_vm7, %v11311_v49, %v6765_v4  ;;  %v11312_v62 = vrot.slane %v6605_v16, 11 }
 0x4ba   : > { %11358 = vmatmul.msk.bf16.gmra.mxu3 %vm1290_vm3, %v15013_v0  ;;  %v6769_v38 = vsel %vm14718_vm7, %v6767_v52, %v6768_v5  ;;  %v6810_v25 = vunpack.c.l.b16 %v6766_v53 }
 0x4bb   : > { %11339 = vmatmul.msk.bf16.gmra.mxu2 %vm1290_vm3, %v14928_v45  ;;  %v6811_v26 = vunpack.c.l.b16 %v6769_v38  ;;  %v6773_v61 = vsel %vm14718_vm7, %v11312_v62, %v6772_v48 }
 0x4bd   : > { %v6892_v14 = vpop.f32.mrf.mxu1  ;;  %v15030_v47 = vpack.c.b16 %v6811_v26, %v6810_v25 }
 0x4be   : > { %v6083_v44 = vpop.f32.mrf.mxu2  ;;  %v6972_v38 = vadd.f32 %v6892_v14, %v14731_v11 }
 0x4bf   : > { %v6121_v55 = vadd.f32 %v6083_v44, %v5387_v43  ;;  %11322 = vmatmul.msk.bf16.gmra.mxu1 %vm1290_vm3, %v14890_v7 }
 0x4c1   : > { %v6311_v27 = vpop.f32.mrf.mxu3  ;;  %v15024_v33 = vadd.f32 %v6309_v36, %v6121_v55  ;;  %v6774_v36 = vrot.slane %v6772_v48, 4 }
 0x4c5   : > { %v6894_v43 = vpop.f32.mrf.mxu1 }
 0x4c6   : > { %v6085_v7 = vpop.f32.mrf.mxu2 }
 0x4c7   : > { %v6122_v19 = vadd.f32 %v6085_v7, %v5388_v9  ;;  %v6606_v9 = vld [vmem:[#allocation2 + $0xb0] sm:$0x7]  ;;  %v15062_v7 = vld [vmem:[%s17015_s11] ss:$0 sm:$0xff] }
 0x4c8   : > { %v6775_v44 = vrot.slane %v6606_v9, 7 }
 0x4c9   : > { %v6314_v20 = vpop.f32.mrf.mxu3  ;;  %v15034_v54 = vadd.f32 %v6311_v27, %v6122_v19  ;;  %v6812_v27 = vunpack.c.l.b16 %v6773_v61  ;;  %v6973_v61 = vadd.f32 %v6894_v43, %v14749_v17 }
 0x4ca   : > { %11359 = vmatmul.msk.bf16.gmra.mxu3 %vm1290_vm3, %v15030_v47  ;;  %v6776_v4 = vsel %vm14718_vm7, %v6774_v36, %v6775_v44 }
 0x4cb   : > { %11340 = vmatmul.msk.bf16.gmra.mxu2 %vm1290_vm3, %v14963_v51 }
 0x4cd   : > { %v6897_v56 = vpop.f32.mrf.mxu1 }
 0x4ce   : > { %v6088_v8 = vpop.f32.mrf.mxu2  ;;  %v6974_v43 = vadd.f32 %v6897_v56, %v14768_v30 }
 0x4cf   : > { %v6123_v2 = vadd.f32 %v6088_v8, %v5389_v37  ;;  %11323 = vmatmul.msk.bf16.gmra.mxu1 %vm1290_vm3, %v14928_v45  ;;  %v6813_v45 = vunpack.c.l.b16 %v6776_v4  ;;  %v6608_v8 = vld [vmem:[#allocation2 + $0xbc] sm:$0x7] }
 0x4d1   : > { %v6316_v22 = vpop.f32.mrf.mxu3  ;;  %v15040_v55 = vadd.f32 %v6314_v20, %v6123_v2  ;;  %v15048_v32 = vpack.c.b16 %v6813_v45, %v6812_v27  ;;  %v6607_v20 = vld [vmem:[#allocation2 + $0xb4] sm:$0x8]  ;;  %v15081_v45 = vpop.f32.mrf.mxu0 }
 0x4d2   : > { %v11313_v46 = vrot.slane %v6607_v20, 11 }
 0x4d5   : > { %v15046_v37 = vpop.f32.mrf.mxu1 }
 0x4d6   : > { %v6090_v31 = vpop.f32.mrf.mxu2 }
 0x4d7   : > { %v6124_v49 = vadd.f32 %v6090_v31, %v5390_v15  ;;  %v11804_v15 = vld [vmem:[#allocation2 + $0xb8] sm:$0xf] }
 0x4d8   : > { %v6779_v19 = vrot.slane %v11804_v15, 7 }
 0x4d9   : > { %v15052_v52 = vadd.f32 %v6316_v22, %v6124_v49  ;;  %v7236_v5 = vpop.f32.mrf.mxu3  ;;  %v6782_v22 = vrot.slane %v6608_v8, 7 }
 0x4da   : > { %11360 = vmatmul.msk.bf16.gmra.mxu3 %vm1290_vm3, %v15048_v32  ;;  %v6781_v48 = vrot.slane %v6779_v19, 4  ;;  %v6780_v14 = vsel %vm14718_vm7, %v11313_v46, %v6779_v19  ;;  %v11805_v46 = vld [vmem:[#allocation2 + $0xc4] sm:$0xf] }
 0x4db   : > { %11341 = vmatmul.msk.bf16.gmra.mxu2 %vm1290_vm3, %v14990_v63  ;;  %v6814_v36 = vunpack.c.l.b16 %v6780_v14  ;;  %v15095_v14 = vpop.f32.mrf.mxu0 }
 0x4dc   : > { %v6783_v16 = vsel %vm14718_vm7, %v6781_v48, %v6782_v22  ;;  %v7015_v48 = vrot.slane %v11805_v46, 7  ;;  %v6609_v22 = vld [vmem:[#allocation2 + $0xc0] sm:$0x8] }
 0x4dd   : > { %v15056_v53 = vpop.f32.mrf.mxu1  ;;  %v6815_v44 = vunpack.c.l.b16 %v6783_v16 }
 0x4de   : > { %v7064_v25 = vpop.f32.mrf.mxu2 }
 0x4df   : > { %v7144_v26 = vadd.f32 %v7064_v25, %v6972_v38  ;;  %11324 = vmatmul.msk.bf16.gmra.mxu1 %vm1290_vm3, %v14963_v51  ;;  %v15074_v51 = vld [vmem:[%s17016_s12] ss:$0 sm:$0xff]  ;;  %v15079_v27 = vpack.c.b16 %v6815_v44, %v6814_v36  ;;  %v11330_v36 = vrot.slane %v6609_v22, 11  ;;  %v7017_v44 = vrot.slane %v7015_v48, 4 }
 0x4e1   : > { %v7316_v2 = vadd.f32 %v7236_v5, %v7144_v26  ;;  %v7238_v9 = vpop.f32.mrf.mxu3 }
 0x4e3   : > { %v7352_v11 = vmul.f32 %v15062_v7, %v7316_v2 }
 0x4e5   : > { %v15076_v62 = vpop.f32.mrf.mxu1  ;;  %v7388_v49 = vadd.f32 %v15074_v51, %v7352_v11  ;;  %v6610_v11 = vld [vmem:[#allocation2 + $0xc8] sm:$0x7] }
 0x4e6   : > { %v7066_v4 = vpop.f32.mrf.mxu2  ;;  %v7018_v30 = vrot.slane %v6610_v11, 7 }
 0x4e7   : > { %v7145_v31 = vadd.f32 %v7066_v4, %v6973_v61  ;;  %v7420_v25 = vmax.f32 %v7388_v49, 0.0 }
 0x4e9   : > { %v7317_v5 = vadd.f32 %v7238_v9, %v7145_v31  ;;  %v7452_v2 = vpack.c.bf16 %v7420_v25, %v7420_v25  ;;  %v6975_v25 = vadd.f32 %v15046_v37, %v14786_v35  ;;  %v15115_v35 = vpop.f32.mrf.mxu0 }
 0x4ea   : > { %11361 = vmatmul.msk.bf16.gmra.mxu3 %vm1290_vm3, %v15079_v27  ;;  %v7241_v17 = vpop.f32.mrf.mxu3 }
 0x4eb   : > { %v7353_v38 = vmul.f32 %v15062_v7, %v7317_v5  ;;  %11342 = vmatmul.msk.bf16.gmra.mxu2 %vm1290_vm3, %v15013_v0  ;;  %v7740_v61 = vunpack.c.l.b16 %v7452_v2  ;;  %v7019_v5 = vsel %vm14718_vm7, %v7017_v44, %v7018_v30  ;;  %v11722_v2 = vld [vmem:[%s17017_s13 + $0x30] sm:$0xff] }
 0x4ec   : > { %8656 = vmatpush.bf16.msrb.mxu0 %v11722_v2 }
 0x4ed   : > { %v15089_v26 = vpop.f32.mrf.mxu1  ;;  %v7389_v15 = vadd.f32 %v15074_v51, %v7353_v38 }
 0x4ee   : > { %v7069_v19 = vpop.f32.mrf.mxu2 }
 0x4ef   : > { %v7146_v20 = vadd.f32 %v7069_v19, %v6974_v43  ;;  %11325 = vmatmul.msk.bf16.gmra.mxu1 %vm1290_vm3, %v14990_v63  ;;  %v7421_v8 = vmax.f32 %v7389_v15, 0.0  ;;  %v7016_v63 = vsel %vm14718_vm7, %v11330_v36, %v7015_v48  ;;  %v7035_v43 = vunpack.c.l.b16 %v7019_v5  ;;  %v6612_v5 = vld [vmem:[#allocation2 + $0xd4] sm:$0x7] }
 0x4f0   : > { %v7034_v38 = vunpack.c.l.b16 %v7016_v63 }
 0x4f1   : > { %v7318_v16 = vadd.f32 %v7241_v17, %v7146_v20  ;;  %v7453_v9 = vpack.c.bf16 %v7421_v8, %v7421_v8 }
 0x4f2   : > { %v7243_v49 = vpop.f32.mrf.mxu3  ;;  %v15108_v8 = vpack.c.b16 %v7035_v43, %v7034_v38 }
 0x4f3   : > { %v7354_v56 = vmul.f32 %v15062_v7, %v7318_v16  ;;  %v7741_v4 = vunpack.c.l.b16 %v7453_v9  ;;  %v6976_v16 = vadd.f32 %v15056_v53, %v14811_v29  ;;  %v7025_v53 = vrot.slane %v6612_v5, 7 }
 0x4f4   : > { %v6978_v5 = vadd.f32 %v15089_v26, %v14846_v13 }
 0x4f5   : > { %v15100_v31 = vpop.f32.mrf.mxu1  ;;  %v7772_v17 = vpack.c.b16 %v7741_v4, %v7740_v61  ;;  %v7390_v19 = vadd.f32 %v15074_v51, %v7354_v56  ;;  %v17346_v61 = vld [vmem:[#allocation27_spill] sm:$0xff]  ;;  %v11806_v4 = vld [vmem:[#allocation2 + $0xd0] sm:$0xf] }
 0x4f6   : > { %v7071_v15 = vpop.f32.mrf.mxu2  ;;  %v7022_v63 = vrot.slane %v11806_v4, 7 }
 0x4f7   : > { %v7147_v20 = vadd.f32 %v7071_v15, %v6975_v25  ;;  %7788 = vrot.lane.b32.xlu1 %v7772_v17, %s11841_s24  ;;  %v7422_v37 = vmax.f32 %v7390_v19, 0.0 }
 0x4f8   : > { %v7024_v29 = vrot.slane %v7022_v63, 4 }
 0x4f9   : > { %v7319_v46 = vadd.f32 %v7243_v49, %v7147_v20  ;;  %v7454_v44 = vpack.c.bf16 %v7422_v37, %v7422_v37  ;;  %v6611_v49 = vld [vmem:[#allocation2 + $0xcc] sm:$0x8] }
 0x4fa   : > { %11362 = vmatmul.msk.bf16.gmra.mxu3 %vm1290_vm3, %v15108_v8  ;;  %v11331_v17 = vrot.slane %v6611_v49, 11 }
 0x4fb   : > { %v7355_v48 = vmul.f32 %v15062_v7, %v7319_v46  ;;  %11343 = vmatmul.msk.bf16.gmra.mxu2 %vm1290_vm3, %v15030_v47  ;;  %v7742_v15 = vunpack.c.l.b16 %v7454_v44  ;;  %v7026_v46 = vsel %vm14718_vm7, %v7024_v29, %v7025_v53 }
 0x4fc   : > { %v7023_v20 = vsel %vm14718_vm7, %v11331_v17, %v7022_v63 }
 0x4fd   : > { %v15120_v22 = vpop.f32.mrf.mxu1  ;;  %v7246_v11 = vpop.f32.mrf.mxu3  ;;  %v7391_v9 = vadd.f32 %v15074_v51, %v7355_v48  ;;  %v7036_v37 = vunpack.c.l.b16 %v7023_v20  ;;  %v6614_v20 = vld [vmem:[#allocation2 + $0xe0] sm:$0x7] }
 0x4fe   : > { %v7074_v36 = vpop.f32.mrf.mxu2  ;;  %v15136_v48 = vpop.f32.mrf.mxu0  ;;  %v7032_v13 = vrot.slane %v6614_v20, 7  ;;  %v6616_v20 = vld [vmem:[#allocation2 + $0xec] sm:$0x7] }
 0x4ff   : > { %v7423_v30 = vmax.f32 %v7391_v9, 0.0  ;;  %v7148_v56 = vadd.f32 %v7074_v36, %v6976_v16  ;;  %11326 = vmatmul.msk.bf16.gmra.mxu1 %vm1290_vm3, %v15013_v0  ;;  %7566 = vrot.lane.b32.xlu1 %v17346_v61, %s11839_s23  ;;  %v7037_v9 = vunpack.c.l.b16 %v7026_v46 }
 0x501   : > { %v7320_v38 = vadd.f32 %v7246_v11, %v7148_v56  ;;  %v7455_v25 = vpack.c.bf16 %v7423_v30, %v7423_v30  ;;  %v6977_v11 = vadd.f32 %v15076_v62, %v14825_v39  ;;  %v17347_v56 = vld [vmem:[#allocation54_spill] sm:$0xff]  ;;  %v15144_v61 = vpack.c.b16 %v7037_v9, %v7036_v37 }
 0x503   : > { %v7356_v43 = vmul.f32 %v15062_v7, %v7320_v38  ;;  %v7743_v19 = vunpack.c.l.b16 %v7455_v25 }
 0x505   : > { %v15132_v0 = vpop.f32.mrf.mxu1  ;;  %v7248_v2 = vpop.f32.mrf.mxu3  ;;  %v7773_v16 = vpack.c.b16 %v7743_v19, %v7742_v15  ;;  %v7392_v36 = vadd.f32 %v15074_v51, %v7356_v43  ;;  %v17348_v15 = vld [vmem:[#allocation56_spill] sm:$0xff]  ;;  %v6613_v19 = vld [vmem:[#allocation2 + $0xd8] sm:$0x8] }
 0x506   : > { %v7076_v44 = vpop.f32.mrf.mxu2  ;;  %v15156_v29 = vpop.f32.mrf.mxu0  ;;  %v11332_v37 = vrot.slane %v6613_v19, 11  ;;  %v6615_v19 = vld [vmem:[#allocation2 + $0xe4] sm:$0x8] }
 0x507   : > { %v7149_v30 = vadd.f32 %v7076_v44, %v6977_v11  ;;  %7680 = vrot.lane.b32.xlu1 %v17347_v56, %s11840_s18  ;;  %7790 = vrot.lane.b32.xlu2 %v7773_v16, %s11841_s24  ;;  %v7424_v63 = vmax.f32 %v7392_v36, 0.0 }
 0x509   : > { %v7321_v4 = vadd.f32 %v7248_v2, %v7149_v30  ;;  %v7456_v25 = vpack.c.bf16 %v7424_v63, %v7424_v63  ;;  %v11807_v2 = vld [vmem:[#allocation2 + $0xdc] sm:$0xf] }
 0x50a   : > { %11363 = vmatmul.msk.bf16.gmra.mxu3 %vm1290_vm3, %v15144_v61  ;;  %v7029_v46 = vrot.slane %v11807_v2, 7 }
 0x50b   : > { %v7357_v39 = vmul.f32 %v15062_v7, %v7321_v4  ;;  %11344 = vmatmul.msk.bf16.gmra.mxu2 %vm1290_vm3, %v15048_v32  ;;  %v7744_v9 = vunpack.c.l.b16 %v7456_v25 }
 0x50c   : > { %v7031_v16 = vrot.slane %v7029_v46, 4  ;;  %v7030_v36 = vsel %vm14718_vm7, %v11332_v37, %v7029_v46  ;;  %v7190_v37 = vrot.slane %v6616_v20, 7 }
 0x50d   : > { %v15151_v62 = vpop.f32.mrf.mxu1  ;;  %v7251_v49 = vpop.f32.mrf.mxu3  ;;  %v7393_v38 = vadd.f32 %v15074_v51, %v7357_v39  ;;  %v7038_v56 = vunpack.c.l.b16 %v7030_v36 }
 0x50e   : > { %v7079_v17 = vpop.f32.mrf.mxu2  ;;  %v15178_v2 = vpop.f32.mrf.mxu0 }
 0x50f   : > { %v7425_v53 = vmax.f32 %v7393_v38, 0.0  ;;  %v7150_v43 = vadd.f32 %v7079_v17, %v6978_v5  ;;  %11327 = vmatmul.msk.bf16.gmra.mxu1 %vm1290_vm3, %v15030_v47  ;;  %7682 = vrot.lane.b32.xlu1 %v17348_v15, %s11840_s18  ;;  %v7033_v47 = vsel %vm14718_vm7, %v7031_v16, %v7032_v13  ;;  %v7187_v17 = vrot.slane %v14843_v24, 7  ;;  %v17349_v15 = vld [vmem:[#allocation14_spill] sm:$0xff] }
 0x510   : > { %v7039_v39 = vunpack.c.l.b16 %v7033_v47  ;;  %v17350_v24 = vld [vmem:[#allocation26_spill] sm:$0xff] }
 0x511   : > { %v7322_v26 = vadd.f32 %v7251_v49, %v7150_v43  ;;  %v7457_v11 = vpack.c.bf16 %v7425_v53, %v7425_v53  ;;  %v6979_v49 = vadd.f32 %v15100_v31, %v14868_v1  ;;  %v11349_v1 = vrot.slane %v6615_v19, 11 }
 0x512   : > { %v15171_v25 = vpack.c.b16 %v7039_v39, %v7038_v56  ;;  %v7189_v31 = vrot.slane %v7187_v17, 4  ;;  %v6553_v13 = vadd.f32 %v15081_v45, %v17350_v24 }
 0x513   : > { %v7358_v44 = vmul.f32 %v15062_v7, %v7322_v26  ;;  %v7745_v30 = vunpack.c.l.b16 %v7457_v11  ;;  %v7188_v47 = vsel %vm14718_vm7, %v11349_v1, %v7187_v17 }
 0x514   : > { %v6980_v36 = vadd.f32 %v15120_v22, %v6553_v13  ;;  %v7191_v45 = vsel %vm14718_vm7, %v7189_v31, %v7190_v37 }
 0x515   : > { %v15167_v4 = vpop.f32.mrf.mxu1  ;;  %v7253_v63 = vpop.f32.mrf.mxu3  ;;  %v7774_v5 = vpack.c.b16 %v7745_v30, %v7744_v9  ;;  %v7394_v53 = vadd.f32 %v15074_v51, %v7358_v44 }
 0x516   : > { %v7081_v38 = vpop.f32.mrf.mxu2  ;;  %v15201_v17 = vpop.f32.mrf.mxu0 }
 0x517   : > { %v7151_v43 = vadd.f32 %v7081_v38, %v6979_v49  ;;  %7684 = vrot.lane.b32.xlu1 %v17349_v15, %s11840_s18  ;;  %7792 = vrot.lane.b32.xlu2 %v7774_v5, %s11841_s24  ;;  %v7426_v26 = vmax.f32 %v7394_v53, 0.0  ;;  %v17351_v49 = vld [vmem:[#allocation16_spill] sm:$0xff]  ;;  %v7206_v38 = vunpack.c.l.b16 %v7188_v47  ;;  %v7207_v53 = vunpack.c.l.b16 %v7191_v45 }
 0x519   : > { %v7323_v46 = vadd.f32 %v7253_v63, %v7151_v43  ;;  %v7458_v56 = vpack.c.bf16 %v7426_v26, %v7426_v26  ;;  %v17352_v43 = vld [vmem:[#allocation31_spill] sm:$0xff]  ;;  %v7212_v24 = vpack.c.b16 %v7207_v53, %v7206_v38  ;;  %v7194_v26 = vrot.slane %v14892_v50, 7 }
 0x51a   : > { %11364 = vmatmul.msk.bf16.gmra.mxu3 %vm1290_vm3, %v15171_v25  ;;  %v6554_v15 = vadd.f32 %v15095_v14, %v17352_v43  ;;  %v17353_v14 = vld [vmem:[#allocation58_spill] sm:$0xff] }
 0x51b   : > { %v7359_v11 = vmul.f32 %v15062_v7, %v7323_v46  ;;  %11345 = vmatmul.msk.bf16.gmra.mxu2 %vm1290_vm3, %v15079_v27  ;;  %v7746_v20 = vunpack.c.l.b16 %v7458_v56  ;;  %v17354_v56 = vld [vmem:[#allocation39_spill] sm:$0xff] }
 0x51d   : > { %v15187_v16 = vpop.f32.mrf.mxu1  ;;  %v7256_v9 = vpop.f32.mrf.mxu3  ;;  %v7395_v44 = vadd.f32 %v15074_v51, %v7359_v11 }
 0x51e   : > { %v7084_v30 = vpop.f32.mrf.mxu2  ;;  %v15222_v53 = vpop.f32.mrf.mxu0 }
 0x51f   : > { %v7427_v63 = vmax.f32 %v7395_v44, 0.0  ;;  %v7152_v39 = vadd.f32 %v7084_v30, %v6980_v36  ;;  %11328 = vmatmul.msk.bf16.gmra.mxu1 %vm1290_vm3, %v15048_v32  ;;  %7686 = vrot.lane.b32.xlu1 %v17351_v49, %s11840_s18  ;;  %v6981_v32 = vadd.f32 %v15132_v0, %v6554_v15  ;;  %v6617_v36 = vld [vmem:[#allocation2 + $0xf0] sm:$0x8]  ;;  %v6618_v44 = vld [vmem:[#allocation2 + $0xf8] sm:$0x7]  ;;  %v7196_v0 = vrot.slane %v7194_v26, 4 }
 0x520   : > { %v11350_v47 = vrot.slane %v6617_v36, 11  ;;  %v7197_v45 = vrot.slane %v6618_v44, 7 }
 0x521   : > { %v7324_v5 = vadd.f32 %v7256_v9, %v7152_v39  ;;  %v7459_v22 = vpack.c.bf16 %v7427_v63, %v7427_v63  ;;  %v6555_v63 = vadd.f32 %v15115_v35, %v17354_v56  ;;  %v17356_v56 = vld [vmem:[#allocation45_spill] sm:$0xff] }
 0x522   : > { %v7195_v15 = vsel %vm14718_vm7, %v11350_v47, %v7194_v26  ;;  %v7198_v35 = vsel %vm14718_vm7, %v7196_v0, %v7197_v45  ;;  %v7201_v47 = vrot.slane %v14931_v21, 7  ;;  %v6557_v21 = vadd.f32 %v15156_v29, %v14755_v40 }
 0x523   : > { %v7360_v19 = vmul.f32 %v15062_v7, %v7324_v5  ;;  %v7747_v46 = vunpack.c.l.b16 %v7459_v22  ;;  %v6982_v22 = vadd.f32 %v15151_v62, %v6555_v63 }
 0x525   : > { %v15204_v1 = vpop.f32.mrf.mxu1  ;;  %v7258_v31 = vpop.f32.mrf.mxu3  ;;  %v7775_v37 = vpack.c.b16 %v7747_v46, %v7746_v20  ;;  %v7396_v11 = vadd.f32 %v15074_v51, %v7360_v19 }
 0x526   : > { %v7086_v13 = vpop.f32.mrf.mxu2  ;;  %v15243_v63 = vpop.f32.mrf.mxu0 }
 0x527   : > { %v7153_v9 = vadd.f32 %v7086_v13, %v6981_v32  ;;  %7688 = vrot.lane.b32.xlu1 %v17353_v14, %s11840_s18  ;;  %7794 = vrot.lane.b32.xlu2 %v7775_v37, %s11841_s24  ;;  %v7428_v50 = vmax.f32 %v7396_v11, 0.0  ;;  %v7208_v32 = vunpack.c.l.b16 %v7195_v15  ;;  %v7209_v37 = vunpack.c.l.b16 %v7198_v35 }
 0x528   : > { %v6984_v35 = vadd.f32 %v15187_v16, %v6557_v21 }
 0x529   : > { %v7325_v30 = vadd.f32 %v7258_v31, %v7153_v9  ;;  %v7460_v19 = vpack.c.bf16 %v7428_v50, %v7428_v50  ;;  %v7213_v44 = vpack.c.b16 %v7209_v37, %v7208_v32 }
 0x52a   : > { %11365 = vmatmul.msk.bf16.gmra.mxu3 %vm1290_vm3, %v7212_v24  ;;  %v6556_v24 = vadd.f32 %v15136_v48, %v14736_v3  ;;  %v6619_v3 = vld [vmem:[#allocation2 + $0xfc] sm:$0x8]  ;;  %v6620_v48 = vld [vmem:[#allocation2 + $0x104] sm:$0x7] }
 0x52b   : > { %v7361_v39 = vmul.f32 %v15062_v7, %v7325_v30  ;;  %11346 = vmatmul.msk.bf16.gmra.mxu2 %vm1290_vm3, %v15108_v8  ;;  %v17355_v8 = vld [vmem:[#allocation23_spill] sm:$0xff]  ;;  %v7748_v26 = vunpack.c.l.b16 %v7460_v19 }
 0x52c   : > { %v6983_v36 = vadd.f32 %v15167_v4, %v6556_v24  ;;  %v11351_v4 = vrot.slane %v6619_v3, 11  ;;  %v17358_v3 = vld [vmem:[#allocation28_spill] sm:$0xff] }
 0x52d   : > { %v15218_v49 = vpop.f32.mrf.mxu1  ;;  %v7261_v5 = vpop.f32.mrf.mxu3  ;;  %v7397_v38 = vadd.f32 %v15074_v51, %v7361_v39  ;;  %v7203_v39 = vrot.slane %v7201_v47, 4 }
 0x52e   : > { %v7089_v43 = vpop.f32.mrf.mxu2  ;;  %v15261_v16 = vpop.f32.mrf.mxu0 }
 0x52f   : > { %v7429_v20 = vmax.f32 %v7397_v38, 0.0  ;;  %v7154_v46 = vadd.f32 %v7089_v43, %v6982_v22  ;;  %11329 = vmatmul.msk.bf16.gmra.mxu1 %vm1290_vm3, %v15079_v27  ;;  %7690 = vrot.lane.b32.xlu1 %v17355_v8, %s11840_s18 }
 0x531   : > { %v7326_v62 = vadd.f32 %v7261_v5, %v7154_v46  ;;  %v7461_v31 = vpack.c.bf16 %v7429_v20, %v7429_v20  ;;  %v7204_v5 = vrot.slane %v6620_v48, 7  ;;  %v7202_v46 = vsel %vm14718_vm7, %v11351_v4, %v7201_v47  ;;  %v1383_v48 = vld [vmem:[%s17006_s2] sm:$0x1] }
 0x532   : > { %v7210_v37 = vunpack.c.l.b16 %v7202_v46  ;;  %v17360_v46 = vld [vmem:[#allocation33_spill] sm:$0xff] }
 0x533   : > { %v7362_v13 = vmul.f32 %v15062_v7, %v7326_v62  ;;  %v7749_v11 = vunpack.c.l.b16 %v7461_v31  ;;  %v7205_v40 = vsel %vm14718_vm7, %v7203_v39, %v7204_v5  ;;  %v17357_v31 = vld [vmem:[#allocation24_spill] sm:$0xff]  ;;  %vm10048_vm7 = vcmask 1046532  }
 0x534   : > { %v7211_v24 = vunpack.c.l.b16 %v7205_v40  ;;  %v1160_v40 = vld [vmem:[#allocation3 + $0xc] sm:$0x1] }
 0x535   : > { %v15235_v9 = vpop.f32.mrf.mxu1  ;;  %v7263_v14 = vpop.f32.mrf.mxu3  ;;  %v7776_v27 = vpack.c.b16 %v7749_v11, %v7748_v26  ;;  %v7398_v0 = vadd.f32 %v15074_v51, %v7362_v13  ;;  %v6558_v13 = vadd.f32 %v15178_v2, %v14773_v28 }
 0x536   : > { %v7091_v30 = vpop.f32.mrf.mxu2  ;;  %v7214_v47 = vpack.c.b16 %v7211_v24, %v7210_v37  ;;  %v15284_v4 = vpop.f32.mrf.mxu0  ;;  %v6560_v37 = vadd.f32 %v15222_v53, %v14816_v18  ;;  %v1161_v24 = vsel %vm15303_vm12, 0, %v1160_v40 }
 0x537   : > { %v7155_v45 = vadd.f32 %v7091_v30, %v6983_v36  ;;  %7692 = vrot.lane.b32.xlu1 %v17356_v56, %s11840_s18  ;;  %7796 = vrot.lane.b32.xlu2 %v7776_v27, %s11841_s24  ;;  %v7430_v22 = vmax.f32 %v7398_v0, 0.0  ;;  %v15268_v27 = vpop.permute.xlu0 %7564  ;;  %1162 = vst [vmem:[#allocation3 + $0xc] sm:$0x1] %v1161_v24  ;;  %v17368_v24 = vld [vmem:[#allocation38_spill] sm:$0xff] }
 0x539   : > { %v7327_v50 = vadd.f32 %v7263_v14, %v7155_v45  ;;  %v7462_v29 = vpack.c.bf16 %v7430_v22, %v7430_v22 }
 0x53a   : > { %11366 = vmatmul.msk.bf16.gmra.mxu3 %vm1290_vm3, %v7213_v44  ;;  %v6985_v44 = vadd.f32 %v15204_v1, %v6558_v13  ;;  %v6559_v1 = vadd.f32 %v15201_v17, %v14794_v6  ;;  %v1385_v6 = vld [vmem:[%s17007_s3] sm:$0x1] }
 0x53b   : > { %v7363_v38 = vmul.f32 %v15062_v7, %v7327_v50  ;;  %11347 = vmatmul.msk.bf16.gmra.mxu2 %vm1290_vm3, %v15144_v61  ;;  %v7750_v11 = vunpack.c.l.b16 %v7462_v29  ;;  %v1210_v29 = vld [vmem:[#allocation3 + $0x14] sm:$0x1] }
 0x53c   : > { %v6986_v21 = vadd.f32 %v15218_v49, %v6559_v1  ;;  %v11717_v49 = vld [vmem:[%s17017_s13 + $0x8] sm:$0xff]  ;;  %v1211_v18 = vsel %vm15315_vm13, 0, %v1210_v29  ;;  %v17367_v29 = vld [vmem:[#allocation35_spill] sm:$0xff] }
 0x53d   : > { %v15251_v43 = vpop.f32.mrf.mxu1  ;;  %v7266_v15 = vpop.f32.mrf.mxu3  ;;  %v7399_v19 = vadd.f32 %v15074_v51, %v7363_v38  ;;  %v17359_v38 = vld [vmem:[#allocation37_spill] sm:$0xff]  ;;  %8764 = vmatpush.bf16.msrb.mxu1 %v11717_v49  ;;  %1212 = vst [vmem:[#allocation3 + $0x14] sm:$0x1] %v1211_v18 }
 0x53e   : > { %v7094_v20 = vpop.f32.mrf.mxu2 }
 0x53f   : > { %v7431_v8 = vmax.f32 %v7399_v19, 0.0  ;;  %v7156_v62 = vadd.f32 %v7094_v20, %v6984_v35  ;;  %7694 = vrot.lane.b32.xlu1 %v17357_v31, %s11840_s18  ;;  %v15286_v5 = vpop.permute.xlu0 %7676 }
 0x541   : > { %v7328_v61 = vadd.f32 %v7266_v15, %v7156_v62  ;;  %v7463_v32 = vpack.c.bf16 %v7431_v8, %v7431_v8  ;;  %v1384_v15 = vmul.f32 %v1383_v48, %v17359_v38 }
 0x543   : > { %v7364_v26 = vmul.f32 %v15062_v7, %v7328_v61  ;;  %v7751_v41 = vunpack.c.l.b16 %v7463_v32  ;;  %v17363_v61 = vmov 0   ;;  %v1386_v32 = vadd.f32 %v1385_v6, %v1384_v15  ;;  %v1213_v6 = vld [vmem:[#allocation3 + $0x20] sm:$0x1] }
 0x544   : > { %1151 = vst.msk [vmem:[#allocation3 + $0x8] sm:$0x1] %vm1150_vm8, %v17363_v61 }
 0x545   : > { %v15266_v14 = vpop.f32.mrf.mxu1  ;;  %v7268_v36 = vpop.f32.mrf.mxu3  ;;  %v7777_v30 = vpack.c.b16 %v7751_v41, %v7750_v11  ;;  %v7400_v0 = vadd.f32 %v15074_v51, %v7364_v26  ;;  %1155 = vst.msk [vmem:[#allocation3 + $0xd4] sm:$0x1] %vm1150_vm8, %v17363_v61  ;;  %vm15795_vm8 = vmor %vm10047_vm6, %vm10048_vm7 }
 0x546   : > { %v7096_v45 = vpop.f32.mrf.mxu2 }
 0x547   : > { %v7157_v56 = vadd.f32 %v7096_v45, %v6985_v44  ;;  %7696 = vrot.lane.b32.xlu1 %v17358_v3, %s11840_s18  ;;  %7798 = vrot.lane.b32.xlu2 %v7777_v30, %s11841_s24  ;;  %v7432_v2 = vmax.f32 %v7400_v0, 0.0  ;;  %v1387_v30 = vmax.f32 %v1386_v32, 0.0  ;;  %v15331_v45 = vpop.permute.xlu0 %7568 }
 0x549   : > { %v7329_v28 = vadd.f32 %v7268_v36, %v7157_v56  ;;  %v7464_v17 = vpack.c.bf16 %v7432_v2, %v7432_v2  ;;  %v6987_v36 = vadd.f32 %v15235_v9, %v6560_v37  ;;  %v11716_v2 = vld [vmem:[%s17017_s13] sm:$0xff]  ;;  %v1388_v1 = vpack.c.bf16 %v1387_v30, %v1387_v30  ;;  %v1166_v30 = vld [vmem:[#allocation3 + $0x24] sm:$0x1] }
 0x54a   : > { %11367 = vmatmul.msk.bf16.gmra.mxu3 %vm1290_vm3, %v7214_v47  ;;  %v15327_v47 = vpop.f32.mrf.mxu0  ;;  %8765 = vmatpush.bf16.msrb.mxu1 %v11716_v2  ;;  %v1216_v2 = vld [vmem:[#allocation3 + $0x2c] sm:$0x1] }
 0x54b   : > { %v7365_v50 = vmul.f32 %v15062_v7, %v7329_v28  ;;  %11348 = vmatmul.msk.bf16.gmra.mxu2 %vm1290_vm3, %v15171_v25  ;;  %vm1147_vm3 = vcmask 257024   ;;  %v7752_v11 = vunpack.c.l.b16 %v7464_v17  ;;  %v17366_v28 = vld [vmem:[#allocation36_spill] sm:$0xff] }
 0x54c   : > { %1148 = vst.msk [vmem:[#allocation3] sm:$0xf] %vm1147_vm3, %v17363_v61  ;;  %vm15440_vm0 = vmand %vm1147_vm3, %vm1208_vm10 }
 0x54d   : > { %v7271_v39 = vpop.f32.mrf.mxu3  ;;  %v7401_v22 = vadd.f32 %v15074_v51, %v7365_v50  ;;  %v15294_v35 = vpop.f32.mrf.mxu1  ;;  %1149 = vst.msk [vmem:[#allocation3 + $0x4] sm:$0xf] %vm1147_vm3, %v17363_v61 }
 0x54e   : > { %v7099_v19 = vpop.f32.mrf.mxu2  ;;  %1153 = vst.msk [vmem:[#allocation3 + $0xcc] sm:$0xf] %vm1147_vm3, %v17363_v61 }
 0x54f   : > { %v7433_v25 = vmax.f32 %v7401_v22, 0.0  ;;  %v7158_v20 = vadd.f32 %v7099_v19, %v6986_v21  ;;  %7698 = vrot.lane.b32.xlu1 %v17360_v46, %s11840_s18  ;;  %1154 = vst.msk [vmem:[#allocation3 + $0xd0] sm:$0xf] %vm1147_vm3, %v17363_v61  ;;  %v6561_v21 = vadd.f32 %v15243_v63, %v14839_v60  ;;  %v1214_v19 = vsel %vm15315_vm13, 0, %v1213_v6 }
 0x550   : > { %1215 = vst [vmem:[#allocation3 + $0x20] sm:$0x1] %v1214_v19  ;;  %v1390_v60 = vpack.i.b16 %v1388_v1, %v1388_v1  ;;  %v15402_v19 = vpop.permute.xlu2 %7678 }
 0x551   : > { %v7330_v8 = vadd.f32 %v7271_v39, %v7158_v20  ;;  %v7465_v62 = vpack.c.bf16 %v7433_v25, %v7433_v25  ;;  %v1163_v39 = vld [vmem:[#allocation3 + $0x18] sm:$0x1]  ;;  %v6988_v25 = vadd.f32 %v15251_v43, %v6561_v21 }
 0x552   : > { %v1164_v15 = vsel %vm15303_vm12, 0, %v1163_v39  ;;  %v15362_v43 = vperm.slane %v1390_v60, 0 }
 0x553   : > { %v7366_v26 = vmul.f32 %v15062_v7, %v7330_v8  ;;  %v7753_v41 = vunpack.c.l.b16 %v7465_v62  ;;  %1165 = vst [vmem:[#allocation3 + $0x18] sm:$0x1] %v1164_v15  ;;  %v15358_v8 = vpop.f32.mrf.mxu0  ;;  %v15360_v62 = vpop.permute.xlu0 %7570  ;;  %v8988_v6 = vld [vmem:[#allocation3] sm:$0xf] }
 0x554   : > { %v11734_v50 = vld [vmem:[#allocation3] sm:$0xff] }
 0x555   : > { %v7273_v53 = vpop.f32.mrf.mxu3  ;;  %v7778_v44 = vpack.c.b16 %v7753_v41, %v7752_v11  ;;  %v7402_v56 = vadd.f32 %v15074_v51, %v7366_v26  ;;  %v15339_v9 = vpop.f32.mrf.mxu1  ;;  %11468 = vmatmul.msk.bf16.vlgmr.msrb.gmra.mxu1 %vm8600_vm14, %v11734_v50  ;;  %v6562_v26 = vadd.f32 %v15261_v16, %v17368_v24  ;;  %v7823_v50 = vsel %vm7820_vm15, %v15362_v43, %v15268_v27 }
 0x556   : > { %v7101_v0 = vpop.f32.mrf.mxu2 }
 0x557   : > { %v7159_v3 = vadd.f32 %v7101_v0, %v6987_v36  ;;  %7700 = vrot.lane.b32.xlu1 %v17366_v28, %s11840_s18  ;;  %7800 = vrot.lane.b32.xlu2 %v7778_v44, %s11841_s24  ;;  %v7434_v22 = vmax.f32 %v7402_v56, 0.0  ;;  %v11729_v36 = vld [vmem:[%s17017_s13 + $0x68] sm:$0xff]  ;;  %v6989_v0 = vadd.f32 %v15266_v14, %v6562_v26  ;;  %v1167_v28 = vsel %vm15303_vm12, 0, %v1166_v30  ;;  %v8990_v26 = vld [vmem:[#allocation3 + $0x8] sm:$0x1] }
 0x558   : > { %8873 = vmatpush.bf16.msrb.mxu2 %v11729_v36  ;;  %1168 = vst [vmem:[#allocation3 + $0x24] sm:$0x1] %v1167_v28  ;;  %v1217_v14 = vsel %vm15315_vm13, 0, %v1216_v2 }
 0x559   : > { %v7331_v48 = vadd.f32 %v7273_v53, %v7159_v3  ;;  %v7466_v46 = vpack.c.bf16 %v7434_v22, %v7434_v22  ;;  %v11719_v53 = vld [vmem:[%s17017_s13 + $0x18] sm:$0xff]  ;;  %v11718_v3 = vld [vmem:[%s17017_s13 + $0x10] sm:$0xff]  ;;  %1218 = vst [vmem:[#allocation3 + $0x2c] sm:$0x1] %v1217_v14  ;;  %v1219_v14 = vld [vmem:[#allocation3 + $0x38] sm:$0x1] }
 0x55a   : > { %9540 = vmatpush.bf16.msrb.mxu3 %v11719_v53  ;;  %v17369_v22 = vld [vmem:[#allocation11_spill] sm:$0xff] }
 0x55b   : > { %v7367_v38 = vmul.f32 %v15062_v7, %v7331_v48  ;;  %v7754_v41 = vunpack.c.l.b16 %v7466_v46  ;;  %v6563_v48 = vadd.f32 %v15284_v4, %v14883_v58  ;;  %v7856_v58 = vsel %vm7854_vm2, %v7823_v50, %v15286_v5  ;;  %v15406_v46 = vpop.f32.mrf.mxu0 }
 0x55c   : > { %v15397_v4 = vsel %vm7820_vm15, %v15362_v43, %v15331_v45  ;;  %v9043_v5 = vshrl.u32 %v8988_v6, 16 }
 0x55d   : > { %v7276_v17 = vpop.f32.mrf.mxu3  ;;  %v7403_v20 = vadd.f32 %v15074_v51, %v7367_v38  ;;  %v15364_v37 = vpop.f32.mrf.mxu1  ;;  %v17370_v38 = vld [vmem:[#allocation41_spill] sm:$0xff]  ;;  %v6990_v15 = vadd.f32 %v15294_v35, %v6563_v48  ;;  %v9062_v48 = vshll.u32 %v8990_v26, 16 }
 0x55e   : > { %v7104_v63 = vpop.f32.mrf.mxu2  ;;  %v6564_v27 = vadd.f32 %v15327_v47, %v17370_v38  ;;  %9541 = vmatpush.bf16.msrb.mxu3 %v11718_v3  ;;  %v11725_v35 = vld [vmem:[%s17017_s13 + $0x48] sm:$0xff]  ;;  %v9045_v53 = vrot.slane %v9043_v5, 4 }
 0x55f   : > { %v7435_v49 = vmax.f32 %v7403_v20, 0.0  ;;  %v7160_v40 = vadd.f32 %v7104_v63, %v6988_v25  ;;  %7702 = vrot.lane.b32.xlu1 %v17367_v29, %s11840_s18  ;;  %v9046_v63 = vshll.u32 %v8988_v6, 16  ;;  %9703 = vmatpush.bf16.msra.mxu0 %v11725_v35  ;;  %v8324_v35 = vld [vmem:[#allocation3 + $0xc] sm:$0xf] }
 0x560   : > { %v15415_v29 = vadd.f32 %v15339_v9, %v6564_v27 }
 0x561   : > { %v7332_v61 = vadd.f32 %v7276_v17, %v7160_v40  ;;  %v7467_v32 = vpack.c.bf16 %v7435_v49, %v7435_v49  ;;  %v8989_v17 = vld [vmem:[#allocation3 + $0x4] sm:$0xf]  ;;  %v15412_v40 = vpop.permute.xlu0 %7572  ;;  %v9048_v36 = vrot.slane %v9046_v63, 5 }
 0x562   : > { %v9052_v49 = vshll.u32 %v8989_v17, 16  ;;  %v9056_v47 = vshrl.u32 %v8989_v17, 16 }
 0x563   : > { %v7368_v11 = vmul.f32 %v15062_v7, %v7332_v61  ;;  %v7755_v18 = vunpack.c.l.b16 %v7467_v32  ;;  %v9049_v28 = vor.u32 %v9048_v36, %v9045_v53  ;;  %v1220_v53 = vsel %vm15315_vm13, 0, %v1219_v14 }
 0x564   : > { %v9058_v30 = vrot.slane %v9056_v47, 4  ;;  %v11728_v47 = vld [vmem:[%s17017_s13 + $0x60] sm:$0xff]  ;;  %1221 = vst [vmem:[#allocation3 + $0x38] sm:$0x1] %v1220_v53 }
 0x565   : > { %v7278_v44 = vpop.f32.mrf.mxu3  ;;  %v7404_v16 = vadd.f32 %v15074_v51, %v7368_v11  ;;  %v7779_v56 = vpack.c.b16 %v7755_v18, %v7754_v41  ;;  %v1169_v11 = vld [vmem:[#allocation3 + $0x30] sm:$0x1]  ;;  %v15418_v41 = vpop.f32.mrf.mxu1  ;;  %v9050_v6 = vrot.slane %v9049_v28, 4  ;;  %8874 = vmatpush.bf16.msrb.mxu2 %v11728_v47 }
 0x566   : > { %v7106_v1 = vpop.f32.mrf.mxu2 }
 0x567   : > { %v7436_v39 = vmax.f32 %v7404_v16, 0.0  ;;  %v7161_v21 = vadd.f32 %v7106_v1, %v6989_v0  ;;  %7704 = vrot.lane.b32.xlu1 %v17369_v22, %s11840_s18  ;;  %7802 = vrot.lane.b32.xlu2 %v7779_v56, %s11841_s24  ;;  %v1170_v1 = vsel %vm15303_vm12, 0, %v1169_v11 }
 0x568   : > { %1171 = vst [vmem:[#allocation3 + $0x30] sm:$0x1] %v1170_v1 }
 0x569   : > { %v15404_v25 = vpack.c.bf16 %v7436_v39, %v7436_v39  ;;  %v7333_v20 = vadd.f32 %v7278_v44, %v7161_v21  ;;  %v7789_v60 = vpop.permute.xlu1 %7788  ;;  %v15420_v44 = vrot.slane %v9052_v49, 5  ;;  %v9064_v49 = vrot.slane %v9062_v48, 5  ;;  %v7575_v48 = vpop.permute.xlu0 %7574 }
 0x56a   : > { %v7889_v45 = vsel %vm7887_vm1, %v7856_v58, %v7789_v60  ;;  %v17371_v58 = vld [vmem:[#allocation10_spill] sm:$0xff] }
 0x56b   : > { %v7369_v61 = vmul.f32 %v15062_v7, %v7333_v20  ;;  %v7936_v32 = vunpack.c.l.b16 %v7889_v45  ;;  %v7937_v24 = vunpack.c.h.b16 %v7889_v45  ;;  %v7756_v56 = vunpack.c.l.b16 %v15404_v25  ;;  %v7791_v25 = vpop.permute.xlu2 %7790 }
 0x56c   : > { %v9059_v2 = vor.u32 %v9058_v30, %v15420_v44  ;;  %v9055_v11 = vsel %vm11997_vm11, %v9050_v6, %v15420_v44 }
 0x56d   : > { %v7281_v18 = vpop.f32.mrf.mxu3  ;;  %v7405_v0 = vadd.f32 %v15074_v51, %v7369_v61  ;;  %v7968_v16 = vpack.c.b16 %v7936_v32, %v7936_v32  ;;  %v7969_v9 = vpack.c.b16 %v7937_v24, %v7937_v24  ;;  %v8328_v61 = vld [vmem:[#allocation3 + $0x14] sm:$0x1] }
 0x56e   : > { %v7109_v3 = vpop.f32.mrf.mxu2  ;;  %v9060_v17 = vrot.slane %v9059_v2, 4 }
 0x56f   : > { %v7437_v50 = vmax.f32 %v7405_v0, 0.0  ;;  %v8003_v39 = vshrl.u32 %v7968_v16, 16  ;;  %v8006_v21 = vshll.u32 %v7968_v16, 16  ;;  %v8011_v22 = vshrl.u32 %v7969_v9, 16  ;;  %7706 = vrot.lane.b32.xlu1 %v17371_v58, %s11840_s18 }
 0x570   : > { %v8014_v38 = vshll.u32 %v7969_v9, 16  ;;  %v7162_v27 = vadd.f32 %v7109_v3, %v6990_v15  ;;  %v15451_v9 = vpop.f32.mrf.mxu0  ;;  %v9065_v44 = vsel %vm11997_vm11, %v9060_v17, %v9064_v49  ;;  %v9426_v17 = vunpack.c.l.b16 %v9055_v11  ;;  %v15495_v11 = vld [vmem:[%s17015_s11] ss:$0 sm:$0xff] }
 0x571   : > { %v8005_v60 = vrot.slane %v8003_v39, 7  ;;  %v8013_v5 = vrot.slane %v8011_v22, 7  ;;  %v7567_v63 = vpop.permute.xlu1 %7566  ;;  %v7469_v45 = vpack.c.bf16 %v7437_v50, %v7437_v50  ;;  %v15470_v39 = vpop.f32.mrf.mxu1 }
 0x572   : > { %v7334_v32 = vadd.f32 %v7281_v18, %v7162_v27  ;;  %v7825_v24 = vsel %vm7820_vm15, %v15362_v43, %v7567_v63 }
 0x573   : > { %v8008_v36 = vor.u32 %v8006_v21, %v8005_v60  ;;  %v8009_v30 = vrot.slane %v8005_v60, 4  ;;  %v8016_v0 = vor.u32 %v8014_v38, %v8013_v5  ;;  %v8018_v16 = vrot.slane %v8013_v5, 4 }
 0x574   : > { %v7370_v18 = vmul.f32 %v15062_v7, %v7334_v32  ;;  %v7858_v3 = vsel %vm7854_vm2, %v7825_v24, %v15402_v19  ;;  %v7757_v28 = vunpack.c.l.b16 %v7469_v45  ;;  %v15468_v19 = vsel %vm7820_vm15, %v15362_v43, %v15360_v62 }
 0x575   : > { %v7283_v2 = vpop.f32.mrf.mxu3  ;;  %v8017_v1 = vsel %vm15431_vm5, %v8009_v30, %v8016_v0  ;;  %v8325_v14 = vsel %vm15440_vm0, %v8008_v36, %v8324_v35  ;;  %v8329_v50 = vsel %vm15303_vm12, %v8018_v16, %v8328_v61  ;;  %v7891_v7 = vsel %vm7887_vm1, %v7858_v3, %v7791_v25  ;;  %v8331_v3 = vld [vmem:[#allocation3 + $0x18] sm:$0xf] }
 0x576   : > { %8326 = vst [vmem:[#allocation3 + $0xc] sm:$0xf] %v8325_v14  ;;  %v7406_v21 = vadd.f32 %v15074_v51, %v7370_v18  ;;  %v7938_v22 = vunpack.c.l.b16 %v7891_v7  ;;  %v7939_v58 = vunpack.c.h.b16 %v7891_v7  ;;  %v7111_v38 = vpop.f32.mrf.mxu2  ;;  %v7780_v6 = vpack.c.b16 %v7757_v28, %v7756_v56  ;;  %v8335_v28 = vld [vmem:[#allocation3 + $0x20] sm:$0x1] }
 0x577   : > { %8327 = vst.msk [vmem:[#allocation3 + $0x10] sm:$0xf] %vm1147_vm3, %v8017_v1  ;;  %v7163_v27 = vadd.f32 %v7111_v38, %v15415_v29  ;;  %v9427_v25 = vunpack.c.l.b16 %v9065_v44  ;;  %v6565_v60 = vadd.f32 %v15358_v8, %v14918_v10  ;;  %v15480_v51 = vsel %vm7820_vm15, %v15362_v43, %v15412_v40  ;;  %v7793_v29 = vpop.permute.xlu2 %7792  ;;  %v17377_v10 = vld [vmem:[#allocation44_spill] sm:$0xff] }
 0x578   : > { %8330 = vst [vmem:[#allocation3 + $0x14] sm:$0x1] %v8329_v50  ;;  %v7438_v62 = vmax.f32 %v7406_v21, 0.0  ;;  %v7970_v5 = vpack.c.b16 %v7938_v22, %v7938_v22  ;;  %v7971_v63 = vpack.c.b16 %v7939_v58, %v7939_v58  ;;  %v15484_v45 = vsel %vm7820_vm15, %v15362_v43, %v7575_v48  ;;  %7804 = vrot.lane.b32.xlu2 %v7780_v6, %s11841_s24  ;;  %v6522_v1 = vpop.f32.mrf.mxu0 }
 0x579   : > { %v7335_v56 = vadd.f32 %v7283_v2, %v7163_v27  ;;  %v7681_v49 = vpop.permute.xlu1 %7680  ;;  %v9458_v47 = vpack.c.b16 %v9427_v25, %v9426_v17  ;;  %v6566_v8 = vadd.f32 %v15406_v46, %v17377_v10  ;;  %v6992_v35 = vadd.f32 %v15364_v37, %v6565_v60  ;;  %v15508_v2 = vld [vmem:[%s17016_s12] ss:$0 sm:$0xff] }
 0x57a   : > { %v8020_v61 = vshrl.u32 %v7970_v5, 16  ;;  %v8028_v32 = vshrl.u32 %v7971_v63, 16  ;;  %v15490_v24 = vpack.c.bf16 %v7438_v62, %v7438_v62  ;;  %v8023_v40 = vshll.u32 %v7970_v5, 16  ;;  %v15517_v5 = vpop.f32.mrf.mxu1 }
 0x57b   : > { %v7371_v53 = vmul.f32 %v15495_v11, %v7335_v56  ;;  %v7860_v36 = vsel %vm7854_vm2, %v15397_v4, %v7681_v49  ;;  %11520 = vmatmul.msk.bf16.vlgmr.msrb.gmra.mxu3 %vm8600_vm14, %v9458_v47  ;;  %v8031_v37 = vshll.u32 %v7971_v63, 16  ;;  %v15503_v18 = vadd.f32 %v15418_v41, %v6566_v8 }
 0x57c   : > { %v8022_v46 = vrot.slane %v8020_v61, 7  ;;  %v8030_v30 = vrot.slane %v8028_v32, 7  ;;  %v7893_v0 = vsel %vm7887_vm1, %v7860_v36, %v7793_v29  ;;  %v7758_v63 = vunpack.c.l.b16 %v15490_v24 }
 0x57d   : > { %v7286_v16 = vpop.f32.mrf.mxu3  ;;  %v7407_v4 = vadd.f32 %v15508_v2, %v7371_v53  ;;  %v7940_v44 = vunpack.c.l.b16 %v7893_v0  ;;  %v7941_v48 = vunpack.c.h.b16 %v7893_v0  ;;  %v8991_v41 = vld [vmem:[#allocation3 + $0xc] sm:$0xf] }
 0x57e   : > { %v8025_v14 = vor.u32 %v8023_v40, %v8022_v46  ;;  %v8026_v50 = vrot.slane %v8022_v46, 4  ;;  %v8033_v7 = vor.u32 %v8031_v37, %v8030_v30  ;;  %v8035_v21 = vrot.slane %v8030_v30, 4  ;;  %v7114_v22 = vpop.f32.mrf.mxu2  ;;  %v11735_v58 = vld [vmem:[#allocation3 + $0xc] sm:$0xff]  ;;  %v8338_v30 = vld [vmem:[#allocation3 + $0x24] sm:$0xf] }
 0x57f   : > { %v7439_v38 = vmax.f32 %v7407_v4, 0.0  ;;  %v7972_v27 = vpack.c.b16 %v7940_v44, %v7940_v44  ;;  %v7973_v6 = vpack.c.b16 %v7941_v48, %v7941_v48  ;;  %v7164_v17 = vadd.f32 %v7114_v22, %v6992_v35  ;;  %11440 = vmatmul.msk.bf16.vlgmr.msrb.gmra.mxu0 %vm8600_vm14, %v11735_v58  ;;  %11469 = vmatmul.msk.bf16.gmra.mxu1 %vm8600_vm14, %v11735_v58  ;;  %v8342_v37 = vld [vmem:[#allocation3 + $0x2c] sm:$0x1] }
 0x580   : > { %v8034_v25 = vsel %vm15431_vm5, %v8026_v50, %v8033_v7  ;;  %v8332_v60 = vsel %vm15440_vm0, %v8025_v14, %v8331_v3  ;;  %v8336_v62 = vsel %vm15303_vm12, %v8035_v21, %v8335_v28  ;;  %v9067_v8 = vshrl.u32 %v8991_v41, 16 }
 0x581   : > { %8333 = vst [vmem:[#allocation3 + $0x18] sm:$0xf] %v8332_v60  ;;  %v8037_v29 = vshrl.u32 %v7972_v27, 16  ;;  %v8040_v56 = vshll.u32 %v7972_v27, 16  ;;  %v8045_v49 = vshrl.u32 %v7973_v6, 16  ;;  %v7683_v47 = vpop.permute.xlu1 %7682  ;;  %v7795_v10 = vpop.permute.xlu2 %7794  ;;  %v8048_v35 = vshll.u32 %v7973_v6, 16 }
 0x582   : > { %8334 = vst.msk [vmem:[#allocation3 + $0x1c] sm:$0xf] %vm1147_vm3, %v8034_v25  ;;  %v7336_v61 = vadd.f32 %v7286_v16, %v7164_v17  ;;  %v7862_v32 = vsel %vm7854_vm2, %v15468_v19, %v7683_v47  ;;  %v7471_v40 = vpack.c.bf16 %v7439_v38, %v7439_v38  ;;  %v9070_v46 = vshll.u32 %v8991_v41, 16  ;;  %v6525_v60 = vpop.f32.mrf.mxu0  ;;  %v8345_v47 = vld [vmem:[#allocation3 + $0x30] sm:$0xf] }
 0x583   : > { %8337 = vst [vmem:[#allocation3 + $0x20] sm:$0x1] %v8336_v62  ;;  %v8039_v53 = vrot.slane %v8037_v29, 7  ;;  %v8047_v36 = vrot.slane %v8045_v49, 7  ;;  %v7895_v24 = vsel %vm7887_vm1, %v7862_v32, %v7795_v10  ;;  %v9069_v58 = vrot.slane %v9067_v8, 4 }
 0x584   : > { %v7372_v0 = vmul.f32 %v15495_v11, %v7336_v61  ;;  %v7942_v3 = vunpack.c.l.b16 %v7895_v24  ;;  %v7943_v28 = vunpack.c.h.b16 %v7895_v24  ;;  %v7759_v4 = vunpack.c.l.b16 %v7471_v40  ;;  %v15543_v61 = vpop.f32.mrf.mxu1  ;;  %v8349_v32 = vld [vmem:[#allocation3 + $0x38] sm:$0x1] }
 0x585   : > { %v7288_v44 = vpop.f32.mrf.mxu3  ;;  %v8042_v48 = vor.u32 %v8040_v56, %v8039_v53  ;;  %v8043_v16 = vrot.slane %v8039_v53, 4  ;;  %v8050_v14 = vor.u32 %v8048_v35, %v8047_v36  ;;  %v8052_v50 = vrot.slane %v8047_v36, 4  ;;  %v15540_v56 = vld [vmem:[#allocation3 + $0x10] sm:$0xf]  ;;  %v15548_v53 = vld [vmem:[#allocation3 + $0x14] sm:$0x1] }
 0x586   : > { %v7408_v19 = vadd.f32 %v15508_v2, %v7372_v0  ;;  %v7974_v7 = vpack.c.b16 %v7942_v3, %v7942_v3  ;;  %v7975_v21 = vpack.c.b16 %v7943_v28, %v7943_v28  ;;  %v7116_v22 = vpop.f32.mrf.mxu2  ;;  %v6567_v17 = vadd.f32 %v15451_v9, %v14953_v23 }
 0x587   : > { %v8051_v41 = vsel %vm15431_vm5, %v8043_v16, %v8050_v14  ;;  %v8339_v38 = vsel %vm15440_vm0, %v8042_v48, %v8338_v30  ;;  %v8343_v27 = vsel %vm15303_vm12, %v8052_v50, %v8342_v37  ;;  %v7165_v6 = vadd.f32 %v7116_v22, %v15503_v18  ;;  %v1172_v22 = vld [vmem:[#allocation3 + $0x3c] sm:$0x1] }
 0x588   : > { %v15538_v25 = vadd.f32 %v6522_v1, %v14969_v34  ;;  %8340 = vst [vmem:[#allocation3 + $0x24] sm:$0xf] %v8339_v38  ;;  %v8054_v62 = vshrl.u32 %v7974_v7, 16  ;;  %v8062_v29 = vshrl.u32 %v7975_v21, 16  ;;  %v7440_v49 = vmax.f32 %v7408_v19, 0.0 }
 0x589   : > { %8341 = vst.msk [vmem:[#allocation3 + $0x28] sm:$0xf] %vm1147_vm3, %v8051_v41  ;;  %v7781_v10 = vpack.c.b16 %v7759_v4, %v7758_v63  ;;  %v7337_v8 = vadd.f32 %v7288_v44, %v7165_v6  ;;  %v11736_v35 = vld [vmem:[#allocation3 + $0x18] sm:$0xff]  ;;  %v9072_v18 = vrot.slane %v9070_v46, 5  ;;  %v8057_v34 = vshll.u32 %v7974_v7, 16  ;;  %v7685_v4 = vpop.permute.xlu1 %7684 }
 0x58a   : > { %8344 = vst [vmem:[#allocation3 + $0x2c] sm:$0x1] %v8343_v27  ;;  %v8056_v23 = vrot.slane %v8054_v62, 7  ;;  %v8064_v9 = vrot.slane %v8062_v29, 7  ;;  %v8065_v1 = vshll.u32 %v7975_v21, 16  ;;  %11496 = vmatmul.msk.bf16.vlgmr.msrb.gmra.mxu2 %vm8600_vm14, %v11736_v35  ;;  %v9076_v36 = vshll.u32 %v15540_v56, 16 }
 0x58b   : > { %7806 = vrot.lane.b32.xlu2 %v7781_v10, %s11841_s24  ;;  %v7373_v40 = vmul.f32 %v15495_v11, %v7337_v8  ;;  %v9073_v63 = vor.u32 %v9072_v18, %v9069_v58  ;;  %v9080_v24 = vshrl.u32 %v15540_v56, 16  ;;  %v9086_v7 = vshll.u32 %v15548_v53, 16  ;;  %v1222_v6 = vld [vmem:[#allocation3 + $0x44] sm:$0x1] }
 0x58c   : > { %v8059_v46 = vor.u32 %v8057_v34, %v8056_v23  ;;  %v8060_v30 = vrot.slane %v8056_v23, 4  ;;  %v8067_v37 = vor.u32 %v8065_v1, %v8064_v9  ;;  %v8069_v0 = vrot.slane %v8064_v9, 4 }
 0x58d   : > { %v7291_v3 = vpop.f32.mrf.mxu3  ;;  %v7409_v28 = vadd.f32 %v15508_v2, %v7373_v40  ;;  %v9074_v44 = vrot.slane %v9073_v63, 4  ;;  %v9078_v48 = vrot.slane %v9076_v36, 5  ;;  %v9082_v16 = vrot.slane %v9080_v24, 4  ;;  %v15576_v40 = vpop.f32.mrf.mxu1 }
 0x58e   : > { %v8068_v14 = vsel %vm15431_vm5, %v8060_v30, %v8067_v37  ;;  %v8346_v50 = vsel %vm15440_vm0, %v8059_v46, %v8345_v47  ;;  %v8350_v19 = vsel %vm15303_vm12, %v8069_v0, %v8349_v32  ;;  %v7119_v21 = vpop.f32.mrf.mxu2  ;;  %v6994_v58 = vadd.f32 %v15470_v39, %v6567_v17  ;;  %v8994_v39 = vld [vmem:[#allocation3 + $0x18] sm:$0xf] }
 0x58f   : > { %8347 = vst [vmem:[#allocation3 + $0x30] sm:$0xf] %v8346_v50  ;;  %v7441_v41 = vmax.f32 %v7409_v28, 0.0  ;;  %v9079_v38 = vsel %vm11997_vm11, %v9074_v44, %v9078_v48  ;;  %v9083_v27 = vor.u32 %v9082_v16, %v9078_v48  ;;  %v6569_v62 = vadd.f32 %v6525_v60, %v14982_v59  ;;  %11441 = vmatmul.msk.bf16.gmra.mxu0 %vm8600_vm14, %v11736_v35  ;;  %v6527_v59 = vpop.f32.mrf.mxu0  ;;  %v8995_v44 = vld [vmem:[#allocation3 + $0x1c] sm:$0xf] }
 0x590   : > { %v7472_v29 = vpack.c.bf16 %v7440_v49, %v7440_v49  ;;  %8348 = vst.msk [vmem:[#allocation3 + $0x34] sm:$0xf] %vm1147_vm3, %v8068_v14  ;;  %v7864_v47 = vsel %vm7854_vm2, %v15480_v51, %v7685_v4  ;;  %11470 = vmatmul.msk.bf16.gmra.mxu1 %vm8600_vm14, %v11736_v35  ;;  %v9088_v10 = vrot.slane %v9086_v7, 5  ;;  %v7166_v8 = vadd.f32 %v7119_v21, %v6994_v58 }
 0x591   : > { %8351 = vst [vmem:[#allocation3 + $0x38] sm:$0x1] %v8350_v19  ;;  %v9084_v17 = vrot.slane %v9083_v27, 4  ;;  %v1173_v18 = vsel %vm15303_vm12, 0, %v1172_v22  ;;  %v7797_v23 = vpop.permute.xlu2 %7796  ;;  %v9428_v60 = vunpack.c.l.b16 %v9079_v38  ;;  %v1223_v49 = vsel %vm15315_vm13, 0, %v1222_v6 }
 0x592   : > { %1174 = vst [vmem:[#allocation3 + $0x3c] sm:$0x1] %v1173_v18  ;;  %v7897_v51 = vsel %vm7887_vm1, %v7864_v47, %v7797_v23  ;;  %v7473_v34 = vpack.c.bf16 %v7441_v41, %v7441_v41  ;;  %v7338_v9 = vadd.f32 %v7291_v3, %v7166_v8  ;;  %v7760_v36 = vunpack.c.l.b16 %v7472_v29  ;;  %v11737_v29 = vld [vmem:[#allocation3 + $0x24] sm:$0xff]  ;;  %v8996_v8 = vld [vmem:[#allocation3 + $0x20] sm:$0x1] }
 0x593   : > { %v9089_v35 = vsel %vm11997_vm11, %v9084_v17, %v9088_v10  ;;  %1224 = vst [vmem:[#allocation3 + $0x44] sm:$0x1] %v1223_v49  ;;  %v7944_v1 = vunpack.c.l.b16 %v7897_v51  ;;  %v7945_v32 = vunpack.c.h.b16 %v7897_v51  ;;  %v9091_v30 = vshrl.u32 %v8994_v39, 16 }
 0x594   : > { %v9429_v63 = vunpack.c.l.b16 %v9089_v35  ;;  %v7761_v24 = vunpack.c.l.b16 %v7473_v34  ;;  %v6995_v37 = vadd.f32 %v15517_v5, %v15538_v25  ;;  %v7374_v0 = vmul.f32 %v15495_v11, %v7338_v9 }
 0x595   : > { %v7293_v46 = vpop.f32.mrf.mxu3  ;;  %v7976_v28 = vpack.c.b16 %v7944_v1, %v7944_v1  ;;  %v7977_v4 = vpack.c.b16 %v7945_v32, %v7945_v32  ;;  %v9093_v14 = vrot.slane %v9091_v30, 4  ;;  %v9094_v50 = vshll.u32 %v8994_v39, 16  ;;  %v7687_v39 = vpop.permute.xlu1 %7686 }
 0x596   : > { %v15581_v48 = vpack.c.b16 %v9429_v63, %v9428_v60  ;;  %v7121_v3 = vpop.f32.mrf.mxu2  ;;  %v7782_v16 = vpack.c.b16 %v7761_v24, %v7760_v36  ;;  %v15584_v19 = vadd.f32 %v6527_v59, %v14996_v57  ;;  %v7410_v7 = vadd.f32 %v15508_v2, %v7374_v0  ;;  %v1175_v63 = vld [vmem:[#allocation3 + $0x48] sm:$0x1]  ;;  %v15601_v0 = vpop.f32.mrf.mxu1 }
 0x597   : > { %v8071_v21 = vshrl.u32 %v7976_v28, 16  ;;  %v8079_v22 = vshrl.u32 %v7977_v4, 16  ;;  %v8074_v5 = vshll.u32 %v7976_v28, 16  ;;  %v7167_v25 = vadd.f32 %v7121_v3, %v6995_v37  ;;  %v15592_v35 = vpop.f32.mrf.mxu0  ;;  %v1225_v37 = vld [vmem:[#allocation3 + $0x50] sm:$0x1] }
 0x598   : > { %11521 = vmatmul.msk.bf16.gmra.mxu3 %vm8600_vm14, %v15581_v48  ;;  %7808 = vrot.lane.b32.xlu2 %v7782_v16, %s11841_s24  ;;  %v9096_v58 = vrot.slane %v9094_v50, 5  ;;  %v9100_v41 = vshll.u32 %v8995_v44, 16  ;;  %v8082_v6 = vshll.u32 %v7977_v4, 16  ;;  %v9104_v47 = vshrl.u32 %v8995_v44, 16  ;;  %v8997_v16 = vld [vmem:[#allocation3 + $0x24] sm:$0xf] }
 0x599   : > { %v8073_v38 = vrot.slane %v8071_v21, 7  ;;  %v8081_v27 = vrot.slane %v8079_v22, 7  ;;  %v6996_v57 = vadd.f32 %v15543_v61, %v6569_v62  ;;  %v8352_v17 = vld [vmem:[#allocation3 + $0x3c] sm:$0xf]  ;;  %v7339_v10 = vadd.f32 %v7293_v46, %v7167_v25 }
 0x59a   : > { %v9097_v18 = vor.u32 %v9096_v58, %v9093_v14  ;;  %v9102_v23 = vrot.slane %v9100_v41, 5  ;;  %v7442_v59 = vmax.f32 %v7410_v7, 0.0  ;;  %v8356_v60 = vld [vmem:[#allocation3 + $0x44] sm:$0x1]  ;;  %11497 = vmatmul.msk.bf16.gmra.mxu2 %vm8600_vm14, %v11737_v29  ;;  %v9106_v61 = vrot.slane %v9104_v47, 4 }
 0x59b   : > { %v8076_v49 = vor.u32 %v8074_v5, %v8073_v38  ;;  %v8077_v51 = vrot.slane %v8073_v38, 4  ;;  %v8084_v34 = vor.u32 %v8082_v6, %v8081_v27  ;;  %v8086_v9 = vrot.slane %v8081_v27, 4  ;;  %v8998_v14 = vld [vmem:[#allocation3 + $0x28] sm:$0xf] }
 0x59c   : > { %v7375_v1 = vmul.f32 %v15495_v11, %v7339_v10  ;;  %v9098_v32 = vrot.slane %v9097_v18, 4  ;;  %v7866_v36 = vsel %vm7854_vm2, %v15484_v45, %v7687_v39  ;;  %v9110_v30 = vshll.u32 %v8996_v8, 16 }
 0x59d   : > { %v7296_v62 = vpop.f32.mrf.mxu3  ;;  %v8085_v24 = vsel %vm15431_vm5, %v8077_v51, %v8084_v34  ;;  %v8353_v46 = vsel %vm15440_vm0, %v8076_v49, %v8352_v17  ;;  %v8357_v28 = vsel %vm15303_vm12, %v8086_v9, %v8356_v60  ;;  %v9107_v45 = vor.u32 %v9106_v61, %v9102_v23  ;;  %v7577_v60 = vpop.permute.xlu0 %7576 }
 0x59e   : > { %8354 = vst [vmem:[#allocation3 + $0x3c] sm:$0xf] %v8353_v46  ;;  %v7411_v4 = vadd.f32 %v15508_v2, %v7375_v1  ;;  %v9103_v44 = vsel %vm11997_vm11, %v9098_v32, %v9102_v23  ;;  %v7124_v3 = vpop.f32.mrf.mxu2  ;;  %v7474_v50 = vpack.c.bf16 %v7442_v59, %v7442_v59  ;;  %v9112_v7 = vrot.slane %v9110_v30, 5  ;;  %v8999_v46 = vld [vmem:[#allocation3 + $0x2c] sm:$0x1] }
 0x59f   : > { %8355 = vst.msk [vmem:[#allocation3 + $0x40] sm:$0xf] %vm1147_vm3, %v8085_v24  ;;  %v7168_v21 = vadd.f32 %v7124_v3, %v6996_v57  ;;  %v1176_v22 = vsel %vm15303_vm12, 0, %v1175_v63  ;;  %v9108_v25 = vrot.slane %v9107_v45, 4  ;;  %v9430_v58 = vunpack.c.l.b16 %v9103_v44  ;;  %11442 = vmatmul.msk.bf16.gmra.mxu0 %vm8600_vm14, %v11737_v29  ;;  %v15630_v3 = vpop.f32.mrf.mxu1 }
 0x5a0   : > { %8358 = vst [vmem:[#allocation3 + $0x44] sm:$0x1] %v8357_v28  ;;  %v7443_v5 = vmax.f32 %v7411_v4, 0.0  ;;  %11471 = vmatmul.msk.bf16.gmra.mxu1 %vm8600_vm14, %v11737_v29  ;;  %v1226_v41 = vsel %vm15315_vm13, 0, %v1225_v37  ;;  %v9115_v6 = vshrl.u32 %v8997_v16, 16  ;;  %v9118_v47 = vshll.u32 %v8997_v16, 16 }
 0x5a1   : > { %v7340_v38 = vadd.f32 %v7296_v62, %v7168_v21  ;;  %1177 = vst [vmem:[#allocation3 + $0x48] sm:$0x1] %v1176_v22  ;;  %v7799_v27 = vpop.permute.xlu2 %7798  ;;  %v9124_v57 = vshll.u32 %v8998_v14, 16  ;;  %v6997_v39 = vadd.f32 %v15576_v40, %v15584_v19  ;;  %v9113_v17 = vsel %vm11997_vm11, %v9108_v25, %v9112_v7  ;;  %v6532_v62 = vpop.f32.mrf.mxu0 }
 0x5a2   : > { %1227 = vst [vmem:[#allocation3 + $0x50] sm:$0x1] %v1226_v41  ;;  %v7899_v10 = vsel %vm7887_vm1, %v7866_v36, %v7799_v27  ;;  %v7475_v8 = vpack.c.bf16 %v7443_v5, %v7443_v5  ;;  %v9431_v29 = vunpack.c.l.b16 %v9113_v17  ;;  %v7762_v49 = vunpack.c.l.b16 %v7474_v50  ;;  %v11738_v5 = vld [vmem:[#allocation3 + $0x30] sm:$0xff] }
 0x5a3   : > { %v7376_v18 = vmul.f32 %v15495_v11, %v7340_v38  ;;  %v7946_v23 = vunpack.c.l.b16 %v7899_v10  ;;  %v7947_v59 = vunpack.c.h.b16 %v7899_v10  ;;  %v9117_v9 = vrot.slane %v9115_v6, 4 }
 0x5a4   : > { %v7763_v51 = vunpack.c.l.b16 %v7475_v8  ;;  %v9120_v1 = vrot.slane %v9118_v47, 5  ;;  %v15621_v32 = vpack.c.b16 %v9431_v29, %v9430_v58  ;;  %v15623_v61 = vrot.slane %v9124_v57, 5 }
 0x5a5   : > { %v7298_v34 = vpop.f32.mrf.mxu3  ;;  %v7978_v40 = vpack.c.b16 %v7946_v23, %v7946_v23  ;;  %v7979_v19 = vpack.c.b16 %v7947_v59, %v7947_v59  ;;  %v7412_v63 = vadd.f32 %v15508_v2, %v7376_v18  ;;  %v9128_v37 = vshrl.u32 %v8998_v14, 16  ;;  %v1228_v59 = vld [vmem:[#allocation3 + $0x5c] sm:$0x1] }
 0x5a6   : > { %v7126_v36 = vpop.f32.mrf.mxu2  ;;  %v7783_v24 = vpack.c.b16 %v7763_v51, %v7762_v49  ;;  %v9121_v30 = vor.u32 %v9120_v1, %v9117_v9  ;;  %v7835_v28 = vsel %vm7820_vm15, %v15362_v43, %v7577_v60  ;;  %v6571_v45 = vadd.f32 %v15592_v35, %v15005_v12  ;;  %v9000_v60 = vld [vmem:[#allocation3 + $0x30] sm:$0xf]  ;;  %v9001_v1 = vld [vmem:[#allocation3 + $0x34] sm:$0xf] }
 0x5a7   : > { %v8088_v4 = vshrl.u32 %v7978_v40, 16  ;;  %v8096_v44 = vshrl.u32 %v7979_v19, 16  ;;  %v8091_v16 = vshll.u32 %v7978_v40, 16  ;;  %v7169_v50 = vadd.f32 %v7126_v36, %v6997_v39  ;;  %v1178_v39 = vld [vmem:[#allocation3 + $0x54] sm:$0x1] }
 0x5a8   : > { %11522 = vmatmul.msk.bf16.gmra.mxu3 %vm8600_vm14, %v15621_v32  ;;  %7810 = vrot.lane.b32.xlu2 %v7783_v24, %s11841_s24  ;;  %v9130_v7 = vrot.slane %v9128_v37, 4  ;;  %v8099_v22 = vshll.u32 %v7979_v19, 16  ;;  %v9134_v25 = vshll.u32 %v8999_v46, 16  ;;  %v7444_v58 = vmax.f32 %v7412_v63, 0.0  ;;  %v8359_v41 = vld [vmem:[#allocation3 + $0x48] sm:$0xf] }
 0x5a9   : > { %v8090_v21 = vrot.slane %v8088_v4, 7  ;;  %v8098_v14 = vrot.slane %v8096_v44, 7  ;;  %v8363_v38 = vld [vmem:[#allocation3 + $0x50] sm:$0x1]  ;;  %v7341_v27 = vadd.f32 %v7298_v34, %v7169_v50  ;;  %v9122_v12 = vrot.slane %v9121_v30, 4  ;;  %v6535_v37 = vpop.f32.mrf.mxu0 }
 0x5aa   : > { %v9131_v35 = vor.u32 %v9130_v7, %v15623_v61  ;;  %11498 = vmatmul.msk.bf16.gmra.mxu2 %vm8600_vm14, %v11738_v5  ;;  %v6572_v10 = vadd.f32 %v6532_v62, %v15018_v42  ;;  %v6998_v8 = vadd.f32 %v15601_v0, %v6571_v45  ;;  %v9136_v9 = vrot.slane %v9134_v25, 5  ;;  %v7689_v42 = vpop.permute.xlu1 %7688 }
 0x5ab   : > { %v8093_v6 = vor.u32 %v8091_v16, %v8090_v21  ;;  %v8094_v47 = vrot.slane %v8090_v21, 4  ;;  %v8101_v57 = vor.u32 %v8099_v22, %v8098_v14  ;;  %v8103_v17 = vrot.slane %v8098_v14, 4  ;;  %v6962_v22 = vpop.f32.mrf.mxu1 }
 0x5ac   : > { %v7377_v29 = vmul.f32 %v15495_v11, %v7341_v27  ;;  %v9132_v18 = vrot.slane %v9131_v35, 4  ;;  %v7476_v40 = vpack.c.bf16 %v7444_v58, %v7444_v58  ;;  %v9127_v19 = vsel %vm11997_vm11, %v9122_v12, %v15623_v61 }
 0x5ad   : > { %v7301_v23 = vpop.f32.mrf.mxu3  ;;  %v8102_v49 = vsel %vm15431_vm5, %v8094_v47, %v8101_v57  ;;  %v8360_v51 = vsel %vm15440_vm0, %v8093_v6, %v8359_v41  ;;  %v8364_v34 = vsel %vm15303_vm12, %v8103_v17, %v8363_v38  ;;  %v1179_v63 = vsel %vm15303_vm12, 0, %v1178_v39  ;;  %v1181_v6 = vld [vmem:[#allocation3 + $0x60] sm:$0x1] }
 0x5ae   : > { %8361 = vst [vmem:[#allocation3 + $0x48] sm:$0xf] %v8360_v51  ;;  %v7413_v0 = vadd.f32 %v15508_v2, %v7377_v29  ;;  %v7129_v62 = vpop.f32.mrf.mxu2  ;;  %v9137_v36 = vsel %vm11997_vm11, %v9132_v18, %v9136_v9  ;;  %v1229_v46 = vsel %vm15315_vm13, 0, %v1228_v59  ;;  %v9139_v30 = vshrl.u32 %v9000_v60, 16 }
 0x5af   : > { %8362 = vst.msk [vmem:[#allocation3 + $0x4c] sm:$0xf] %vm1147_vm3, %v8102_v49  ;;  %v7170_v24 = vadd.f32 %v7129_v62, %v6998_v8  ;;  %11443 = vmatmul.msk.bf16.gmra.mxu0 %vm8600_vm14, %v11738_v5  ;;  %v9142_v61 = vshll.u32 %v9000_v60, 16  ;;  %v9148_v44 = vshll.u32 %v9001_v1, 16  ;;  %v9152_v45 = vshrl.u32 %v9001_v1, 16 }
 0x5b0   : > { %8365 = vst [vmem:[#allocation3 + $0x50] sm:$0x1] %v8364_v34  ;;  %v7445_v4 = vmax.f32 %v7413_v0, 0.0  ;;  %11472 = vmatmul.msk.bf16.gmra.mxu1 %vm8600_vm14, %v11738_v5  ;;  %v7868_v16 = vsel %vm7854_vm2, %v7835_v28, %v7689_v42  ;;  %v9432_v50 = vunpack.c.l.b16 %v9127_v19  ;;  %v9141_v14 = vrot.slane %v9139_v30, 4  ;;  %v7579_v28 = vpop.permute.xlu0 %7578  ;;  %v9002_v60 = vld [vmem:[#allocation3 + $0x38] sm:$0x1] }
 0x5b1   : > { %v7342_v7 = vadd.f32 %v7301_v23, %v7170_v24  ;;  %1180 = vst [vmem:[#allocation3 + $0x54] sm:$0x1] %v1179_v63  ;;  %v7801_v21 = vpop.permute.xlu2 %7800  ;;  %v9433_v25 = vunpack.c.l.b16 %v9137_v36  ;;  %v9144_v38 = vrot.slane %v9142_v61, 5  ;;  %v15662_v35 = vrot.slane %v9148_v44, 5  ;;  %v9003_v36 = vld [vmem:[#allocation3 + $0x3c] sm:$0xf] }
 0x5b2   : > { %1230 = vst [vmem:[#allocation3 + $0x5c] sm:$0x1] %v1229_v46  ;;  %v7901_v58 = vsel %vm7887_vm1, %v7868_v16, %v7801_v21  ;;  %v7477_v41 = vpack.c.bf16 %v7445_v4, %v7445_v4  ;;  %v7764_v47 = vunpack.c.l.b16 %v7476_v40  ;;  %v9154_v8 = vrot.slane %v9152_v45, 4  ;;  %v11739_v61 = vld [vmem:[#allocation3 + $0x3c] sm:$0xff]  ;;  %v6537_v45 = vpop.f32.mrf.mxu0 }
 0x5b3   : > { %v7378_v27 = vmul.f32 %v15495_v11, %v7342_v7  ;;  %v7948_v5 = vunpack.c.l.b16 %v7901_v58  ;;  %v7949_v12 = vunpack.c.h.b16 %v7901_v58  ;;  %v9145_v39 = vor.u32 %v9144_v38, %v9141_v14 }
 0x5b4   : > { %v7765_v57 = vunpack.c.l.b16 %v7477_v41  ;;  %v6999_v29 = vadd.f32 %v15630_v3, %v6572_v10  ;;  %v15666_v49 = vpack.c.b16 %v9433_v25, %v9432_v50  ;;  %v9155_v9 = vor.u32 %v9154_v8, %v15662_v35  ;;  %v1231_v10 = vld [vmem:[#allocation3 + $0x68] sm:$0x1]  ;;  %v1184_v8 = vld [vmem:[#allocation3 + $0x6c] sm:$0x1] }
 0x5b5   : > { %v7303_v17 = vpop.f32.mrf.mxu3  ;;  %v7414_v18 = vadd.f32 %v15508_v2, %v7378_v27  ;;  %v7980_v23 = vpack.c.b16 %v7948_v5, %v7948_v5  ;;  %v7981_v59 = vpack.c.b16 %v7949_v12, %v7949_v12  ;;  %v1182_v1 = vsel %vm15303_vm12, 0, %v1181_v6  ;;  %v9004_v27 = vld [vmem:[#allocation3 + $0x40] sm:$0xf]  ;;  %v6964_v12 = vpop.f32.mrf.mxu1 }
 0x5b6   : > { %v7131_v51 = vpop.f32.mrf.mxu2  ;;  %v7784_v34 = vpack.c.b16 %v7765_v57, %v7764_v47  ;;  %v15673_v42 = vsel %vm7820_vm15, %v15362_v43, %v7579_v28  ;;  %1183 = vst [vmem:[#allocation3 + $0x60] sm:$0x1] %v1182_v1  ;;  %v9146_v62 = vrot.slane %v9145_v39, 4  ;;  %v9158_v63 = vshll.u32 %v9002_v60, 16 }
 0x5b7   : > { %v8105_v40 = vshrl.u32 %v7980_v23, 16  ;;  %v8113_v3 = vshrl.u32 %v7981_v59, 16  ;;  %v7446_v0 = vmax.f32 %v7414_v18, 0.0  ;;  %v7171_v19 = vadd.f32 %v7131_v51, %v6999_v29  ;;  %v1234_v29 = vld [vmem:[#allocation3 + $0x74] sm:$0x1]  ;;  %v7691_v18 = vpop.permute.xlu1 %7690 }
 0x5b8   : > { %11523 = vmatmul.msk.bf16.gmra.mxu3 %vm8600_vm14, %v15666_v49  ;;  %7812 = vrot.lane.b32.xlu2 %v7784_v34, %s11841_s24  ;;  %v8108_v46 = vshll.u32 %v7980_v23, 16  ;;  %v8116_v4 = vshll.u32 %v7981_v59, 16  ;;  %v6573_v44 = vadd.f32 %v6535_v37, %v15024_v33  ;;  %v8366_v16 = vld [vmem:[#allocation3 + $0x54] sm:$0xf]  ;;  %v9156_v21 = vrot.slane %v9155_v9, 4 }
 0x5b9   : > { %v8107_v24 = vrot.slane %v8105_v40, 7  ;;  %v8115_v30 = vrot.slane %v8113_v3, 7  ;;  %v8370_v50 = vld [vmem:[#allocation3 + $0x5c] sm:$0x1]  ;;  %v7343_v7 = vadd.f32 %v7303_v17, %v7171_v19  ;;  %v1232_v14 = vsel %vm15315_vm13, 0, %v1231_v10 }
 0x5ba   : > { %11499 = vmatmul.msk.bf16.gmra.mxu2 %vm8600_vm14, %v11739_v61  ;;  %1233 = vst [vmem:[#allocation3 + $0x68] sm:$0x1] %v1232_v14  ;;  %v7000_v5 = vadd.f32 %v6962_v22, %v6573_v44  ;;  %v9160_v37 = vrot.slane %v9158_v63, 5  ;;  %v9163_v28 = vshrl.u32 %v9003_v36, 16  ;;  %v9166_v39 = vshll.u32 %v9003_v36, 16 }
 0x5bb   : > { %v8110_v25 = vor.u32 %v8108_v46, %v8107_v24  ;;  %v8111_v58 = vrot.slane %v8107_v24, 4  ;;  %v8118_v41 = vor.u32 %v8116_v4, %v8115_v30  ;;  %v8120_v38 = vrot.slane %v8115_v30, 4 }
 0x5bc   : > { %v7379_v33 = vmul.f32 %v15495_v11, %v7343_v7  ;;  %v9151_v23 = vsel %vm11997_vm11, %v9146_v62, %v15662_v35  ;;  %v9161_v59 = vsel %vm11997_vm11, %v9156_v21, %v9160_v37  ;;  %v9172_v51 = vshll.u32 %v9004_v27, 16  ;;  %v9005_v7 = vld [vmem:[#allocation3 + $0x44] sm:$0x1]  ;;  %v6540_v21 = vpop.f32.mrf.mxu0 }
 0x5bd   : > { %v7306_v6 = vpop.f32.mrf.mxu3  ;;  %v8119_v47 = vsel %vm15431_vm5, %v8111_v58, %v8118_v41  ;;  %v8367_v57 = vsel %vm15440_vm0, %v8110_v25, %v8366_v16  ;;  %v8371_v17 = vsel %vm15303_vm12, %v8120_v38, %v8370_v50  ;;  %v7478_v34 = vpack.c.bf16 %v7446_v0, %v7446_v0  ;;  %v9006_v38 = vld [vmem:[#allocation3 + $0x48] sm:$0xf]  ;;  %v6967_v37 = vpop.f32.mrf.mxu1 }
 0x5be   : > { %8368 = vst [vmem:[#allocation3 + $0x54] sm:$0xf] %v8367_v57  ;;  %v7415_v22 = vadd.f32 %v15508_v2, %v7379_v33  ;;  %v7134_v60 = vpop.f32.mrf.mxu2  ;;  %v9165_v1 = vrot.slane %v9163_v28, 4  ;;  %v9176_v40 = vshrl.u32 %v9004_v27, 16  ;;  %v9168_v10 = vrot.slane %v9166_v39, 5 }
 0x5bf   : > { %8369 = vst.msk [vmem:[#allocation3 + $0x58] sm:$0xf] %vm1147_vm3, %v8119_v47  ;;  %v7172_v9 = vadd.f32 %v7134_v60, %v7000_v5  ;;  %11444 = vmatmul.msk.bf16.gmra.mxu0 %vm8600_vm14, %v11739_v61  ;;  %v1185_v35 = vsel %vm15303_vm12, 0, %v1184_v8  ;;  %v1235_v19 = vsel %vm15315_vm13, 0, %v1234_v29  ;;  %v7870_v0 = vsel %vm7854_vm2, %v15673_v42, %v7691_v18 }
 0x5c0   : > { %8372 = vst [vmem:[#allocation3 + $0x5c] sm:$0x1] %v8371_v17  ;;  %v7447_v3 = vmax.f32 %v7415_v22, 0.0  ;;  %11473 = vmatmul.msk.bf16.gmra.mxu1 %vm8600_vm14, %v11739_v61  ;;  %v9434_v62 = vunpack.c.l.b16 %v9151_v23  ;;  %v9435_v63 = vunpack.c.l.b16 %v9161_v59  ;;  %v15705_v4 = vrot.slane %v9172_v51, 5 }
 0x5c1   : > { %v7344_v36 = vadd.f32 %v7306_v6, %v7172_v9  ;;  %v7803_v24 = vpop.permute.xlu2 %7802  ;;  %1186 = vst [vmem:[#allocation3 + $0x6c] sm:$0x1] %v1185_v35  ;;  %v9178_v61 = vrot.slane %v9176_v40, 4  ;;  %v6574_v44 = vadd.f32 %v6537_v45, %v15034_v54  ;;  %v7766_v14 = vunpack.c.l.b16 %v7478_v34  ;;  %v11740_v34 = vld [vmem:[#allocation3 + $0x48] sm:$0xff] }
 0x5c2   : > { %v7903_v46 = vsel %vm7887_vm1, %v7870_v0, %v7803_v24  ;;  %v7479_v30 = vpack.c.bf16 %v7447_v3, %v7447_v3  ;;  %1236 = vst [vmem:[#allocation3 + $0x74] sm:$0x1] %v1235_v19  ;;  %v9169_v41 = vor.u32 %v9168_v10, %v9165_v1  ;;  %v15709_v6 = vpack.c.b16 %v9435_v63, %v9434_v62  ;;  %v8377_v1 = vld [vmem:[#allocation3 + $0x68] sm:$0x1]  ;;  %v15718_v63 = vld [vmem:[#allocation3 + $0x4c] sm:$0xf] }
 0x5c3   : > { %v7950_v16 = vunpack.c.l.b16 %v7903_v46  ;;  %v7951_v50 = vunpack.c.h.b16 %v7903_v46  ;;  %v7380_v42 = vmul.f32 %v15495_v11, %v7344_v36  ;;  %v7001_v27 = vadd.f32 %v6964_v12, %v6574_v44  ;;  %v1187_v36 = vld [vmem:[#allocation3 + $0x78] sm:$0x1]  ;;  %v1237_v44 = vld [vmem:[#allocation3 + $0x80] sm:$0x1] }
 0x5c4   : > { %v7767_v25 = vunpack.c.l.b16 %v7479_v30  ;;  %v9179_v54 = vor.u32 %v9178_v61, %v15705_v4  ;;  %v9182_v45 = vshll.u32 %v9005_v7, 16  ;;  %v6575_v57 = vadd.f32 %v6540_v21, %v15040_v55  ;;  %v8373_v55 = vld [vmem:[#allocation3 + $0x60] sm:$0xf] }
 0x5c5   : > { %v7308_v58 = vpop.f32.mrf.mxu3  ;;  %v7982_v5 = vpack.c.b16 %v7950_v16, %v7950_v16  ;;  %v7983_v33 = vpack.c.b16 %v7951_v50, %v7951_v50  ;;  %v9187_v8 = vshrl.u32 %v9006_v38, 16  ;;  %v7416_v12 = vadd.f32 %v15508_v2, %v7380_v42  ;;  %v7581_v16 = vpop.permute.xlu0 %7580 }
 0x5c6   : > { %v7136_v28 = vpop.f32.mrf.mxu2  ;;  %v7785_v47 = vpack.c.b16 %v7767_v25, %v7766_v14  ;;  %v9170_v18 = vrot.slane %v9169_v41, 4  ;;  %v9190_v22 = vshll.u32 %v9006_v38, 16  ;;  %v7002_v9 = vadd.f32 %v6967_v37, %v6575_v57  ;;  %v6542_v25 = vpop.f32.mrf.mxu0 }
 0x5c7   : > { %v8122_v17 = vshrl.u32 %v7982_v5, 16  ;;  %v8130_v39 = vshrl.u32 %v7983_v33, 16  ;;  %v7173_v29 = vadd.f32 %v7136_v28, %v7001_v27  ;;  %v8125_v59 = vshll.u32 %v7982_v5, 16  ;;  %v7693_v28 = vpop.permute.xlu1 %7692 }
 0x5c8   : > { %11524 = vmatmul.msk.bf16.gmra.mxu3 %vm8600_vm14, %v15709_v6  ;;  %7814 = vrot.lane.b32.xlu2 %v7785_v47, %s11841_s24  ;;  %v8133_v51 = vshll.u32 %v7983_v33, 16  ;;  %v9180_v3 = vrot.slane %v9179_v54, 4  ;;  %v9184_v10 = vrot.slane %v9182_v45, 5  ;;  %v7448_v24 = vmax.f32 %v7416_v12, 0.0  ;;  %v6969_v47 = vpop.f32.mrf.mxu1 }
 0x5c9   : > { %v8124_v23 = vrot.slane %v8122_v17, 7  ;;  %v8132_v60 = vrot.slane %v8130_v39, 7  ;;  %v7345_v40 = vadd.f32 %v7308_v58, %v7173_v29  ;;  %v9175_v30 = vsel %vm11997_vm11, %v9170_v18, %v15705_v4  ;;  %v15745_v18 = vld [vmem:[#allocation3 + $0x50] sm:$0x1] }
 0x5ca   : > { %11500 = vmatmul.msk.bf16.gmra.mxu2 %vm8600_vm14, %v11740_v34  ;;  %v9189_v61 = vrot.slane %v9187_v8, 4  ;;  %v9192_v14 = vrot.slane %v9190_v22, 5  ;;  %v9196_v4 = vshll.u32 %v15718_v63, 16  ;;  %v9200_v38 = vshrl.u32 %v15718_v63, 16 }
 0x5cb   : > { %v8127_v35 = vor.u32 %v8125_v59, %v8124_v23  ;;  %v8128_v19 = vrot.slane %v8124_v23, 4  ;;  %v8135_v0 = vor.u32 %v8133_v51, %v8132_v60  ;;  %v8137_v62 = vrot.slane %v8132_v60, 4 }
 0x5cc   : > { %v7381_v46 = vmul.f32 %v15495_v11, %v7345_v40  ;;  %v1188_v27 = vsel %vm15303_vm12, 0, %v1187_v36  ;;  %v9185_v5 = vsel %vm11997_vm11, %v9180_v3, %v9184_v10  ;;  %v1238_v37 = vsel %vm15315_vm13, 0, %v1237_v44  ;;  %v11810_v44 = vld [vmem:[%s17016_s12] ss:$0 sm:$0xff] }
 0x5cd   : > { %v8136_v50 = vsel %vm15431_vm5, %v8128_v19, %v8135_v0  ;;  %v8374_v7 = vsel %vm15440_vm0, %v8127_v35, %v8373_v55  ;;  %v8378_v21 = vsel %vm15303_vm12, %v8137_v62, %v8377_v1  ;;  %v7311_v42 = vpop.f32.mrf.mxu3  ;;  %v7480_v54 = vpack.c.bf16 %v7448_v24, %v7448_v24  ;;  %1189 = vst [vmem:[#allocation3 + $0x78] sm:$0x1] %v1188_v27 }
 0x5ce   : > { %8375 = vst [vmem:[#allocation3 + $0x60] sm:$0xf] %v8374_v7  ;;  %v7417_v58 = vadd.f32 %v15508_v2, %v7381_v46  ;;  %v7139_v41 = vpop.f32.mrf.mxu2  ;;  %v7839_v2 = vsel %vm7820_vm15, %v15362_v43, %v7581_v16  ;;  %v6576_v57 = vadd.f32 %v6542_v25, %v15052_v52  ;;  %v9436_v17 = vunpack.c.l.b16 %v9175_v30  ;;  %v15766_v25 = vld [vmem:[#allocation3 + $0x58] sm:$0xf] }
 0x5cf   : > { %8376 = vst.msk [vmem:[#allocation3 + $0x64] sm:$0xf] %vm1147_vm3, %v8136_v50  ;;  %v7174_v33 = vadd.f32 %v7139_v41, %v7002_v9  ;;  %11445 = vmatmul.msk.bf16.gmra.mxu0 %vm8600_vm14, %v11740_v34  ;;  %v9193_v8 = vor.u32 %v9192_v14, %v9189_v61  ;;  %v9437_v12 = vunpack.c.l.b16 %v9185_v5  ;;  %v15747_v22 = vrot.slane %v9196_v4, 5  ;;  %v1240_v5 = vld [vmem:[#allocation3 + $0x8c] sm:$0x1] }
 0x5d0   : > { %8379 = vst [vmem:[#allocation3 + $0x68] sm:$0x1] %v8378_v21  ;;  %v7449_v45 = vmax.f32 %v7417_v58, 0.0  ;;  %11474 = vmatmul.msk.bf16.gmra.mxu1 %vm8600_vm14, %v11740_v34  ;;  %v9202_v23 = vrot.slane %v9200_v38, 4  ;;  %v7872_v59 = vsel %vm7854_vm2, %v7839_v2, %v7693_v28  ;;  %v7003_v60 = vadd.f32 %v6969_v47, %v6576_v57  ;;  %v11741_v21 = vld [vmem:[#allocation3 + $0x54] sm:$0xff] }
 0x5d1   : > { %v7346_v39 = vadd.f32 %v7311_v42, %v7174_v33  ;;  %1239 = vst [vmem:[#allocation3 + $0x80] sm:$0x1] %v1238_v37  ;;  %v7768_v9 = vunpack.c.l.b16 %v7480_v54  ;;  %v9194_v3 = vrot.slane %v9193_v8, 4  ;;  %v9206_v10 = vshll.u32 %v15745_v18, 16  ;;  %v1190_v58 = vld [vmem:[#allocation3 + $0x84] sm:$0x1] }
 0x5d2   : > { %v7481_v29 = vpack.c.bf16 %v7449_v45, %v7449_v45  ;;  %v7805_v51 = vpop.permute.xlu2 %7804  ;;  %v15753_v35 = vpack.c.b16 %v9437_v12, %v9436_v17  ;;  %v9203_v62 = vor.u32 %v9202_v23, %v15747_v22  ;;  %v10059_v61 = vrot.slane %v15540_v56, 5  ;;  %v8380_v33 = vld [vmem:[#allocation3 + $0x6c] sm:$0xf]  ;;  %v8384_v45 = vld [vmem:[#allocation3 + $0x74] sm:$0x1] }
 0x5d3   : > { %v7382_v34 = vmul.f32 %v15495_v11, %v7346_v39  ;;  %v7905_v52 = vsel %vm7887_vm1, %v7872_v59, %v7805_v51  ;;  %v9009_v11 = vld [vmem:[#allocation3 + $0x54] sm:$0xf]  ;;  %v9199_v42 = vsel %vm11997_vm11, %v9194_v3, %v15747_v22  ;;  %v9208_v14 = vrot.slane %v9206_v10, 5  ;;  %v11811_v57 = vld [vmem:[%s17015_s11] ss:$0 sm:$0xff] }
 0x5d4   : > { %v7769_v55 = vunpack.c.l.b16 %v7481_v29  ;;  %v7952_v1 = vunpack.c.l.b16 %v7905_v52  ;;  %v7953_v40 = vunpack.c.h.b16 %v7905_v52  ;;  %v9204_v4 = vrot.slane %v9203_v62, 4  ;;  %v9982_v59 = vld [vmem:[#allocation3 + $0xc] sm:$0xe]  ;;  %v7583_v62 = vpop.permute.xlu0 %7582 }
 0x5d5   : > { %v7313_v30 = vpop.f32.mrf.mxu3  ;;  %v7418_v16 = vadd.f32 %v11810_v44, %v7382_v34  ;;  %v9211_v38 = vshrl.u32 %v9009_v11, 16  ;;  %v9214_v27 = vshll.u32 %v9009_v11, 16  ;;  %v1191_v39 = vsel %vm15303_vm12, 0, %v1190_v58 }
 0x5d6   : > { %v7141_v19 = vpop.f32.mrf.mxu2  ;;  %v7786_v0 = vpack.c.b16 %v7769_v55, %v7768_v9  ;;  %v7984_v36 = vpack.c.b16 %v7952_v1, %v7952_v1  ;;  %v7985_v24 = vpack.c.b16 %v7953_v40, %v7953_v40  ;;  %v1241_v8 = vsel %vm15315_vm13, 0, %v1240_v5  ;;  %1192 = vst [vmem:[#allocation3 + $0x84] sm:$0x1] %v1191_v39  ;;  %v1193_v39 = vld [vmem:[#allocation3 + $0x90] sm:$0x1] }
 0x5d7   : > { %v7175_v46 = vadd.f32 %v7141_v19, %v7003_v60  ;;  %v7450_v54 = vmax.f32 %v7418_v16, 0.0  ;;  %v10061_v60 = vrot.slane %v10059_v61, 4  ;;  %v9220_v34 = vshll.u32 %v15766_v25, 16  ;;  %1242 = vst [vmem:[#allocation3 + $0x8c] sm:$0x1] %v1241_v8 }
 0x5d8   : > { %11525 = vmatmul.msk.bf16.gmra.mxu3 %vm8600_vm14, %v15753_v35  ;;  %7816 = vrot.lane.b32.xlu2 %v7786_v0, %s11841_s24  ;;  %v8139_v50 = vshrl.u32 %v7984_v36, 16  ;;  %v8147_v7 = vshrl.u32 %v7985_v24, 16  ;;  %v8142_v2 = vshll.u32 %v7984_v36, 16  ;;  %v8150_v47 = vshll.u32 %v7985_v24, 16 }
 0x5d9   : > { %v7347_v41 = vadd.f32 %v7313_v30, %v7175_v46  ;;  %v9224_v52 = vshrl.u32 %v15766_v25, 16  ;;  %v9209_v40 = vsel %vm11997_vm11, %v9204_v4, %v9208_v14  ;;  %v10062_v3 = vrot.slane %v15548_v53, 5  ;;  %v7695_v30 = vpop.permute.xlu1 %7694 }
 0x5da   : > { %v8141_v37 = vrot.slane %v8139_v50, 7  ;;  %v8149_v28 = vrot.slane %v8147_v7, 7  ;;  %11501 = vmatmul.msk.bf16.gmra.mxu2 %vm8600_vm14, %v11741_v21  ;;  %v7482_v10 = vpack.c.bf16 %v7450_v54, %v7450_v54  ;;  %v9438_v0 = vunpack.c.l.b16 %v9199_v42 }
 0x5db   : > { %v7383_v17 = vmul.f32 %v11811_v57, %v7347_v41  ;;  %v9213_v36 = vrot.slane %v9211_v38, 4  ;;  %v9216_v24 = vrot.slane %v9214_v27, 5  ;;  %v11585_v46 = vrot.slane %v9982_v59, 9  ;;  %v15807_v41 = vld [vmem:[#allocation3 + $0x5c] sm:$0x1] }
 0x5dc   : > { %v8144_v12 = vor.u32 %v8142_v2, %v8141_v37  ;;  %v8145_v29 = vrot.slane %v8141_v37, 4  ;;  %v8152_v22 = vor.u32 %v8150_v47, %v8149_v28  ;;  %v8154_v23 = vrot.slane %v8149_v28, 4  ;;  %v9012_v57 = vld [vmem:[#allocation3 + $0x60] sm:$0xf] }
 0x5dd   : > { %v7419_v51 = vadd.f32 %v11810_v44, %v7383_v17  ;;  %v9439_v11 = vunpack.c.l.b16 %v9209_v40  ;;  %v15792_v53 = vrot.slane %v9220_v34, 5  ;;  %v9226_v16 = vrot.slane %v9224_v52, 4  ;;  %v11724_v17 = vld [vmem:[%s17017_s13 + $0x40] sm:$0xff] }
 0x5de   : > { %v8153_v9 = vsel %vm15431_vm5, %v8145_v29, %v8152_v22  ;;  %v8381_v55 = vsel %vm15440_vm0, %v8144_v12, %v8380_v33  ;;  %v8385_v1 = vsel %vm15303_vm12, %v8154_v23, %v8384_v45  ;;  %v10060_v7 = vsel %vm15795_vm8, %v11585_v46, %v10059_v61  ;;  %v11742_v29 = vld [vmem:[#allocation3 + $0x60] sm:$0xff]  ;;  %v15823_v22 = vpop.f32.mrf.mxu1  ;;  %9704 = vmatpush.bf16.msra.mxu0 %v11724_v17 }
 0x5df   : > { %8382 = vst [vmem:[#allocation3 + $0x6c] sm:$0xf] %v8381_v55  ;;  %v7451_v19 = vmax.f32 %v7419_v51, 0.0  ;;  %11446 = vmatmul.msk.bf16.gmra.mxu0 %vm8600_vm14, %v11741_v21  ;;  %v7841_v42 = vsel %vm7820_vm15, %v15362_v43, %v7583_v62  ;;  %v7770_v14 = vunpack.c.l.b16 %v7482_v10  ;;  %v9217_v27 = vor.u32 %v9216_v24, %v9213_v36  ;;  %v15825_v23 = vld [vmem:[#allocation3 + $0x64] sm:$0xf] }
 0x5e0   : > { %11475 = vmatmul.msk.bf16.gmra.mxu1 %vm8600_vm14, %v11741_v21  ;;  %8383 = vst.msk [vmem:[#allocation3 + $0x70] sm:$0xf] %vm1147_vm3, %v8153_v9  ;;  %v10063_v21 = vsel %vm15795_vm8, %v10061_v60, %v10062_v3  ;;  %v7874_v4 = vsel %vm7854_vm2, %v7841_v42, %v7695_v30  ;;  %v10164_v5 = vunpack.c.l.b16 %v10060_v7  ;;  %v15810_v56 = vpack.c.b16 %v9439_v11, %v9438_v0  ;;  %v1243_v60 = vld [vmem:[#allocation3 + $0x98] sm:$0x1]  ;;  %v7585_v0 = vpop.permute.xlu0 %7584  ;;  %v8391_v11 = vld [vmem:[#allocation3 + $0x80] sm:$0x1] }
 0x5e1   : > { %8386 = vst [vmem:[#allocation3 + $0x74] sm:$0x1] %v8385_v1  ;;  %v7483_v44 = vpack.c.bf16 %v7451_v19, %v7451_v19  ;;  %v10165_v33 = vunpack.c.l.b16 %v10063_v21  ;;  %v9227_v2 = vor.u32 %v9226_v16, %v15792_v53  ;;  %v9230_v54 = vshll.u32 %v15807_v41, 16  ;;  %v8387_v30 = vld [vmem:[#allocation3 + $0x78] sm:$0xf]  ;;  %v7697_v7 = vpop.permute.xlu1 %7696 }
 0x5e2   : > { %v1194_v59 = vsel %vm15303_vm12, 0, %v1193_v39  ;;  %v9218_v51 = vrot.slane %v9217_v27, 4  ;;  %v1244_v52 = vsel %vm15315_vm13, 0, %v1243_v60  ;;  %v9235_v40 = vshrl.u32 %v9012_v57, 16 }
 0x5e3   : > { %v7771_v58 = vunpack.c.l.b16 %v7483_v44  ;;  %v15815_v45 = vpack.c.b16 %v10165_v33, %v10164_v5  ;;  %v9228_v34 = vrot.slane %v9227_v2, 4  ;;  %1195 = vst [vmem:[#allocation3 + $0x90] sm:$0x1] %v1194_v59  ;;  %v9232_v1 = vrot.slane %v9230_v54, 5 }
 0x5e4   : > { %1245 = vst [vmem:[#allocation3 + $0x98] sm:$0x1] %v1244_v52  ;;  %v9238_v3 = vshll.u32 %v9012_v57, 16  ;;  %v9244_v10 = vshll.u32 %v15825_v23, 16  ;;  %v9248_v19 = vshrl.u32 %v15825_v23, 16  ;;  %v9223_v44 = vsel %vm11997_vm11, %v9218_v51, %v15792_v53 }
 0x5e5   : > { %v7807_v38 = vpop.permute.xlu2 %7806  ;;  %v7787_v37 = vpack.c.b16 %v7771_v58, %v7770_v14  ;;  %v9233_v16 = vsel %vm11997_vm11, %v9228_v34, %v9232_v1 }
 0x5e6   : > { %v7907_v61 = vsel %vm7887_vm1, %v7874_v4, %v7807_v38  ;;  %v7843_v4 = vsel %vm7820_vm15, %v15362_v43, %v7585_v0  ;;  %v9237_v38 = vrot.slane %v9235_v40, 4  ;;  %v9240_v27 = vrot.slane %v9238_v3, 5  ;;  %v15854_v17 = vpop.f32.mrf.mxu1  ;;  %v9015_v52 = vld [vmem:[#allocation3 + $0x6c] sm:$0xf]  ;;  %v8394_v3 = vld [vmem:[#allocation3 + $0x84] sm:$0xf] }
 0x5e7   : > { %v7954_v28 = vunpack.c.l.b16 %v7907_v61  ;;  %v7955_v47 = vunpack.c.h.b16 %v7907_v61  ;;  %7818 = vrot.lane.b32.xlu2 %v7787_v37, %s11841_s24  ;;  %v15843_v5 = vrot.slane %v9244_v10, 5  ;;  %v9250_v37 = vrot.slane %v9248_v19, 4  ;;  %v9016_v40 = vld [vmem:[#allocation3 + $0x70] sm:$0xf] }
 0x5e8   : > { %11526 = vmatmul.msk.bf16.gmra.mxu3 %vm8600_vm14, %v15810_v56  ;;  %v7876_v2 = vsel %vm7854_vm2, %v7843_v4, %v7697_v7  ;;  %v11743_v10 = vld [vmem:[#allocation3 + $0x6c] sm:$0xff]  ;;  %v9268_v7 = vshll.u32 %v9016_v40, 16 }
 0x5e9   : > { %v7986_v8 = vpack.c.b16 %v7954_v28, %v7954_v28  ;;  %v7987_v12 = vpack.c.b16 %v7955_v47, %v7955_v47  ;;  %v9440_v28 = vunpack.c.l.b16 %v9223_v44  ;;  %v9441_v47 = vunpack.c.l.b16 %v9233_v16 }
 0x5ea   : > { %11502 = vmatmul.msk.bf16.gmra.mxu2 %vm8600_vm14, %v11742_v29  ;;  %v9251_v59 = vor.u32 %v9250_v37, %v15843_v5  ;;  %v9262_v16 = vshll.u32 %v9015_v52, 16 }
 0x5eb   : > { %v8156_v9 = vshrl.u32 %v7986_v8, 16  ;;  %v8164_v55 = vshrl.u32 %v7987_v12, 16  ;;  %v8159_v36 = vshll.u32 %v7986_v8, 16  ;;  %v8167_v46 = vshll.u32 %v7987_v12, 16  ;;  %v15856_v12 = vld [vmem:[#allocation3 + $0x68] sm:$0x1] }
 0x5ec   : > { %v15859_v60 = vpack.c.b16 %v9441_v47, %v9440_v28  ;;  %v9252_v0 = vrot.slane %v9251_v59, 4  ;;  %v7587_v47 = vpop.permute.xlu0 %7586  ;;  %v15883_v59 = vrot.slane %v9268_v7, 5  ;;  %v10097_v7 = vrot.slane %v15745_v18, 5 }
 0x5ed   : > { %v8158_v62 = vrot.slane %v8156_v9, 7  ;;  %v8166_v24 = vrot.slane %v8164_v55, 7  ;;  %v9254_v9 = vshll.u32 %v15856_v12, 16 }
 0x5ef   : > { %v8161_v21 = vor.u32 %v8159_v36, %v8158_v62  ;;  %v8162_v42 = vrot.slane %v8158_v62, 4  ;;  %v8169_v14 = vor.u32 %v8167_v46, %v8166_v24  ;;  %v8171_v58 = vrot.slane %v8166_v24, 4  ;;  %11447 = vmatmul.msk.bf16.gmra.mxu0 %vm8600_vm14, %v11742_v29  ;;  %v8398_v36 = vld [vmem:[#allocation3 + $0x8c] sm:$0x1] }
 0x5f0   : > { %11476 = vmatmul.msk.bf16.gmra.mxu1 %vm8600_vm14, %v11742_v29  ;;  %v9241_v29 = vor.u32 %v9240_v27, %v9237_v38  ;;  %v9259_v62 = vshrl.u32 %v9015_v52, 16  ;;  %v9256_v44 = vrot.slane %v9254_v9, 5  ;;  %v1246_v27 = vld [vmem:[#allocation3 + $0xa4] sm:$0x1]  ;;  %v9017_v52 = vld [vmem:[#allocation3 + $0x74] sm:$0x1] }
 0x5f1   : > { %v8170_v53 = vsel %vm15431_vm5, %v8162_v42, %v8169_v14  ;;  %v8388_v33 = vsel %vm15440_vm0, %v8161_v21, %v8387_v30  ;;  %v8392_v61 = vsel %vm15303_vm12, %v8171_v58, %v8391_v11  ;;  %v9272_v21 = vshrl.u32 %v9016_v40, 16  ;;  %v1196_v42 = vld [vmem:[#allocation3 + $0x9c] sm:$0x1] }
 0x5f2   : > { %8389 = vst [vmem:[#allocation3 + $0x78] sm:$0xf] %v8388_v33  ;;  %v7809_v54 = vpop.permute.xlu2 %7808  ;;  %v9242_v19 = vrot.slane %v9241_v29, 4  ;;  %v9257_v33 = vsel %vm11997_vm11, %v9252_v0, %v9256_v44  ;;  %v1197_v28 = vsel %vm15303_vm12, 0, %v1196_v42  ;;  %v9264_v29 = vrot.slane %v9262_v16, 5 }
 0x5f3   : > { %8390 = vst.msk [vmem:[#allocation3 + $0x7c] sm:$0xf] %vm1147_vm3, %v8170_v53  ;;  %v7909_v57 = vsel %vm7887_vm1, %v7876_v2, %v7809_v54  ;;  %v9261_v2 = vrot.slane %v9259_v62, 4  ;;  %v9278_v44 = vshll.u32 %v9017_v52, 16  ;;  %v1199_v52 = vld [vmem:[#allocation3 + $0xa8] sm:$0x1] }
 0x5f4   : > { %8393 = vst [vmem:[#allocation3 + $0x80] sm:$0x1] %v8392_v61  ;;  %v7956_v39 = vunpack.c.l.b16 %v7909_v57  ;;  %v7957_v8 = vunpack.c.h.b16 %v7909_v57  ;;  %v9247_v53 = vsel %vm11997_vm11, %v9242_v19, %v15843_v5  ;;  %v10094_v19 = vrot.slane %v15718_v63, 5 }
 0x5f5   : > { %1198 = vst [vmem:[#allocation3 + $0x9c] sm:$0x1] %v1197_v28  ;;  %v9265_v62 = vor.u32 %v9264_v29, %v9261_v2  ;;  %v9280_v2 = vrot.slane %v9278_v44, 5  ;;  %v8401_v29 = vld [vmem:[#allocation3 + $0x90] sm:$0xf] }
 0x5f6   : > { %v7988_v51 = vpack.c.b16 %v7956_v39, %v7956_v39  ;;  %v7989_v34 = vpack.c.b16 %v7957_v8, %v7957_v8  ;;  %v7699_v8 = vpop.permute.xlu1 %7698  ;;  %v9988_v44 = vld [vmem:[#allocation3 + $0x54] sm:$0xe] }
 0x5f8   : > { %11527 = vmatmul.msk.bf16.gmra.mxu3 %vm8600_vm14, %v15859_v60  ;;  %v8173_v55 = vshrl.u32 %v7988_v51, 16  ;;  %v8181_v1 = vshrl.u32 %v7989_v34, 16  ;;  %v8176_v46 = vshll.u32 %v7988_v51, 16  ;;  %v8184_v11 = vshll.u32 %v7989_v34, 16 }
 0x5f9   : > { %v9274_v51 = vrot.slane %v9272_v21, 4  ;;  %v1247_v34 = vsel %vm15315_vm13, 0, %v1246_v27 }
 0x5fa   : > { %v8175_v24 = vrot.slane %v8173_v55, 7  ;;  %v8183_v30 = vrot.slane %v8181_v1, 7  ;;  %11503 = vmatmul.msk.bf16.gmra.mxu2 %vm8600_vm14, %v11743_v10  ;;  %v9442_v55 = vunpack.c.l.b16 %v9247_v53  ;;  %v9443_v1 = vunpack.c.l.b16 %v9257_v33  ;;  %1248 = vst [vmem:[#allocation3 + $0xa4] sm:$0x1] %v1247_v34 }
 0x5fc   : > { %v8178_v14 = vor.u32 %v8176_v46, %v8175_v24  ;;  %v8179_v58 = vrot.slane %v8175_v24, 4  ;;  %v8186_v4 = vor.u32 %v8184_v11, %v8183_v30  ;;  %v8188_v38 = vrot.slane %v8183_v30, 4  ;;  %v8658_v61 = vpop.f32.mrf.mxu0  ;;  %v15870_v37 = vpop.f32.mrf.mxu1 }
 0x5fd   : > { %v15881_v39 = vadd.f32 %v15823_v22, %v8658_v61  ;;  %v7845_v22 = vsel %vm7820_vm15, %v15362_v43, %v7587_v47  ;;  %v10096_v46 = vrot.slane %v10094_v19, 4  ;;  %v15899_v21 = vpack.c.b16 %v9443_v1, %v9442_v55  ;;  %v11744_v61 = vld [vmem:[#allocation3 + $0x78] sm:$0xff]  ;;  %v7589_v55 = vpop.permute.xlu0 %7588 }
 0x5fe   : > { %v8187_v54 = vsel %vm15431_vm5, %v8179_v58, %v8186_v4  ;;  %v8395_v57 = vsel %vm15440_vm0, %v8178_v14, %v8394_v3  ;;  %v8399_v5 = vsel %vm15303_vm12, %v8188_v38, %v8398_v36  ;;  %v7878_v9 = vsel %vm7854_vm2, %v7845_v22, %v7699_v8  ;;  %v9987_v3 = vld [vmem:[#allocation3 + $0x48] sm:$0xe]  ;;  %v9018_v58 = vld [vmem:[#allocation3 + $0x78] sm:$0xf]  ;;  %v15904_v4 = vpop.f32.mrf.mxu3 }
 0x5ff   : > { %8396 = vst [vmem:[#allocation3 + $0x84] sm:$0xf] %v8395_v57  ;;  %11448 = vmatmul.msk.bf16.gmra.mxu0 %vm8600_vm14, %v11743_v10  ;;  %v9275_v36 = vor.u32 %v9274_v51, %v15883_v59  ;;  %v11590_v16 = vrot.slane %v9987_v3, 9  ;;  %v9266_v38 = vrot.slane %v9265_v62, 4  ;;  %v10098_v53 = vsel %vm15795_vm8, %v10096_v46, %v10097_v7  ;;  %v8405_v51 = vld [vmem:[#allocation3 + $0x98] sm:$0x1] }
 0x600   : > { %8397 = vst.msk [vmem:[#allocation3 + $0x88] sm:$0xf] %vm1147_vm3, %v8187_v54  ;;  %11477 = vmatmul.msk.bf16.gmra.mxu1 %vm8600_vm14, %v11743_v10  ;;  %v9283_v28 = vshrl.u32 %v9018_v58, 16  ;;  %v9286_v47 = vshll.u32 %v9018_v58, 16  ;;  %v1249_v62 = vld [vmem:[#allocation3 + $0xb0] sm:$0x1] }
 0x601   : > { %8400 = vst [vmem:[#allocation3 + $0x8c] sm:$0x1] %v8399_v5  ;;  %v9276_v27 = vrot.slane %v9275_v36, 4  ;;  %v9271_v34 = vsel %vm11997_vm11, %v9266_v38, %v15883_v59  ;;  %v1200_v59 = vsel %vm15303_vm12, 0, %v1199_v52 }
 0x602   : > { %v7811_v40 = vpop.permute.xlu2 %7810  ;;  %17380 = vst [vmem:[#allocation43_spill] sm:$0xff] %v15904_v4  ;;  %v9288_v46 = vrot.slane %v9286_v47, 5 }
 0x603   : > { %v7911_v0 = vsel %vm7887_vm1, %v7878_v9, %v7811_v40  ;;  %v9281_v22 = vsel %vm11997_vm11, %v9276_v27, %v9280_v2  ;;  %v10175_v9 = vunpack.c.l.b16 %v10098_v53  ;;  %1201 = vst [vmem:[#allocation3 + $0xa8] sm:$0x1] %v1200_v59  ;;  %v7847_v2 = vsel %vm7820_vm15, %v15362_v43, %v7589_v55 }
 0x604   : > { %v7958_v10 = vunpack.c.l.b16 %v7911_v0  ;;  %v7959_v24 = vunpack.c.h.b16 %v7911_v0  ;;  %v8660_v30 = vpop.f32.mrf.mxu0  ;;  %v15896_v11 = vpop.f32.mrf.mxu1  ;;  %v9019_v0 = vld [vmem:[#allocation3 + $0x7c] sm:$0xf] }
 0x605   : > { %v15902_v63 = vadd.f32 %v15854_v17, %v8660_v30  ;;  %v10095_v17 = vsel %vm15795_vm8, %v11590_v16, %v10094_v19  ;;  %v7701_v16 = vpop.permute.xlu1 %7700  ;;  %v9292_v53 = vshll.u32 %v9019_v0, 16 }
 0x606   : > { %v7990_v42 = vpack.c.b16 %v7958_v10, %v7958_v10  ;;  %v7991_v14 = vpack.c.b16 %v7959_v24, %v7959_v24  ;;  %v9285_v24 = vrot.slane %v9283_v28, 4  ;;  %v10174_v30 = vunpack.c.l.b16 %v10095_v17  ;;  %v15945_v17 = vpop.f32.mrf.mxu3 }
 0x607   : > { %v11591_v28 = vrot.slane %v9988_v44, 9  ;;  %v7880_v47 = vsel %vm7854_vm2, %v7847_v2, %v7701_v16 }
 0x608   : > { %11528 = vmatmul.msk.bf16.gmra.mxu3 %vm8600_vm14, %v15899_v21  ;;  %v8190_v33 = vshrl.u32 %v7990_v42, 16  ;;  %v8198_v18 = vshrl.u32 %v7991_v14, 16  ;;  %v8193_v57 = vshll.u32 %v7990_v42, 16  ;;  %v8201_v8 = vshll.u32 %v7991_v14, 16 }
 0x60a   : > { %v8192_v54 = vrot.slane %v8190_v33, 7  ;;  %v8200_v5 = vrot.slane %v8198_v18, 7  ;;  %11504 = vmatmul.msk.bf16.gmra.mxu2 %vm8600_vm14, %v11744_v61  ;;  %v9296_v33 = vshrl.u32 %v9019_v0, 16  ;;  %v1250_v18 = vsel %vm15315_vm13, 0, %v1249_v62 }
 0x60b   : > { %1251 = vst [vmem:[#allocation3 + $0xb0] sm:$0x1] %v1250_v18  ;;  %v9021_v18 = vld [vmem:[#allocation3 + $0x84] sm:$0xf] }
 0x60c   : > { %v8195_v1 = vor.u32 %v8193_v57, %v8192_v54  ;;  %v8196_v40 = vrot.slane %v8192_v54, 4  ;;  %v8203_v3 = vor.u32 %v8201_v8, %v8200_v5  ;;  %v8205_v19 = vrot.slane %v8200_v5, 4  ;;  %v8663_v36 = vpop.f32.mrf.mxu0  ;;  %v9020_v8 = vld [vmem:[#allocation3 + $0x80] sm:$0x1] }
 0x60d   : > { %v15918_v10 = vpop.f32.mrf.mxu1  ;;  %v15929_v58 = vadd.f32 %v15870_v37, %v8663_v36  ;;  %v8876_v38 = vpop.f32.mrf.mxu2  ;;  %v15941_v37 = vpack.c.b16 %v10175_v9, %v10174_v30  ;;  %v9444_v54 = vunpack.c.l.b16 %v9271_v34  ;;  %v9445_v57 = vunpack.c.l.b16 %v9281_v22 }
 0x60e   : > { %v8204_v7 = vsel %vm15431_vm5, %v8196_v40, %v8203_v3  ;;  %v8402_v42 = vsel %vm15440_vm0, %v8195_v1, %v8401_v29  ;;  %v8406_v14 = vsel %vm15303_vm12, %v8205_v19, %v8405_v51  ;;  %v15932_v27 = vadd.f32 %v8876_v38, %v15881_v39  ;;  %v8408_v38 = vld [vmem:[#allocation3 + $0x9c] sm:$0xf] }
 0x60f   : > { %8403 = vst [vmem:[#allocation3 + $0x90] sm:$0xf] %v8402_v42  ;;  %11449 = vmatmul.msk.bf16.gmra.mxu0 %vm8600_vm14, %v11744_v61  ;;  %v10101_v39 = vrot.slane %v15766_v25, 5  ;;  %v9289_v9 = vor.u32 %v9288_v46, %v9285_v24  ;;  %v15951_v25 = vrot.slane %v9292_v53, 5  ;;  %v9298_v55 = vrot.slane %v9296_v33, 4  ;;  %v11745_v53 = vld [vmem:[#allocation3 + $0x84] sm:$0xff] }
 0x610   : > { %17381 = vst [vmem:[#allocation46_spill] sm:$0xff] %v15932_v27  ;;  %11478 = vmatmul.msk.bf16.gmra.mxu1 %vm8600_vm14, %v11744_v61  ;;  %v10104_v61 = vrot.slane %v15807_v41, 5  ;;  %v9302_v19 = vshll.u32 %v9020_v8, 16  ;;  %v15957_v36 = vpack.c.b16 %v9445_v57, %v9444_v54  ;;  %v8412_v54 = vld [vmem:[#allocation3 + $0xa4] sm:$0x1] }
 0x611   : > { %8404 = vst.msk [vmem:[#allocation3 + $0x94] sm:$0xf] %vm1147_vm3, %v8204_v7  ;;  %v10102_v29 = vsel %vm15795_vm8, %v11591_v28, %v10101_v39  ;;  %v10103_v51 = vrot.slane %v10101_v39, 4  ;;  %v9290_v44 = vrot.slane %v9289_v9, 4  ;;  %v9299_v16 = vor.u32 %v9298_v55, %v15951_v25  ;;  %v1202_v8 = vld [vmem:[#allocation3 + $0xb4] sm:$0x1] }
 0x612   : > { %17382 = vst [vmem:[#allocation48_spill] sm:$0xff] %v15941_v37  ;;  %v7813_v5 = vpop.permute.xlu2 %7812  ;;  %v10176_v0 = vunpack.c.l.b16 %v10102_v29  ;;  %v9304_v33 = vrot.slane %v9302_v19, 5  ;;  %v10108_v29 = vrot.slane %v15825_v23, 5  ;;  %v9310_v19 = vshll.u32 %v9021_v18, 16 }
 0x613   : > { %8407 = vst [vmem:[#allocation3 + $0x98] sm:$0x1] %v8406_v14  ;;  %v7913_v52 = vsel %vm7887_vm1, %v7880_v47, %v7813_v5  ;;  %v10105_v34 = vsel %vm15795_vm8, %v10103_v51, %v10104_v61  ;;  %v9295_v57 = vsel %vm11997_vm11, %v9290_v44, %v15951_v25  ;;  %v9300_v5 = vrot.slane %v9299_v16, 4  ;;  %v7591_v51 = vpop.permute.xlu0 %7590  ;;  %v9989_v25 = vld [vmem:[#allocation3 + $0x60] sm:$0xe] }
 0x614   : > { %v7960_v1 = vunpack.c.l.b16 %v7913_v52  ;;  %v7961_v40 = vunpack.c.h.b16 %v7913_v52  ;;  %v8665_v22 = vpop.f32.mrf.mxu0  ;;  %v10177_v62 = vunpack.c.l.b16 %v10105_v34 }
 0x615   : > { %v15955_v3 = vpop.f32.mrf.mxu1  ;;  %v15960_v24 = vadd.f32 %v15896_v11, %v8665_v22  ;;  %v8878_v46 = vpop.f32.mrf.mxu2  ;;  %v9307_v22 = vshrl.u32 %v9021_v18, 16 }
 0x616   : > { %v7992_v41 = vpack.c.b16 %v7960_v1, %v7960_v1  ;;  %v7993_v59 = vpack.c.b16 %v7961_v40, %v7961_v40  ;;  %v15963_v30 = vadd.f32 %v8878_v46, %v15902_v63  ;;  %v15966_v7 = vpack.c.b16 %v10177_v62, %v10176_v0  ;;  %v9022_v63 = vld [vmem:[#allocation3 + $0x88] sm:$0xf]  ;;  %v1252_v1 = vld [vmem:[#allocation3 + $0xbc] sm:$0x1] }
 0x617   : > { %v9316_v0 = vshll.u32 %v9022_v63, 16  ;;  %v1203_v62 = vsel %vm15303_vm12, 0, %v1202_v8  ;;  %v9320_v18 = vshrl.u32 %v9022_v63, 16  ;;  %v9312_v63 = vrot.slane %v9310_v19, 5  ;;  %v9023_v8 = vld [vmem:[#allocation3 + $0x8c] sm:$0x1] }
 0x618   : > { %17383 = vst [vmem:[#allocation53_spill] sm:$0xff] %v15966_v7  ;;  %11529 = vmatmul.msk.bf16.gmra.mxu3 %vm8600_vm14, %v15957_v36  ;;  %v8207_v42 = vshrl.u32 %v7992_v41, 16  ;;  %v8215_v14 = vshrl.u32 %v7993_v59, 16  ;;  %v8210_v2 = vshll.u32 %v7992_v41, 16  ;;  %v8218_v39 = vshll.u32 %v7993_v59, 16  ;;  %v7703_v41 = vpop.permute.xlu1 %7702 }
 0x619   : > { %1204 = vst [vmem:[#allocation3 + $0xb4] sm:$0x1] %v1203_v62  ;;  %v9326_v62 = vshll.u32 %v9023_v8, 16 }
 0x61a   : > { %v8209_v11 = vrot.slane %v8207_v42, 7  ;;  %v8217_v28 = vrot.slane %v8215_v14, 7  ;;  %11505 = vmatmul.msk.bf16.gmra.mxu2 %vm8600_vm14, %v11745_v53  ;;  %v9305_v42 = vsel %vm11997_vm11, %v9300_v5, %v9304_v33  ;;  %v10111_v33 = vrot.slane %v15856_v12, 5 }
 0x61b   : > { %v15970_v47 = vpop.f32.mrf.mxu3 }
 0x61c   : > { %v8212_v61 = vor.u32 %v8210_v2, %v8209_v11  ;;  %v8213_v52 = vrot.slane %v8209_v11, 4  ;;  %v8220_v9 = vor.u32 %v8218_v39, %v8217_v28  ;;  %v8222_v55 = vrot.slane %v8217_v28, 4  ;;  %v8668_v40 = vpop.f32.mrf.mxu0 }
 0x61d   : > { %v15977_v34 = vpop.f32.mrf.mxu1  ;;  %v15988_v44 = vadd.f32 %v15918_v10, %v8668_v40  ;;  %v8881_v16 = vpop.f32.mrf.mxu2  ;;  %v1253_v11 = vsel %vm15315_vm13, 0, %v1252_v1  ;;  %v11592_v10 = vrot.slane %v9989_v25, 9  ;;  %v10110_v2 = vrot.slane %v10108_v29, 4 }
 0x61e   : > { %v8221_v23 = vsel %vm15431_vm5, %v8213_v52, %v8220_v9  ;;  %v8409_v59 = vsel %vm15440_vm0, %v8212_v61, %v8408_v38  ;;  %v8413_v46 = vsel %vm15303_vm12, %v8222_v55, %v8412_v54  ;;  %v15993_v14 = vadd.f32 %v8881_v16, %v15929_v58  ;;  %1254 = vst [vmem:[#allocation3 + $0xbc] sm:$0x1] %v1253_v11 }
 0x61f   : > { %8410 = vst [vmem:[#allocation3 + $0x9c] sm:$0xf] %v8409_v59  ;;  %v7849_v38 = vsel %vm7820_vm15, %v15362_v43, %v7591_v51  ;;  %11450 = vmatmul.msk.bf16.gmra.mxu0 %vm8600_vm14, %v11745_v53  ;;  %v9446_v28 = vunpack.c.l.b16 %v9295_v57  ;;  %v9309_v39 = vrot.slane %v9307_v22, 4  ;;  %v9447_v54 = vunpack.c.l.b16 %v9305_v42 }
 0x620   : > { %8411 = vst.msk [vmem:[#allocation3 + $0xa0] sm:$0xf] %vm1147_vm3, %v8221_v23  ;;  %11479 = vmatmul.msk.bf16.gmra.mxu1 %vm8600_vm14, %v11745_v53  ;;  %v7882_v58 = vsel %vm7854_vm2, %v7849_v38, %v7703_v41  ;;  %v16004_v51 = vrot.slane %v9316_v0, 5  ;;  %v10109_v61 = vsel %vm15795_vm8, %v11592_v10, %v10108_v29  ;;  %v10112_v53 = vsel %vm15795_vm8, %v10110_v2, %v10111_v33  ;;  %v9024_v38 = vld [vmem:[#allocation3 + $0x90] sm:$0xf] }
 0x621   : > { %8414 = vst [vmem:[#allocation3 + $0xa4] sm:$0x1] %v8413_v46  ;;  %v9322_v9 = vrot.slane %v9320_v18, 4  ;;  %v10178_v57 = vunpack.c.l.b16 %v10109_v61  ;;  %v10179_v55 = vunpack.c.l.b16 %v10112_v53  ;;  %v9313_v0 = vor.u32 %v9312_v63, %v9309_v39  ;;  %v8415_v10 = vld [vmem:[#allocation3 + $0xa8] sm:$0xf]  ;;  %v11746_v2 = vld [vmem:[#allocation3 + $0x90] sm:$0xff] }
 0x622   : > { %v7815_v5 = vpop.permute.xlu2 %7814  ;;  %v16017_v29 = vpack.c.b16 %v9447_v54, %v9446_v28  ;;  %v9025_v54 = vld [vmem:[#allocation3 + $0x94] sm:$0xf]  ;;  %v9331_v61 = vshrl.u32 %v9024_v38, 16  ;;  %v1205_v53 = vld [vmem:[#allocation3 + $0xc0] sm:$0x1] }
 0x623   : > { %v16010_v52 = vpop.f32.mrf.mxu3  ;;  %v7915_v12 = vsel %vm7887_vm1, %v7882_v58, %v7815_v5  ;;  %v16015_v25 = vpack.c.b16 %v10179_v55, %v10178_v57  ;;  %v9323_v42 = vor.u32 %v9322_v9, %v16004_v51  ;;  %v9314_v33 = vrot.slane %v9313_v0, 4 }
 0x624   : > { %v7962_v1 = vunpack.c.l.b16 %v7915_v12  ;;  %v7963_v40 = vunpack.c.h.b16 %v7915_v12  ;;  %v8670_v22 = vpop.f32.mrf.mxu0  ;;  %v9328_v58 = vrot.slane %v9326_v62, 5  ;;  %v7593_v12 = vpop.permute.xlu0 %7592  ;;  %v9334_v62 = vshll.u32 %v9024_v38, 16 }
 0x625   : > { %v16013_v19 = vpop.f32.mrf.mxu1  ;;  %17384 = vst [vmem:[#allocation52_spill] sm:$0xff] %v16015_v25  ;;  %v16020_v59 = vadd.f32 %v15955_v3, %v8670_v22  ;;  %v8883_v46 = vpop.f32.mrf.mxu2  ;;  %v9324_v8 = vrot.slane %v9323_v42, 4 }
 0x626   : > { %v7994_v41 = vpack.c.b16 %v7962_v1, %v7962_v1  ;;  %v7995_v23 = vpack.c.b16 %v7963_v40, %v7963_v40  ;;  %v16023_v16 = vadd.f32 %v8883_v46, %v15960_v24  ;;  %v8419_v24 = vld [vmem:[#allocation3 + $0xb0] sm:$0x1]  ;;  %v1255_v40 = vld [vmem:[#allocation3 + $0xc8] sm:$0x1]  ;;  %v1206_v46 = vsel %vm15303_vm12, 0, %v1205_v53  ;;  %v7705_v38 = vpop.permute.xlu1 %7704 }
 0x627   : > { %1207 = vst [vmem:[#allocation3 + $0xc0] sm:$0x1] %v1206_v46 }
 0x628   : > { %11530 = vmatmul.msk.bf16.gmra.mxu3 %vm8600_vm14, %v16017_v29  ;;  %v8224_v18 = vshrl.u32 %v7994_v41, 16  ;;  %v8232_v11 = vshrl.u32 %v7995_v23, 16  ;;  %v8227_v39 = vshll.u32 %v7994_v41, 16  ;;  %v8235_v63 = vshll.u32 %v7995_v23, 16 }
 0x629   : > { %v9340_v41 = vshll.u32 %v9025_v54, 16  ;;  %v9344_v23 = vshrl.u32 %v9025_v54, 16 }
 0x62a   : > { %v8226_v28 = vrot.slane %v8224_v18, 7  ;;  %v8234_v3 = vrot.slane %v8232_v11, 7  ;;  %11506 = vmatmul.msk.bf16.gmra.mxu2 %vm8600_vm14, %v11746_v2 }
 0x62b   : > { %v16028_v5 = vpop.f32.mrf.mxu3 }
 0x62c   : > { %v8229_v9 = vor.u32 %v8227_v39, %v8226_v28  ;;  %v8230_v57 = vrot.slane %v8226_v28, 4  ;;  %v8237_v55 = vor.u32 %v8235_v63, %v8234_v3  ;;  %v8239_v1 = vrot.slane %v8234_v3, 4  ;;  %v8673_v22 = vpop.f32.mrf.mxu0  ;;  %v7595_v4 = vpop.permute.xlu0 %7594 }
 0x62d   : > { %v16031_v0 = vpop.f32.mrf.mxu1  ;;  %v16042_v28 = vadd.f32 %v15977_v34, %v8673_v22  ;;  %v8886_v39 = vpop.f32.mrf.mxu2  ;;  %v9319_v3 = vsel %vm11997_vm11, %v9314_v33, %v16004_v51  ;;  %v9329_v63 = vsel %vm11997_vm11, %v9324_v8, %v9328_v58  ;;  %v7851_v34 = vsel %vm7820_vm15, %v15362_v43, %v7593_v12 }
 0x62e   : > { %v8238_v42 = vsel %vm15431_vm5, %v8230_v57, %v8237_v55  ;;  %v8416_v18 = vsel %vm15440_vm0, %v8229_v9, %v8415_v10  ;;  %v8420_v11 = vsel %vm15303_vm12, %v8239_v1, %v8419_v24  ;;  %v16050_v54 = vadd.f32 %v8886_v39, %v15988_v44  ;;  %v16065_v1 = vld [vmem:[#allocation3 + $0x98] sm:$0x1] }
 0x62f   : > { %8417 = vst [vmem:[#allocation3 + $0xa8] sm:$0xf] %v8416_v18  ;;  %v1256_v10 = vsel %vm15315_vm13, 0, %v1255_v40  ;;  %11451 = vmatmul.msk.bf16.gmra.mxu0 %vm8600_vm14, %v11746_v2  ;;  %v9333_v51 = vrot.slane %v9331_v61, 4  ;;  %v9336_v33 = vrot.slane %v9334_v62, 5  ;;  %v16059_v24 = vrot.slane %v9340_v41, 5 }
 0x630   : > { %8418 = vst.msk [vmem:[#allocation3 + $0xac] sm:$0xf] %vm1147_vm3, %v8238_v42  ;;  %11480 = vmatmul.msk.bf16.gmra.mxu1 %vm8600_vm14, %v11746_v2  ;;  %v9346_v58 = vrot.slane %v9344_v23, 4  ;;  %v7884_v44 = vsel %vm7854_vm2, %v7851_v34, %v7705_v38  ;;  %v9448_v8 = vunpack.c.l.b16 %v9319_v3  ;;  %v9449_v13 = vunpack.c.l.b16 %v9329_v63  ;;  %v9027_v18 = vld [vmem:[#allocation3 + $0x9c] sm:$0xf] }
 0x631   : > { %8421 = vst [vmem:[#allocation3 + $0xb0] sm:$0x1] %v8420_v11  ;;  %v9337_v40 = vor.u32 %v9336_v33, %v9333_v51  ;;  %v9350_v39 = vshll.u32 %v16065_v1, 16  ;;  %v9028_v63 = vld [vmem:[#allocation3 + $0xa0] sm:$0xf]  ;;  %v9355_v33 = vshrl.u32 %v9027_v18, 16 }
 0x632   : > { %v7817_v53 = vpop.permute.xlu2 %7816  ;;  %1257 = vst [vmem:[#allocation3 + $0xc8] sm:$0x1] %v1256_v10  ;;  %v9347_v22 = vor.u32 %v9346_v58, %v16059_v24  ;;  %v16070_v62 = vpack.c.b16 %v9449_v13, %v9448_v8  ;;  %v11747_v10 = vld [vmem:[#allocation3 + $0x9c] sm:$0xff]  ;;  %v8422_v58 = vld [vmem:[#allocation3 + $0xb4] sm:$0xf] }
 0x633   : > { %v16062_v9 = vpop.f32.mrf.mxu3  ;;  %v7917_v12 = vsel %vm7887_vm1, %v7884_v44, %v7817_v53  ;;  %17385 = vst [vmem:[#allocation50_spill] sm:$0xff] %v16065_v1  ;;  %v9338_v34 = vrot.slane %v9337_v40, 4 }
 0x634   : > { %v7964_v57 = vunpack.c.l.b16 %v7917_v12  ;;  %v7965_v55 = vunpack.c.h.b16 %v7917_v12  ;;  %v8675_v2 = vpop.f32.mrf.mxu0  ;;  %17386 = vst [vmem:[#allocation51_spill] sm:$0xff] %v16070_v62  ;;  %v9348_v51 = vrot.slane %v9347_v22, 4  ;;  %v9352_v12 = vrot.slane %v9350_v39, 5 }
 0x635   : > { %v16067_v61 = vpop.f32.mrf.mxu1  ;;  %v16073_v46 = vadd.f32 %v16013_v19, %v8675_v2  ;;  %v8888_v42 = vpop.f32.mrf.mxu2  ;;  %v9368_v2 = vshrl.u32 %v9028_v63, 16  ;;  %v9343_v22 = vsel %vm11997_vm11, %v9338_v34, %v16059_v24 }
 0x636   : > { %v7996_v41 = vpack.c.b16 %v7964_v57, %v7964_v57  ;;  %v7997_v23 = vpack.c.b16 %v7965_v55, %v7965_v55  ;;  %v16076_v11 = vadd.f32 %v8888_v42, %v16020_v59  ;;  %v8426_v59 = vld [vmem:[#allocation3 + $0xbc] sm:$0x1]  ;;  %v9358_v57 = vshll.u32 %v9027_v18, 16  ;;  %v7707_v34 = vpop.permute.xlu1 %7706 }
 0x637   : > { %v9364_v55 = vshll.u32 %v9028_v63, 16 }
 0x638   : > { %11531 = vmatmul.msk.bf16.gmra.mxu3 %vm8600_vm14, %v16070_v62  ;;  %v8241_v38 = vshrl.u32 %v7996_v41, 16  ;;  %v8249_v3 = vshrl.u32 %v7997_v23, 16  ;;  %v8244_v44 = vshll.u32 %v7996_v41, 16  ;;  %v8252_v13 = vshll.u32 %v7997_v23, 16 }
 0x639   : > { %v9353_v41 = vsel %vm11997_vm11, %v9348_v51, %v9352_v12 }
 0x63a   : > { %v8243_v19 = vrot.slane %v8241_v38, 7  ;;  %v8251_v8 = vrot.slane %v8249_v3, 7  ;;  %11507 = vmatmul.msk.bf16.gmra.mxu2 %vm8600_vm14, %v11747_v10  ;;  %v9357_v3 = vrot.slane %v9355_v33, 4  ;;  %v9360_v33 = vrot.slane %v9358_v57, 5 }
 0x63b   : > { %v16081_v53 = vpop.f32.mrf.mxu3 }
 0x63c   : > { %v8246_v42 = vor.u32 %v8244_v44, %v8243_v19  ;;  %v8247_v1 = vrot.slane %v8243_v19, 4  ;;  %v8254_v62 = vor.u32 %v8252_v13, %v8251_v8  ;;  %v8256_v40 = vrot.slane %v8251_v8, 4  ;;  %v8678_v23 = vpop.f32.mrf.mxu0  ;;  %v16111_v13 = vld [vmem:[#allocation3 + $0xa4] sm:$0x1] }
 0x63d   : > { %v16089_v38 = vpop.f32.mrf.mxu1  ;;  %v16098_v19 = vadd.f32 %v16031_v0, %v8678_v23  ;;  %v8891_v24 = vpop.f32.mrf.mxu2  ;;  %v16103_v44 = vrot.slane %v9364_v55, 5  ;;  %v9370_v8 = vrot.slane %v9368_v2, 4  ;;  %v7853_v0 = vsel %vm7820_vm15, %v15362_v43, %v7595_v4  ;;  %17387 = vst [vmem:[#allocation57_spill] sm:$0xff] %v16111_v13 }
 0x63e   : > { %v8255_v18 = vsel %vm15431_vm5, %v8247_v1, %v8254_v62  ;;  %v8423_v39 = vsel %vm15440_vm0, %v8246_v42, %v8422_v58  ;;  %v8427_v63 = vsel %vm15303_vm12, %v8256_v40, %v8426_v59  ;;  %v16101_v51 = vadd.f32 %v8891_v24, %v16042_v28 }
 0x63f   : > { %8424 = vst [vmem:[#allocation3 + $0xb4] sm:$0xf] %v8423_v39  ;;  %11452 = vmatmul.msk.bf16.gmra.mxu0 %vm8600_vm14, %v11747_v10  ;;  %v7886_v1 = vsel %vm7854_vm2, %v7853_v0, %v7707_v34  ;;  %v9450_v62 = vunpack.c.l.b16 %v9343_v22  ;;  %v9451_v58 = vunpack.c.l.b16 %v9353_v41  ;;  %v9361_v57 = vor.u32 %v9360_v33, %v9357_v3  ;;  %v11748_v33 = vld [vmem:[#allocation3 + $0xa8] sm:$0xff] }
 0x640   : > { %8425 = vst.msk [vmem:[#allocation3 + $0xb8] sm:$0xf] %vm1147_vm3, %v8255_v18  ;;  %11481 = vmatmul.msk.bf16.gmra.mxu1 %vm8600_vm14, %v11747_v10  ;;  %v9371_v55 = vor.u32 %v9370_v8, %v16103_v44  ;;  %v9374_v43 = vshll.u32 %v16111_v13, 16  ;;  %v9030_v0 = vld [vmem:[#allocation3 + $0xa8] sm:$0xf] }
 0x641   : > { %8428 = vst [vmem:[#allocation3 + $0xbc] sm:$0x1] %v8427_v63  ;;  %v7819_v28 = vpop.permute.xlu2 %7818  ;;  %v16118_v4 = vpack.c.b16 %v9451_v58, %v9450_v62  ;;  %v9362_v63 = vrot.slane %v9361_v57, 4 }
 0x642   : > { %v7919_v12 = vsel %vm7887_vm1, %v7886_v1, %v7819_v28  ;;  %v9372_v3 = vrot.slane %v9371_v55, 4  ;;  %v9376_v8 = vrot.slane %v9374_v43, 5 }
 0x643   : > { %v16113_v59 = vpop.f32.mrf.mxu3  ;;  %v7966_v2 = vunpack.c.l.b16 %v7919_v12  ;;  %v7967_v10 = vunpack.c.h.b16 %v7919_v12  ;;  %17388 = vst [vmem:[#allocation55_spill] sm:$0xff] %v16118_v4  ;;  %v16126_v12 = vld [vmem:[#allocation3 + $0xac] sm:$0xf]  ;;  %v9367_v57 = vsel %vm11997_vm11, %v9362_v63, %v16103_v44 }
 0x644   : > { %v8680_v42 = vpop.f32.mrf.mxu0  ;;  %v9377_v55 = vsel %vm11997_vm11, %v9372_v3, %v9376_v8  ;;  %v9388_v13 = vshll.u32 %v16126_v12, 16  ;;  %v9452_v20 = vunpack.c.l.b16 %v9367_v57 }
 0x645   : > { %v8794_v40 = vpop.f32.mrf.mxu1  ;;  %v7998_v22 = vpack.c.b16 %v7966_v2, %v7966_v2  ;;  %v7999_v41 = vpack.c.b16 %v7967_v10, %v7967_v10  ;;  %v8790_v23 = vadd.f32 %v16067_v61, %v8680_v42  ;;  %v8893_v18 = vpop.f32.mrf.mxu2  ;;  %v8433_v2 = vld [vmem:[#allocation3 + $0xc8] sm:$0x1]  ;;  %v9453_v15 = vunpack.c.l.b16 %v9377_v55 }
 0x646   : > { %v16122_v39 = vadd.f32 %v8893_v18, %v16073_v46  ;;  %v8429_v46 = vld [vmem:[#allocation3 + $0xc0] sm:$0xf]  ;;  %v9390_v31 = vrot.slane %v9388_v13, 5 }
 0x647   : > { %v8258_v24 = vshrl.u32 %v7998_v22, 16  ;;  %v8266_v34 = vshrl.u32 %v7999_v41, 16  ;;  %v8261_v62 = vshll.u32 %v7998_v22, 16  ;;  %v8269_v28 = vshll.u32 %v7999_v41, 16 }
 0x648   : > { %11532 = vmatmul.msk.bf16.gmra.mxu3 %vm8600_vm14, %v16118_v4  ;;  %v9392_v4 = vshrl.u32 %v16126_v12, 16 }
 0x649   : > { %v8260_v1 = vrot.slane %v8258_v24, 7  ;;  %v8268_v58 = vrot.slane %v8266_v34, 7  ;;  %v9379_v24 = vshrl.u32 %v9030_v0, 16  ;;  %v9382_v34 = vshll.u32 %v9030_v0, 16 }
 0x64a   : > { %11508 = vmatmul.msk.bf16.gmra.mxu2 %vm8600_vm14, %v11748_v33 }
 0x64b   : > { %v16128_v61 = vpop.f32.mrf.mxu3  ;;  %v8263_v10 = vor.u32 %v8261_v62, %v8260_v1  ;;  %v8264_v42 = vrot.slane %v8260_v1, 4  ;;  %v8271_v43 = vor.u32 %v8269_v28, %v8268_v58  ;;  %v8273_v22 = vrot.slane %v8268_v58, 4 }
 0x64c   : > { %v8683_v41 = vpop.f32.mrf.mxu0  ;;  %v9381_v0 = vrot.slane %v9379_v24, 4  ;;  %v9384_v62 = vrot.slane %v9382_v34, 5  ;;  %v9394_v58 = vrot.slane %v9392_v4, 4  ;;  %v11730_v4 = vld [vmem:[%s17017_s13 + $0x70] sm:$0xff]  ;;  %v16176_v34 = vadd.f32 %v15945_v17, %v15963_v30 }
 0x64d   : > { %v8797_v18 = vpop.f32.mrf.mxu1  ;;  %v8272_v27 = vsel %vm15431_vm5, %v8264_v42, %v8271_v43  ;;  %v8430_v44 = vsel %vm15440_vm0, %v8263_v10, %v8429_v46  ;;  %v8434_v63 = vsel %vm15303_vm12, %v8273_v22, %v8433_v2  ;;  %v8793_v3 = vadd.f32 %v16089_v38, %v8683_v41  ;;  %v8896_v8 = vpop.f32.mrf.mxu2  ;;  %v11731_v38 = vld [vmem:[%s17017_s13 + $0x78] sm:$0xff] }
 0x64e   : > { %8431 = vst [vmem:[#allocation3 + $0xc0] sm:$0xf] %v8430_v44  ;;  %v16146_v1 = vadd.f32 %v8896_v8, %v16098_v19  ;;  %9866 = vmatpush.bf16.msra.mxu1 %v11731_v38  ;;  %v16158_v2 = vpack.c.b16 %v9453_v15, %v9452_v20  ;;  %v9385_v55 = vor.u32 %v9384_v62, %v9381_v0  ;;  %v11749_v43 = vld [vmem:[#allocation3 + $0xb4] sm:$0xff] }
 0x64f   : > { %8432 = vst.msk [vmem:[#allocation3 + $0xc4] sm:$0xf] %vm1147_vm3, %v8272_v27  ;;  %11453 = vmatmul.msk.bf16.gmra.mxu0 %vm8600_vm14, %v11748_v33  ;;  %v16156_v27 = vld [vmem:[#allocation3 + $0xb0] sm:$0x1]  ;;  %v9395_v10 = vor.u32 %v9394_v58, %v9390_v31 }
 0x650   : > { %11482 = vmatmul.msk.bf16.gmra.mxu1 %vm8600_vm14, %v11748_v33  ;;  %8435 = vst [vmem:[#allocation3 + $0xc8] sm:$0x1] %v8434_v63  ;;  %v9398_v13 = vshll.u32 %v16156_v27, 16  ;;  %v9386_v22 = vrot.slane %v9385_v55, 4  ;;  %v16178_v63 = vld [vmem:[#allocation3 + $0xb8] sm:$0xf] }
 0x651   : > { %17389 = vst [vmem:[#allocation60_spill] sm:$0xff] %v16156_v27  ;;  %v9396_v41 = vrot.slane %v9395_v10, 4  ;;  %v9412_v17 = vshll.u32 %v16178_v63, 16  ;;  %v9416_v30 = vshrl.u32 %v16178_v63, 16 }
 0x652   : > { %9867 = vmatpush.bf16.msra.mxu1 %v11730_v4  ;;  %v9400_v44 = vrot.slane %v9398_v13, 5  ;;  %17390 = vst [vmem:[#allocation40_spill] sm:$0xff] %v16178_v63  ;;  %v9391_v15 = vsel %vm11997_vm11, %v9386_v22, %v9390_v31 }
 0x653   : > { %v16151_v28 = vpop.f32.mrf.mxu3  ;;  %v9454_v55 = vunpack.c.l.b16 %v9391_v15  ;;  %v9418_v22 = vrot.slane %v9416_v30, 4 }
 0x654   : > { %v8685_v19 = vpop.f32.mrf.mxu0  ;;  %v9401_v0 = vsel %vm11997_vm11, %v9396_v41, %v9400_v44  ;;  %v11726_v41 = vld [vmem:[%s17017_s13 + $0x50] sm:$0xff] }
 0x655   : > { %v8799_v46 = vpop.f32.mrf.mxu1  ;;  %v8795_v33 = vadd.f32 %v8794_v40, %v8685_v19  ;;  %v8898_v57 = vpop.f32.mrf.mxu2  ;;  %v9033_v40 = vld [vmem:[#allocation3 + $0xb4] sm:$0xf]  ;;  %v9455_v10 = vunpack.c.l.b16 %v9401_v0  ;;  %v16204_v0 = vld [vmem:[#allocation3 + $0xbc] sm:$0x1] }
 0x656   : > { %v16160_v42 = vadd.f32 %v8898_v57, %v8790_v23  ;;  %v11727_v23 = vld [vmem:[%s17017_s13 + $0x58] sm:$0xff]  ;;  %v9403_v38 = vshrl.u32 %v9033_v40, 16  ;;  %v9406_v57 = vshll.u32 %v9033_v40, 16  ;;  %v16200_v40 = vadd.f32 %v15970_v47, %v15993_v14  ;;  %17391 = vst [vmem:[#allocation4_spill] sm:$0xff] %v16204_v0 }
 0x657   : > { %10425 = vmatpush.bf16.msra.mxu3 %v11727_v23  ;;  %v16202_v44 = vpack.c.b16 %v9455_v10, %v9454_v55  ;;  %v9422_v47 = vshll.u32 %v16204_v0, 16  ;;  %v11814_v0 = vld [vmem:[#allocation3 + $0x1c] sm:$0xf] }
 0x658   : > { %11533 = vmatmul.msk.bf16.gmra.mxu3 %vm8600_vm14, %v16158_v2  ;;  %v9405_v31 = vrot.slane %v9403_v38, 4  ;;  %v9408_v4 = vrot.slane %v9406_v57, 5  ;;  %v10066_v63 = vrot.slane %v11814_v0, 5 }
 0x659   : > { %v9424_v10 = vrot.slane %v9422_v47, 5 }
 0x65a   : > { %11509 = vmatmul.msk.bf16.gmra.mxu2 %vm8600_vm14, %v11749_v43  ;;  %v9409_v38 = vor.u32 %v9408_v4, %v9405_v31 }
 0x65b   : > { %v16168_v24 = vpop.f32.mrf.mxu3  ;;  %10426 = vmatpush.bf16.msra.mxu3 %v11726_v41 }
 0x65c   : > { %v8688_v8 = vpop.f32.mrf.mxu0  ;;  %v9410_v30 = vrot.slane %v9409_v38, 4  ;;  %v16235_v38 = vadd.f32 %v16028_v5, %v16050_v54  ;;  %v16248_v5 = vadd.f32 %v16062_v9, %v16076_v11 }
 0x65d   : > { %v8802_v20 = vpop.f32.mrf.mxu1  ;;  %v8798_v62 = vadd.f32 %v8797_v18, %v8688_v8  ;;  %v8901_v58 = vpop.f32.mrf.mxu2  ;;  %v9414_v18 = vrot.slane %v9412_v17, 5  ;;  %v11750_v17 = vld [vmem:[#allocation3 + $0xc0] sm:$0xff] }
 0x65e   : > { %v16184_v19 = vadd.f32 %v8901_v58, %v8793_v3  ;;  %v11721_v3 = vld [vmem:[%s17017_s13 + $0x28] sm:$0xff] }
 0x65f   : > { %11454 = vmatmul.msk.bf16.gmra.mxu0 %vm8600_vm14, %v11749_v43  ;;  %10276 = vmatpush.bf16.msra.mxu2 %v11721_v3  ;;  %v9419_v57 = vor.u32 %v9418_v22, %v9414_v18  ;;  %v9415_v41 = vsel %vm11997_vm11, %v9410_v30, %v9414_v18 }
 0x660   : > { %11483 = vmatmul.msk.bf16.gmra.mxu1 %vm8600_vm14, %v11749_v43 }
 0x661   : > { %v9420_v55 = vrot.slane %v9419_v57, 4 }
 0x663   : > { %v16190_v13 = vpop.f32.mrf.mxu3 }
 0x664   : > { %v8690_v43 = vpop.f32.mrf.mxu0 }
 0x665   : > { %v8804_v23 = vpop.f32.mrf.mxu1  ;;  %v8800_v8 = vadd.f32 %v8799_v46, %v8690_v43  ;;  %v8903_v15 = vpop.f32.mrf.mxu2  ;;  %v11733_v46 = vld [vmem:[%s17017_s13 + $0x88] sm:$0xff]  ;;  %v9425_v43 = vsel %vm11997_vm11, %v9420_v55, %v9424_v10 }
 0x666   : > { %v16206_v58 = vadd.f32 %v8903_v15, %v8795_v33  ;;  %v16219_v33 = vadd.f32 %v16010_v52, %v16023_v16  ;;  %10574 = vmatpush.bf16.msrb.mxu0 %v11733_v46  ;;  %v9456_v52 = vunpack.c.l.b16 %v9415_v41  ;;  %v9457_v16 = vunpack.c.l.b16 %v9425_v43  ;;  %v11751_v46 = vld [vmem:[#allocation3 + $0xcc] sm:$0xff]  ;;  %v11812_v10 = vld [vmem:[#allocation3 + $0x4] sm:$0xf]  ;;  %v11813_v43 = vld [vmem:[#allocation3 + $0x8] sm:$0x1] }
 0x668   : > { %11534 = vmatmul.msk.bf16.gmra.mxu3 %vm8600_vm14, %v16202_v44  ;;  %v16239_v47 = vpack.c.b16 %v9457_v16, %v9456_v52 }
 0x66a   : > { %11510 = vmatmul.msk.bf16.gmra.mxu2 %vm8600_vm14, %v11750_v17 }
 0x66b   : > { %v16211_v14 = vpop.f32.mrf.mxu3 }
 0x66c   : > { %v8693_v31 = vpop.f32.mrf.mxu0 }
 0x66d   : > { %v8807_v4 = vpop.f32.mrf.mxu1  ;;  %v8803_v22 = vadd.f32 %v8802_v20, %v8693_v31  ;;  %v8906_v3 = vpop.f32.mrf.mxu2  ;;  %v11720_v20 = vld [vmem:[%s17017_s13 + $0x20] sm:$0xff]  ;;  %v10052_v31 = vrot.slane %v11812_v10, 5 }
 0x66e   : > { %v16225_v15 = vadd.f32 %v8906_v3, %v8798_v62  ;;  %10277 = vmatpush.bf16.msra.mxu2 %v11720_v20  ;;  %v9981_v3 = vld [vmem:[#allocation3] sm:$0xe] }
 0x66f   : > { %11455 = vmatmul.msk.bf16.gmra.mxu0 %vm8600_vm14, %v11750_v17  ;;  %v11584_v54 = vrot.slane %v9981_v3, 9  ;;  %v10054_v41 = vrot.slane %v10052_v31, 4 }
 0x670   : > { %11568 = vmatmul.msk.bf16.vlgmr.msra.gmra.mxu1 %vm8600_vm14, %v15621_v32 }
 0x671   : > { %v10053_v9 = vsel %vm15795_vm8, %v11584_v54, %v10052_v31  ;;  %v9983_v31 = vld [vmem:[#allocation3 + $0x18] sm:$0xe]  ;;  %v10068_v54 = vrot.slane %v10066_v63, 4 }
 0x673   : > { %v16237_v18 = vpop.f32.mrf.mxu3 }
 0x674   : > { %v8695_v57 = vpop.f32.mrf.mxu0 }
 0x675   : > { %v8809_v62 = vpop.f32.mrf.mxu1  ;;  %v8805_v17 = vadd.f32 %v8804_v23, %v8695_v57  ;;  %v8908_v30 = vpop.f32.mrf.mxu2  ;;  %v10055_v23 = vrot.slane %v11813_v43, 5 }
 0x676   : > { %v16241_v55 = vadd.f32 %v8908_v30, %v8800_v8 }
 0x677   : > { %v10056_v11 = vsel %vm15795_vm8, %v10054_v41, %v10055_v23 }
 0x678   : > { %11535 = vmatmul.msk.bf16.gmra.mxu3 %vm8600_vm14, %v16239_v47  ;;  %v10163_v10 = vunpack.c.l.b16 %v10056_v11 }
 0x67a   : > { %11511 = vmatmul.msk.bf16.gmra.mxu2 %vm8600_vm14, %v11751_v46  ;;  %v10162_v46 = vunpack.c.l.b16 %v10053_v9 }
 0x67b   : > { %v16250_v16 = vpop.f32.mrf.mxu3 }
 0x67c   : > { %v8698_v52 = vpop.f32.mrf.mxu0 }
 0x67d   : > { %v8812_v8 = vpop.f32.mrf.mxu1  ;;  %v8808_v20 = vadd.f32 %v8807_v4, %v8698_v52  ;;  %v8911_v57 = vpop.f32.mrf.mxu2  ;;  %v16264_v4 = vadd.f32 %v16081_v53, %v16101_v51  ;;  %v16275_v53 = vadd.f32 %v16113_v59, %v16122_v39  ;;  %v11586_v51 = vrot.slane %v9983_v31, 9 }
 0x67e   : > { %v16252_v30 = vadd.f32 %v8911_v57, %v8803_v22  ;;  %v10194_v57 = vpack.c.b16 %v10163_v10, %v10162_v46 }
 0x67f   : > { %11544 = vmatmul.msk.bf16.vlgmr.msra.gmra.mxu0 %vm8600_vm14, %v15581_v48  ;;  %v10067_v59 = vsel %vm15795_vm8, %v11586_v51, %v10066_v63  ;;  %v9984_v63 = vld [vmem:[#allocation3 + $0x24] sm:$0xe] }
 0x680   : > { %11569 = vmatmul.msk.bf16.gmra.mxu1 %vm8600_vm14, %v15666_v49 }
 0x683   : > { %v16268_v27 = vpop.f32.mrf.mxu3 }
 0x684   : > { %v8700_v22 = vpop.f32.mrf.mxu0 }
 0x685   : > { %v8814_v3 = vpop.f32.mrf.mxu1  ;;  %v8810_v43 = vadd.f32 %v8809_v62, %v8700_v22  ;;  %v8913_v52 = vpop.f32.mrf.mxu2  ;;  %v11815_v62 = vld [vmem:[#allocation3 + $0x20] sm:$0x1]  ;;  %v10166_v22 = vunpack.c.l.b16 %v10067_v59 }
 0x686   : > { %v16266_v48 = vadd.f32 %v8913_v52, %v8805_v17  ;;  %v10069_v17 = vrot.slane %v11815_v62, 5  ;;  %v11816_v62 = vld [vmem:[#allocation3 + $0x28] sm:$0xf] }
 0x688   : > { %11633 = vmatmul.msk.bf16.vlgmr.msra.gmra.mxu3 %vm8600_vm14, %v15815_v45  ;;  %v10070_v11 = vsel %vm15795_vm8, %v10068_v54, %v10069_v17  ;;  %v10073_v17 = vrot.slane %v11816_v62, 5 }
 0x689   : > { %v10167_v10 = vunpack.c.l.b16 %v10070_v11 }
 0x68a   : > { %11608 = vmatmul.msk.bf16.vlgmr.msra.gmra.mxu2 %vm8600_vm14, %v10194_v57 }
 0x68b   : > { %v16287_v39 = vpop.f32.mrf.mxu3  ;;  %v16293_v57 = vpack.c.b16 %v10167_v10, %v10166_v22 }
 0x68c   : > { %v8703_v41 = vpop.f32.mrf.mxu0 }
 0x68d   : > { %v8817_v23 = vpop.f32.mrf.mxu1  ;;  %v8813_v9 = vadd.f32 %v8812_v8, %v8703_v41  ;;  %v8916_v0 = vpop.f32.mrf.mxu2  ;;  %v16291_v8 = vadd.f32 %v16128_v61, %v16146_v1  ;;  %v10075_v61 = vrot.slane %v10073_v17, 4  ;;  %v16303_v1 = vadd.f32 %v16151_v28, %v16160_v42  ;;  %v11817_v41 = vld [vmem:[#allocation3 + $0x2c] sm:$0x1] }
 0x68e   : > { %v16279_v46 = vadd.f32 %v8916_v0, %v8808_v20  ;;  %v16319_v42 = vadd.f32 %v16168_v24, %v16184_v19  ;;  %v16333_v19 = vadd.f32 %v16190_v13, %v16206_v58 }
 0x68f   : > { %11545 = vmatmul.msk.bf16.gmra.mxu0 %vm8600_vm14, %v15621_v32 }
 0x690   : > { %11570 = vmatmul.msk.bf16.gmra.mxu1 %vm8600_vm14, %v15709_v6 }
 0x693   : > { %v16305_v51 = vpop.f32.mrf.mxu3 }
 0x694   : > { %v8705_v52 = vpop.f32.mrf.mxu0 }
 0x695   : > { %v8819_v20 = vpop.f32.mrf.mxu1  ;;  %v8815_v31 = vadd.f32 %v8814_v3, %v8705_v52  ;;  %v8918_v32 = vpop.f32.mrf.mxu2  ;;  %v11587_v3 = vrot.slane %v9984_v63, 9 }
 0x696   : > { %v16295_v54 = vadd.f32 %v8918_v32, %v8810_v43  ;;  %v10076_v43 = vrot.slane %v11817_v41, 5 }
 0x698   : > { %11634 = vmatmul.msk.bf16.gmra.mxu3 %vm8600_vm14, %v16293_v57  ;;  %v10077_v22 = vsel %vm15795_vm8, %v10075_v61, %v10076_v43  ;;  %v11818_v43 = vld [vmem:[#allocation3 + $0x34] sm:$0xf] }
 0x699   : > { %v10169_v28 = vunpack.c.l.b16 %v10077_v22 }
 0x69a   : > { %11609 = vmatmul.msk.bf16.gmra.mxu2 %vm8600_vm14, %v15815_v45  ;;  %v10074_v45 = vsel %vm15795_vm8, %v11587_v3, %v10073_v17  ;;  %v9985_v17 = vld [vmem:[#allocation3 + $0x30] sm:$0xe] }
 0x69b   : > { %v16321_v63 = vpop.f32.mrf.mxu3  ;;  %v11588_v3 = vrot.slane %v9985_v17, 9 }
 0x69c   : > { %v8708_v0 = vpop.f32.mrf.mxu0 }
 0x69d   : > { %v8822_v11 = vpop.f32.mrf.mxu1  ;;  %v8818_v59 = vadd.f32 %v8817_v23, %v8708_v0  ;;  %v8921_v10 = vpop.f32.mrf.mxu2  ;;  %v10168_v23 = vunpack.c.l.b16 %v10074_v45  ;;  %v10080_v0 = vrot.slane %v11818_v43, 5 }
 0x69e   : > { %v16309_v52 = vadd.f32 %v8921_v10, %v8813_v9  ;;  %v11819_v10 = vld [vmem:[#allocation3 + $0x38] sm:$0x1] }
 0x69f   : > { %11546 = vmatmul.msk.bf16.gmra.mxu0 %vm8600_vm14, %v15666_v49  ;;  %v16323_v9 = vpack.c.b16 %v10169_v28, %v10168_v23  ;;  %v10082_v24 = vrot.slane %v10080_v0, 4  ;;  %v10081_v13 = vsel %vm15795_vm8, %v11588_v3, %v10080_v0  ;;  %v9986_v3 = vld [vmem:[#allocation3 + $0x3c] sm:$0xe] }
 0x6a0   : > { %11571 = vmatmul.msk.bf16.gmra.mxu1 %vm8600_vm14, %v15753_v35  ;;  %v10170_v43 = vunpack.c.l.b16 %v10081_v13 }
 0x6a4   : > { %v8710_v32 = vpop.f32.mrf.mxu0 }
 0x6a5   : > { %v8824_v62 = vpop.f32.mrf.mxu1  ;;  %v8820_v61 = vadd.f32 %v8819_v20, %v8710_v32  ;;  %v8923_v49 = vpop.f32.mrf.mxu2  ;;  %v10083_v20 = vrot.slane %v11819_v10, 5 }
 0x6a6   : > { %v16325_v41 = vadd.f32 %v8923_v49, %v8815_v31  ;;  %v16339_v49 = vpop.f32.mrf.mxu3 }
 0x6a7   : > { %v10084_v23 = vsel %vm15795_vm8, %v10082_v24, %v10083_v20 }
 0x6a8   : > { %11635 = vmatmul.msk.bf16.gmra.mxu3 %vm8600_vm14, %v16323_v9  ;;  %v10171_v58 = vunpack.c.l.b16 %v10084_v23  ;;  %v11821_v23 = vld [vmem:[#allocation3 + $0x44] sm:$0x1] }
 0x6aa   : > { %11610 = vmatmul.msk.bf16.gmra.mxu2 %vm8600_vm14, %v16293_v57  ;;  %v16351_v24 = vpack.c.b16 %v10171_v58, %v10170_v43 }
 0x6ac   : > { %v8713_v22 = vpop.f32.mrf.mxu0  ;;  %17392 = vst [vmem:[#allocation21_spill] sm:$0xff] %v16351_v24 }
 0x6ad   : > { %v8827_v31 = vpop.f32.mrf.mxu1  ;;  %v8823_v45 = vadd.f32 %v8822_v11, %v8713_v22  ;;  %v8926_v28 = vpop.f32.mrf.mxu2  ;;  %v16349_v11 = vadd.f32 %v16211_v14, %v16225_v15  ;;  %v16363_v15 = vadd.f32 %v16237_v18, %v16241_v55 }
 0x6ae   : > { %v16337_v32 = vadd.f32 %v8926_v28, %v8818_v59  ;;  %v16357_v0 = vpop.f32.mrf.mxu3 }
 0x6af   : > { %11547 = vmatmul.msk.bf16.gmra.mxu0 %vm8600_vm14, %v15709_v6  ;;  %v11820_v6 = vld [vmem:[#allocation3 + $0x40] sm:$0xf] }
 0x6b0   : > { %11572 = vmatmul.msk.bf16.gmra.mxu1 %vm8600_vm14, %v15810_v56  ;;  %v10087_v28 = vrot.slane %v11820_v6, 5 }
 0x6b2   : > { %v10089_v14 = vrot.slane %v10087_v28, 4 }
 0x6b4   : > { %v8715_v17 = vpop.f32.mrf.mxu0 }
 0x6b5   : > { %v8829_v59 = vpop.f32.mrf.mxu1  ;;  %v8825_v10 = vadd.f32 %v8824_v62, %v8715_v17  ;;  %v8928_v20 = vpop.f32.mrf.mxu2  ;;  %v11589_v62 = vrot.slane %v9986_v3, 9  ;;  %v16377_v3 = vadd.f32 %v16250_v16, %v16252_v30  ;;  %v16391_v16 = vadd.f32 %v16268_v27, %v16266_v48 }
 0x6b6   : > { %v16353_v22 = vadd.f32 %v8928_v20, %v8820_v61  ;;  %v10090_v61 = vrot.slane %v11821_v23, 5 }
 0x6b7   : > { %v10088_v18 = vsel %vm15795_vm8, %v11589_v62, %v10087_v28 }
 0x6b8   : > { %11636 = vmatmul.msk.bf16.gmra.mxu3 %vm8600_vm14, %v16351_v24  ;;  %v10091_v20 = vsel %vm15795_vm8, %v10089_v14, %v10090_v61  ;;  %v10172_v23 = vunpack.c.l.b16 %v10088_v18 }
 0x6b9   : > { %v10173_v55 = vunpack.c.l.b16 %v10091_v20 }
 0x6ba   : > { %11611 = vmatmul.msk.bf16.gmra.mxu2 %vm8600_vm14, %v16323_v9 }
 0x6bb   : > { %v16381_v61 = vpack.c.b16 %v10173_v55, %v10172_v23 }
 0x6bc   : > { %v8718_v13 = vpop.f32.mrf.mxu0 }
 0x6bd   : > { %v8832_v58 = vpop.f32.mrf.mxu1  ;;  %v8828_v43 = vadd.f32 %v8827_v31, %v8718_v13  ;;  %v8931_v17 = vpop.f32.mrf.mxu2  ;;  %17393 = vst [vmem:[#allocation6_spill] sm:$0xff] %v16381_v61 }
 0x6be   : > { %v16367_v6 = vadd.f32 %v8931_v17, %v8823_v45  ;;  %v16379_v31 = vpop.f32.mrf.mxu3 }
 0x6bf   : > { %11548 = vmatmul.msk.bf16.gmra.mxu0 %vm8600_vm14, %v15753_v35 }
 0x6c0   : > { %11573 = vmatmul.msk.bf16.gmra.mxu1 %vm8600_vm14, %v15859_v60 }
 0x6c4   : > { %v8720_v14 = vpop.f32.mrf.mxu0 }
 0x6c5   : > { %v8834_v45 = vpop.f32.mrf.mxu1  ;;  %v8830_v13 = vadd.f32 %v8829_v59, %v8720_v14  ;;  %v8933_v35 = vpop.f32.mrf.mxu2 }
 0x6c6   : > { %v16383_v17 = vadd.f32 %v8933_v35, %v8825_v10  ;;  %v16393_v62 = vpop.f32.mrf.mxu3  ;;  %v16403_v10 = vadd.f32 %v16287_v39, %v16279_v46 }
 0x6c8   : > { %11637 = vmatmul.msk.bf16.gmra.mxu3 %vm8600_vm14, %v16381_v61 }
 0x6ca   : > { %11612 = vmatmul.msk.bf16.gmra.mxu2 %vm8600_vm14, %v16351_v24 }
 0x6cc   : > { %v8723_v30 = vpop.f32.mrf.mxu0 }
 0x6cd   : > { %v8837_v28 = vpop.f32.mrf.mxu1  ;;  %v8833_v20 = vadd.f32 %v8832_v58, %v8723_v30  ;;  %v8936_v18 = vpop.f32.mrf.mxu2  ;;  %v16427_v30 = vadd.f32 %v16321_v63, %v16309_v52  ;;  %v16440_v52 = vadd.f32 %v16339_v49, %v16325_v41 }
 0x6ce   : > { %v16395_v59 = vadd.f32 %v8936_v18, %v8828_v43  ;;  %v16407_v58 = vpop.f32.mrf.mxu3 }
 0x6cf   : > { %11549 = vmatmul.msk.bf16.gmra.mxu0 %vm8600_vm14, %v15810_v56  ;;  %v16415_v56 = vadd.f32 %v16305_v51, %v16295_v54  ;;  %17394 = vst [vmem:[#allocation42_spill] sm:$0xff] %v16440_v52 }
 0x6d0   : > { %11574 = vmatmul.msk.bf16.gmra.mxu1 %vm8600_vm14, %v15899_v21 }
 0x6d4   : > { %v8725_v27 = vpop.f32.mrf.mxu0 }
 0x6d5   : > { %v8839_v48 = vpop.f32.mrf.mxu1  ;;  %v8835_v55 = vadd.f32 %v8834_v45, %v8725_v27  ;;  %v8938_v23 = vpop.f32.mrf.mxu2 }
 0x6d6   : > { %v16405_v14 = vadd.f32 %v8938_v23, %v8830_v13  ;;  %v16423_v13 = vpop.f32.mrf.mxu3 }
 0x6d8   : > { %11638 = vmatmul.msk.bf16.gmra.mxu3 %vm8600_vm14, %v15941_v37 }
 0x6da   : > { %11613 = vmatmul.msk.bf16.gmra.mxu2 %vm8600_vm14, %v16381_v61 }
 0x6dc   : > { %v8728_v46 = vpop.f32.mrf.mxu0 }
 0x6dd   : > { %v8842_v39 = vpop.f32.mrf.mxu1  ;;  %v8838_v43 = vadd.f32 %v8837_v28, %v8728_v46  ;;  %v8941_v35 = vpop.f32.mrf.mxu2 }
 0x6de   : > { %v16417_v45 = vadd.f32 %v8941_v35, %v8833_v20  ;;  %v16442_v63 = vpop.f32.mrf.mxu3  ;;  %v16452_v35 = vadd.f32 %v16357_v0, %v16337_v32  ;;  %v16464_v32 = vadd.f32 %v16379_v31, %v16353_v22  ;;  %v17396_v0 = vld [vmem:[#allocation46_spill] sm:$0xff]  ;;  %v17398_v22 = vld [vmem:[#allocation51_spill] sm:$0xff] }
 0x6df   : > { %11550 = vmatmul.msk.bf16.gmra.mxu0 %vm8600_vm14, %v15859_v60  ;;  %v11732_v60 = vld [vmem:[%s17017_s13 + $0x80] sm:$0xff] }
 0x6e0   : > { %11575 = vmatmul.msk.bf16.gmra.mxu1 %vm8600_vm14, %v15957_v36  ;;  %10575 = vmatpush.bf16.msrb.mxu0 %v11732_v60  ;;  %17395 = vst [vmem:[#allocation13_spill] sm:$0xff] %v16452_v35 }
 0x6e4   : > { %v8730_v54 = vpop.f32.mrf.mxu0 }
 0x6e5   : > { %v8840_v51 = vadd.f32 %v8839_v48, %v8730_v54  ;;  %v8943_v18 = vpop.f32.mrf.mxu2  ;;  %v8844_v27 = vpop.f32.mrf.mxu1 }
 0x6e6   : > { %v16429_v28 = vadd.f32 %v8943_v18, %v8835_v55  ;;  %v16454_v49 = vpop.f32.mrf.mxu3 }
 0x6e8   : > { %11639 = vmatmul.msk.bf16.gmra.mxu3 %vm8600_vm14, %v15966_v7 }
 0x6ea   : > { %11614 = vmatmul.msk.bf16.gmra.mxu2 %vm8600_vm14, %v15941_v37 }
 0x6ec   : > { %v8733_v20 = vpop.f32.mrf.mxu0 }
 0x6ed   : > { %v8843_v48 = vadd.f32 %v8842_v39, %v8733_v20  ;;  %v8946_v55 = vpop.f32.mrf.mxu2  ;;  %v9869_v46 = vpop.f32.mrf.mxu1 }
 0x6ee   : > { %v16444_v23 = vadd.f32 %v8946_v55, %v8838_v43  ;;  %v11822_v43 = vld [vmem:[#allocation3 + $0x70] sm:$0xf] }
 0x6ef   : > { %11551 = vmatmul.msk.bf16.gmra.mxu0 %vm8600_vm14, %v15899_v21  ;;  %v10115_v60 = vrot.slane %v11822_v43, 5  ;;  %v9990_v21 = vld [vmem:[#allocation3 + $0x6c] sm:$0xe] }
 0x6f0   : > { %11576 = vmatmul.msk.bf16.gmra.mxu1 %vm8600_vm14, %v16017_v29 }
 0x6f1   : > { %v10117_v55 = vrot.slane %v10115_v60, 4 }
 0x6f4   : > { %v8735_v41 = vpop.f32.mrf.mxu0 }
 0x6f5   : > { %v8845_v54 = vadd.f32 %v8844_v27, %v8735_v41  ;;  %v8948_v18 = vpop.f32.mrf.mxu2  ;;  %v9871_v20 = vpop.f32.mrf.mxu1  ;;  %v17397_v27 = vld [vmem:[#allocation43_spill] sm:$0xff] }
 0x6f6   : > { %v16456_v39 = vadd.f32 %v8948_v18, %v8840_v51  ;;  %v9623_v41 = vadd.f32 %v17397_v27, %v17396_v0  ;;  %v11593_v51 = vrot.slane %v9990_v21, 9  ;;  %v11823_v18 = vld [vmem:[#allocation3 + $0x74] sm:$0x1]  ;;  %v16482_v27 = vadd.f32 %v16393_v62, %v16367_v6  ;;  %v9991_v6 = vld [vmem:[#allocation3 + $0x78] sm:$0xe] }
 0x6f7   : > { %v10118_v37 = vrot.slane %v11823_v18, 5 }
 0x6f8   : > { %11640 = vmatmul.msk.bf16.gmra.mxu3 %vm8600_vm14, %v16015_v25  ;;  %v10116_v21 = vsel %vm15795_vm8, %v11593_v51, %v10115_v60  ;;  %v16497_v60 = vadd.f32 %v16407_v58, %v16383_v17 }
 0x6f9   : > { %v10119_v35 = vsel %vm15795_vm8, %v10117_v55, %v10118_v37  ;;  %v10180_v37 = vunpack.c.l.b16 %v10116_v21 }
 0x6fa   : > { %11615 = vmatmul.msk.bf16.gmra.mxu2 %vm8600_vm14, %v15966_v7  ;;  %v16472_v7 = vpop.f32.mrf.mxu3  ;;  %v10181_v0 = vunpack.c.l.b16 %v10119_v35 }
 0x6fc   : > { %v9706_v43 = vpop.f32.mrf.mxu0  ;;  %v16484_v55 = vpack.c.b16 %v10181_v0, %v10180_v37 }
 0x6fd   : > { %v8951_v61 = vpop.f32.mrf.mxu2  ;;  %v9786_v24 = vadd.f32 %v9706_v43, %v9623_v41  ;;  %v11824_v43 = vld [vmem:[#allocation3 + $0x7c] sm:$0xf] }
 0x6fe   : > { %v16470_v52 = vadd.f32 %v8951_v61, %v8843_v48  ;;  %v9874_v61 = vpop.f32.mrf.mxu1  ;;  %17399 = vst [vmem:[#allocation12_spill] sm:$0xff] %v16484_v55 }
 0x6ff   : > { %11552 = vmatmul.msk.bf16.gmra.mxu0 %vm8600_vm14, %v15957_v36  ;;  %v9949_v31 = vadd.f32 %v9869_v46, %v9786_v24  ;;  %v10122_v24 = vrot.slane %v11824_v43, 5 }
 0x700   : > { %11577 = vmatmul.msk.bf16.gmra.mxu1 %vm8600_vm14, %v17398_v22 }
 0x701   : > { %v10124_v62 = vrot.slane %v10122_v24, 4 }
 0x702   : > { %v16491_v35 = vpop.f32.mrf.mxu3 }
 0x704   : > { %v9708_v48 = vpop.f32.mrf.mxu0 }
 0x705   : > { %v8953_v41 = vpop.f32.mrf.mxu2  ;;  %v9787_v36 = vadd.f32 %v9708_v48, %v16176_v34  ;;  %v11594_v34 = vrot.slane %v9991_v6, 9 }
 0x706   : > { %v16487_v18 = vadd.f32 %v8953_v41, %v8845_v54  ;;  %v11825_v54 = vld [vmem:[#allocation3 + $0x80] sm:$0x1]  ;;  %v9876_v48 = vpop.f32.mrf.mxu1 }
 0x707   : > { %v9950_v46 = vadd.f32 %v9871_v20, %v9787_v36  ;;  %v10125_v51 = vrot.slane %v11825_v54, 5  ;;  %v17400_v36 = vld [vmem:[#allocation55_spill] sm:$0xff]  ;;  %v10123_v58 = vsel %vm15795_vm8, %v11594_v34, %v10122_v24 }
 0x708   : > { %11641 = vmatmul.msk.bf16.gmra.mxu3 %vm8600_vm14, %v16484_v55 }
 0x709   : > { %v10126_v20 = vsel %vm15795_vm8, %v10124_v62, %v10125_v51  ;;  %v10182_v62 = vunpack.c.l.b16 %v10123_v58 }
 0x70a   : > { %11616 = vmatmul.msk.bf16.gmra.mxu2 %vm8600_vm14, %v16015_v25  ;;  %v10183_v43 = vunpack.c.l.b16 %v10126_v20  ;;  %v16514_v6 = vpop.f32.mrf.mxu3  ;;  %v11827_v20 = vld [vmem:[#allocation3 + $0x8c] sm:$0x1] }
 0x70c   : > { %v9711_v21 = vpop.f32.mrf.mxu0  ;;  %v16516_v54 = vpack.c.b16 %v10183_v43, %v10182_v62 }
 0x70d   : > { %v9788_v0 = vadd.f32 %v9711_v21, %v16200_v40  ;;  %v10279_v37 = vpop.f32.mrf.mxu2  ;;  %v16512_v40 = vadd.f32 %v16423_v13, %v16395_v59  ;;  %v9992_v59 = vld [vmem:[#allocation3 + $0x84] sm:$0xe] }
 0x70e   : > { %v16502_v41 = vadd.f32 %v10279_v37, %v9949_v31  ;;  %17401 = vst [vmem:[#allocation15_spill] sm:$0xff] %v16516_v54  ;;  %v9879_v34 = vpop.f32.mrf.mxu1  ;;  %v16527_v37 = vadd.f32 %v16442_v63, %v16405_v14 }
 0x70f   : > { %11553 = vmatmul.msk.bf16.gmra.mxu0 %vm8600_vm14, %v16017_v29  ;;  %v9951_v17 = vadd.f32 %v9874_v61, %v9788_v0  ;;  %v11826_v61 = vld [vmem:[#allocation3 + $0x88] sm:$0xf] }
 0x710   : > { %11578 = vmatmul.msk.bf16.gmra.mxu1 %vm8600_vm14, %v17400_v36  ;;  %v10129_v0 = vrot.slane %v11826_v61, 5 }
 0x712   : > { %v10131_v13 = vrot.slane %v10129_v0, 4  ;;  %v16529_v43 = vpop.f32.mrf.mxu3 }
 0x714   : > { %v9713_v31 = vpop.f32.mrf.mxu0 }
 0x715   : > { %v9789_v29 = vadd.f32 %v9713_v31, %v16219_v33  ;;  %v10281_v51 = vpop.f32.mrf.mxu2  ;;  %v11595_v33 = vrot.slane %v9992_v59, 9 }
 0x716   : > { %v16519_v21 = vadd.f32 %v10281_v51, %v9950_v46  ;;  %v10132_v46 = vrot.slane %v11827_v20, 5  ;;  %v9881_v61 = vpop.f32.mrf.mxu1 }
 0x717   : > { %v9952_v24 = vadd.f32 %v9876_v48, %v9789_v29  ;;  %v10130_v63 = vsel %vm15795_vm8, %v11595_v33, %v10129_v0  ;;  %v9993_v33 = vld [vmem:[#allocation3 + $0x90] sm:$0xe] }
 0x718   : > { %11642 = vmatmul.msk.bf16.gmra.mxu3 %vm8600_vm14, %v16516_v54  ;;  %v10133_v48 = vsel %vm15795_vm8, %v10131_v13, %v10132_v46  ;;  %v10184_v59 = vunpack.c.l.b16 %v10130_v63 }
 0x719   : > { %v10185_v51 = vunpack.c.l.b16 %v10133_v48 }
 0x71a   : > { %11617 = vmatmul.msk.bf16.gmra.mxu2 %vm8600_vm14, %v16484_v55 }
 0x71c   : > { %v9716_v58 = vpop.f32.mrf.mxu0 }
 0x71d   : > { %v9790_v62 = vadd.f32 %v9716_v58, %v16235_v38  ;;  %v10284_v31 = vpop.f32.mrf.mxu2  ;;  %v16544_v38 = vadd.f32 %v16454_v49, %v16417_v45  ;;  %v11828_v58 = vld [vmem:[#allocation3 + $0x94] sm:$0xf]  ;;  %v16559_v49 = vadd.f32 %v16472_v7, %v16429_v28 }
 0x71e   : > { %v16534_v29 = vadd.f32 %v10284_v31, %v9951_v17  ;;  %v16546_v17 = vpack.c.b16 %v10185_v51, %v10184_v59  ;;  %v17403_v31 = vld [vmem:[#allocation50_spill] sm:$0xff] }
 0x71f   : > { %11554 = vmatmul.msk.bf16.gmra.mxu0 %vm8600_vm14, %v17398_v22  ;;  %v9953_v14 = vadd.f32 %v9879_v34, %v9790_v62  ;;  %v10136_v34 = vrot.slane %v11828_v58, 5  ;;  %v16551_v62 = vpop.f32.mrf.mxu3  ;;  %v10139_v48 = vrot.slane %v17403_v31, 5  ;;  %v16577_v58 = vadd.f32 %v16491_v35, %v16444_v23 }
 0x720   : > { %11579 = vmatmul.msk.bf16.gmra.mxu1 %vm8600_vm14, %v16158_v2  ;;  %17402 = vst [vmem:[#allocation59_spill] sm:$0xff] %v16546_v17 }
 0x721   : > { %v10138_v45 = vrot.slane %v10136_v34, 4 }
 0x724   : > { %v9718_v13 = vpop.f32.mrf.mxu0 }
 0x725   : > { %v9791_v20 = vadd.f32 %v9718_v13, %v16248_v5  ;;  %v10286_v22 = vpop.f32.mrf.mxu2  ;;  %v9884_v5 = vpop.f32.mrf.mxu1 }
 0x726   : > { %v16549_v46 = vadd.f32 %v10286_v22, %v9952_v24  ;;  %v11596_v24 = vrot.slane %v9993_v33, 9  ;;  %v16579_v33 = vld [vmem:[#allocation3 + $0xc4] sm:$0xf] }
 0x727   : > { %v9954_v0 = vadd.f32 %v9881_v61, %v9791_v20  ;;  %v10140_v61 = vsel %vm15795_vm8, %v10138_v45, %v10139_v48  ;;  %v16573_v20 = vpop.f32.mrf.mxu3  ;;  %v11829_v48 = vld [vmem:[#allocation3 + $0xa0] sm:$0xf]  ;;  %v9669_v23 = vshrl.u32 %v16579_v33, 16 }
 0x728   : > { %11643 = vmatmul.msk.bf16.gmra.mxu3 %vm8600_vm14, %v16546_v17  ;;  %v10137_v28 = vsel %vm15795_vm8, %v11596_v24, %v10136_v34  ;;  %v10187_v22 = vunpack.c.l.b16 %v10140_v61  ;;  %v9665_v61 = vshll.u32 %v16579_v33, 16 }
 0x72a   : > { %11618 = vmatmul.msk.bf16.gmra.mxu2 %vm8600_vm14, %v16516_v54  ;;  %v17404_v54 = vld [vmem:[#allocation57_spill] sm:$0xff] }
 0x72b   : > { %v10146_v55 = vrot.slane %v17404_v54, 5 }
 0x72c   : > { %v9721_v63 = vpop.f32.mrf.mxu0 }
 0x72d   : > { %v9792_v51 = vadd.f32 %v9721_v63, %v16264_v4  ;;  %v10289_v59 = vpop.f32.mrf.mxu2  ;;  %v9036_v4 = vld [vmem:[#allocation3 + $0xc0] sm:$0xf]  ;;  %v10143_v63 = vrot.slane %v11829_v48, 5  ;;  %v9886_v24 = vpop.f32.mrf.mxu1  ;;  %v9671_v48 = vrot.slane %v9669_v23, 4 }
 0x72e   : > { %v16565_v13 = vadd.f32 %v10289_v59, %v9953_v14  ;;  %v10186_v14 = vunpack.c.l.b16 %v10137_v28  ;;  %v9656_v34 = vshrl.u32 %v9036_v4, 16  ;;  %v9659_v59 = vshll.u32 %v9036_v4, 16  ;;  %v9994_v28 = vld [vmem:[#allocation3 + $0x9c] sm:$0xe] }
 0x72f   : > { %11555 = vmatmul.msk.bf16.gmra.mxu0 %vm8600_vm14, %v17400_v36  ;;  %v9955_v7 = vadd.f32 %v9884_v5, %v9792_v51  ;;  %v10430_v4 = vpop.f32.mrf.mxu3 }
 0x730   : > { %11580 = vmatmul.msk.bf16.gmra.mxu1 %vm8600_vm14, %v16202_v44  ;;  %v16581_v36 = vpack.c.b16 %v10187_v22, %v10186_v14  ;;  %v10145_v22 = vrot.slane %v10143_v63, 4  ;;  %v9658_v14 = vrot.slane %v9656_v34, 4  ;;  %v16600_v34 = vld [vmem:[#allocation3 + $0xc8] sm:$0x1] }
 0x734   : > { %v9723_v45 = vpop.f32.mrf.mxu0 }
 0x735   : > { %v9793_v31 = vadd.f32 %v9723_v45, %v16275_v53  ;;  %v10291_v5 = vpop.f32.mrf.mxu2  ;;  %v9661_v53 = vrot.slane %v9659_v59, 5  ;;  %v9667_v45 = vrot.slane %v9665_v61, 5  ;;  %v10147_v59 = vsel %vm15795_vm8, %v10145_v22, %v10146_v55 }
 0x736   : > { %v16584_v51 = vadd.f32 %v10291_v5, %v9954_v0  ;;  %v16594_v0 = vadd.f32 %v16514_v6, %v16456_v39  ;;  %v11597_v5 = vrot.slane %v9994_v28, 9  ;;  %v10189_v39 = vunpack.c.l.b16 %v10147_v59 }
 0x737   : > { %v9956_v35 = vadd.f32 %v9886_v24, %v9793_v31  ;;  %v9662_v23 = vor.u32 %v9661_v53, %v9658_v14  ;;  %v16615_v55 = vadd.f32 %v16529_v43, %v16470_v52  ;;  %v16617_v14 = vpop.f32.mrf.mxu3  ;;  %v9995_v43 = vld [vmem:[#allocation3 + $0xa8] sm:$0xe] }
 0x738   : > { %11644 = vmatmul.msk.bf16.gmra.mxu3 %vm8600_vm14, %v16581_v36 }
 0x739   : > { %v9663_v6 = vrot.slane %v9662_v23, 4  ;;  %v17405_v23 = vld [vmem:[#allocation60_spill] sm:$0xff] }
 0x73a   : > { %11619 = vmatmul.msk.bf16.gmra.mxu2 %vm8600_vm14, %v16546_v17  ;;  %v9672_v17 = vor.u32 %v9671_v48, %v9667_v45 }
 0x73c   : > { %v9726_v25 = vpop.f32.mrf.mxu0  ;;  %v9673_v54 = vrot.slane %v9672_v17, 4  ;;  %v9668_v17 = vsel %vm11997_vm11, %v9663_v6, %v9667_v45  ;;  %v10153_v45 = vrot.slane %v17405_v23, 5 }
 0x73d   : > { %v16598_v31 = vadd.f32 %v9726_v25, %v16291_v8  ;;  %v10294_v24 = vpop.f32.mrf.mxu2  ;;  %v10144_v25 = vsel %vm15795_vm8, %v11597_v5, %v10143_v63  ;;  %v9675_v8 = vshll.u32 %v16600_v34, 16  ;;  %v10150_v5 = vrot.slane %v16126_v12, 5 }
 0x73e   : > { %v16604_v61 = vadd.f32 %v10294_v24, %v9955_v7  ;;  %v10188_v7 = vunpack.c.l.b16 %v10144_v25  ;;  %v9679_v24 = vunpack.c.l.b16 %v9668_v17  ;;  %v11598_v12 = vrot.slane %v9995_v43, 9  ;;  %v17408_v17 = vld [vmem:[#allocation40_spill] sm:$0xff]  ;;  %v9996_v43 = vld [vmem:[#allocation3 + $0xb4] sm:$0xe] }
 0x73f   : > { %11556 = vmatmul.msk.bf16.gmra.mxu0 %vm8600_vm14, %v16158_v2  ;;  %v9677_v22 = vrot.slane %v9675_v8, 5 }
 0x740   : > { %11581 = vmatmul.msk.bf16.gmra.mxu1 %vm8600_vm14, %v16239_v47  ;;  %v16619_v2 = vpack.c.b16 %v10189_v39, %v10188_v7 }
 0x741   : > { %v9678_v52 = vsel %vm11997_vm11, %v9673_v54, %v9677_v22  ;;  %v10435_v54 = vpop.f32.mrf.mxu3 }
 0x742   : > { %v9680_v59 = vunpack.c.l.b16 %v9678_v52 }
 0x744   : > { %v9728_v28 = vpop.f32.mrf.mxu0  ;;  %v16643_v39 = vpack.c.b16 %v9680_v59, %v9679_v24  ;;  %v16669_v24 = vld [vmem:[#allocation3 + $0xd4] sm:$0x1]  ;;  %v16672_v59 = vadd.f32 %v10430_v4, %v16519_v21 }
 0x745   : > { %v16622_v53 = vadd.f32 %v9728_v28, %v16303_v1  ;;  %v10296_v63 = vpop.f32.mrf.mxu2  ;;  %v10152_v1 = vrot.slane %v10150_v5, 4  ;;  %17410 = vst [vmem:[#allocation20_spill] sm:$0xff] %v16669_v24 }
 0x746   : > { %v16624_v48 = vadd.f32 %v10296_v63, %v9956_v35  ;;  %v16637_v35 = vadd.f32 %v16551_v62, %v16487_v18  ;;  %v10151_v18 = vsel %vm15795_vm8, %v11598_v12, %v10150_v5 }
 0x747   : > { %v10154_v6 = vsel %vm15795_vm8, %v10152_v1, %v10153_v45  ;;  %v10190_v7 = vunpack.c.l.b16 %v10151_v18  ;;  %v11599_v45 = vrot.slane %v9996_v43, 9 }
 0x748   : > { %11645 = vmatmul.msk.bf16.gmra.mxu3 %vm8600_vm14, %v16619_v2  ;;  %v10191_v62 = vunpack.c.l.b16 %v10154_v6 }
 0x749   : > { %v10438_v52 = vpop.f32.mrf.mxu3 }
 0x74a   : > { %11620 = vmatmul.msk.bf16.gmra.mxu2 %vm8600_vm14, %v16581_v36  ;;  %v16657_v22 = vpack.c.b16 %v10191_v62, %v10190_v7  ;;  %v9838_v62 = vshll.u32 %v16669_v24, 16 }
 0x74c   : > { %v9731_v25 = vpop.f32.mrf.mxu0 }
 0x74d   : > { %v16641_v8 = vadd.f32 %v9731_v25, %v16319_v42  ;;  %v16655_v42 = vadd.f32 %v16573_v20, %v16502_v41  ;;  %v9039_v41 = vld [vmem:[#allocation3 + $0xcc] sm:$0xf]  ;;  %v16667_v20 = vld [vmem:[#allocation3 + $0xd0] sm:$0xf]  ;;  %v17411_v25 = vld [vmem:[#allocation4_spill] sm:$0xff] }
 0x74e   : > { %17409 = vst [vmem:[#allocation18_spill] sm:$0xff] %v16667_v20  ;;  %v9822_v1 = vshll.u32 %v9039_v41, 16  ;;  %v9828_v12 = vshll.u32 %v16667_v20, 16  ;;  %v9832_v23 = vshrl.u32 %v16667_v20, 16  ;;  %v10160_v6 = vrot.slane %v17411_v25, 5 }
 0x74f   : > { %17406 = vst [vmem:[#allocation17_spill] sm:$0xff] %v16641_v8  ;;  %11557 = vmatmul.msk.bf16.gmra.mxu0 %vm8600_vm14, %v16202_v44  ;;  %v10157_v44 = vrot.slane %v17408_v17, 5  ;;  %v9840_v20 = vrot.slane %v9838_v62, 5  ;;  %v10396_v62 = vrot.slane %v16579_v33, 5 }
 0x750   : > { %11582 = vmatmul.msk.bf16.gmra.mxu1 %vm8600_vm14, %v16643_v39  ;;  %v9824_v17 = vrot.slane %v9822_v1, 5  ;;  %v9834_v4 = vrot.slane %v9832_v23, 4 }
 0x751   : > { %v10159_v5 = vrot.slane %v10157_v44, 4  ;;  %v10158_v43 = vsel %vm15795_vm8, %v11599_v45, %v10157_v44  ;;  %v10440_v1 = vpop.f32.mrf.mxu3  ;;  %v10398_v26 = vrot.slane %v10396_v62, 4 }
 0x753   : > { %v10161_v21 = vsel %vm15795_vm8, %v10159_v5, %v10160_v6 }
 0x754   : > { %v9733_v28 = vpop.f32.mrf.mxu0  ;;  %v10193_v24 = vunpack.c.l.b16 %v10161_v21 }
 0x755   : > { %v16660_v63 = vadd.f32 %v9733_v28, %v16333_v19  ;;  %v9819_v19 = vshrl.u32 %v9039_v41, 16 }
 0x757   : > { %17407 = vst [vmem:[#allocation19_spill] sm:$0xff] %v16660_v63  ;;  %v9821_v28 = vrot.slane %v9819_v19, 4  ;;  %v9830_v63 = vrot.slane %v9828_v12, 5  ;;  %v16689_v19 = vadd.f32 %v16617_v14, %v16534_v29  ;;  %v10192_v12 = vunpack.c.l.b16 %v10158_v43  ;;  %v9997_v14 = vld [vmem:[#allocation3 + $0xc0] sm:$0xe] }
 0x758   : > { %11646 = vmatmul.msk.bf16.gmra.mxu3 %vm8600_vm14, %v16657_v22 }
 0x759   : > { %v9825_v41 = vor.u32 %v9824_v17, %v9821_v28  ;;  %v9835_v25 = vor.u32 %v9834_v4, %v9830_v63  ;;  %v16695_v44 = vpack.c.b16 %v10193_v24, %v10192_v12  ;;  %v10443_v24 = vpop.f32.mrf.mxu3 }
 0x75a   : > { %11621 = vmatmul.msk.bf16.gmra.mxu2 %vm8600_vm14, %v16619_v2 }
 0x75b   : > { %v9826_v8 = vrot.slane %v9825_v41, 4 }
 0x75c   : > { %v9736_v18 = vpop.f32.mrf.mxu0 }
 0x75d   : > { %v16679_v7 = vadd.f32 %v9736_v18, %v16349_v11  ;;  %v9836_v11 = vrot.slane %v9835_v25, 4  ;;  %v9831_v5 = vsel %vm11997_vm11, %v9826_v8, %v9830_v63  ;;  %v16707_v8 = vadd.f32 %v10435_v54, %v16549_v46 }
 0x75e   : > { %v9842_v6 = vunpack.c.l.b16 %v9831_v5  ;;  %v11624_v63 = vrot.slane %v9997_v14, 9  ;;  %v16720_v46 = vadd.f32 %v10438_v52, %v16565_v13  ;;  %v17413_v5 = vld [vmem:[#allocation13_spill] sm:$0xff] }
 0x75f   : > { %11558 = vmatmul.msk.bf16.gmra.mxu0 %vm8600_vm14, %v16239_v47  ;;  %v9841_v47 = vsel %vm11997_vm11, %v9836_v11, %v9840_v20 }
 0x760   : > { %v9843_v18 = vunpack.c.l.b16 %v9841_v47  ;;  %v10397_v17 = vsel %vm15795_vm8, %v11624_v63, %v10396_v62 }
 0x761   : > { %v10401_v54 = vunpack.c.l.b16 %v10397_v17  ;;  %v10445_v41 = vpop.f32.mrf.mxu3  ;;  %v17418_v17 = vld [vmem:[#allocation52_spill] sm:$0xff] }
 0x762   : > { %v9844_v29 = vpack.c.b16 %v9843_v18, %v9842_v6  ;;  %v16746_v11 = vadd.f32 %v10445_v41, %v16624_v48 }
 0x764   : > { %v9738_v23 = vpop.f32.mrf.mxu0  ;;  %11583 = vmatmul.msk.bf16.gmra.mxu1 %vm8600_vm14, %v9844_v29 }
 0x765   : > { %v16698_v45 = vadd.f32 %v9738_v23, %v16363_v15  ;;  %v10399_v15 = vrot.slane %v16600_v34, 5 }
 0x767   : > { %v10400_v28 = vsel %vm15795_vm8, %v10398_v26, %v10399_v15  ;;  %v17416_v26 = vld [vmem:[#allocation48_spill] sm:$0xff] }
 0x768   : > { %11647 = vmatmul.msk.bf16.gmra.mxu3 %vm8600_vm14, %v16695_v44  ;;  %v10402_v21 = vunpack.c.l.b16 %v10400_v28 }
 0x76a   : > { %11622 = vmatmul.msk.bf16.gmra.mxu2 %vm8600_vm14, %v16657_v22  ;;  %v16722_v4 = vpack.c.b16 %v10402_v21, %v10401_v54 }
 0x76c   : > { %v9741_v20 = vpop.f32.mrf.mxu0 }
 0x76d   : > { %v16711_v33 = vadd.f32 %v9741_v20, %v16377_v3  ;;  %v17417_v20 = vld [vmem:[#allocation53_spill] sm:$0xff] }
 0x76f   : > { %11559 = vmatmul.msk.bf16.gmra.mxu0 %vm8600_vm14, %v16643_v39  ;;  %v16732_v39 = vadd.f32 %v10440_v1, %v16584_v51  ;;  %v17412_v1 = vld [vmem:[#allocation42_spill] sm:$0xff] }
 0x774   : > { %v9743_v34 = vpop.f32.mrf.mxu0 }
 0x775   : > { %v16725_v3 = vadd.f32 %v9743_v34, %v16391_v16  ;;  %v16740_v16 = vadd.f32 %v10443_v24, %v16604_v61  ;;  %v17419_v34 = vld [vmem:[#allocation12_spill] sm:$0xff] }
 0x778   : > { %11648 = vmatmul.msk.bf16.gmra.mxu3 %vm8600_vm14, %v16722_v4 }
 0x77a   : > { %11623 = vmatmul.msk.bf16.gmra.mxu2 %vm8600_vm14, %v16695_v44 }
 0x77c   : > { %v9746_v43 = vpop.f32.mrf.mxu0 }
 0x77d   : > { %v16735_v13 = vadd.f32 %v9746_v43, %v16403_v10 }
 0x77f   : > { %11658 = vmatmul.msk.bf16.vlgmr.msrb.gmra.mxu0 %vm8600_vm14, %v16293_v57 }
 0x784   : > { %v9748_v52 = vpop.f32.mrf.mxu0 }
 0x785   : > { %v16743_v25 = vadd.f32 %v9748_v52, %v16415_v56  ;;  %v17414_v56 = vld [vmem:[#allocation21_spill] sm:$0xff] }
 0x78c   : > { %v9751_v12 = vpop.f32.mrf.mxu0 }
 0x78d   : > { %v16749_v51 = vadd.f32 %v9751_v12, %v16427_v30  ;;  %v17420_v12 = vld [vmem:[#allocation15_spill] sm:$0xff] }
 0x78f   : > { %11659 = vmatmul.msk.bf16.gmra.mxu0 %vm8600_vm14, %v16323_v9  ;;  %v17415_v9 = vld [vmem:[#allocation6_spill] sm:$0xff] }
 0x794   : > { %v9753_v10 = vpop.f32.mrf.mxu0 }
 0x795   : > { %v16754_v57 = vadd.f32 %v9753_v10, %v17412_v1  ;;  %v9889_v1 = vpop.f32.mrf.mxu1 }
 0x79c   : > { %v9756_v61 = vpop.f32.mrf.mxu0 }
 0x79d   : > { %v16757_v23 = vadd.f32 %v9756_v61, %v17413_v5  ;;  %v10299_v5 = vpop.f32.mrf.mxu2 }
 0x79f   : > { %11660 = vmatmul.msk.bf16.gmra.mxu0 %vm8600_vm14, %v17414_v56 }
 0x7a4   : > { %v9758_v48 = vpop.f32.mrf.mxu0 }
 0x7a5   : > { %v16762_v47 = vadd.f32 %v9758_v48, %v16464_v32 }
 0x7ac   : > { %v9761_v30 = vpop.f32.mrf.mxu0 }
 0x7ad   : > { %v16765_v6 = vadd.f32 %v9761_v30, %v16482_v27 }
 0x7af   : > { %11661 = vmatmul.msk.bf16.gmra.mxu0 %vm8600_vm14, %v17415_v9  ;;  %v10448_v9 = vpop.f32.mrf.mxu3 }
 0x7b4   : > { %v9763_v18 = vpop.f32.mrf.mxu0 }
 0x7b5   : > { %v16770_v62 = vadd.f32 %v9763_v18, %v16497_v60 }
 0x7bc   : > { %v9766_v29 = vpop.f32.mrf.mxu0 }
 0x7bd   : > { %v16773_v14 = vadd.f32 %v9766_v29, %v16512_v40 }
 0x7bf   : > { %11662 = vmatmul.msk.bf16.gmra.mxu0 %vm8600_vm14, %v17416_v26  ;;  %v9891_v26 = vpop.f32.mrf.mxu1 }
 0x7c4   : > { %v9768_v32 = vpop.f32.mrf.mxu0 }
 0x7c5   : > { %v16778_v63 = vadd.f32 %v9768_v32, %v16527_v37 }
 0x7cc   : > { %v9771_v27 = vpop.f32.mrf.mxu0 }
 0x7cd   : > { %v16781_v15 = vadd.f32 %v9771_v27, %v16544_v38  ;;  %v17421_v27 = vld [vmem:[#allocation59_spill] sm:$0xff] }
 0x7cf   : > { %11663 = vmatmul.msk.bf16.gmra.mxu0 %vm8600_vm14, %v17417_v20 }
 0x7d4   : > { %v9773_v60 = vpop.f32.mrf.mxu0 }
 0x7d5   : > { %v16786_v24 = vadd.f32 %v9773_v60, %v16559_v49 }
 0x7dc   : > { %v9776_v40 = vpop.f32.mrf.mxu0 }
 0x7dd   : > { %v16789_v28 = vadd.f32 %v9776_v40, %v16577_v58  ;;  %v16807_v58 = vld [vmem:[%s17018_s14] ss:$0 sm:$0xff] }
 0x7df   : > { %11664 = vmatmul.msk.bf16.gmra.mxu0 %vm8600_vm14, %v17418_v17 }
 0x7e4   : > { %v9778_v37 = vpop.f32.mrf.mxu0 }
 0x7e5   : > { %v16794_v21 = vadd.f32 %v9778_v37, %v16594_v0  ;;  %v10450_v37 = vpop.f32.mrf.mxu3 }
 0x7ec   : > { %v9781_v38 = vpop.f32.mrf.mxu0 }
 0x7ed   : > { %v16797_v54 = vadd.f32 %v9781_v38, %v16615_v55  ;;  %v16813_v55 = vld [vmem:[%s17019_s15] ss:$0 sm:$0xff] }
 0x7ef   : > { %11665 = vmatmul.msk.bf16.gmra.mxu0 %vm8600_vm14, %v17419_v34 }
 0x7f4   : > { %v9783_v49 = vpop.f32.mrf.mxu0 }
 0x7f5   : > { %v16802_v41 = vadd.f32 %v9783_v49, %v16637_v35 }
 0x7fc   : > { %v10577_v43 = vpop.f32.mrf.mxu0 }
 0x7fd   : > { %v10657_v0 = vadd.f32 %v10577_v43, %v16655_v42 }
 0x7ff   : > { %v10693_v52 = vmul.f32 %v16807_v58, %v10657_v0  ;;  %11666 = vmatmul.msk.bf16.gmra.mxu0 %vm8600_vm14, %v17420_v12 }
 0x801   : > { %v10729_v35 = vadd.f32 %v16813_v55, %v10693_v52 }
 0x803   : > { %v10761_v42 = vmax.f32 %v10729_v35, 0.0 }
 0x804   : > { %v10579_v10 = vpop.f32.mrf.mxu0 }
 0x805   : > { %10793 = vst.msk [vmem:[%s16823_s28] sm:$0xff] %vm7820_vm15, %v10761_v42  ;;  %v10658_v61 = vadd.f32 %v10579_v10, %v16672_v59  ;;  %v10301_v59 = vpop.f32.mrf.mxu2 }
 0x807   : > { %v10694_v56 = vmul.f32 %v16807_v58, %v10658_v61 }
 0x809   : > { %v10730_v48 = vadd.f32 %v16813_v55, %v10694_v56 }
 0x80b   : > { %v10762_v30 = vmax.f32 %v10730_v48, 0.0 }
 0x80c   : > { %v10582_v18 = vpop.f32.mrf.mxu0 }
 0x80d   : > { %10794 = vst.msk [vmem:[%s16823_s28 + $0x8] sm:$0xff] %vm7820_vm15, %v10762_v30  ;;  %v10659_v29 = vadd.f32 %v10582_v18, %v16689_v19  ;;  %v9894_v19 = vpop.f32.mrf.mxu1  ;;  %v10304_v49 = vpop.f32.mrf.mxu2 }
 0x80f   : > { %v10695_v32 = vmul.f32 %v16807_v58, %v10659_v29  ;;  %11667 = vmatmul.msk.bf16.gmra.mxu0 %vm8600_vm14, %v17421_v27 }
 0x811   : > { %v10731_v20 = vadd.f32 %v16813_v55, %v10695_v32 }
 0x813   : > { %v10763_v60 = vmax.f32 %v10731_v20, 0.0 }
 0x814   : > { %v10584_v40 = vpop.f32.mrf.mxu0 }
 0x815   : > { %10795 = vst.msk [vmem:[%s16823_s28 + $0x10] sm:$0xff] %vm7820_vm15, %v10763_v60  ;;  %v10660_v17 = vadd.f32 %v10584_v40, %v16707_v8  ;;  %v10453_v8 = vpop.f32.mrf.mxu3  ;;  %v9896_v42 = vpop.f32.mrf.mxu1 }
 0x816   : > { %v10306_v61 = vpop.f32.mrf.mxu2 }
 0x817   : > { %v10696_v38 = vmul.f32 %v16807_v58, %v10660_v17 }
 0x819   : > { %v10732_v34 = vadd.f32 %v16813_v55, %v10696_v38 }
 0x81b   : > { %v10764_v43 = vmax.f32 %v10732_v34, 0.0  ;;  %v9957_v34 = vadd.f32 %v9889_v1, %v16598_v31 }
 0x81c   : > { %v10587_v0 = vpop.f32.mrf.mxu0 }
 0x81d   : > { %10796 = vst.msk [vmem:[%s16823_s28 + $0x18] sm:$0xff] %vm7820_vm15, %v10764_v43  ;;  %v10661_v52 = vadd.f32 %v10587_v0, %v16720_v46  ;;  %v10455_v18 = vpop.f32.mrf.mxu3  ;;  %v10367_v0 = vadd.f32 %v10299_v5, %v9957_v34 }
 0x81e   : > { %v10309_v20 = vpop.f32.mrf.mxu2 }
 0x81f   : > { %v10697_v12 = vmul.f32 %v16807_v58, %v10661_v52  ;;  %11668 = vmatmul.msk.bf16.gmra.mxu0 %vm8600_vm14, %v16581_v36  ;;  %v9899_v36 = vpop.f32.mrf.mxu1 }
 0x821   : > { %v10733_v35 = vadd.f32 %v16813_v55, %v10697_v12 }
 0x823   : > { %v10765_v10 = vmax.f32 %v10733_v35, 0.0 }
 0x824   : > { %v10589_v56 = vpop.f32.mrf.mxu0 }
 0x825   : > { %10797 = vst.msk [vmem:[%s16823_s28 + $0x20] sm:$0xff] %vm7820_vm15, %v10765_v10  ;;  %v10662_v48 = vadd.f32 %v10589_v56, %v16732_v39  ;;  %v10458_v17 = vpop.f32.mrf.mxu3  ;;  %v10516_v10 = vadd.f32 %v10448_v9, %v10367_v0 }
 0x826   : > { %v10311_v12 = vpop.f32.mrf.mxu2 }
 0x827   : > { %v10698_v30 = vmul.f32 %v16807_v58, %v10662_v48  ;;  %v9958_v48 = vadd.f32 %v9891_v26, %v16622_v53 }
 0x829   : > { %v10734_v46 = vadd.f32 %v16813_v55, %v10698_v30  ;;  %v10368_v30 = vadd.f32 %v10301_v59, %v9958_v48 }
 0x82b   : > { %v10766_v29 = vmax.f32 %v10734_v46, 0.0  ;;  %v10517_v9 = vadd.f32 %v10450_v37, %v10368_v30 }
 0x82c   : > { %v10592_v32 = vpop.f32.mrf.mxu0 }
 0x82d   : > { %10798 = vst.msk [vmem:[%s16823_s28 + $0x28] sm:$0xff] %vm7820_vm15, %v10766_v29  ;;  %v10663_v27 = vadd.f32 %v10592_v32, %v16740_v16  ;;  %v9901_v16 = vpop.f32.mrf.mxu1  ;;  %v10460_v1 = vpop.f32.mrf.mxu3 }
 0x82e   : > { %v10314_v29 = vpop.f32.mrf.mxu2 }
 0x82f   : > { %v10699_v60 = vmul.f32 %v16807_v58, %v10663_v27  ;;  %11669 = vmatmul.msk.bf16.gmra.mxu0 %vm8600_vm14, %v16619_v2 }
 0x831   : > { %v10735_v39 = vadd.f32 %v16813_v55, %v10699_v60  ;;  %v17422_v60 = vld [vmem:[#allocation17_spill] sm:$0xff] }
 0x832   : > { %v9959_v53 = vadd.f32 %v9894_v19, %v17422_v60 }
 0x833   : > { %v10767_v40 = vmax.f32 %v10735_v39, 0.0 }
 0x834   : > { %v10594_v38 = vpop.f32.mrf.mxu0  ;;  %v10369_v39 = vadd.f32 %v10304_v49, %v9959_v53 }
 0x835   : > { %10799 = vst.msk [vmem:[%s16823_s28 + $0x30] sm:$0xff] %vm7820_vm15, %v10767_v40  ;;  %v10664_v43 = vadd.f32 %v10594_v38, %v16746_v11  ;;  %v9904_v5 = vpop.f32.mrf.mxu1  ;;  %v10463_v40 = vpop.f32.mrf.mxu3 }
 0x836   : > { %v10316_v0 = vpop.f32.mrf.mxu2 }
 0x837   : > { %v10700_v52 = vmul.f32 %v16807_v58, %v10664_v43  ;;  %v10518_v43 = vadd.f32 %v10453_v8, %v10369_v39  ;;  %v9962_v39 = vadd.f32 %v9901_v16, %v16698_v45 }
 0x839   : > { %v10736_v35 = vadd.f32 %v16813_v55, %v10700_v52 }
 0x83b   : > { %v10768_v2 = vmax.f32 %v10736_v35, 0.0  ;;  %v17423_v35 = vld [vmem:[#allocation19_spill] sm:$0xff] }
 0x83c   : > { %v10597_v56 = vpop.f32.mrf.mxu0  ;;  %v9960_v37 = vadd.f32 %v9896_v42, %v17423_v35 }
 0x83d   : > { %10800 = vst.msk [vmem:[%s16823_s28 + $0x38] sm:$0xff] %vm7820_vm15, %v10768_v2  ;;  %v10665_v31 = vadd.f32 %v10597_v56, %v10516_v10  ;;  %v10465_v56 = vpop.f32.mrf.mxu3 }
 0x83e   : > { %v10370_v2 = vadd.f32 %v10306_v61, %v9960_v37 }
 0x83f   : > { %v10701_v11 = vmul.f32 %v16807_v58, %v10665_v31  ;;  %11670 = vmatmul.msk.bf16.gmra.mxu0 %vm8600_vm14, %v16657_v22  ;;  %v9906_v22 = vpop.f32.mrf.mxu1 }
 0x840   : > { %v10519_v31 = vadd.f32 %v10455_v18, %v10370_v2 }
 0x841   : > { %v10737_v46 = vadd.f32 %v16813_v55, %v10701_v11  ;;  %v9961_v11 = vadd.f32 %v9899_v36, %v16679_v7  ;;  %v9998_v36 = vld [vmem:[#allocation3 + $0xcc] sm:$0xe] }
 0x843   : > { %v10769_v32 = vmax.f32 %v10737_v46, 0.0  ;;  %v10319_v46 = vpop.f32.mrf.mxu2  ;;  %v10371_v61 = vadd.f32 %v10309_v20, %v9961_v11 }
 0x844   : > { %v10599_v27 = vpop.f32.mrf.mxu0 }
 0x845   : > { %10801 = vst.msk [vmem:[%s16823_s28 + $0x40] sm:$0xff] %vm7820_vm15, %v10769_v32  ;;  %v10666_v26 = vadd.f32 %v10599_v27, %v10517_v9  ;;  %v10520_v27 = vadd.f32 %v10458_v17, %v10371_v61  ;;  %v10468_v60 = vpop.f32.mrf.mxu3  ;;  %v11649_v17 = vrot.slane %v9998_v36, 9 }
 0x847   : > { %v10702_v59 = vmul.f32 %v16807_v58, %v10666_v26  ;;  %v9909_v30 = vpop.f32.mrf.mxu1  ;;  %v17424_v26 = vld [vmem:[#allocation18_spill] sm:$0xff] }
 0x848   : > { %v10545_v18 = vrot.slane %v17424_v26, 5 }
 0x849   : > { %v10738_v38 = vadd.f32 %v16813_v55, %v10702_v59 }
 0x84a   : > { %v10546_v2 = vsel %vm15795_vm8, %v11649_v17, %v10545_v18 }
 0x84b   : > { %v10770_v34 = vmax.f32 %v10738_v38, 0.0  ;;  %v10372_v38 = vadd.f32 %v10311_v12, %v9962_v39 }
 0x84c   : > { %v10602_v52 = vpop.f32.mrf.mxu0 }
 0x84d   : > { %10802 = vst.msk [vmem:[%s16823_s28 + $0x48] sm:$0xff] %vm7820_vm15, %v10770_v34  ;;  %v10667_v19 = vadd.f32 %v10602_v52, %v10518_v43  ;;  %v10321_v34 = vpop.f32.mrf.mxu2  ;;  %v10547_v43 = vrot.slane %v10545_v18, 4  ;;  %v17425_v52 = vld [vmem:[#allocation20_spill] sm:$0xff]  ;;  %v10521_v16 = vadd.f32 %v10460_v1, %v10372_v38  ;;  %v9965_v38 = vadd.f32 %v9909_v30, %v16735_v13 }
 0x84e   : > { %v10548_v35 = vrot.slane %v17425_v52, 5 }
 0x84f   : > { %v10703_v10 = vmul.f32 %v16807_v58, %v10667_v19  ;;  %11671 = vmatmul.msk.bf16.gmra.mxu0 %vm8600_vm14, %v16695_v44  ;;  %v9911_v59 = vpop.f32.mrf.mxu1 }
 0x850   : > { %v10549_v12 = vsel %vm15795_vm8, %v10547_v43, %v10548_v35 }
 0x851   : > { %v10739_v49 = vadd.f32 %v16813_v55, %v10703_v10  ;;  %v9963_v10 = vadd.f32 %v9904_v5, %v16711_v33  ;;  %v10551_v11 = vunpack.c.l.b16 %v10549_v12  ;;  %v9964_v33 = vadd.f32 %v9906_v22, %v16725_v3 }
 0x852   : > { %v10375_v22 = vadd.f32 %v10319_v46, %v9965_v38 }
 0x853   : > { %v10771_v48 = vmax.f32 %v10739_v49, 0.0  ;;  %v10470_v49 = vpop.f32.mrf.mxu3 }
 0x854   : > { %v10604_v8 = vpop.f32.mrf.mxu0  ;;  %v10524_v52 = vadd.f32 %v10468_v60, %v10375_v22 }
 0x855   : > { %10803 = vst.msk [vmem:[%s16823_s28 + $0x50] sm:$0xff] %vm7820_vm15, %v10771_v48  ;;  %v10668_v42 = vadd.f32 %v10604_v8, %v10519_v31  ;;  %v10373_v48 = vadd.f32 %v10314_v29, %v9963_v10  ;;  %v10550_v8 = vunpack.c.l.b16 %v10546_v2  ;;  %v10324_v61 = vpop.f32.mrf.mxu2 }
 0x857   : > { %v10704_v32 = vmul.f32 %v16807_v58, %v10668_v42  ;;  %v9914_v1 = vpop.f32.mrf.mxu1  ;;  %v10552_v50 = vpack.c.b16 %v10551_v11, %v10550_v8 }
 0x858   : > { %v9967_v60 = vadd.f32 %v9914_v1, %v16749_v51 }
 0x859   : > { %v10740_v9 = vadd.f32 %v16813_v55, %v10704_v32 }
 0x85b   : > { %v10772_v44 = vmax.f32 %v10740_v9, 0.0  ;;  %v10522_v9 = vadd.f32 %v10463_v40, %v10373_v48 }
 0x85c   : > { %v10607_v53 = vpop.f32.mrf.mxu0 }
 0x85d   : > { %10804 = vst.msk [vmem:[%s16823_s28 + $0x58] sm:$0xff] %vm7820_vm15, %v10772_v44  ;;  %v10669_v7 = vadd.f32 %v10607_v53, %v10520_v27  ;;  %v10374_v27 = vadd.f32 %v10316_v0, %v9964_v33  ;;  %v10473_v53 = vpop.f32.mrf.mxu3 }
 0x85f   : > { %v10705_v20 = vmul.f32 %v16807_v58, %v10669_v7  ;;  %11672 = vmatmul.msk.bf16.gmra.mxu0 %vm8600_vm14, %v16722_v4  ;;  %v9916_v18 = vpop.f32.mrf.mxu1  ;;  %v10523_v40 = vadd.f32 %v10465_v56, %v10374_v27  ;;  %v10326_v7 = vpop.f32.mrf.mxu2  ;;  %v9966_v56 = vadd.f32 %v9911_v59, %v16743_v25  ;;  %v10377_v59 = vadd.f32 %v10324_v61, %v9967_v60 }
 0x861   : > { %v10741_v37 = vadd.f32 %v16813_v55, %v10705_v20  ;;  %v10376_v30 = vadd.f32 %v10321_v34, %v9966_v56  ;;  %v10526_v11 = vadd.f32 %v10473_v53, %v10377_v59 }
 0x863   : > { %v10773_v45 = vmax.f32 %v10741_v37, 0.0  ;;  %v10525_v2 = vadd.f32 %v10470_v49, %v10376_v30  ;;  %v9968_v49 = vadd.f32 %v9916_v18, %v16754_v57 }
 0x864   : > { %v10609_v19 = vpop.f32.mrf.mxu0 }
 0x865   : > { %10805 = vst.msk [vmem:[%s16823_s28 + $0x60] sm:$0xff] %vm7820_vm15, %v10773_v45  ;;  %v10670_v4 = vadd.f32 %v10609_v19, %v10521_v16  ;;  %v10475_v17 = vpop.f32.mrf.mxu3  ;;  %v10378_v1 = vadd.f32 %v10326_v7, %v9968_v49 }
 0x867   : > { %v10706_v31 = vmul.f32 %v16807_v58, %v10670_v4  ;;  %v9919_v37 = vpop.f32.mrf.mxu1  ;;  %v10329_v13 = vpop.f32.mrf.mxu2 }
 0x869   : > { %v10742_v42 = vadd.f32 %v16813_v55, %v10706_v31 }
 0x86b   : > { %v10774_v32 = vmax.f32 %v10742_v42, 0.0 }
 0x86c   : > { %v10612_v44 = vpop.f32.mrf.mxu0 }
 0x86d   : > { %10806 = vst.msk [vmem:[%s16823_s28 + $0x68] sm:$0xff] %vm7820_vm15, %v10774_v32  ;;  %v10671_v5 = vadd.f32 %v10612_v44, %v10522_v9  ;;  %v10478_v12 = vpop.f32.mrf.mxu3 }
 0x86f   : > { %v10707_v29 = vmul.f32 %v16807_v58, %v10671_v5  ;;  %11673 = vmatmul.msk.bf16.gmra.mxu0 %vm8600_vm14, %v10552_v50  ;;  %v9921_v25 = vpop.f32.mrf.mxu1  ;;  %v10331_v31 = vpop.f32.mrf.mxu2  ;;  %v10527_v5 = vadd.f32 %v10475_v17, %v10378_v1 }
 0x870   : > { %v9970_v22 = vadd.f32 %v9921_v25, %v16762_v47 }
 0x871   : > { %v10743_v26 = vadd.f32 %v16813_v55, %v10707_v29  ;;  %v9969_v29 = vadd.f32 %v9919_v37, %v16757_v23 }
 0x873   : > { %v10775_v39 = vmax.f32 %v10743_v26, 0.0  ;;  %v10379_v53 = vadd.f32 %v10329_v13, %v9969_v29 }
 0x874   : > { %v10614_v36 = vpop.f32.mrf.mxu0 }
 0x875   : > { %10807 = vst.msk [vmem:[%s16823_s28 + $0x70] sm:$0xff] %vm7820_vm15, %v10775_v39  ;;  %v10672_v3 = vadd.f32 %v10614_v36, %v10523_v40  ;;  %v10480_v51 = vpop.f32.mrf.mxu3  ;;  %v10528_v36 = vadd.f32 %v10478_v12, %v10379_v53 }
 0x877   : > { %v10708_v0 = vmul.f32 %v16807_v58, %v10672_v3  ;;  %v9924_v50 = vpop.f32.mrf.mxu1  ;;  %v10334_v44 = vpop.f32.mrf.mxu2 }
 0x879   : > { %v10744_v20 = vadd.f32 %v16813_v55, %v10708_v0  ;;  %v10380_v0 = vadd.f32 %v10331_v31, %v9970_v22 }
 0x87b   : > { %v10776_v43 = vmax.f32 %v10744_v20, 0.0 }
 0x87c   : > { %v10617_v35 = vpop.f32.mrf.mxu0 }
 0x87d   : > { %10808 = vst.msk [vmem:[%s16823_s28 + $0x78] sm:$0xff] %vm7820_vm15, %v10776_v43  ;;  %v10673_v45 = vadd.f32 %v10617_v35, %v10524_v52  ;;  %v10483_v18 = vpop.f32.mrf.mxu3  ;;  %v10529_v35 = vadd.f32 %v10480_v51, %v10380_v0 }
 0x87f   : > { %v10709_v16 = vmul.f32 %v16807_v58, %v10673_v45  ;;  %v9926_v40 = vpop.f32.mrf.mxu1  ;;  %v10336_v38 = vpop.f32.mrf.mxu2  ;;  %v9971_v45 = vadd.f32 %v9924_v50, %v16765_v6 }
 0x880   : > { %v9972_v60 = vadd.f32 %v9926_v40, %v16770_v62 }
 0x881   : > { %v10745_v46 = vadd.f32 %v16813_v55, %v10709_v16  ;;  %v10381_v30 = vadd.f32 %v10334_v44, %v9971_v45 }
 0x882   : > { %v10382_v25 = vadd.f32 %v10336_v38, %v9972_v60 }
 0x883   : > { %v10777_v19 = vmax.f32 %v10745_v46, 0.0 }
 0x884   : > { %v10619_v10 = vpop.f32.mrf.mxu0 }
 0x885   : > { %10809 = vst.msk [vmem:[%s16823_s28 + $0x80] sm:$0xff] %vm7820_vm15, %v10777_v19  ;;  %v10674_v4 = vadd.f32 %v10619_v10, %v10525_v2  ;;  %v10485_v43 = vpop.f32.mrf.mxu3  ;;  %v10530_v2 = vadd.f32 %v10483_v18, %v10381_v30 }
 0x887   : > { %v10710_v48 = vmul.f32 %v16807_v58, %v10674_v4  ;;  %v9929_v56 = vpop.f32.mrf.mxu1  ;;  %v10339_v47 = vpop.f32.mrf.mxu2 }
 0x889   : > { %v10746_v34 = vadd.f32 %v16813_v55, %v10710_v48 }
 0x88b   : > { %v10778_v8 = vmax.f32 %v10746_v34, 0.0 }
 0x88c   : > { %v10622_v42 = vpop.f32.mrf.mxu0 }
 0x88d   : > { %10810 = vst.msk [vmem:[%s16823_s28 + $0x88] sm:$0xff] %vm7820_vm15, %v10778_v8  ;;  %v10675_v32 = vadd.f32 %v10622_v42, %v10526_v11  ;;  %v10488_v12 = vpop.f32.mrf.mxu3  ;;  %v10531_v8 = vadd.f32 %v10485_v43, %v10382_v25  ;;  %v9973_v42 = vadd.f32 %v9929_v56, %v16773_v14 }
 0x88f   : > { %v10711_v9 = vmul.f32 %v16807_v58, %v10675_v32  ;;  %v9931_v6 = vpop.f32.mrf.mxu1  ;;  %v10341_v48 = vpop.f32.mrf.mxu2  ;;  %v10383_v32 = vadd.f32 %v10339_v47, %v9973_v42 }
 0x891   : > { %v10747_v61 = vadd.f32 %v16813_v55, %v10711_v9  ;;  %v10532_v44 = vadd.f32 %v10488_v12, %v10383_v32 }
 0x893   : > { %v10779_v33 = vmax.f32 %v10747_v61, 0.0 }
 0x894   : > { %v10624_v27 = vpop.f32.mrf.mxu0 }
 0x895   : > { %10811 = vst.msk [vmem:[%s16823_s28 + $0x90] sm:$0xff] %vm7820_vm15, %v10779_v33  ;;  %v10676_v57 = vadd.f32 %v10624_v27, %v10527_v5  ;;  %v10490_v62 = vpop.f32.mrf.mxu3  ;;  %v9974_v5 = vadd.f32 %v9931_v6, %v16778_v63 }
 0x897   : > { %v10712_v26 = vmul.f32 %v16807_v58, %v10676_v57  ;;  %v9934_v1 = vpop.f32.mrf.mxu1  ;;  %v10344_v50 = vpop.f32.mrf.mxu2  ;;  %v10384_v27 = vadd.f32 %v10341_v48, %v9974_v5 }
 0x899   : > { %v10748_v39 = vadd.f32 %v16813_v55, %v10712_v26 }
 0x89b   : > { %v10780_v7 = vmax.f32 %v10748_v39, 0.0  ;;  %v10533_v39 = vadd.f32 %v10490_v62, %v10384_v27 }
 0x89c   : > { %v10627_v3 = vpop.f32.mrf.mxu0 }
 0x89d   : > { %10812 = vst.msk [vmem:[%s16823_s28 + $0x98] sm:$0xff] %vm7820_vm15, %v10780_v7  ;;  %v10677_v23 = vadd.f32 %v10627_v3, %v10528_v36  ;;  %v10493_v57 = vpop.f32.mrf.mxu3  ;;  %v9975_v36 = vadd.f32 %v9934_v1, %v16781_v15 }
 0x89f   : > { %v10713_v20 = vmul.f32 %v16807_v58, %v10677_v23  ;;  %v9936_v26 = vpop.f32.mrf.mxu1  ;;  %v10346_v40 = vpop.f32.mrf.mxu2  ;;  %v10385_v38 = vadd.f32 %v10344_v50, %v9975_v36 }
 0x8a0   : > { %v9976_v43 = vadd.f32 %v9936_v26, %v16786_v24 }
 0x8a1   : > { %v10749_v17 = vadd.f32 %v16813_v55, %v10713_v20  ;;  %v10534_v20 = vadd.f32 %v10493_v57, %v10385_v38 }
 0x8a3   : > { %v10781_v52 = vmax.f32 %v10749_v17, 0.0 }
 0x8a4   : > { %v10629_v37 = vpop.f32.mrf.mxu0 }
 0x8a5   : > { %10813 = vst.msk [vmem:[%s16823_s28 + $0xa0] sm:$0xff] %vm7820_vm15, %v10781_v52  ;;  %v10678_v13 = vadd.f32 %v10629_v37, %v10529_v35  ;;  %v10495_v23 = vpop.f32.mrf.mxu3  ;;  %v10386_v37 = vadd.f32 %v10346_v40, %v9976_v43 }
 0x8a7   : > { %v10714_v16 = vmul.f32 %v16807_v58, %v10678_v13  ;;  %v9939_v35 = vpop.f32.mrf.mxu1  ;;  %v10349_v15 = vpop.f32.mrf.mxu2  ;;  %v10535_v47 = vadd.f32 %v10495_v23, %v10386_v37 }
 0x8a9   : > { %v10750_v46 = vadd.f32 %v16813_v55, %v10714_v16 }
 0x8ab   : > { %v10782_v19 = vmax.f32 %v10750_v46, 0.0  ;;  %v9977_v46 = vadd.f32 %v9939_v35, %v16789_v28 }
 0x8ac   : > { %v10632_v10 = vpop.f32.mrf.mxu0 }
 0x8ad   : > { %10814 = vst.msk [vmem:[%s16823_s28 + $0xa8] sm:$0xff] %vm7820_vm15, %v10782_v19  ;;  %v10679_v4 = vadd.f32 %v10632_v10, %v10530_v2  ;;  %v10498_v30 = vpop.f32.mrf.mxu3  ;;  %v10387_v19 = vadd.f32 %v10349_v15, %v9977_v46 }
 0x8af   : > { %v10715_v59 = vmul.f32 %v16807_v58, %v10679_v4  ;;  %v9941_v12 = vpop.f32.mrf.mxu1  ;;  %v10351_v10 = vpop.f32.mrf.mxu2  ;;  %v10536_v6 = vadd.f32 %v10498_v30, %v10387_v19 }
 0x8b1   : > { %v10751_v31 = vadd.f32 %v16813_v55, %v10715_v59  ;;  %v9978_v59 = vadd.f32 %v9941_v12, %v16794_v21 }
 0x8b3   : > { %v10783_v34 = vmax.f32 %v10751_v31, 0.0  ;;  %v10388_v31 = vadd.f32 %v10351_v10, %v9978_v59 }
 0x8b4   : > { %v10634_v11 = vpop.f32.mrf.mxu0 }
 0x8b5   : > { %10815 = vst.msk [vmem:[%s16823_s28 + $0xb0] sm:$0xff] %vm7820_vm15, %v10783_v34  ;;  %v10680_v49 = vadd.f32 %v10634_v11, %v10531_v8  ;;  %v10500_v28 = vpop.f32.mrf.mxu3 }
 0x8b6   : > { %v10537_v62 = vadd.f32 %v10500_v28, %v10388_v31 }
 0x8b7   : > { %v10716_v51 = vmul.f32 %v16807_v58, %v10680_v49  ;;  %v9944_v8 = vpop.f32.mrf.mxu1  ;;  %v10354_v42 = vpop.f32.mrf.mxu2 }
 0x8b9   : > { %v10752_v9 = vadd.f32 %v16813_v55, %v10716_v51  ;;  %v9979_v51 = vadd.f32 %v9944_v8, %v16797_v54 }
 0x8bb   : > { %v10784_v61 = vmax.f32 %v10752_v9, 0.0  ;;  %v10389_v1 = vadd.f32 %v10354_v42, %v9979_v51 }
 0x8bc   : > { %v10637_v33 = vpop.f32.mrf.mxu0 }
 0x8bd   : > { %10816 = vst.msk [vmem:[%s16823_s28 + $0xb8] sm:$0xff] %vm7820_vm15, %v10784_v61  ;;  %v10681_v14 = vadd.f32 %v10637_v33, %v10532_v44  ;;  %v10503_v50 = vpop.f32.mrf.mxu3 }
 0x8be   : > { %v10538_v5 = vadd.f32 %v10503_v50, %v10389_v1 }
 0x8bf   : > { %v10717_v29 = vmul.f32 %v16807_v58, %v10681_v14  ;;  %v9946_v44 = vpop.f32.mrf.mxu1  ;;  %v10356_v14 = vpop.f32.mrf.mxu2 }
 0x8c1   : > { %v10753_v53 = vadd.f32 %v16813_v55, %v10717_v29  ;;  %v9980_v29 = vadd.f32 %v9946_v44, %v16802_v41 }
 0x8c3   : > { %v10785_v18 = vmax.f32 %v10753_v53, 0.0  ;;  %v10390_v57 = vadd.f32 %v10356_v14, %v9980_v29 }
 0x8c4   : > { %v10639_v7 = vpop.f32.mrf.mxu0 }
 0x8c5   : > { %10817 = vst.msk [vmem:[%s16823_s28 + $0xc0] sm:$0xff] %vm7820_vm15, %v10785_v18  ;;  %v10682_v63 = vadd.f32 %v10639_v7, %v10533_v39  ;;  %v10505_v18 = vpop.f32.mrf.mxu3 }
 0x8c6   : > { %v10539_v40 = vadd.f32 %v10505_v18, %v10390_v57 }
 0x8c7   : > { %v10718_v3 = vmul.f32 %v16807_v58, %v10682_v63 }
 0x8c9   : > { %v10754_v22 = vadd.f32 %v16813_v55, %v10718_v3 }
 0x8cb   : > { %v10786_v0 = vmax.f32 %v10754_v22, 0.0 }
 0x8cc   : > { %v10642_v17 = vpop.f32.mrf.mxu0 }
 0x8cd   : > { %10818 = vst.msk [vmem:[%s16823_s28 + $0xc8] sm:$0xff] %vm7820_vm15, %v10786_v0  ;;  %v10683_v52 = vadd.f32 %v10642_v17, %v10534_v20 }
 0x8cf   : > { %v10719_v56 = vmul.f32 %v16807_v58, %v10683_v52 }
 0x8d1   : > { %v10755_v45 = vadd.f32 %v16813_v55, %v10719_v56 }
 0x8d3   : > { %v10787_v13 = vmax.f32 %v10755_v45, 0.0 }
 0x8d4   : > { %v10644_v16 = vpop.f32.mrf.mxu0 }
 0x8d5   : > { %10819 = vst.msk [vmem:[%s16823_s28 + $0xd0] sm:$0xff] %vm7820_vm15, %v10787_v13  ;;  %v10684_v24 = vadd.f32 %v10644_v16, %v10535_v47 }
 0x8d7   : > { %v10720_v2 = vmul.f32 %v16807_v58, %v10684_v24 }
 0x8d9   : > { %v10756_v60 = vadd.f32 %v16813_v55, %v10720_v2 }
 0x8db   : > { %v10788_v4 = vmax.f32 %v10756_v60, 0.0 }
 0x8dc   : > { %v10647_v25 = vpop.f32.mrf.mxu0 }
 0x8dd   : > { %10820 = vst.msk [vmem:[%s16823_s28 + $0xd8] sm:$0xff] %vm7820_vm15, %v10788_v4  ;;  %v10685_v48 = vadd.f32 %v10647_v25, %v10536_v6 }
 0x8df   : > { %v10721_v34 = vmul.f32 %v16807_v58, %v10685_v48 }
 0x8e1   : > { %v10757_v11 = vadd.f32 %v16813_v55, %v10721_v34 }
 0x8e3   : > { %v10789_v49 = vmax.f32 %v10757_v11, 0.0 }
 0x8e4   : > { %v10649_v32 = vpop.f32.mrf.mxu0 }
 0x8e5   : > { %10821 = vst.msk [vmem:[%s16823_s28 + $0xe0] sm:$0xff] %vm7820_vm15, %v10789_v49  ;;  %v10686_v21 = vadd.f32 %v10649_v32, %v10537_v62 }
 0x8e7   : > { %v10722_v9 = vmul.f32 %v16807_v58, %v10686_v21 }
 0x8e9   : > { %v10758_v61 = vadd.f32 %v16813_v55, %v10722_v9 }
 0x8eb   : > { %v10790_v33 = vmax.f32 %v10758_v61, 0.0 }
 0x8ec   : > { %v10652_v27 = vpop.f32.mrf.mxu0 }
 0x8ed   : > { %10822 = vst.msk [vmem:[%s16823_s28 + $0xe8] sm:$0xff] %vm7820_vm15, %v10790_v33  ;;  %v10687_v54 = vadd.f32 %v10652_v27, %v10538_v5 }
 0x8ef   : > { %v10723_v53 = vmul.f32 %v16807_v58, %v10687_v54 }
 0x8f1   : > { %v10759_v26 = vadd.f32 %v16813_v55, %v10723_v53 }
 0x8f3   : > { %v10791_v39 = vmax.f32 %v10759_v26, 0.0 }
 0x8f4   : > { %v10654_v7 = vpop.f32.mrf.mxu0 }
 0x8f5   : > { %10823 = vst.msk [vmem:[%s16823_s28 + $0xf0] sm:$0xff] %vm7820_vm15, %v10791_v39  ;;  %v10688_v36 = vadd.f32 %v10654_v7, %v10539_v40 }
 0x8f7   : > { %v10724_v63 = vmul.f32 %v16807_v58, %v10688_v36 }
 0x8f9   : > { %v10760_v38 = vadd.f32 %v16813_v55, %v10724_v63 }
 0x8fb   : > { %v10792_v41 = vmax.f32 %v10760_v38, 0.0 }
 0x8fd   : > { %10824 = vst.msk [vmem:[%s16823_s28 + $0xf8] sm:$0xff] %vm7820_vm15, %v10792_v41 }
 0x8fe PF: > { %s26_s21 = sadd.s32 1, %s11836_s21  }
 0x8ff   : > { %p23_p4 = scmp.ge.s32.totalorder %s26_s21, 4  }
 0x901   :  { %25 = sbr.rel (!%p23_p4) target bundleno = 2 (0x2), region = 119 }

</bundles_post_ra>
